<compile_context>
chip_gen: v6e
topology: v6e:2x2x1
jax: 0.10.0
libtpu: 0.0.40
codegen_flags: <defaults>
</compile_context>

<pallas_src>
import functools
import math

import jax
import jax.numpy as jnp
from jax.experimental import pallas as pl
from jax.experimental.pallas import tpu as pltpu

LN_EPS = 1e-5       # torch.nn.LayerNorm default eps
GEO_CLAMP = 1e-6    # clamp before log in box_attention
POS_CLAMP = 1e-3    # clamp on |delta| / size in BoxRelationalEmbedding
WAVE_LEN = 1000.0
DIM_G = 64          # trignometric_embedding=True
N_FREQ = DIM_G // 8  # 8 frequencies per geometric component (dx, dy, dw, dh)


# -----------------------------------------------------------------------------
# Kernel 1: relative-geometry attention bias
#   pos : (B, 4, N, N)  precomputed [dx, dy, dw, dh] log-ratio maps
#   wg  : (h, 64) SMEM  stacked WG weights (one 64->1 Linear per head)
#   wgb : (h,)    SMEM  WG biases
#   out : (B, h, N, N)  log(max(relu(WG(trig_embed(pos))), 1e-6))
# -----------------------------------------------------------------------------
def _geo_bias_kernel(pos_ref, wg_ref, wgb_ref, out_ref, *, num_heads):
    rows, cols = pos_ref.shape[-2], pos_ref.shape[-1]
    dim_mat = [1.0 / (WAVE_LEN ** (f / float(N_FREQ))) for f in range(N_FREQ)]

    accs = [jnp.zeros((rows, cols), jnp.float32) for _ in range(num_heads)]
    for c in range(4):                       # dx, dy, dw, dh
        base = pos_ref[0, c] * 100.0         # (N, N)
        for f in range(N_FREQ):
            ang = base * dim_mat[f]
            s = jnp.sin(ang)                 # shared across heads (EUP)
            co = jnp.cos(ang)
            col = c * N_FREQ + f
            for head in range(num_heads):    # scalar weights from SMEM
                accs[head] = (accs[head]
                              + s * wg_ref[head, col]
                              + co * wg_ref[head, DIM_G // 2 + col])

    for head in range(num_heads):
        g = accs[head] + wgb_ref[head]
        # relu -> clamp(min=1e-6) -> log  ==  log(max(g, 1e-6))
        out_ref[0, head] = jnp.log(jnp.maximum(g, GEO_CLAMP))


def geo_bias(pos, wg_w, wg_b, num_heads):
    b, _, n, _ = pos.shape
    kernel = functools.partial(_geo_bias_kernel, num_heads=num_heads)
    return pl.pallas_call(
        kernel,
        grid=(b,),
        in_specs=[
            pl.BlockSpec((1, 4, n, n), lambda i: (i, 0, 0, 0)),
            pl.BlockSpec(memory_space=pltpu.MemorySpace.SMEM),
            pl.BlockSpec(memory_space=pltpu.MemorySpace.SMEM),
        ],
        out_specs=pl.BlockSpec((1, num_heads, n, n), lambda i: (i, 0, 0, 0)),
        out_shape=jax.ShapeDtypeStruct((b, num_heads, n, n), jnp.float32),
        compiler_params=pltpu.CompilerParams(
            dimension_semantics=("parallel",)),
    )(pos, wg_w, wg_b)


# -----------------------------------------------------------------------------
# Kernel 2: fused QKV proj + box attention + output proj + both LayerNorms.
#   xq/xk/xv : (B, N, D)        geo : (B, h, N, N)
#   wq/wk/wv/wo : (D, D)  (torch weight transposed: y = x @ W + b)
#   pb : (4, D)  rows = [b_q, b_k, b_v, b_out]
#   ln : (4, D)  rows = [ln0_gamma, ln0_beta, ln_gamma, ln_beta]
# -----------------------------------------------------------------------------
def _box_attention_kernel(xq_ref, xk_ref, xv_ref, geo_ref,
                          wq_ref, wk_ref, wv_ref, wo_ref,
                          pb_ref, ln_ref, out_ref, *, num_heads):
    xq = xq_ref[0]                                   # (N, D)
    xk = xk_ref[0]
    xv = xv_ref[0]

    d_model = xq.shape[-1]
    d_k = d_model // num_heads
    scale = 1.0 / math.sqrt(d_k)

    q = jnp.dot(xq, wq_ref[...], preferred_element_type=jnp.float32) + pb_ref[0:1, :]
    k = jnp.dot(xk, wk_ref[...], preferred_element_type=jnp.float32) + pb_ref[1:2, :]
    v = jnp.dot(xv, wv_ref[...], preferred_element_type=jnp.float32) + pb_ref[2:3, :]

    heads = []
    for head in range(num_heads):
        sl = slice(head * d_k, (head + 1) * d_k)
        qh, kh, vh = q[:, sl], k[:, sl], v[:, sl]    # (N, d_k)
        s = jnp.dot(qh, kh.T, preferred_element_type=jnp.float32) * scale
        s = s + geo_ref[0, head]                     # additive log-geometry bias
        # TODO(synk): optional `mask` argument (masked_fill with -1e9) not wired up.
        m = jnp.max(s, axis=-1, keepdims=True)
        e = jnp.exp(s - m)
        p = e * pl.reciprocal(jnp.sum(e, axis=-1, keepdims=True), approx=True)
        heads.append(jnp.dot(p, vh, preferred_element_type=jnp.float32))
    attn = jnp.concatenate(heads, axis=-1)           # (N, D)

    def layer_norm(x, gamma, beta):
        mu = jnp.mean(x, axis=-1, keepdims=True)
        xc = x - mu
        var = jnp.mean(xc * xc, axis=-1, keepdims=True)
        return xc * jax.lax.rsqrt(var + LN_EPS) * gamma + beta

    o0 = layer_norm(attn + xq, ln_ref[0:1, :], ln_ref[1:2, :])
    proj = (jnp.dot(o0, wo_ref[...], preferred_element_type=jnp.float32)
            + pb_ref[3:4, :])                        # dropout == identity (eval)
    out = layer_norm(proj + o0, ln_ref[2:3, :], ln_ref[3:4, :])
    out_ref[0] = out.astype(out_ref.dtype)


def box_mha(xq, xk, xv, geo, wq, wk, wv, wo, pbias, lnp, num_heads):
    b, n, d = xq.shape
    kernel = functools.partial(_box_attention_kernel, num_heads=num_heads)
    x_spec = pl.BlockSpec((1, n, d), lambda i: (i, 0, 0))
    w_spec = pl.BlockSpec((d, d), lambda i: (0, 0))          # VMEM-resident
    p_spec = pl.BlockSpec((4, d), lambda i: (0, 0))
    return pl.pallas_call(
        kernel,
        grid=(b,),
        in_specs=[
            x_spec, x_spec, x_spec,
            pl.BlockSpec((1, num_heads, n, n), lambda i: (i, 0, 0, 0)),
            w_spec, w_spec, w_spec, w_spec,
            p_spec, p_spec,
        ],
        out_specs=pl.BlockSpec((1, n, d), lambda i: (i, 0, 0)),
        out_shape=jax.ShapeDtypeStruct((b, n, d), jnp.float32),
        compiler_params=pltpu.CompilerParams(
            dimension_semantics=("parallel",)),
    )(xq, xk, xv, geo, wq, wk, wv, wo, pbias, lnp)


# -----------------------------------------------------------------------------
# Plain-JAX glue: pairwise box log-ratio maps (trivial elementwise on (B,N,N)).
# The heavy 64-d trig expansion + per-head projection is done inside kernel 1.
# -----------------------------------------------------------------------------
def _position_maps(box):
    x_min, y_min, x_max, y_max = jnp.split(box, 4, axis=-1)   # (B, N, 1) each
    cx = (x_min + x_max) * 0.5
    cy = (y_min + y_max) * 0.5
    w = x_max - x_min + 1.0
    h = y_max - y_min + 1.0

    def t(a):
        return jnp.transpose(a, (0, 2, 1))

    dx = jnp.log(jnp.maximum(jnp.abs((cx - t(cx)) / w), POS_CLAMP))
    dy = jnp.log(jnp.maximum(jnp.abs((cy - t(cy)) / h), POS_CLAMP))
    dw = jnp.log(w / t(w))
    dh = jnp.log(h / t(h))
    return jnp.stack([dx, dy, dw, dh], axis=1)                # (B, 4, N, N)


@functools.partial(jax.jit, static_argnames=("num_heads",))
def _forward(params, xq, xk, xv, boxes, *, num_heads):
    pos = _position_maps(boxes)
    geo = geo_bias(pos, params["wg_w"], params["wg_b"], num_heads)
    return box_mha(xq, xk, xv, geo,
                   params["wq"], params["wk"], params["wv"], params["wo"],
                   params["pbias"], params["lnp"], num_heads)


class BoxMultiHeadedAttentionPallas:
    """Pallas-TPU BoxMultiHeadedAttention (eval mode: dropout == identity)."""

    def __init__(self, key, h, d_model, trignometric_embedding=True,
                 legacy_extra_skip=False, dropout=0.1):
        assert d_model % h == 0
        # TODO(synk): trignometric_embedding=False (dim_g=4) path not wired up.
        assert trignometric_embedding, "only trignometric_embedding=True supported"
        del legacy_extra_skip, dropout  # unused in forward / identity at eval
        self.h = h
        self.d_model = d_model

        ks = jax.random.split(key, 10)
        f32 = jnp.float32

        def linear(kw, kb, fan_in, fan_out):
            bound = 1.0 / math.sqrt(fan_in)
            w = jax.random.uniform(kw, (fan_in, fan_out), f32, -bound, bound)
            b = jax.random.uniform(kb, (fan_out,), f32, -bound, bound)
            return w, b

        wq, bq = linear(ks[0], ks[1], d_model, d_model)
        wk, bk = linear(ks[2], ks[3], d_model, d_model)
        wv, bv = linear(ks[4], ks[5], d_model, d_model)
        wo, bo = linear(ks[6], ks[7], d_model, d_model)
        gbound = 1.0 / math.sqrt(DIM_G)
        wg_w = jax.random.uniform(ks[8], (h, DIM_G), f32, -gbound, gbound)
        wg_b = jax.random.uniform(ks[9], (h,), f32, -gbound, gbound)

        self.params = {
            "wq": wq, "wk": wk, "wv": wv, "wo": wo,
            "pbias": jnp.stack([bq, bk, bv, bo], axis=0),          # (4, D)
            "lnp": jnp.stack([jnp.ones((d_model,), f32),           # ln0 gamma
                              jnp.zeros((d_model,), f32),          # ln0 beta
                              jnp.ones((d_model,), f32),           # ln  gamma
                              jnp.zeros((d_model,), f32)], axis=0),
            "wg_w": wg_w, "wg_b": wg_b,
        }

    def __call__(self, input_query, input_key, input_value, input_box, mask=None):
        # TODO(synk): mask path (masked_fill with -1e9 before softmax) not implemented.
        assert mask is None, "mask is not supported in this kernel"
        return _forward(self.params, input_query, input_key, input_value,
                        input_box, num_heads=self.h)


# -----------------------------------------------------------------------------
# demo
# -----------------------------------------------------------------------------
if __name__ == "__main__":
    key = jax.random.PRNGKey(0)
    k_params, k_q, k_k, k_v, k_box = jax.random.split(key, 5)

    B, N, d_model, num_heads = 2, 8, 32, 4

    attn = BoxMultiHeadedAttentionPallas(k_params, num_heads, d_model,
                                         trignometric_embedding=True)

    xq = jax.random.normal(k_q, (B, N, d_model), jnp.float32)
    xk = jax.random.normal(k_k, (B, N, d_model), jnp.float32)
    xv = jax.random.normal(k_v, (B, N, d_model), jnp.float32)

    # boxes: (x_min, y_min, x_max, y_max) with strictly positive extents
    mins = jax.random.uniform(k_box, (B, N, 2), jnp.float32, 0.0, 40.0)
    exts = jax.random.uniform(jax.random.fold_in(k_box, 1), (B, N, 2),
                              jnp.float32, 2.0, 20.0)
    boxes = jnp.concatenate([mins, mins + exts], axis=-1)       # (B, N, 4)

    y = attn(xq, xk, xv, boxes)
    y = jax.block_until_ready(y)
    assert y.shape == (B, N, d_model), y.shape
    assert bool(jnp.all(jnp.isfinite(y)))
    print("KERNEL_OK")
</pallas_src>

<mosaic_0001>
module attributes {stable_mosaic.version = 11 : i64} {
  func.func @_geo_bias_kernel(%arg0: i32, %arg1: memref<1x4x8x8xf32, #tpu.memory_space<vmem>>, %arg2: memref<4x64xf32, #tpu.memory_space<smem>>, %arg3: memref<4xf32, #tpu.memory_space<smem>>, %arg4: memref<1x4x8x8xf32, #tpu.memory_space<vmem>>) attributes {dimension_semantics = [#tpu.dimension_semantics<parallel>], iteration_bounds = array<i64: 2>, scalar_prefetch = 0 : i64, scratch_operands = 0 : i64, tpu.core_type = #tpu.core_type<tc>, window_params = [{transform_indices = @transform_0, window_bounds = array<i64: 1, 4, 8, 8>}, {transform_indices = @transform_1, window_bounds = array<i64: 4, 64>}, {transform_indices = @transform_2, window_bounds = array<i64: 4>}, {transform_indices = @transform_3, window_bounds = array<i64: 1, 4, 8, 8>}]} {
    %cst = arith.constant 0.000000e+00 : f32
    %0 = vector.broadcast %cst : f32 to vector<8x8xf32>
    %cst_0 = arith.constant 0.000000e+00 : f32
    %1 = vector.broadcast %cst_0 : f32 to vector<8x8xf32>
    %cst_1 = arith.constant 0.000000e+00 : f32
    %2 = vector.broadcast %cst_1 : f32 to vector<8x8xf32>
    %cst_2 = arith.constant 0.000000e+00 : f32
    %3 = vector.broadcast %cst_2 : f32 to vector<8x8xf32>
    %c0 = arith.constant 0 : index
    %c0_3 = arith.constant 0 : index
    %c0_4 = arith.constant 0 : index
    %c0_5 = arith.constant 0 : index
    %4 = vector.load %arg1[%c0, %c0_3, %c0_4, %c0_5] : memref<1x4x8x8xf32, #tpu.memory_space<vmem>>, vector<1x1x8x8xf32>
    %5 = vector.shape_cast %4 : vector<1x1x8x8xf32> to vector<8x8xf32>
    %cst_6 = arith.constant 1.000000e+02 : f32
    %6 = vector.broadcast %cst_6 : f32 to vector<8x8xf32>
    %7 = arith.mulf %5, %6 : vector<8x8xf32>
    %cst_7 = arith.constant 1.000000e+00 : f32
    %8 = vector.broadcast %cst_7 : f32 to vector<8x8xf32>
    %9 = arith.mulf %7, %8 : vector<8x8xf32>
    %10 = math.sin %9 : vector<8x8xf32>
    %11 = math.cos %9 : vector<8x8xf32>
    %c0_8 = arith.constant 0 : index
    %c0_9 = arith.constant 0 : index
    %12 = memref.load %arg2[%c0_8, %c0_9] : memref<4x64xf32, #tpu.memory_space<smem>>
    %13 = vector.broadcast %12 : f32 to vector<8x8xf32>
    %14 = arith.mulf %10, %13 : vector<8x8xf32>
    %15 = arith.addf %0, %14 : vector<8x8xf32>
    %c0_10 = arith.constant 0 : index
    %c32 = arith.constant 32 : index
    %16 = memref.load %arg2[%c0_10, %c32] : memref<4x64xf32, #tpu.memory_space<smem>>
    %17 = vector.broadcast %16 : f32 to vector<8x8xf32>
    %18 = arith.mulf %11, %17 : vector<8x8xf32>
    %19 = arith.addf %15, %18 : vector<8x8xf32>
    %c1 = arith.constant 1 : index
    %c0_11 = arith.constant 0 : index
    %20 = memref.load %arg2[%c1, %c0_11] : memref<4x64xf32, #tpu.memory_space<smem>>
    %21 = vector.broadcast %20 : f32 to vector<8x8xf32>
    %22 = arith.mulf %10, %21 : vector<8x8xf32>
    %23 = arith.addf %1, %22 : vector<8x8xf32>
    %c1_12 = arith.constant 1 : index
    %c32_13 = arith.constant 32 : index
    %24 = memref.load %arg2[%c1_12, %c32_13] : memref<4x64xf32, #tpu.memory_space<smem>>
    %25 = vector.broadcast %24 : f32 to vector<8x8xf32>
    %26 = arith.mulf %11, %25 : vector<8x8xf32>
    %27 = arith.addf %23, %26 : vector<8x8xf32>
    %c2 = arith.constant 2 : index
    %c0_14 = arith.constant 0 : index
    %28 = memref.load %arg2[%c2, %c0_14] : memref<4x64xf32, #tpu.memory_space<smem>>
    %29 = vector.broadcast %28 : f32 to vector<8x8xf32>
    %30 = arith.mulf %10, %29 : vector<8x8xf32>
    %31 = arith.addf %2, %30 : vector<8x8xf32>
    %c2_15 = arith.constant 2 : index
    %c32_16 = arith.constant 32 : index
    %32 = memref.load %arg2[%c2_15, %c32_16] : memref<4x64xf32, #tpu.memory_space<smem>>
    %33 = vector.broadcast %32 : f32 to vector<8x8xf32>
    %34 = arith.mulf %11, %33 : vector<8x8xf32>
    %35 = arith.addf %31, %34 : vector<8x8xf32>
    %c3 = arith.constant 3 : index
    %c0_17 = arith.constant 0 : index
    %36 = memref.load %arg2[%c3, %c0_17] : memref<4x64xf32, #tpu.memory_space<smem>>
    %37 = vector.broadcast %36 : f32 to vector<8x8xf32>
    %38 = arith.mulf %10, %37 : vector<8x8xf32>
    %39 = arith.addf %3, %38 : vector<8x8xf32>
    %c3_18 = arith.constant 3 : index
    %c32_19 = arith.constant 32 : index
    %40 = memref.load %arg2[%c3_18, %c32_19] : memref<4x64xf32, #tpu.memory_space<smem>>
    %41 = vector.broadcast %40 : f32 to vector<8x8xf32>
    %42 = arith.mulf %11, %41 : vector<8x8xf32>
    %43 = arith.addf %39, %42 : vector<8x8xf32>
    %cst_20 = arith.constant 0.421696514 : f32
    %44 = vector.broadcast %cst_20 : f32 to vector<8x8xf32>
    %45 = arith.mulf %7, %44 : vector<8x8xf32>
    %46 = math.sin %45 : vector<8x8xf32>
    %47 = math.cos %45 : vector<8x8xf32>
    %c0_21 = arith.constant 0 : index
    %c1_22 = arith.constant 1 : index
    %48 = memref.load %arg2[%c0_21, %c1_22] : memref<4x64xf32, #tpu.memory_space<smem>>
    %49 = vector.broadcast %48 : f32 to vector<8x8xf32>
    %50 = arith.mulf %46, %49 : vector<8x8xf32>
    %51 = arith.addf %19, %50 : vector<8x8xf32>
    %c0_23 = arith.constant 0 : index
    %c33 = arith.constant 33 : index
    %52 = memref.load %arg2[%c0_23, %c33] : memref<4x64xf32, #tpu.memory_space<smem>>
    %53 = vector.broadcast %52 : f32 to vector<8x8xf32>
    %54 = arith.mulf %47, %53 : vector<8x8xf32>
    %55 = arith.addf %51, %54 : vector<8x8xf32>
    %c1_24 = arith.constant 1 : index
    %c1_25 = arith.constant 1 : index
    %56 = memref.load %arg2[%c1_24, %c1_25] : memref<4x64xf32, #tpu.memory_space<smem>>
    %57 = vector.broadcast %56 : f32 to vector<8x8xf32>
    %58 = arith.mulf %46, %57 : vector<8x8xf32>
    %59 = arith.addf %27, %58 : vector<8x8xf32>
    %c1_26 = arith.constant 1 : index
    %c33_27 = arith.constant 33 : index
    %60 = memref.load %arg2[%c1_26, %c33_27] : memref<4x64xf32, #tpu.memory_space<smem>>
    %61 = vector.broadcast %60 : f32 to vector<8x8xf32>
    %62 = arith.mulf %47, %61 : vector<8x8xf32>
    %63 = arith.addf %59, %62 : vector<8x8xf32>
    %c2_28 = arith.constant 2 : index
    %c1_29 = arith.constant 1 : index
    %64 = memref.load %arg2[%c2_28, %c1_29] : memref<4x64xf32, #tpu.memory_space<smem>>
    %65 = vector.broadcast %64 : f32 to vector<8x8xf32>
    %66 = arith.mulf %46, %65 : vector<8x8xf32>
    %67 = arith.addf %35, %66 : vector<8x8xf32>
    %c2_30 = arith.constant 2 : index
    %c33_31 = arith.constant 33 : index
    %68 = memref.load %arg2[%c2_30, %c33_31] : memref<4x64xf32, #tpu.memory_space<smem>>
    %69 = vector.broadcast %68 : f32 to vector<8x8xf32>
    %70 = arith.mulf %47, %69 : vector<8x8xf32>
    %71 = arith.addf %67, %70 : vector<8x8xf32>
    %c3_32 = arith.constant 3 : index
    %c1_33 = arith.constant 1 : index
    %72 = memref.load %arg2[%c3_32, %c1_33] : memref<4x64xf32, #tpu.memory_space<smem>>
    %73 = vector.broadcast %72 : f32 to vector<8x8xf32>
    %74 = arith.mulf %46, %73 : vector<8x8xf32>
    %75 = arith.addf %43, %74 : vector<8x8xf32>
    %c3_34 = arith.constant 3 : index
    %c33_35 = arith.constant 33 : index
    %76 = memref.load %arg2[%c3_34, %c33_35] : memref<4x64xf32, #tpu.memory_space<smem>>
    %77 = vector.broadcast %76 : f32 to vector<8x8xf32>
    %78 = arith.mulf %47, %77 : vector<8x8xf32>
    %79 = arith.addf %75, %78 : vector<8x8xf32>
    %cst_36 = arith.constant 0.177827939 : f32
    %80 = vector.broadcast %cst_36 : f32 to vector<8x8xf32>
    %81 = arith.mulf %7, %80 : vector<8x8xf32>
    %82 = math.sin %81 : vector<8x8xf32>
    %83 = math.cos %81 : vector<8x8xf32>
    %c0_37 = arith.constant 0 : index
    %c2_38 = arith.constant 2 : index
    %84 = memref.load %arg2[%c0_37, %c2_38] : memref<4x64xf32, #tpu.memory_space<smem>>
    %85 = vector.broadcast %84 : f32 to vector<8x8xf32>
    %86 = arith.mulf %82, %85 : vector<8x8xf32>
    %87 = arith.addf %55, %86 : vector<8x8xf32>
    %c0_39 = arith.constant 0 : index
    %c34 = arith.constant 34 : index
    %88 = memref.load %arg2[%c0_39, %c34] : memref<4x64xf32, #tpu.memory_space<smem>>
    %89 = vector.broadcast %88 : f32 to vector<8x8xf32>
    %90 = arith.mulf %83, %89 : vector<8x8xf32>
    %91 = arith.addf %87, %90 : vector<8x8xf32>
    %c1_40 = arith.constant 1 : index
    %c2_41 = arith.constant 2 : index
    %92 = memref.load %arg2[%c1_40, %c2_41] : memref<4x64xf32, #tpu.memory_space<smem>>
    %93 = vector.broadcast %92 : f32 to vector<8x8xf32>
    %94 = arith.mulf %82, %93 : vector<8x8xf32>
    %95 = arith.addf %63, %94 : vector<8x8xf32>
    %c1_42 = arith.constant 1 : index
    %c34_43 = arith.constant 34 : index
    %96 = memref.load %arg2[%c1_42, %c34_43] : memref<4x64xf32, #tpu.memory_space<smem>>
    %97 = vector.broadcast %96 : f32 to vector<8x8xf32>
    %98 = arith.mulf %83, %97 : vector<8x8xf32>
    %99 = arith.addf %95, %98 : vector<8x8xf32>
    %c2_44 = arith.constant 2 : index
    %c2_45 = arith.constant 2 : index
    %100 = memref.load %arg2[%c2_44, %c2_45] : memref<4x64xf32, #tpu.memory_space<smem>>
    %101 = vector.broadcast %100 : f32 to vector<8x8xf32>
    %102 = arith.mulf %82, %101 : vector<8x8xf32>
    %103 = arith.addf %71, %102 : vector<8x8xf32>
    %c2_46 = arith.constant 2 : index
    %c34_47 = arith.constant 34 : index
    %104 = memref.load %arg2[%c2_46, %c34_47] : memref<4x64xf32, #tpu.memory_space<smem>>
    %105 = vector.broadcast %104 : f32 to vector<8x8xf32>
    %106 = arith.mulf %83, %105 : vector<8x8xf32>
    %107 = arith.addf %103, %106 : vector<8x8xf32>
    %c3_48 = arith.constant 3 : index
    %c2_49 = arith.constant 2 : index
    %108 = memref.load %arg2[%c3_48, %c2_49] : memref<4x64xf32, #tpu.memory_space<smem>>
    %109 = vector.broadcast %108 : f32 to vector<8x8xf32>
    %110 = arith.mulf %82, %109 : vector<8x8xf32>
    %111 = arith.addf %79, %110 : vector<8x8xf32>
    %c3_50 = arith.constant 3 : index
    %c34_51 = arith.constant 34 : index
    %112 = memref.load %arg2[%c3_50, %c34_51] : memref<4x64xf32, #tpu.memory_space<smem>>
    %113 = vector.broadcast %112 : f32 to vector<8x8xf32>
    %114 = arith.mulf %83, %113 : vector<8x8xf32>
    %115 = arith.addf %111, %114 : vector<8x8xf32>
    %cst_52 = arith.constant 0.0749894232 : f32
    %116 = vector.broadcast %cst_52 : f32 to vector<8x8xf32>
    %117 = arith.mulf %7, %116 : vector<8x8xf32>
    %118 = math.sin %117 : vector<8x8xf32>
    %119 = math.cos %117 : vector<8x8xf32>
    %c0_53 = arith.constant 0 : index
    %c3_54 = arith.constant 3 : index
    %120 = memref.load %arg2[%c0_53, %c3_54] : memref<4x64xf32, #tpu.memory_space<smem>>
    %121 = vector.broadcast %120 : f32 to vector<8x8xf32>
    %122 = arith.mulf %118, %121 : vector<8x8xf32>
    %123 = arith.addf %91, %122 : vector<8x8xf32>
    %c0_55 = arith.constant 0 : index
    %c35 = arith.constant 35 : index
    %124 = memref.load %arg2[%c0_55, %c35] : memref<4x64xf32, #tpu.memory_space<smem>>
    %125 = vector.broadcast %124 : f32 to vector<8x8xf32>
    %126 = arith.mulf %119, %125 : vector<8x8xf32>
    %127 = arith.addf %123, %126 : vector<8x8xf32>
    %c1_56 = arith.constant 1 : index
    %c3_57 = arith.constant 3 : index
    %128 = memref.load %arg2[%c1_56, %c3_57] : memref<4x64xf32, #tpu.memory_space<smem>>
    %129 = vector.broadcast %128 : f32 to vector<8x8xf32>
    %130 = arith.mulf %118, %129 : vector<8x8xf32>
    %131 = arith.addf %99, %130 : vector<8x8xf32>
    %c1_58 = arith.constant 1 : index
    %c35_59 = arith.constant 35 : index
    %132 = memref.load %arg2[%c1_58, %c35_59] : memref<4x64xf32, #tpu.memory_space<smem>>
    %133 = vector.broadcast %132 : f32 to vector<8x8xf32>
    %134 = arith.mulf %119, %133 : vector<8x8xf32>
    %135 = arith.addf %131, %134 : vector<8x8xf32>
    %c2_60 = arith.constant 2 : index
    %c3_61 = arith.constant 3 : index
    %136 = memref.load %arg2[%c2_60, %c3_61] : memref<4x64xf32, #tpu.memory_space<smem>>
    %137 = vector.broadcast %136 : f32 to vector<8x8xf32>
    %138 = arith.mulf %118, %137 : vector<8x8xf32>
    %139 = arith.addf %107, %138 : vector<8x8xf32>
    %c2_62 = arith.constant 2 : index
    %c35_63 = arith.constant 35 : index
    %140 = memref.load %arg2[%c2_62, %c35_63] : memref<4x64xf32, #tpu.memory_space<smem>>
    %141 = vector.broadcast %140 : f32 to vector<8x8xf32>
    %142 = arith.mulf %119, %141 : vector<8x8xf32>
    %143 = arith.addf %139, %142 : vector<8x8xf32>
    %c3_64 = arith.constant 3 : index
    %c3_65 = arith.constant 3 : index
    %144 = memref.load %arg2[%c3_64, %c3_65] : memref<4x64xf32, #tpu.memory_space<smem>>
    %145 = vector.broadcast %144 : f32 to vector<8x8xf32>
    %146 = arith.mulf %118, %145 : vector<8x8xf32>
    %147 = arith.addf %115, %146 : vector<8x8xf32>
    %c3_66 = arith.constant 3 : index
    %c35_67 = arith.constant 35 : index
    %148 = memref.load %arg2[%c3_66, %c35_67] : memref<4x64xf32, #tpu.memory_space<smem>>
    %149 = vector.broadcast %148 : f32 to vector<8x8xf32>
    %150 = arith.mulf %119, %149 : vector<8x8xf32>
    %151 = arith.addf %147, %150 : vector<8x8xf32>
    %cst_68 = arith.constant 0.0316227749 : f32
    %152 = vector.broadcast %cst_68 : f32 to vector<8x8xf32>
    %153 = arith.mulf %7, %152 : vector<8x8xf32>
    %154 = math.sin %153 : vector<8x8xf32>
    %155 = math.cos %153 : vector<8x8xf32>
    %c0_69 = arith.constant 0 : index
    %c4 = arith.constant 4 : index
    %156 = memref.load %arg2[%c0_69, %c4] : memref<4x64xf32, #tpu.memory_space<smem>>
    %157 = vector.broadcast %156 : f32 to vector<8x8xf32>
    %158 = arith.mulf %154, %157 : vector<8x8xf32>
    %159 = arith.addf %127, %158 : vector<8x8xf32>
    %c0_70 = arith.constant 0 : index
    %c36 = arith.constant 36 : index
    %160 = memref.load %arg2[%c0_70, %c36] : memref<4x64xf32, #tpu.memory_space<smem>>
    %161 = vector.broadcast %160 : f32 to vector<8x8xf32>
    %162 = arith.mulf %155, %161 : vector<8x8xf32>
    %163 = arith.addf %159, %162 : vector<8x8xf32>
    %c1_71 = arith.constant 1 : index
    %c4_72 = arith.constant 4 : index
    %164 = memref.load %arg2[%c1_71, %c4_72] : memref<4x64xf32, #tpu.memory_space<smem>>
    %165 = vector.broadcast %164 : f32 to vector<8x8xf32>
    %166 = arith.mulf %154, %165 : vector<8x8xf32>
    %167 = arith.addf %135, %166 : vector<8x8xf32>
    %c1_73 = arith.constant 1 : index
    %c36_74 = arith.constant 36 : index
    %168 = memref.load %arg2[%c1_73, %c36_74] : memref<4x64xf32, #tpu.memory_space<smem>>
    %169 = vector.broadcast %168 : f32 to vector<8x8xf32>
    %170 = arith.mulf %155, %169 : vector<8x8xf32>
    %171 = arith.addf %167, %170 : vector<8x8xf32>
    %c2_75 = arith.constant 2 : index
    %c4_76 = arith.constant 4 : index
    %172 = memref.load %arg2[%c2_75, %c4_76] : memref<4x64xf32, #tpu.memory_space<smem>>
    %173 = vector.broadcast %172 : f32 to vector<8x8xf32>
    %174 = arith.mulf %154, %173 : vector<8x8xf32>
    %175 = arith.addf %143, %174 : vector<8x8xf32>
    %c2_77 = arith.constant 2 : index
    %c36_78 = arith.constant 36 : index
    %176 = memref.load %arg2[%c2_77, %c36_78] : memref<4x64xf32, #tpu.memory_space<smem>>
    %177 = vector.broadcast %176 : f32 to vector<8x8xf32>
    %178 = arith.mulf %155, %177 : vector<8x8xf32>
    %179 = arith.addf %175, %178 : vector<8x8xf32>
    %c3_79 = arith.constant 3 : index
    %c4_80 = arith.constant 4 : index
    %180 = memref.load %arg2[%c3_79, %c4_80] : memref<4x64xf32, #tpu.memory_space<smem>>
    %181 = vector.broadcast %180 : f32 to vector<8x8xf32>
    %182 = arith.mulf %154, %181 : vector<8x8xf32>
    %183 = arith.addf %151, %182 : vector<8x8xf32>
    %c3_81 = arith.constant 3 : index
    %c36_82 = arith.constant 36 : index
    %184 = memref.load %arg2[%c3_81, %c36_82] : memref<4x64xf32, #tpu.memory_space<smem>>
    %185 = vector.broadcast %184 : f32 to vector<8x8xf32>
    %186 = arith.mulf %155, %185 : vector<8x8xf32>
    %187 = arith.addf %183, %186 : vector<8x8xf32>
    %cst_83 = arith.constant 0.013335214 : f32
    %188 = vector.broadcast %cst_83 : f32 to vector<8x8xf32>
    %189 = arith.mulf %7, %188 : vector<8x8xf32>
    %190 = math.sin %189 : vector<8x8xf32>
    %191 = math.cos %189 : vector<8x8xf32>
    %c0_84 = arith.constant 0 : index
    %c5 = arith.constant 5 : index
    %192 = memref.load %arg2[%c0_84, %c5] : memref<4x64xf32, #tpu.memory_space<smem>>
    %193 = vector.broadcast %192 : f32 to vector<8x8xf32>
    %194 = arith.mulf %190, %193 : vector<8x8xf32>
    %195 = arith.addf %163, %194 : vector<8x8xf32>
    %c0_85 = arith.constant 0 : index
    %c37 = arith.constant 37 : index
    %196 = memref.load %arg2[%c0_85, %c37] : memref<4x64xf32, #tpu.memory_space<smem>>
    %197 = vector.broadcast %196 : f32 to vector<8x8xf32>
    %198 = arith.mulf %191, %197 : vector<8x8xf32>
    %199 = arith.addf %195, %198 : vector<8x8xf32>
    %c1_86 = arith.constant 1 : index
    %c5_87 = arith.constant 5 : index
    %200 = memref.load %arg2[%c1_86, %c5_87] : memref<4x64xf32, #tpu.memory_space<smem>>
    %201 = vector.broadcast %200 : f32 to vector<8x8xf32>
    %202 = arith.mulf %190, %201 : vector<8x8xf32>
    %203 = arith.addf %171, %202 : vector<8x8xf32>
    %c1_88 = arith.constant 1 : index
    %c37_89 = arith.constant 37 : index
    %204 = memref.load %arg2[%c1_88, %c37_89] : memref<4x64xf32, #tpu.memory_space<smem>>
    %205 = vector.broadcast %204 : f32 to vector<8x8xf32>
    %206 = arith.mulf %191, %205 : vector<8x8xf32>
    %207 = arith.addf %203, %206 : vector<8x8xf32>
    %c2_90 = arith.constant 2 : index
    %c5_91 = arith.constant 5 : index
    %208 = memref.load %arg2[%c2_90, %c5_91] : memref<4x64xf32, #tpu.memory_space<smem>>
    %209 = vector.broadcast %208 : f32 to vector<8x8xf32>
    %210 = arith.mulf %190, %209 : vector<8x8xf32>
    %211 = arith.addf %179, %210 : vector<8x8xf32>
    %c2_92 = arith.constant 2 : index
    %c37_93 = arith.constant 37 : index
    %212 = memref.load %arg2[%c2_92, %c37_93] : memref<4x64xf32, #tpu.memory_space<smem>>
    %213 = vector.broadcast %212 : f32 to vector<8x8xf32>
    %214 = arith.mulf %191, %213 : vector<8x8xf32>
    %215 = arith.addf %211, %214 : vector<8x8xf32>
    %c3_94 = arith.constant 3 : index
    %c5_95 = arith.constant 5 : index
    %216 = memref.load %arg2[%c3_94, %c5_95] : memref<4x64xf32, #tpu.memory_space<smem>>
    %217 = vector.broadcast %216 : f32 to vector<8x8xf32>
    %218 = arith.mulf %190, %217 : vector<8x8xf32>
    %219 = arith.addf %187, %218 : vector<8x8xf32>
    %c3_96 = arith.constant 3 : index
    %c37_97 = arith.constant 37 : index
    %220 = memref.load %arg2[%c3_96, %c37_97] : memref<4x64xf32, #tpu.memory_space<smem>>
    %221 = vector.broadcast %220 : f32 to vector<8x8xf32>
    %222 = arith.mulf %191, %221 : vector<8x8xf32>
    %223 = arith.addf %219, %222 : vector<8x8xf32>
    %cst_98 = arith.constant 0.00562341325 : f32
    %224 = vector.broadcast %cst_98 : f32 to vector<8x8xf32>
    %225 = arith.mulf %7, %224 : vector<8x8xf32>
    %226 = math.sin %225 : vector<8x8xf32>
    %227 = math.cos %225 : vector<8x8xf32>
    %c0_99 = arith.constant 0 : index
    %c6 = arith.constant 6 : index
    %228 = memref.load %arg2[%c0_99, %c6] : memref<4x64xf32, #tpu.memory_space<smem>>
    %229 = vector.broadcast %228 : f32 to vector<8x8xf32>
    %230 = arith.mulf %226, %229 : vector<8x8xf32>
    %231 = arith.addf %199, %230 : vector<8x8xf32>
    %c0_100 = arith.constant 0 : index
    %c38 = arith.constant 38 : index
    %232 = memref.load %arg2[%c0_100, %c38] : memref<4x64xf32, #tpu.memory_space<smem>>
    %233 = vector.broadcast %232 : f32 to vector<8x8xf32>
    %234 = arith.mulf %227, %233 : vector<8x8xf32>
    %235 = arith.addf %231, %234 : vector<8x8xf32>
    %c1_101 = arith.constant 1 : index
    %c6_102 = arith.constant 6 : index
    %236 = memref.load %arg2[%c1_101, %c6_102] : memref<4x64xf32, #tpu.memory_space<smem>>
    %237 = vector.broadcast %236 : f32 to vector<8x8xf32>
    %238 = arith.mulf %226, %237 : vector<8x8xf32>
    %239 = arith.addf %207, %238 : vector<8x8xf32>
    %c1_103 = arith.constant 1 : index
    %c38_104 = arith.constant 38 : index
    %240 = memref.load %arg2[%c1_103, %c38_104] : memref<4x64xf32, #tpu.memory_space<smem>>
    %241 = vector.broadcast %240 : f32 to vector<8x8xf32>
    %242 = arith.mulf %227, %241 : vector<8x8xf32>
    %243 = arith.addf %239, %242 : vector<8x8xf32>
    %c2_105 = arith.constant 2 : index
    %c6_106 = arith.constant 6 : index
    %244 = memref.load %arg2[%c2_105, %c6_106] : memref<4x64xf32, #tpu.memory_space<smem>>
    %245 = vector.broadcast %244 : f32 to vector<8x8xf32>
    %246 = arith.mulf %226, %245 : vector<8x8xf32>
    %247 = arith.addf %215, %246 : vector<8x8xf32>
    %c2_107 = arith.constant 2 : index
    %c38_108 = arith.constant 38 : index
    %248 = memref.load %arg2[%c2_107, %c38_108] : memref<4x64xf32, #tpu.memory_space<smem>>
    %249 = vector.broadcast %248 : f32 to vector<8x8xf32>
    %250 = arith.mulf %227, %249 : vector<8x8xf32>
    %251 = arith.addf %247, %250 : vector<8x8xf32>
    %c3_109 = arith.constant 3 : index
    %c6_110 = arith.constant 6 : index
    %252 = memref.load %arg2[%c3_109, %c6_110] : memref<4x64xf32, #tpu.memory_space<smem>>
    %253 = vector.broadcast %252 : f32 to vector<8x8xf32>
    %254 = arith.mulf %226, %253 : vector<8x8xf32>
    %255 = arith.addf %223, %254 : vector<8x8xf32>
    %c3_111 = arith.constant 3 : index
    %c38_112 = arith.constant 38 : index
    %256 = memref.load %arg2[%c3_111, %c38_112] : memref<4x64xf32, #tpu.memory_space<smem>>
    %257 = vector.broadcast %256 : f32 to vector<8x8xf32>
    %258 = arith.mulf %227, %257 : vector<8x8xf32>
    %259 = arith.addf %255, %258 : vector<8x8xf32>
    %cst_113 = arith.constant 0.00237137382 : f32
    %260 = vector.broadcast %cst_113 : f32 to vector<8x8xf32>
    %261 = arith.mulf %7, %260 : vector<8x8xf32>
    %262 = math.sin %261 : vector<8x8xf32>
    %263 = math.cos %261 : vector<8x8xf32>
    %c0_114 = arith.constant 0 : index
    %c7 = arith.constant 7 : index
    %264 = memref.load %arg2[%c0_114, %c7] : memref<4x64xf32, #tpu.memory_space<smem>>
    %265 = vector.broadcast %264 : f32 to vector<8x8xf32>
    %266 = arith.mulf %262, %265 : vector<8x8xf32>
    %267 = arith.addf %235, %266 : vector<8x8xf32>
    %c0_115 = arith.constant 0 : index
    %c39 = arith.constant 39 : index
    %268 = memref.load %arg2[%c0_115, %c39] : memref<4x64xf32, #tpu.memory_space<smem>>
    %269 = vector.broadcast %268 : f32 to vector<8x8xf32>
    %270 = arith.mulf %263, %269 : vector<8x8xf32>
    %271 = arith.addf %267, %270 : vector<8x8xf32>
    %c1_116 = arith.constant 1 : index
    %c7_117 = arith.constant 7 : index
    %272 = memref.load %arg2[%c1_116, %c7_117] : memref<4x64xf32, #tpu.memory_space<smem>>
    %273 = vector.broadcast %272 : f32 to vector<8x8xf32>
    %274 = arith.mulf %262, %273 : vector<8x8xf32>
    %275 = arith.addf %243, %274 : vector<8x8xf32>
    %c1_118 = arith.constant 1 : index
    %c39_119 = arith.constant 39 : index
    %276 = memref.load %arg2[%c1_118, %c39_119] : memref<4x64xf32, #tpu.memory_space<smem>>
    %277 = vector.broadcast %276 : f32 to vector<8x8xf32>
    %278 = arith.mulf %263, %277 : vector<8x8xf32>
    %279 = arith.addf %275, %278 : vector<8x8xf32>
    %c2_120 = arith.constant 2 : index
    %c7_121 = arith.constant 7 : index
    %280 = memref.load %arg2[%c2_120, %c7_121] : memref<4x64xf32, #tpu.memory_space<smem>>
    %281 = vector.broadcast %280 : f32 to vector<8x8xf32>
    %282 = arith.mulf %262, %281 : vector<8x8xf32>
    %283 = arith.addf %251, %282 : vector<8x8xf32>
    %c2_122 = arith.constant 2 : index
    %c39_123 = arith.constant 39 : index
    %284 = memref.load %arg2[%c2_122, %c39_123] : memref<4x64xf32, #tpu.memory_space<smem>>
    %285 = vector.broadcast %284 : f32 to vector<8x8xf32>
    %286 = arith.mulf %263, %285 : vector<8x8xf32>
    %287 = arith.addf %283, %286 : vector<8x8xf32>
    %c3_124 = arith.constant 3 : index
    %c7_125 = arith.constant 7 : index
    %288 = memref.load %arg2[%c3_124, %c7_125] : memref<4x64xf32, #tpu.memory_space<smem>>
    %289 = vector.broadcast %288 : f32 to vector<8x8xf32>
    %290 = arith.mulf %262, %289 : vector<8x8xf32>
    %291 = arith.addf %259, %290 : vector<8x8xf32>
    %c3_126 = arith.constant 3 : index
    %c39_127 = arith.constant 39 : index
    %292 = memref.load %arg2[%c3_126, %c39_127] : memref<4x64xf32, #tpu.memory_space<smem>>
    %293 = vector.broadcast %292 : f32 to vector<8x8xf32>
    %294 = arith.mulf %263, %293 : vector<8x8xf32>
    %295 = arith.addf %291, %294 : vector<8x8xf32>
    %c0_128 = arith.constant 0 : index
    %c1_129 = arith.constant 1 : index
    %c0_130 = arith.constant 0 : index
    %c0_131 = arith.constant 0 : index
    %296 = vector.load %arg1[%c0_128, %c1_129, %c0_130, %c0_131] : memref<1x4x8x8xf32, #tpu.memory_space<vmem>>, vector<1x1x8x8xf32>
    %297 = vector.shape_cast %296 : vector<1x1x8x8xf32> to vector<8x8xf32>
    %cst_132 = arith.constant 1.000000e+02 : f32
    %298 = vector.broadcast %cst_132 : f32 to vector<8x8xf32>
    %299 = arith.mulf %297, %298 : vector<8x8xf32>
    %cst_133 = arith.constant 1.000000e+00 : f32
    %300 = vector.broadcast %cst_133 : f32 to vector<8x8xf32>
    %301 = arith.mulf %299, %300 : vector<8x8xf32>
    %302 = math.sin %301 : vector<8x8xf32>
    %303 = math.cos %301 : vector<8x8xf32>
    %c0_134 = arith.constant 0 : index
    %c8 = arith.constant 8 : index
    %304 = memref.load %arg2[%c0_134, %c8] : memref<4x64xf32, #tpu.memory_space<smem>>
    %305 = vector.broadcast %304 : f32 to vector<8x8xf32>
    %306 = arith.mulf %302, %305 : vector<8x8xf32>
    %307 = arith.addf %271, %306 : vector<8x8xf32>
    %c0_135 = arith.constant 0 : index
    %c40 = arith.constant 40 : index
    %308 = memref.load %arg2[%c0_135, %c40] : memref<4x64xf32, #tpu.memory_space<smem>>
    %309 = vector.broadcast %308 : f32 to vector<8x8xf32>
    %310 = arith.mulf %303, %309 : vector<8x8xf32>
    %311 = arith.addf %307, %310 : vector<8x8xf32>
    %c1_136 = arith.constant 1 : index
    %c8_137 = arith.constant 8 : index
    %312 = memref.load %arg2[%c1_136, %c8_137] : memref<4x64xf32, #tpu.memory_space<smem>>
    %313 = vector.broadcast %312 : f32 to vector<8x8xf32>
    %314 = arith.mulf %302, %313 : vector<8x8xf32>
    %315 = arith.addf %279, %314 : vector<8x8xf32>
    %c1_138 = arith.constant 1 : index
    %c40_139 = arith.constant 40 : index
    %316 = memref.load %arg2[%c1_138, %c40_139] : memref<4x64xf32, #tpu.memory_space<smem>>
    %317 = vector.broadcast %316 : f32 to vector<8x8xf32>
    %318 = arith.mulf %303, %317 : vector<8x8xf32>
    %319 = arith.addf %315, %318 : vector<8x8xf32>
    %c2_140 = arith.constant 2 : index
    %c8_141 = arith.constant 8 : index
    %320 = memref.load %arg2[%c2_140, %c8_141] : memref<4x64xf32, #tpu.memory_space<smem>>
    %321 = vector.broadcast %320 : f32 to vector<8x8xf32>
    %322 = arith.mulf %302, %321 : vector<8x8xf32>
    %323 = arith.addf %287, %322 : vector<8x8xf32>
    %c2_142 = arith.constant 2 : index
    %c40_143 = arith.constant 40 : index
    %324 = memref.load %arg2[%c2_142, %c40_143] : memref<4x64xf32, #tpu.memory_space<smem>>
    %325 = vector.broadcast %324 : f32 to vector<8x8xf32>
    %326 = arith.mulf %303, %325 : vector<8x8xf32>
    %327 = arith.addf %323, %326 : vector<8x8xf32>
    %c3_144 = arith.constant 3 : index
    %c8_145 = arith.constant 8 : index
    %328 = memref.load %arg2[%c3_144, %c8_145] : memref<4x64xf32, #tpu.memory_space<smem>>
    %329 = vector.broadcast %328 : f32 to vector<8x8xf32>
    %330 = arith.mulf %302, %329 : vector<8x8xf32>
    %331 = arith.addf %295, %330 : vector<8x8xf32>
    %c3_146 = arith.constant 3 : index
    %c40_147 = arith.constant 40 : index
    %332 = memref.load %arg2[%c3_146, %c40_147] : memref<4x64xf32, #tpu.memory_space<smem>>
    %333 = vector.broadcast %332 : f32 to vector<8x8xf32>
    %334 = arith.mulf %303, %333 : vector<8x8xf32>
    %335 = arith.addf %331, %334 : vector<8x8xf32>
    %cst_148 = arith.constant 0.421696514 : f32
    %336 = vector.broadcast %cst_148 : f32 to vector<8x8xf32>
    %337 = arith.mulf %299, %336 : vector<8x8xf32>
    %338 = math.sin %337 : vector<8x8xf32>
    %339 = math.cos %337 : vector<8x8xf32>
    %c0_149 = arith.constant 0 : index
    %c9 = arith.constant 9 : index
    %340 = memref.load %arg2[%c0_149, %c9] : memref<4x64xf32, #tpu.memory_space<smem>>
    %341 = vector.broadcast %340 : f32 to vector<8x8xf32>
    %342 = arith.mulf %338, %341 : vector<8x8xf32>
    %343 = arith.addf %311, %342 : vector<8x8xf32>
    %c0_150 = arith.constant 0 : index
    %c41 = arith.constant 41 : index
    %344 = memref.load %arg2[%c0_150, %c41] : memref<4x64xf32, #tpu.memory_space<smem>>
    %345 = vector.broadcast %344 : f32 to vector<8x8xf32>
    %346 = arith.mulf %339, %345 : vector<8x8xf32>
    %347 = arith.addf %343, %346 : vector<8x8xf32>
    %c1_151 = arith.constant 1 : index
    %c9_152 = arith.constant 9 : index
    %348 = memref.load %arg2[%c1_151, %c9_152] : memref<4x64xf32, #tpu.memory_space<smem>>
    %349 = vector.broadcast %348 : f32 to vector<8x8xf32>
    %350 = arith.mulf %338, %349 : vector<8x8xf32>
    %351 = arith.addf %319, %350 : vector<8x8xf32>
    %c1_153 = arith.constant 1 : index
    %c41_154 = arith.constant 41 : index
    %352 = memref.load %arg2[%c1_153, %c41_154] : memref<4x64xf32, #tpu.memory_space<smem>>
    %353 = vector.broadcast %352 : f32 to vector<8x8xf32>
    %354 = arith.mulf %339, %353 : vector<8x8xf32>
    %355 = arith.addf %351, %354 : vector<8x8xf32>
    %c2_155 = arith.constant 2 : index
    %c9_156 = arith.constant 9 : index
    %356 = memref.load %arg2[%c2_155, %c9_156] : memref<4x64xf32, #tpu.memory_space<smem>>
    %357 = vector.broadcast %356 : f32 to vector<8x8xf32>
    %358 = arith.mulf %338, %357 : vector<8x8xf32>
    %359 = arith.addf %327, %358 : vector<8x8xf32>
    %c2_157 = arith.constant 2 : index
    %c41_158 = arith.constant 41 : index
    %360 = memref.load %arg2[%c2_157, %c41_158] : memref<4x64xf32, #tpu.memory_space<smem>>
    %361 = vector.broadcast %360 : f32 to vector<8x8xf32>
    %362 = arith.mulf %339, %361 : vector<8x8xf32>
    %363 = arith.addf %359, %362 : vector<8x8xf32>
    %c3_159 = arith.constant 3 : index
    %c9_160 = arith.constant 9 : index
    %364 = memref.load %arg2[%c3_159, %c9_160] : memref<4x64xf32, #tpu.memory_space<smem>>
    %365 = vector.broadcast %364 : f32 to vector<8x8xf32>
    %366 = arith.mulf %338, %365 : vector<8x8xf32>
    %367 = arith.addf %335, %366 : vector<8x8xf32>
    %c3_161 = arith.constant 3 : index
    %c41_162 = arith.constant 41 : index
    %368 = memref.load %arg2[%c3_161, %c41_162] : memref<4x64xf32, #tpu.memory_space<smem>>
    %369 = vector.broadcast %368 : f32 to vector<8x8xf32>
    %370 = arith.mulf %339, %369 : vector<8x8xf32>
    %371 = arith.addf %367, %370 : vector<8x8xf32>
    %cst_163 = arith.constant 0.177827939 : f32
    %372 = vector.broadcast %cst_163 : f32 to vector<8x8xf32>
    %373 = arith.mulf %299, %372 : vector<8x8xf32>
    %374 = math.sin %373 : vector<8x8xf32>
    %375 = math.cos %373 : vector<8x8xf32>
    %c0_164 = arith.constant 0 : index
    %c10 = arith.constant 10 : index
    %376 = memref.load %arg2[%c0_164, %c10] : memref<4x64xf32, #tpu.memory_space<smem>>
    %377 = vector.broadcast %376 : f32 to vector<8x8xf32>
    %378 = arith.mulf %374, %377 : vector<8x8xf32>
    %379 = arith.addf %347, %378 : vector<8x8xf32>
    %c0_165 = arith.constant 0 : index
    %c42 = arith.constant 42 : index
    %380 = memref.load %arg2[%c0_165, %c42] : memref<4x64xf32, #tpu.memory_space<smem>>
    %381 = vector.broadcast %380 : f32 to vector<8x8xf32>
    %382 = arith.mulf %375, %381 : vector<8x8xf32>
    %383 = arith.addf %379, %382 : vector<8x8xf32>
    %c1_166 = arith.constant 1 : index
    %c10_167 = arith.constant 10 : index
    %384 = memref.load %arg2[%c1_166, %c10_167] : memref<4x64xf32, #tpu.memory_space<smem>>
    %385 = vector.broadcast %384 : f32 to vector<8x8xf32>
    %386 = arith.mulf %374, %385 : vector<8x8xf32>
    %387 = arith.addf %355, %386 : vector<8x8xf32>
    %c1_168 = arith.constant 1 : index
    %c42_169 = arith.constant 42 : index
    %388 = memref.load %arg2[%c1_168, %c42_169] : memref<4x64xf32, #tpu.memory_space<smem>>
    %389 = vector.broadcast %388 : f32 to vector<8x8xf32>
    %390 = arith.mulf %375, %389 : vector<8x8xf32>
    %391 = arith.addf %387, %390 : vector<8x8xf32>
    %c2_170 = arith.constant 2 : index
    %c10_171 = arith.constant 10 : index
    %392 = memref.load %arg2[%c2_170, %c10_171] : memref<4x64xf32, #tpu.memory_space<smem>>
    %393 = vector.broadcast %392 : f32 to vector<8x8xf32>
    %394 = arith.mulf %374, %393 : vector<8x8xf32>
    %395 = arith.addf %363, %394 : vector<8x8xf32>
    %c2_172 = arith.constant 2 : index
    %c42_173 = arith.constant 42 : index
    %396 = memref.load %arg2[%c2_172, %c42_173] : memref<4x64xf32, #tpu.memory_space<smem>>
    %397 = vector.broadcast %396 : f32 to vector<8x8xf32>
    %398 = arith.mulf %375, %397 : vector<8x8xf32>
    %399 = arith.addf %395, %398 : vector<8x8xf32>
    %c3_174 = arith.constant 3 : index
    %c10_175 = arith.constant 10 : index
    %400 = memref.load %arg2[%c3_174, %c10_175] : memref<4x64xf32, #tpu.memory_space<smem>>
    %401 = vector.broadcast %400 : f32 to vector<8x8xf32>
    %402 = arith.mulf %374, %401 : vector<8x8xf32>
    %403 = arith.addf %371, %402 : vector<8x8xf32>
    %c3_176 = arith.constant 3 : index
    %c42_177 = arith.constant 42 : index
    %404 = memref.load %arg2[%c3_176, %c42_177] : memref<4x64xf32, #tpu.memory_space<smem>>
    %405 = vector.broadcast %404 : f32 to vector<8x8xf32>
    %406 = arith.mulf %375, %405 : vector<8x8xf32>
    %407 = arith.addf %403, %406 : vector<8x8xf32>
    %cst_178 = arith.constant 0.0749894232 : f32
    %408 = vector.broadcast %cst_178 : f32 to vector<8x8xf32>
    %409 = arith.mulf %299, %408 : vector<8x8xf32>
    %410 = math.sin %409 : vector<8x8xf32>
    %411 = math.cos %409 : vector<8x8xf32>
    %c0_179 = arith.constant 0 : index
    %c11 = arith.constant 11 : index
    %412 = memref.load %arg2[%c0_179, %c11] : memref<4x64xf32, #tpu.memory_space<smem>>
    %413 = vector.broadcast %412 : f32 to vector<8x8xf32>
    %414 = arith.mulf %410, %413 : vector<8x8xf32>
    %415 = arith.addf %383, %414 : vector<8x8xf32>
    %c0_180 = arith.constant 0 : index
    %c43 = arith.constant 43 : index
    %416 = memref.load %arg2[%c0_180, %c43] : memref<4x64xf32, #tpu.memory_space<smem>>
    %417 = vector.broadcast %416 : f32 to vector<8x8xf32>
    %418 = arith.mulf %411, %417 : vector<8x8xf32>
    %419 = arith.addf %415, %418 : vector<8x8xf32>
    %c1_181 = arith.constant 1 : index
    %c11_182 = arith.constant 11 : index
    %420 = memref.load %arg2[%c1_181, %c11_182] : memref<4x64xf32, #tpu.memory_space<smem>>
    %421 = vector.broadcast %420 : f32 to vector<8x8xf32>
    %422 = arith.mulf %410, %421 : vector<8x8xf32>
    %423 = arith.addf %391, %422 : vector<8x8xf32>
    %c1_183 = arith.constant 1 : index
    %c43_184 = arith.constant 43 : index
    %424 = memref.load %arg2[%c1_183, %c43_184] : memref<4x64xf32, #tpu.memory_space<smem>>
    %425 = vector.broadcast %424 : f32 to vector<8x8xf32>
    %426 = arith.mulf %411, %425 : vector<8x8xf32>
    %427 = arith.addf %423, %426 : vector<8x8xf32>
    %c2_185 = arith.constant 2 : index
    %c11_186 = arith.constant 11 : index
    %428 = memref.load %arg2[%c2_185, %c11_186] : memref<4x64xf32, #tpu.memory_space<smem>>
    %429 = vector.broadcast %428 : f32 to vector<8x8xf32>
    %430 = arith.mulf %410, %429 : vector<8x8xf32>
    %431 = arith.addf %399, %430 : vector<8x8xf32>
    %c2_187 = arith.constant 2 : index
    %c43_188 = arith.constant 43 : index
    %432 = memref.load %arg2[%c2_187, %c43_188] : memref<4x64xf32, #tpu.memory_space<smem>>
    %433 = vector.broadcast %432 : f32 to vector<8x8xf32>
    %434 = arith.mulf %411, %433 : vector<8x8xf32>
    %435 = arith.addf %431, %434 : vector<8x8xf32>
    %c3_189 = arith.constant 3 : index
    %c11_190 = arith.constant 11 : index
    %436 = memref.load %arg2[%c3_189, %c11_190] : memref<4x64xf32, #tpu.memory_space<smem>>
    %437 = vector.broadcast %436 : f32 to vector<8x8xf32>
    %438 = arith.mulf %410, %437 : vector<8x8xf32>
    %439 = arith.addf %407, %438 : vector<8x8xf32>
    %c3_191 = arith.constant 3 : index
    %c43_192 = arith.constant 43 : index
    %440 = memref.load %arg2[%c3_191, %c43_192] : memref<4x64xf32, #tpu.memory_space<smem>>
    %441 = vector.broadcast %440 : f32 to vector<8x8xf32>
    %442 = arith.mulf %411, %441 : vector<8x8xf32>
    %443 = arith.addf %439, %442 : vector<8x8xf32>
    %cst_193 = arith.constant 0.0316227749 : f32
    %444 = vector.broadcast %cst_193 : f32 to vector<8x8xf32>
    %445 = arith.mulf %299, %444 : vector<8x8xf32>
    %446 = math.sin %445 : vector<8x8xf32>
    %447 = math.cos %445 : vector<8x8xf32>
    %c0_194 = arith.constant 0 : index
    %c12 = arith.constant 12 : index
    %448 = memref.load %arg2[%c0_194, %c12] : memref<4x64xf32, #tpu.memory_space<smem>>
    %449 = vector.broadcast %448 : f32 to vector<8x8xf32>
    %450 = arith.mulf %446, %449 : vector<8x8xf32>
    %451 = arith.addf %419, %450 : vector<8x8xf32>
    %c0_195 = arith.constant 0 : index
    %c44 = arith.constant 44 : index
    %452 = memref.load %arg2[%c0_195, %c44] : memref<4x64xf32, #tpu.memory_space<smem>>
    %453 = vector.broadcast %452 : f32 to vector<8x8xf32>
    %454 = arith.mulf %447, %453 : vector<8x8xf32>
    %455 = arith.addf %451, %454 : vector<8x8xf32>
    %c1_196 = arith.constant 1 : index
    %c12_197 = arith.constant 12 : index
    %456 = memref.load %arg2[%c1_196, %c12_197] : memref<4x64xf32, #tpu.memory_space<smem>>
    %457 = vector.broadcast %456 : f32 to vector<8x8xf32>
    %458 = arith.mulf %446, %457 : vector<8x8xf32>
    %459 = arith.addf %427, %458 : vector<8x8xf32>
    %c1_198 = arith.constant 1 : index
    %c44_199 = arith.constant 44 : index
    %460 = memref.load %arg2[%c1_198, %c44_199] : memref<4x64xf32, #tpu.memory_space<smem>>
    %461 = vector.broadcast %460 : f32 to vector<8x8xf32>
    %462 = arith.mulf %447, %461 : vector<8x8xf32>
    %463 = arith.addf %459, %462 : vector<8x8xf32>
    %c2_200 = arith.constant 2 : index
    %c12_201 = arith.constant 12 : index
    %464 = memref.load %arg2[%c2_200, %c12_201] : memref<4x64xf32, #tpu.memory_space<smem>>
    %465 = vector.broadcast %464 : f32 to vector<8x8xf32>
    %466 = arith.mulf %446, %465 : vector<8x8xf32>
    %467 = arith.addf %435, %466 : vector<8x8xf32>
    %c2_202 = arith.constant 2 : index
    %c44_203 = arith.constant 44 : index
    %468 = memref.load %arg2[%c2_202, %c44_203] : memref<4x64xf32, #tpu.memory_space<smem>>
    %469 = vector.broadcast %468 : f32 to vector<8x8xf32>
    %470 = arith.mulf %447, %469 : vector<8x8xf32>
    %471 = arith.addf %467, %470 : vector<8x8xf32>
    %c3_204 = arith.constant 3 : index
    %c12_205 = arith.constant 12 : index
    %472 = memref.load %arg2[%c3_204, %c12_205] : memref<4x64xf32, #tpu.memory_space<smem>>
    %473 = vector.broadcast %472 : f32 to vector<8x8xf32>
    %474 = arith.mulf %446, %473 : vector<8x8xf32>
    %475 = arith.addf %443, %474 : vector<8x8xf32>
    %c3_206 = arith.constant 3 : index
    %c44_207 = arith.constant 44 : index
    %476 = memref.load %arg2[%c3_206, %c44_207] : memref<4x64xf32, #tpu.memory_space<smem>>
    %477 = vector.broadcast %476 : f32 to vector<8x8xf32>
    %478 = arith.mulf %447, %477 : vector<8x8xf32>
    %479 = arith.addf %475, %478 : vector<8x8xf32>
    %cst_208 = arith.constant 0.013335214 : f32
    %480 = vector.broadcast %cst_208 : f32 to vector<8x8xf32>
    %481 = arith.mulf %299, %480 : vector<8x8xf32>
    %482 = math.sin %481 : vector<8x8xf32>
    %483 = math.cos %481 : vector<8x8xf32>
    %c0_209 = arith.constant 0 : index
    %c13 = arith.constant 13 : index
    %484 = memref.load %arg2[%c0_209, %c13] : memref<4x64xf32, #tpu.memory_space<smem>>
    %485 = vector.broadcast %484 : f32 to vector<8x8xf32>
    %486 = arith.mulf %482, %485 : vector<8x8xf32>
    %487 = arith.addf %455, %486 : vector<8x8xf32>
    %c0_210 = arith.constant 0 : index
    %c45 = arith.constant 45 : index
    %488 = memref.load %arg2[%c0_210, %c45] : memref<4x64xf32, #tpu.memory_space<smem>>
    %489 = vector.broadcast %488 : f32 to vector<8x8xf32>
    %490 = arith.mulf %483, %489 : vector<8x8xf32>
    %491 = arith.addf %487, %490 : vector<8x8xf32>
    %c1_211 = arith.constant 1 : index
    %c13_212 = arith.constant 13 : index
    %492 = memref.load %arg2[%c1_211, %c13_212] : memref<4x64xf32, #tpu.memory_space<smem>>
    %493 = vector.broadcast %492 : f32 to vector<8x8xf32>
    %494 = arith.mulf %482, %493 : vector<8x8xf32>
    %495 = arith.addf %463, %494 : vector<8x8xf32>
    %c1_213 = arith.constant 1 : index
    %c45_214 = arith.constant 45 : index
    %496 = memref.load %arg2[%c1_213, %c45_214] : memref<4x64xf32, #tpu.memory_space<smem>>
    %497 = vector.broadcast %496 : f32 to vector<8x8xf32>
    %498 = arith.mulf %483, %497 : vector<8x8xf32>
    %499 = arith.addf %495, %498 : vector<8x8xf32>
    %c2_215 = arith.constant 2 : index
    %c13_216 = arith.constant 13 : index
    %500 = memref.load %arg2[%c2_215, %c13_216] : memref<4x64xf32, #tpu.memory_space<smem>>
    %501 = vector.broadcast %500 : f32 to vector<8x8xf32>
    %502 = arith.mulf %482, %501 : vector<8x8xf32>
    %503 = arith.addf %471, %502 : vector<8x8xf32>
    %c2_217 = arith.constant 2 : index
    %c45_218 = arith.constant 45 : index
    %504 = memref.load %arg2[%c2_217, %c45_218] : memref<4x64xf32, #tpu.memory_space<smem>>
    %505 = vector.broadcast %504 : f32 to vector<8x8xf32>
    %506 = arith.mulf %483, %505 : vector<8x8xf32>
    %507 = arith.addf %503, %506 : vector<8x8xf32>
    %c3_219 = arith.constant 3 : index
    %c13_220 = arith.constant 13 : index
    %508 = memref.load %arg2[%c3_219, %c13_220] : memref<4x64xf32, #tpu.memory_space<smem>>
    %509 = vector.broadcast %508 : f32 to vector<8x8xf32>
    %510 = arith.mulf %482, %509 : vector<8x8xf32>
    %511 = arith.addf %479, %510 : vector<8x8xf32>
    %c3_221 = arith.constant 3 : index
    %c45_222 = arith.constant 45 : index
    %512 = memref.load %arg2[%c3_221, %c45_222] : memref<4x64xf32, #tpu.memory_space<smem>>
    %513 = vector.broadcast %512 : f32 to vector<8x8xf32>
    %514 = arith.mulf %483, %513 : vector<8x8xf32>
    %515 = arith.addf %511, %514 : vector<8x8xf32>
    %cst_223 = arith.constant 0.00562341325 : f32
    %516 = vector.broadcast %cst_223 : f32 to vector<8x8xf32>
    %517 = arith.mulf %299, %516 : vector<8x8xf32>
    %518 = math.sin %517 : vector<8x8xf32>
    %519 = math.cos %517 : vector<8x8xf32>
    %c0_224 = arith.constant 0 : index
    %c14 = arith.constant 14 : index
    %520 = memref.load %arg2[%c0_224, %c14] : memref<4x64xf32, #tpu.memory_space<smem>>
    %521 = vector.broadcast %520 : f32 to vector<8x8xf32>
    %522 = arith.mulf %518, %521 : vector<8x8xf32>
    %523 = arith.addf %491, %522 : vector<8x8xf32>
    %c0_225 = arith.constant 0 : index
    %c46 = arith.constant 46 : index
    %524 = memref.load %arg2[%c0_225, %c46] : memref<4x64xf32, #tpu.memory_space<smem>>
    %525 = vector.broadcast %524 : f32 to vector<8x8xf32>
    %526 = arith.mulf %519, %525 : vector<8x8xf32>
    %527 = arith.addf %523, %526 : vector<8x8xf32>
    %c1_226 = arith.constant 1 : index
    %c14_227 = arith.constant 14 : index
    %528 = memref.load %arg2[%c1_226, %c14_227] : memref<4x64xf32, #tpu.memory_space<smem>>
    %529 = vector.broadcast %528 : f32 to vector<8x8xf32>
    %530 = arith.mulf %518, %529 : vector<8x8xf32>
    %531 = arith.addf %499, %530 : vector<8x8xf32>
    %c1_228 = arith.constant 1 : index
    %c46_229 = arith.constant 46 : index
    %532 = memref.load %arg2[%c1_228, %c46_229] : memref<4x64xf32, #tpu.memory_space<smem>>
    %533 = vector.broadcast %532 : f32 to vector<8x8xf32>
    %534 = arith.mulf %519, %533 : vector<8x8xf32>
    %535 = arith.addf %531, %534 : vector<8x8xf32>
    %c2_230 = arith.constant 2 : index
    %c14_231 = arith.constant 14 : index
    %536 = memref.load %arg2[%c2_230, %c14_231] : memref<4x64xf32, #tpu.memory_space<smem>>
    %537 = vector.broadcast %536 : f32 to vector<8x8xf32>
    %538 = arith.mulf %518, %537 : vector<8x8xf32>
    %539 = arith.addf %507, %538 : vector<8x8xf32>
    %c2_232 = arith.constant 2 : index
    %c46_233 = arith.constant 46 : index
    %540 = memref.load %arg2[%c2_232, %c46_233] : memref<4x64xf32, #tpu.memory_space<smem>>
    %541 = vector.broadcast %540 : f32 to vector<8x8xf32>
    %542 = arith.mulf %519, %541 : vector<8x8xf32>
    %543 = arith.addf %539, %542 : vector<8x8xf32>
    %c3_234 = arith.constant 3 : index
    %c14_235 = arith.constant 14 : index
    %544 = memref.load %arg2[%c3_234, %c14_235] : memref<4x64xf32, #tpu.memory_space<smem>>
    %545 = vector.broadcast %544 : f32 to vector<8x8xf32>
    %546 = arith.mulf %518, %545 : vector<8x8xf32>
    %547 = arith.addf %515, %546 : vector<8x8xf32>
    %c3_236 = arith.constant 3 : index
    %c46_237 = arith.constant 46 : index
    %548 = memref.load %arg2[%c3_236, %c46_237] : memref<4x64xf32, #tpu.memory_space<smem>>
    %549 = vector.broadcast %548 : f32 to vector<8x8xf32>
    %550 = arith.mulf %519, %549 : vector<8x8xf32>
    %551 = arith.addf %547, %550 : vector<8x8xf32>
    %cst_238 = arith.constant 0.00237137382 : f32
    %552 = vector.broadcast %cst_238 : f32 to vector<8x8xf32>
    %553 = arith.mulf %299, %552 : vector<8x8xf32>
    %554 = math.sin %553 : vector<8x8xf32>
    %555 = math.cos %553 : vector<8x8xf32>
    %c0_239 = arith.constant 0 : index
    %c15 = arith.constant 15 : index
    %556 = memref.load %arg2[%c0_239, %c15] : memref<4x64xf32, #tpu.memory_space<smem>>
    %557 = vector.broadcast %556 : f32 to vector<8x8xf32>
    %558 = arith.mulf %554, %557 : vector<8x8xf32>
    %559 = arith.addf %527, %558 : vector<8x8xf32>
    %c0_240 = arith.constant 0 : index
    %c47 = arith.constant 47 : index
    %560 = memref.load %arg2[%c0_240, %c47] : memref<4x64xf32, #tpu.memory_space<smem>>
    %561 = vector.broadcast %560 : f32 to vector<8x8xf32>
    %562 = arith.mulf %555, %561 : vector<8x8xf32>
    %563 = arith.addf %559, %562 : vector<8x8xf32>
    %c1_241 = arith.constant 1 : index
    %c15_242 = arith.constant 15 : index
    %564 = memref.load %arg2[%c1_241, %c15_242] : memref<4x64xf32, #tpu.memory_space<smem>>
    %565 = vector.broadcast %564 : f32 to vector<8x8xf32>
    %566 = arith.mulf %554, %565 : vector<8x8xf32>
    %567 = arith.addf %535, %566 : vector<8x8xf32>
    %c1_243 = arith.constant 1 : index
    %c47_244 = arith.constant 47 : index
    %568 = memref.load %arg2[%c1_243, %c47_244] : memref<4x64xf32, #tpu.memory_space<smem>>
    %569 = vector.broadcast %568 : f32 to vector<8x8xf32>
    %570 = arith.mulf %555, %569 : vector<8x8xf32>
    %571 = arith.addf %567, %570 : vector<8x8xf32>
    %c2_245 = arith.constant 2 : index
    %c15_246 = arith.constant 15 : index
    %572 = memref.load %arg2[%c2_245, %c15_246] : memref<4x64xf32, #tpu.memory_space<smem>>
    %573 = vector.broadcast %572 : f32 to vector<8x8xf32>
    %574 = arith.mulf %554, %573 : vector<8x8xf32>
    %575 = arith.addf %543, %574 : vector<8x8xf32>
    %c2_247 = arith.constant 2 : index
    %c47_248 = arith.constant 47 : index
    %576 = memref.load %arg2[%c2_247, %c47_248] : memref<4x64xf32, #tpu.memory_space<smem>>
    %577 = vector.broadcast %576 : f32 to vector<8x8xf32>
    %578 = arith.mulf %555, %577 : vector<8x8xf32>
    %579 = arith.addf %575, %578 : vector<8x8xf32>
    %c3_249 = arith.constant 3 : index
    %c15_250 = arith.constant 15 : index
    %580 = memref.load %arg2[%c3_249, %c15_250] : memref<4x64xf32, #tpu.memory_space<smem>>
    %581 = vector.broadcast %580 : f32 to vector<8x8xf32>
    %582 = arith.mulf %554, %581 : vector<8x8xf32>
    %583 = arith.addf %551, %582 : vector<8x8xf32>
    %c3_251 = arith.constant 3 : index
    %c47_252 = arith.constant 47 : index
    %584 = memref.load %arg2[%c3_251, %c47_252] : memref<4x64xf32, #tpu.memory_space<smem>>
    %585 = vector.broadcast %584 : f32 to vector<8x8xf32>
    %586 = arith.mulf %555, %585 : vector<8x8xf32>
    %587 = arith.addf %583, %586 : vector<8x8xf32>
    %c0_253 = arith.constant 0 : index
    %c2_254 = arith.constant 2 : index
    %c0_255 = arith.constant 0 : index
    %c0_256 = arith.constant 0 : index
    %588 = vector.load %arg1[%c0_253, %c2_254, %c0_255, %c0_256] : memref<1x4x8x8xf32, #tpu.memory_space<vmem>>, vector<1x1x8x8xf32>
    %589 = vector.shape_cast %588 : vector<1x1x8x8xf32> to vector<8x8xf32>
    %cst_257 = arith.constant 1.000000e+02 : f32
    %590 = vector.broadcast %cst_257 : f32 to vector<8x8xf32>
    %591 = arith.mulf %589, %590 : vector<8x8xf32>
    %cst_258 = arith.constant 1.000000e+00 : f32
    %592 = vector.broadcast %cst_258 : f32 to vector<8x8xf32>
    %593 = arith.mulf %591, %592 : vector<8x8xf32>
    %594 = math.sin %593 : vector<8x8xf32>
    %595 = math.cos %593 : vector<8x8xf32>
    %c0_259 = arith.constant 0 : index
    %c16 = arith.constant 16 : index
    %596 = memref.load %arg2[%c0_259, %c16] : memref<4x64xf32, #tpu.memory_space<smem>>
    %597 = vector.broadcast %596 : f32 to vector<8x8xf32>
    %598 = arith.mulf %594, %597 : vector<8x8xf32>
    %599 = arith.addf %563, %598 : vector<8x8xf32>
    %c0_260 = arith.constant 0 : index
    %c48 = arith.constant 48 : index
    %600 = memref.load %arg2[%c0_260, %c48] : memref<4x64xf32, #tpu.memory_space<smem>>
    %601 = vector.broadcast %600 : f32 to vector<8x8xf32>
    %602 = arith.mulf %595, %601 : vector<8x8xf32>
    %603 = arith.addf %599, %602 : vector<8x8xf32>
    %c1_261 = arith.constant 1 : index
    %c16_262 = arith.constant 16 : index
    %604 = memref.load %arg2[%c1_261, %c16_262] : memref<4x64xf32, #tpu.memory_space<smem>>
    %605 = vector.broadcast %604 : f32 to vector<8x8xf32>
    %606 = arith.mulf %594, %605 : vector<8x8xf32>
    %607 = arith.addf %571, %606 : vector<8x8xf32>
    %c1_263 = arith.constant 1 : index
    %c48_264 = arith.constant 48 : index
    %608 = memref.load %arg2[%c1_263, %c48_264] : memref<4x64xf32, #tpu.memory_space<smem>>
    %609 = vector.broadcast %608 : f32 to vector<8x8xf32>
    %610 = arith.mulf %595, %609 : vector<8x8xf32>
    %611 = arith.addf %607, %610 : vector<8x8xf32>
    %c2_265 = arith.constant 2 : index
    %c16_266 = arith.constant 16 : index
    %612 = memref.load %arg2[%c2_265, %c16_266] : memref<4x64xf32, #tpu.memory_space<smem>>
    %613 = vector.broadcast %612 : f32 to vector<8x8xf32>
    %614 = arith.mulf %594, %613 : vector<8x8xf32>
    %615 = arith.addf %579, %614 : vector<8x8xf32>
    %c2_267 = arith.constant 2 : index
    %c48_268 = arith.constant 48 : index
    %616 = memref.load %arg2[%c2_267, %c48_268] : memref<4x64xf32, #tpu.memory_space<smem>>
    %617 = vector.broadcast %616 : f32 to vector<8x8xf32>
    %618 = arith.mulf %595, %617 : vector<8x8xf32>
    %619 = arith.addf %615, %618 : vector<8x8xf32>
    %c3_269 = arith.constant 3 : index
    %c16_270 = arith.constant 16 : index
    %620 = memref.load %arg2[%c3_269, %c16_270] : memref<4x64xf32, #tpu.memory_space<smem>>
    %621 = vector.broadcast %620 : f32 to vector<8x8xf32>
    %622 = arith.mulf %594, %621 : vector<8x8xf32>
    %623 = arith.addf %587, %622 : vector<8x8xf32>
    %c3_271 = arith.constant 3 : index
    %c48_272 = arith.constant 48 : index
    %624 = memref.load %arg2[%c3_271, %c48_272] : memref<4x64xf32, #tpu.memory_space<smem>>
    %625 = vector.broadcast %624 : f32 to vector<8x8xf32>
    %626 = arith.mulf %595, %625 : vector<8x8xf32>
    %627 = arith.addf %623, %626 : vector<8x8xf32>
    %cst_273 = arith.constant 0.421696514 : f32
    %628 = vector.broadcast %cst_273 : f32 to vector<8x8xf32>
    %629 = arith.mulf %591, %628 : vector<8x8xf32>
    %630 = math.sin %629 : vector<8x8xf32>
    %631 = math.cos %629 : vector<8x8xf32>
    %c0_274 = arith.constant 0 : index
    %c17 = arith.constant 17 : index
    %632 = memref.load %arg2[%c0_274, %c17] : memref<4x64xf32, #tpu.memory_space<smem>>
    %633 = vector.broadcast %632 : f32 to vector<8x8xf32>
    %634 = arith.mulf %630, %633 : vector<8x8xf32>
    %635 = arith.addf %603, %634 : vector<8x8xf32>
    %c0_275 = arith.constant 0 : index
    %c49 = arith.constant 49 : index
    %636 = memref.load %arg2[%c0_275, %c49] : memref<4x64xf32, #tpu.memory_space<smem>>
    %637 = vector.broadcast %636 : f32 to vector<8x8xf32>
    %638 = arith.mulf %631, %637 : vector<8x8xf32>
    %639 = arith.addf %635, %638 : vector<8x8xf32>
    %c1_276 = arith.constant 1 : index
    %c17_277 = arith.constant 17 : index
    %640 = memref.load %arg2[%c1_276, %c17_277] : memref<4x64xf32, #tpu.memory_space<smem>>
    %641 = vector.broadcast %640 : f32 to vector<8x8xf32>
    %642 = arith.mulf %630, %641 : vector<8x8xf32>
    %643 = arith.addf %611, %642 : vector<8x8xf32>
    %c1_278 = arith.constant 1 : index
    %c49_279 = arith.constant 49 : index
    %644 = memref.load %arg2[%c1_278, %c49_279] : memref<4x64xf32, #tpu.memory_space<smem>>
    %645 = vector.broadcast %644 : f32 to vector<8x8xf32>
    %646 = arith.mulf %631, %645 : vector<8x8xf32>
    %647 = arith.addf %643, %646 : vector<8x8xf32>
    %c2_280 = arith.constant 2 : index
    %c17_281 = arith.constant 17 : index
    %648 = memref.load %arg2[%c2_280, %c17_281] : memref<4x64xf32, #tpu.memory_space<smem>>
    %649 = vector.broadcast %648 : f32 to vector<8x8xf32>
    %650 = arith.mulf %630, %649 : vector<8x8xf32>
    %651 = arith.addf %619, %650 : vector<8x8xf32>
    %c2_282 = arith.constant 2 : index
    %c49_283 = arith.constant 49 : index
    %652 = memref.load %arg2[%c2_282, %c49_283] : memref<4x64xf32, #tpu.memory_space<smem>>
    %653 = vector.broadcast %652 : f32 to vector<8x8xf32>
    %654 = arith.mulf %631, %653 : vector<8x8xf32>
    %655 = arith.addf %651, %654 : vector<8x8xf32>
    %c3_284 = arith.constant 3 : index
    %c17_285 = arith.constant 17 : index
    %656 = memref.load %arg2[%c3_284, %c17_285] : memref<4x64xf32, #tpu.memory_space<smem>>
    %657 = vector.broadcast %656 : f32 to vector<8x8xf32>
    %658 = arith.mulf %630, %657 : vector<8x8xf32>
    %659 = arith.addf %627, %658 : vector<8x8xf32>
    %c3_286 = arith.constant 3 : index
    %c49_287 = arith.constant 49 : index
    %660 = memref.load %arg2[%c3_286, %c49_287] : memref<4x64xf32, #tpu.memory_space<smem>>
    %661 = vector.broadcast %660 : f32 to vector<8x8xf32>
    %662 = arith.mulf %631, %661 : vector<8x8xf32>
    %663 = arith.addf %659, %662 : vector<8x8xf32>
    %cst_288 = arith.constant 0.177827939 : f32
    %664 = vector.broadcast %cst_288 : f32 to vector<8x8xf32>
    %665 = arith.mulf %591, %664 : vector<8x8xf32>
    %666 = math.sin %665 : vector<8x8xf32>
    %667 = math.cos %665 : vector<8x8xf32>
    %c0_289 = arith.constant 0 : index
    %c18 = arith.constant 18 : index
    %668 = memref.load %arg2[%c0_289, %c18] : memref<4x64xf32, #tpu.memory_space<smem>>
    %669 = vector.broadcast %668 : f32 to vector<8x8xf32>
    %670 = arith.mulf %666, %669 : vector<8x8xf32>
    %671 = arith.addf %639, %670 : vector<8x8xf32>
    %c0_290 = arith.constant 0 : index
    %c50 = arith.constant 50 : index
    %672 = memref.load %arg2[%c0_290, %c50] : memref<4x64xf32, #tpu.memory_space<smem>>
    %673 = vector.broadcast %672 : f32 to vector<8x8xf32>
    %674 = arith.mulf %667, %673 : vector<8x8xf32>
    %675 = arith.addf %671, %674 : vector<8x8xf32>
    %c1_291 = arith.constant 1 : index
    %c18_292 = arith.constant 18 : index
    %676 = memref.load %arg2[%c1_291, %c18_292] : memref<4x64xf32, #tpu.memory_space<smem>>
    %677 = vector.broadcast %676 : f32 to vector<8x8xf32>
    %678 = arith.mulf %666, %677 : vector<8x8xf32>
    %679 = arith.addf %647, %678 : vector<8x8xf32>
    %c1_293 = arith.constant 1 : index
    %c50_294 = arith.constant 50 : index
    %680 = memref.load %arg2[%c1_293, %c50_294] : memref<4x64xf32, #tpu.memory_space<smem>>
    %681 = vector.broadcast %680 : f32 to vector<8x8xf32>
    %682 = arith.mulf %667, %681 : vector<8x8xf32>
    %683 = arith.addf %679, %682 : vector<8x8xf32>
    %c2_295 = arith.constant 2 : index
    %c18_296 = arith.constant 18 : index
    %684 = memref.load %arg2[%c2_295, %c18_296] : memref<4x64xf32, #tpu.memory_space<smem>>
    %685 = vector.broadcast %684 : f32 to vector<8x8xf32>
    %686 = arith.mulf %666, %685 : vector<8x8xf32>
    %687 = arith.addf %655, %686 : vector<8x8xf32>
    %c2_297 = arith.constant 2 : index
    %c50_298 = arith.constant 50 : index
    %688 = memref.load %arg2[%c2_297, %c50_298] : memref<4x64xf32, #tpu.memory_space<smem>>
    %689 = vector.broadcast %688 : f32 to vector<8x8xf32>
    %690 = arith.mulf %667, %689 : vector<8x8xf32>
    %691 = arith.addf %687, %690 : vector<8x8xf32>
    %c3_299 = arith.constant 3 : index
    %c18_300 = arith.constant 18 : index
    %692 = memref.load %arg2[%c3_299, %c18_300] : memref<4x64xf32, #tpu.memory_space<smem>>
    %693 = vector.broadcast %692 : f32 to vector<8x8xf32>
    %694 = arith.mulf %666, %693 : vector<8x8xf32>
    %695 = arith.addf %663, %694 : vector<8x8xf32>
    %c3_301 = arith.constant 3 : index
    %c50_302 = arith.constant 50 : index
    %696 = memref.load %arg2[%c3_301, %c50_302] : memref<4x64xf32, #tpu.memory_space<smem>>
    %697 = vector.broadcast %696 : f32 to vector<8x8xf32>
    %698 = arith.mulf %667, %697 : vector<8x8xf32>
    %699 = arith.addf %695, %698 : vector<8x8xf32>
    %cst_303 = arith.constant 0.0749894232 : f32
    %700 = vector.broadcast %cst_303 : f32 to vector<8x8xf32>
    %701 = arith.mulf %591, %700 : vector<8x8xf32>
    %702 = math.sin %701 : vector<8x8xf32>
    %703 = math.cos %701 : vector<8x8xf32>
    %c0_304 = arith.constant 0 : index
    %c19 = arith.constant 19 : index
    %704 = memref.load %arg2[%c0_304, %c19] : memref<4x64xf32, #tpu.memory_space<smem>>
    %705 = vector.broadcast %704 : f32 to vector<8x8xf32>
    %706 = arith.mulf %702, %705 : vector<8x8xf32>
    %707 = arith.addf %675, %706 : vector<8x8xf32>
    %c0_305 = arith.constant 0 : index
    %c51 = arith.constant 51 : index
    %708 = memref.load %arg2[%c0_305, %c51] : memref<4x64xf32, #tpu.memory_space<smem>>
    %709 = vector.broadcast %708 : f32 to vector<8x8xf32>
    %710 = arith.mulf %703, %709 : vector<8x8xf32>
    %711 = arith.addf %707, %710 : vector<8x8xf32>
    %c1_306 = arith.constant 1 : index
    %c19_307 = arith.constant 19 : index
    %712 = memref.load %arg2[%c1_306, %c19_307] : memref<4x64xf32, #tpu.memory_space<smem>>
    %713 = vector.broadcast %712 : f32 to vector<8x8xf32>
    %714 = arith.mulf %702, %713 : vector<8x8xf32>
    %715 = arith.addf %683, %714 : vector<8x8xf32>
    %c1_308 = arith.constant 1 : index
    %c51_309 = arith.constant 51 : index
    %716 = memref.load %arg2[%c1_308, %c51_309] : memref<4x64xf32, #tpu.memory_space<smem>>
    %717 = vector.broadcast %716 : f32 to vector<8x8xf32>
    %718 = arith.mulf %703, %717 : vector<8x8xf32>
    %719 = arith.addf %715, %718 : vector<8x8xf32>
    %c2_310 = arith.constant 2 : index
    %c19_311 = arith.constant 19 : index
    %720 = memref.load %arg2[%c2_310, %c19_311] : memref<4x64xf32, #tpu.memory_space<smem>>
    %721 = vector.broadcast %720 : f32 to vector<8x8xf32>
    %722 = arith.mulf %702, %721 : vector<8x8xf32>
    %723 = arith.addf %691, %722 : vector<8x8xf32>
    %c2_312 = arith.constant 2 : index
    %c51_313 = arith.constant 51 : index
    %724 = memref.load %arg2[%c2_312, %c51_313] : memref<4x64xf32, #tpu.memory_space<smem>>
    %725 = vector.broadcast %724 : f32 to vector<8x8xf32>
    %726 = arith.mulf %703, %725 : vector<8x8xf32>
    %727 = arith.addf %723, %726 : vector<8x8xf32>
    %c3_314 = arith.constant 3 : index
    %c19_315 = arith.constant 19 : index
    %728 = memref.load %arg2[%c3_314, %c19_315] : memref<4x64xf32, #tpu.memory_space<smem>>
    %729 = vector.broadcast %728 : f32 to vector<8x8xf32>
    %730 = arith.mulf %702, %729 : vector<8x8xf32>
    %731 = arith.addf %699, %730 : vector<8x8xf32>
    %c3_316 = arith.constant 3 : index
    %c51_317 = arith.constant 51 : index
    %732 = memref.load %arg2[%c3_316, %c51_317] : memref<4x64xf32, #tpu.memory_space<smem>>
    %733 = vector.broadcast %732 : f32 to vector<8x8xf32>
    %734 = arith.mulf %703, %733 : vector<8x8xf32>
    %735 = arith.addf %731, %734 : vector<8x8xf32>
    %cst_318 = arith.constant 0.0316227749 : f32
    %736 = vector.broadcast %cst_318 : f32 to vector<8x8xf32>
    %737 = arith.mulf %591, %736 : vector<8x8xf32>
    %738 = math.sin %737 : vector<8x8xf32>
    %739 = math.cos %737 : vector<8x8xf32>
    %c0_319 = arith.constant 0 : index
    %c20 = arith.constant 20 : index
    %740 = memref.load %arg2[%c0_319, %c20] : memref<4x64xf32, #tpu.memory_space<smem>>
    %741 = vector.broadcast %740 : f32 to vector<8x8xf32>
    %742 = arith.mulf %738, %741 : vector<8x8xf32>
    %743 = arith.addf %711, %742 : vector<8x8xf32>
    %c0_320 = arith.constant 0 : index
    %c52 = arith.constant 52 : index
    %744 = memref.load %arg2[%c0_320, %c52] : memref<4x64xf32, #tpu.memory_space<smem>>
    %745 = vector.broadcast %744 : f32 to vector<8x8xf32>
    %746 = arith.mulf %739, %745 : vector<8x8xf32>
    %747 = arith.addf %743, %746 : vector<8x8xf32>
    %c1_321 = arith.constant 1 : index
    %c20_322 = arith.constant 20 : index
    %748 = memref.load %arg2[%c1_321, %c20_322] : memref<4x64xf32, #tpu.memory_space<smem>>
    %749 = vector.broadcast %748 : f32 to vector<8x8xf32>
    %750 = arith.mulf %738, %749 : vector<8x8xf32>
    %751 = arith.addf %719, %750 : vector<8x8xf32>
    %c1_323 = arith.constant 1 : index
    %c52_324 = arith.constant 52 : index
    %752 = memref.load %arg2[%c1_323, %c52_324] : memref<4x64xf32, #tpu.memory_space<smem>>
    %753 = vector.broadcast %752 : f32 to vector<8x8xf32>
    %754 = arith.mulf %739, %753 : vector<8x8xf32>
    %755 = arith.addf %751, %754 : vector<8x8xf32>
    %c2_325 = arith.constant 2 : index
    %c20_326 = arith.constant 20 : index
    %756 = memref.load %arg2[%c2_325, %c20_326] : memref<4x64xf32, #tpu.memory_space<smem>>
    %757 = vector.broadcast %756 : f32 to vector<8x8xf32>
    %758 = arith.mulf %738, %757 : vector<8x8xf32>
    %759 = arith.addf %727, %758 : vector<8x8xf32>
    %c2_327 = arith.constant 2 : index
    %c52_328 = arith.constant 52 : index
    %760 = memref.load %arg2[%c2_327, %c52_328] : memref<4x64xf32, #tpu.memory_space<smem>>
    %761 = vector.broadcast %760 : f32 to vector<8x8xf32>
    %762 = arith.mulf %739, %761 : vector<8x8xf32>
    %763 = arith.addf %759, %762 : vector<8x8xf32>
    %c3_329 = arith.constant 3 : index
    %c20_330 = arith.constant 20 : index
    %764 = memref.load %arg2[%c3_329, %c20_330] : memref<4x64xf32, #tpu.memory_space<smem>>
    %765 = vector.broadcast %764 : f32 to vector<8x8xf32>
    %766 = arith.mulf %738, %765 : vector<8x8xf32>
    %767 = arith.addf %735, %766 : vector<8x8xf32>
    %c3_331 = arith.constant 3 : index
    %c52_332 = arith.constant 52 : index
    %768 = memref.load %arg2[%c3_331, %c52_332] : memref<4x64xf32, #tpu.memory_space<smem>>
    %769 = vector.broadcast %768 : f32 to vector<8x8xf32>
    %770 = arith.mulf %739, %769 : vector<8x8xf32>
    %771 = arith.addf %767, %770 : vector<8x8xf32>
    %cst_333 = arith.constant 0.013335214 : f32
    %772 = vector.broadcast %cst_333 : f32 to vector<8x8xf32>
    %773 = arith.mulf %591, %772 : vector<8x8xf32>
    %774 = math.sin %773 : vector<8x8xf32>
    %775 = math.cos %773 : vector<8x8xf32>
    %c0_334 = arith.constant 0 : index
    %c21 = arith.constant 21 : index
    %776 = memref.load %arg2[%c0_334, %c21] : memref<4x64xf32, #tpu.memory_space<smem>>
    %777 = vector.broadcast %776 : f32 to vector<8x8xf32>
    %778 = arith.mulf %774, %777 : vector<8x8xf32>
    %779 = arith.addf %747, %778 : vector<8x8xf32>
    %c0_335 = arith.constant 0 : index
    %c53 = arith.constant 53 : index
    %780 = memref.load %arg2[%c0_335, %c53] : memref<4x64xf32, #tpu.memory_space<smem>>
    %781 = vector.broadcast %780 : f32 to vector<8x8xf32>
    %782 = arith.mulf %775, %781 : vector<8x8xf32>
    %783 = arith.addf %779, %782 : vector<8x8xf32>
    %c1_336 = arith.constant 1 : index
    %c21_337 = arith.constant 21 : index
    %784 = memref.load %arg2[%c1_336, %c21_337] : memref<4x64xf32, #tpu.memory_space<smem>>
    %785 = vector.broadcast %784 : f32 to vector<8x8xf32>
    %786 = arith.mulf %774, %785 : vector<8x8xf32>
    %787 = arith.addf %755, %786 : vector<8x8xf32>
    %c1_338 = arith.constant 1 : index
    %c53_339 = arith.constant 53 : index
    %788 = memref.load %arg2[%c1_338, %c53_339] : memref<4x64xf32, #tpu.memory_space<smem>>
    %789 = vector.broadcast %788 : f32 to vector<8x8xf32>
    %790 = arith.mulf %775, %789 : vector<8x8xf32>
    %791 = arith.addf %787, %790 : vector<8x8xf32>
    %c2_340 = arith.constant 2 : index
    %c21_341 = arith.constant 21 : index
    %792 = memref.load %arg2[%c2_340, %c21_341] : memref<4x64xf32, #tpu.memory_space<smem>>
    %793 = vector.broadcast %792 : f32 to vector<8x8xf32>
    %794 = arith.mulf %774, %793 : vector<8x8xf32>
    %795 = arith.addf %763, %794 : vector<8x8xf32>
    %c2_342 = arith.constant 2 : index
    %c53_343 = arith.constant 53 : index
    %796 = memref.load %arg2[%c2_342, %c53_343] : memref<4x64xf32, #tpu.memory_space<smem>>
    %797 = vector.broadcast %796 : f32 to vector<8x8xf32>
    %798 = arith.mulf %775, %797 : vector<8x8xf32>
    %799 = arith.addf %795, %798 : vector<8x8xf32>
    %c3_344 = arith.constant 3 : index
    %c21_345 = arith.constant 21 : index
    %800 = memref.load %arg2[%c3_344, %c21_345] : memref<4x64xf32, #tpu.memory_space<smem>>
    %801 = vector.broadcast %800 : f32 to vector<8x8xf32>
    %802 = arith.mulf %774, %801 : vector<8x8xf32>
    %803 = arith.addf %771, %802 : vector<8x8xf32>
    %c3_346 = arith.constant 3 : index
    %c53_347 = arith.constant 53 : index
    %804 = memref.load %arg2[%c3_346, %c53_347] : memref<4x64xf32, #tpu.memory_space<smem>>
    %805 = vector.broadcast %804 : f32 to vector<8x8xf32>
    %806 = arith.mulf %775, %805 : vector<8x8xf32>
    %807 = arith.addf %803, %806 : vector<8x8xf32>
    %cst_348 = arith.constant 0.00562341325 : f32
    %808 = vector.broadcast %cst_348 : f32 to vector<8x8xf32>
    %809 = arith.mulf %591, %808 : vector<8x8xf32>
    %810 = math.sin %809 : vector<8x8xf32>
    %811 = math.cos %809 : vector<8x8xf32>
    %c0_349 = arith.constant 0 : index
    %c22 = arith.constant 22 : index
    %812 = memref.load %arg2[%c0_349, %c22] : memref<4x64xf32, #tpu.memory_space<smem>>
    %813 = vector.broadcast %812 : f32 to vector<8x8xf32>
    %814 = arith.mulf %810, %813 : vector<8x8xf32>
    %815 = arith.addf %783, %814 : vector<8x8xf32>
    %c0_350 = arith.constant 0 : index
    %c54 = arith.constant 54 : index
    %816 = memref.load %arg2[%c0_350, %c54] : memref<4x64xf32, #tpu.memory_space<smem>>
    %817 = vector.broadcast %816 : f32 to vector<8x8xf32>
    %818 = arith.mulf %811, %817 : vector<8x8xf32>
    %819 = arith.addf %815, %818 : vector<8x8xf32>
    %c1_351 = arith.constant 1 : index
    %c22_352 = arith.constant 22 : index
    %820 = memref.load %arg2[%c1_351, %c22_352] : memref<4x64xf32, #tpu.memory_space<smem>>
    %821 = vector.broadcast %820 : f32 to vector<8x8xf32>
    %822 = arith.mulf %810, %821 : vector<8x8xf32>
    %823 = arith.addf %791, %822 : vector<8x8xf32>
    %c1_353 = arith.constant 1 : index
    %c54_354 = arith.constant 54 : index
    %824 = memref.load %arg2[%c1_353, %c54_354] : memref<4x64xf32, #tpu.memory_space<smem>>
    %825 = vector.broadcast %824 : f32 to vector<8x8xf32>
    %826 = arith.mulf %811, %825 : vector<8x8xf32>
    %827 = arith.addf %823, %826 : vector<8x8xf32>
    %c2_355 = arith.constant 2 : index
    %c22_356 = arith.constant 22 : index
    %828 = memref.load %arg2[%c2_355, %c22_356] : memref<4x64xf32, #tpu.memory_space<smem>>
    %829 = vector.broadcast %828 : f32 to vector<8x8xf32>
    %830 = arith.mulf %810, %829 : vector<8x8xf32>
    %831 = arith.addf %799, %830 : vector<8x8xf32>
    %c2_357 = arith.constant 2 : index
    %c54_358 = arith.constant 54 : index
    %832 = memref.load %arg2[%c2_357, %c54_358] : memref<4x64xf32, #tpu.memory_space<smem>>
    %833 = vector.broadcast %832 : f32 to vector<8x8xf32>
    %834 = arith.mulf %811, %833 : vector<8x8xf32>
    %835 = arith.addf %831, %834 : vector<8x8xf32>
    %c3_359 = arith.constant 3 : index
    %c22_360 = arith.constant 22 : index
    %836 = memref.load %arg2[%c3_359, %c22_360] : memref<4x64xf32, #tpu.memory_space<smem>>
    %837 = vector.broadcast %836 : f32 to vector<8x8xf32>
    %838 = arith.mulf %810, %837 : vector<8x8xf32>
    %839 = arith.addf %807, %838 : vector<8x8xf32>
    %c3_361 = arith.constant 3 : index
    %c54_362 = arith.constant 54 : index
    %840 = memref.load %arg2[%c3_361, %c54_362] : memref<4x64xf32, #tpu.memory_space<smem>>
    %841 = vector.broadcast %840 : f32 to vector<8x8xf32>
    %842 = arith.mulf %811, %841 : vector<8x8xf32>
    %843 = arith.addf %839, %842 : vector<8x8xf32>
    %cst_363 = arith.constant 0.00237137382 : f32
    %844 = vector.broadcast %cst_363 : f32 to vector<8x8xf32>
    %845 = arith.mulf %591, %844 : vector<8x8xf32>
    %846 = math.sin %845 : vector<8x8xf32>
    %847 = math.cos %845 : vector<8x8xf32>
    %c0_364 = arith.constant 0 : index
    %c23 = arith.constant 23 : index
    %848 = memref.load %arg2[%c0_364, %c23] : memref<4x64xf32, #tpu.memory_space<smem>>
    %849 = vector.broadcast %848 : f32 to vector<8x8xf32>
    %850 = arith.mulf %846, %849 : vector<8x8xf32>
    %851 = arith.addf %819, %850 : vector<8x8xf32>
    %c0_365 = arith.constant 0 : index
    %c55 = arith.constant 55 : index
    %852 = memref.load %arg2[%c0_365, %c55] : memref<4x64xf32, #tpu.memory_space<smem>>
    %853 = vector.broadcast %852 : f32 to vector<8x8xf32>
    %854 = arith.mulf %847, %853 : vector<8x8xf32>
    %855 = arith.addf %851, %854 : vector<8x8xf32>
    %c1_366 = arith.constant 1 : index
    %c23_367 = arith.constant 23 : index
    %856 = memref.load %arg2[%c1_366, %c23_367] : memref<4x64xf32, #tpu.memory_space<smem>>
    %857 = vector.broadcast %856 : f32 to vector<8x8xf32>
    %858 = arith.mulf %846, %857 : vector<8x8xf32>
    %859 = arith.addf %827, %858 : vector<8x8xf32>
    %c1_368 = arith.constant 1 : index
    %c55_369 = arith.constant 55 : index
    %860 = memref.load %arg2[%c1_368, %c55_369] : memref<4x64xf32, #tpu.memory_space<smem>>
    %861 = vector.broadcast %860 : f32 to vector<8x8xf32>
    %862 = arith.mulf %847, %861 : vector<8x8xf32>
    %863 = arith.addf %859, %862 : vector<8x8xf32>
    %c2_370 = arith.constant 2 : index
    %c23_371 = arith.constant 23 : index
    %864 = memref.load %arg2[%c2_370, %c23_371] : memref<4x64xf32, #tpu.memory_space<smem>>
    %865 = vector.broadcast %864 : f32 to vector<8x8xf32>
    %866 = arith.mulf %846, %865 : vector<8x8xf32>
    %867 = arith.addf %835, %866 : vector<8x8xf32>
    %c2_372 = arith.constant 2 : index
    %c55_373 = arith.constant 55 : index
    %868 = memref.load %arg2[%c2_372, %c55_373] : memref<4x64xf32, #tpu.memory_space<smem>>
    %869 = vector.broadcast %868 : f32 to vector<8x8xf32>
    %870 = arith.mulf %847, %869 : vector<8x8xf32>
    %871 = arith.addf %867, %870 : vector<8x8xf32>
    %c3_374 = arith.constant 3 : index
    %c23_375 = arith.constant 23 : index
    %872 = memref.load %arg2[%c3_374, %c23_375] : memref<4x64xf32, #tpu.memory_space<smem>>
    %873 = vector.broadcast %872 : f32 to vector<8x8xf32>
    %874 = arith.mulf %846, %873 : vector<8x8xf32>
    %875 = arith.addf %843, %874 : vector<8x8xf32>
    %c3_376 = arith.constant 3 : index
    %c55_377 = arith.constant 55 : index
    %876 = memref.load %arg2[%c3_376, %c55_377] : memref<4x64xf32, #tpu.memory_space<smem>>
    %877 = vector.broadcast %876 : f32 to vector<8x8xf32>
    %878 = arith.mulf %847, %877 : vector<8x8xf32>
    %879 = arith.addf %875, %878 : vector<8x8xf32>
    %c0_378 = arith.constant 0 : index
    %c3_379 = arith.constant 3 : index
    %c0_380 = arith.constant 0 : index
    %c0_381 = arith.constant 0 : index
    %880 = vector.load %arg1[%c0_378, %c3_379, %c0_380, %c0_381] : memref<1x4x8x8xf32, #tpu.memory_space<vmem>>, vector<1x1x8x8xf32>
    %881 = vector.shape_cast %880 : vector<1x1x8x8xf32> to vector<8x8xf32>
    %cst_382 = arith.constant 1.000000e+02 : f32
    %882 = vector.broadcast %cst_382 : f32 to vector<8x8xf32>
    %883 = arith.mulf %881, %882 : vector<8x8xf32>
    %cst_383 = arith.constant 1.000000e+00 : f32
    %884 = vector.broadcast %cst_383 : f32 to vector<8x8xf32>
    %885 = arith.mulf %883, %884 : vector<8x8xf32>
    %886 = math.sin %885 : vector<8x8xf32>
    %887 = math.cos %885 : vector<8x8xf32>
    %c0_384 = arith.constant 0 : index
    %c24 = arith.constant 24 : index
    %888 = memref.load %arg2[%c0_384, %c24] : memref<4x64xf32, #tpu.memory_space<smem>>
    %889 = vector.broadcast %888 : f32 to vector<8x8xf32>
    %890 = arith.mulf %886, %889 : vector<8x8xf32>
    %891 = arith.addf %855, %890 : vector<8x8xf32>
    %c0_385 = arith.constant 0 : index
    %c56 = arith.constant 56 : index
    %892 = memref.load %arg2[%c0_385, %c56] : memref<4x64xf32, #tpu.memory_space<smem>>
    %893 = vector.broadcast %892 : f32 to vector<8x8xf32>
    %894 = arith.mulf %887, %893 : vector<8x8xf32>
    %895 = arith.addf %891, %894 : vector<8x8xf32>
    %c1_386 = arith.constant 1 : index
    %c24_387 = arith.constant 24 : index
    %896 = memref.load %arg2[%c1_386, %c24_387] : memref<4x64xf32, #tpu.memory_space<smem>>
    %897 = vector.broadcast %896 : f32 to vector<8x8xf32>
    %898 = arith.mulf %886, %897 : vector<8x8xf32>
    %899 = arith.addf %863, %898 : vector<8x8xf32>
    %c1_388 = arith.constant 1 : index
    %c56_389 = arith.constant 56 : index
    %900 = memref.load %arg2[%c1_388, %c56_389] : memref<4x64xf32, #tpu.memory_space<smem>>
    %901 = vector.broadcast %900 : f32 to vector<8x8xf32>
    %902 = arith.mulf %887, %901 : vector<8x8xf32>
    %903 = arith.addf %899, %902 : vector<8x8xf32>
    %c2_390 = arith.constant 2 : index
    %c24_391 = arith.constant 24 : index
    %904 = memref.load %arg2[%c2_390, %c24_391] : memref<4x64xf32, #tpu.memory_space<smem>>
    %905 = vector.broadcast %904 : f32 to vector<8x8xf32>
    %906 = arith.mulf %886, %905 : vector<8x8xf32>
    %907 = arith.addf %871, %906 : vector<8x8xf32>
    %c2_392 = arith.constant 2 : index
    %c56_393 = arith.constant 56 : index
    %908 = memref.load %arg2[%c2_392, %c56_393] : memref<4x64xf32, #tpu.memory_space<smem>>
    %909 = vector.broadcast %908 : f32 to vector<8x8xf32>
    %910 = arith.mulf %887, %909 : vector<8x8xf32>
    %911 = arith.addf %907, %910 : vector<8x8xf32>
    %c3_394 = arith.constant 3 : index
    %c24_395 = arith.constant 24 : index
    %912 = memref.load %arg2[%c3_394, %c24_395] : memref<4x64xf32, #tpu.memory_space<smem>>
    %913 = vector.broadcast %912 : f32 to vector<8x8xf32>
    %914 = arith.mulf %886, %913 : vector<8x8xf32>
    %915 = arith.addf %879, %914 : vector<8x8xf32>
    %c3_396 = arith.constant 3 : index
    %c56_397 = arith.constant 56 : index
    %916 = memref.load %arg2[%c3_396, %c56_397] : memref<4x64xf32, #tpu.memory_space<smem>>
    %917 = vector.broadcast %916 : f32 to vector<8x8xf32>
    %918 = arith.mulf %887, %917 : vector<8x8xf32>
    %919 = arith.addf %915, %918 : vector<8x8xf32>
    %cst_398 = arith.constant 0.421696514 : f32
    %920 = vector.broadcast %cst_398 : f32 to vector<8x8xf32>
    %921 = arith.mulf %883, %920 : vector<8x8xf32>
    %922 = math.sin %921 : vector<8x8xf32>
    %923 = math.cos %921 : vector<8x8xf32>
    %c0_399 = arith.constant 0 : index
    %c25 = arith.constant 25 : index
    %924 = memref.load %arg2[%c0_399, %c25] : memref<4x64xf32, #tpu.memory_space<smem>>
    %925 = vector.broadcast %924 : f32 to vector<8x8xf32>
    %926 = arith.mulf %922, %925 : vector<8x8xf32>
    %927 = arith.addf %895, %926 : vector<8x8xf32>
    %c0_400 = arith.constant 0 : index
    %c57 = arith.constant 57 : index
    %928 = memref.load %arg2[%c0_400, %c57] : memref<4x64xf32, #tpu.memory_space<smem>>
    %929 = vector.broadcast %928 : f32 to vector<8x8xf32>
    %930 = arith.mulf %923, %929 : vector<8x8xf32>
    %931 = arith.addf %927, %930 : vector<8x8xf32>
    %c1_401 = arith.constant 1 : index
    %c25_402 = arith.constant 25 : index
    %932 = memref.load %arg2[%c1_401, %c25_402] : memref<4x64xf32, #tpu.memory_space<smem>>
    %933 = vector.broadcast %932 : f32 to vector<8x8xf32>
    %934 = arith.mulf %922, %933 : vector<8x8xf32>
    %935 = arith.addf %903, %934 : vector<8x8xf32>
    %c1_403 = arith.constant 1 : index
    %c57_404 = arith.constant 57 : index
    %936 = memref.load %arg2[%c1_403, %c57_404] : memref<4x64xf32, #tpu.memory_space<smem>>
    %937 = vector.broadcast %936 : f32 to vector<8x8xf32>
    %938 = arith.mulf %923, %937 : vector<8x8xf32>
    %939 = arith.addf %935, %938 : vector<8x8xf32>
    %c2_405 = arith.constant 2 : index
    %c25_406 = arith.constant 25 : index
    %940 = memref.load %arg2[%c2_405, %c25_406] : memref<4x64xf32, #tpu.memory_space<smem>>
    %941 = vector.broadcast %940 : f32 to vector<8x8xf32>
    %942 = arith.mulf %922, %941 : vector<8x8xf32>
    %943 = arith.addf %911, %942 : vector<8x8xf32>
    %c2_407 = arith.constant 2 : index
    %c57_408 = arith.constant 57 : index
    %944 = memref.load %arg2[%c2_407, %c57_408] : memref<4x64xf32, #tpu.memory_space<smem>>
    %945 = vector.broadcast %944 : f32 to vector<8x8xf32>
    %946 = arith.mulf %923, %945 : vector<8x8xf32>
    %947 = arith.addf %943, %946 : vector<8x8xf32>
    %c3_409 = arith.constant 3 : index
    %c25_410 = arith.constant 25 : index
    %948 = memref.load %arg2[%c3_409, %c25_410] : memref<4x64xf32, #tpu.memory_space<smem>>
    %949 = vector.broadcast %948 : f32 to vector<8x8xf32>
    %950 = arith.mulf %922, %949 : vector<8x8xf32>
    %951 = arith.addf %919, %950 : vector<8x8xf32>
    %c3_411 = arith.constant 3 : index
    %c57_412 = arith.constant 57 : index
    %952 = memref.load %arg2[%c3_411, %c57_412] : memref<4x64xf32, #tpu.memory_space<smem>>
    %953 = vector.broadcast %952 : f32 to vector<8x8xf32>
    %954 = arith.mulf %923, %953 : vector<8x8xf32>
    %955 = arith.addf %951, %954 : vector<8x8xf32>
    %cst_413 = arith.constant 0.177827939 : f32
    %956 = vector.broadcast %cst_413 : f32 to vector<8x8xf32>
    %957 = arith.mulf %883, %956 : vector<8x8xf32>
    %958 = math.sin %957 : vector<8x8xf32>
    %959 = math.cos %957 : vector<8x8xf32>
    %c0_414 = arith.constant 0 : index
    %c26 = arith.constant 26 : index
    %960 = memref.load %arg2[%c0_414, %c26] : memref<4x64xf32, #tpu.memory_space<smem>>
    %961 = vector.broadcast %960 : f32 to vector<8x8xf32>
    %962 = arith.mulf %958, %961 : vector<8x8xf32>
    %963 = arith.addf %931, %962 : vector<8x8xf32>
    %c0_415 = arith.constant 0 : index
    %c58 = arith.constant 58 : index
    %964 = memref.load %arg2[%c0_415, %c58] : memref<4x64xf32, #tpu.memory_space<smem>>
    %965 = vector.broadcast %964 : f32 to vector<8x8xf32>
    %966 = arith.mulf %959, %965 : vector<8x8xf32>
    %967 = arith.addf %963, %966 : vector<8x8xf32>
    %c1_416 = arith.constant 1 : index
    %c26_417 = arith.constant 26 : index
    %968 = memref.load %arg2[%c1_416, %c26_417] : memref<4x64xf32, #tpu.memory_space<smem>>
    %969 = vector.broadcast %968 : f32 to vector<8x8xf32>
    %970 = arith.mulf %958, %969 : vector<8x8xf32>
    %971 = arith.addf %939, %970 : vector<8x8xf32>
    %c1_418 = arith.constant 1 : index
    %c58_419 = arith.constant 58 : index
    %972 = memref.load %arg2[%c1_418, %c58_419] : memref<4x64xf32, #tpu.memory_space<smem>>
    %973 = vector.broadcast %972 : f32 to vector<8x8xf32>
    %974 = arith.mulf %959, %973 : vector<8x8xf32>
    %975 = arith.addf %971, %974 : vector<8x8xf32>
    %c2_420 = arith.constant 2 : index
    %c26_421 = arith.constant 26 : index
    %976 = memref.load %arg2[%c2_420, %c26_421] : memref<4x64xf32, #tpu.memory_space<smem>>
    %977 = vector.broadcast %976 : f32 to vector<8x8xf32>
    %978 = arith.mulf %958, %977 : vector<8x8xf32>
    %979 = arith.addf %947, %978 : vector<8x8xf32>
    %c2_422 = arith.constant 2 : index
    %c58_423 = arith.constant 58 : index
    %980 = memref.load %arg2[%c2_422, %c58_423] : memref<4x64xf32, #tpu.memory_space<smem>>
    %981 = vector.broadcast %980 : f32 to vector<8x8xf32>
    %982 = arith.mulf %959, %981 : vector<8x8xf32>
    %983 = arith.addf %979, %982 : vector<8x8xf32>
    %c3_424 = arith.constant 3 : index
    %c26_425 = arith.constant 26 : index
    %984 = memref.load %arg2[%c3_424, %c26_425] : memref<4x64xf32, #tpu.memory_space<smem>>
    %985 = vector.broadcast %984 : f32 to vector<8x8xf32>
    %986 = arith.mulf %958, %985 : vector<8x8xf32>
    %987 = arith.addf %955, %986 : vector<8x8xf32>
    %c3_426 = arith.constant 3 : index
    %c58_427 = arith.constant 58 : index
    %988 = memref.load %arg2[%c3_426, %c58_427] : memref<4x64xf32, #tpu.memory_space<smem>>
    %989 = vector.broadcast %988 : f32 to vector<8x8xf32>
    %990 = arith.mulf %959, %989 : vector<8x8xf32>
    %991 = arith.addf %987, %990 : vector<8x8xf32>
    %cst_428 = arith.constant 0.0749894232 : f32
    %992 = vector.broadcast %cst_428 : f32 to vector<8x8xf32>
    %993 = arith.mulf %883, %992 : vector<8x8xf32>
    %994 = math.sin %993 : vector<8x8xf32>
    %995 = math.cos %993 : vector<8x8xf32>
    %c0_429 = arith.constant 0 : index
    %c27 = arith.constant 27 : index
    %996 = memref.load %arg2[%c0_429, %c27] : memref<4x64xf32, #tpu.memory_space<smem>>
    %997 = vector.broadcast %996 : f32 to vector<8x8xf32>
    %998 = arith.mulf %994, %997 : vector<8x8xf32>
    %999 = arith.addf %967, %998 : vector<8x8xf32>
    %c0_430 = arith.constant 0 : index
    %c59 = arith.constant 59 : index
    %1000 = memref.load %arg2[%c0_430, %c59] : memref<4x64xf32, #tpu.memory_space<smem>>
    %1001 = vector.broadcast %1000 : f32 to vector<8x8xf32>
    %1002 = arith.mulf %995, %1001 : vector<8x8xf32>
    %1003 = arith.addf %999, %1002 : vector<8x8xf32>
    %c1_431 = arith.constant 1 : index
    %c27_432 = arith.constant 27 : index
    %1004 = memref.load %arg2[%c1_431, %c27_432] : memref<4x64xf32, #tpu.memory_space<smem>>
    %1005 = vector.broadcast %1004 : f32 to vector<8x8xf32>
    %1006 = arith.mulf %994, %1005 : vector<8x8xf32>
    %1007 = arith.addf %975, %1006 : vector<8x8xf32>
    %c1_433 = arith.constant 1 : index
    %c59_434 = arith.constant 59 : index
    %1008 = memref.load %arg2[%c1_433, %c59_434] : memref<4x64xf32, #tpu.memory_space<smem>>
    %1009 = vector.broadcast %1008 : f32 to vector<8x8xf32>
    %1010 = arith.mulf %995, %1009 : vector<8x8xf32>
    %1011 = arith.addf %1007, %1010 : vector<8x8xf32>
    %c2_435 = arith.constant 2 : index
    %c27_436 = arith.constant 27 : index
    %1012 = memref.load %arg2[%c2_435, %c27_436] : memref<4x64xf32, #tpu.memory_space<smem>>
    %1013 = vector.broadcast %1012 : f32 to vector<8x8xf32>
    %1014 = arith.mulf %994, %1013 : vector<8x8xf32>
    %1015 = arith.addf %983, %1014 : vector<8x8xf32>
    %c2_437 = arith.constant 2 : index
    %c59_438 = arith.constant 59 : index
    %1016 = memref.load %arg2[%c2_437, %c59_438] : memref<4x64xf32, #tpu.memory_space<smem>>
    %1017 = vector.broadcast %1016 : f32 to vector<8x8xf32>
    %1018 = arith.mulf %995, %1017 : vector<8x8xf32>
    %1019 = arith.addf %1015, %1018 : vector<8x8xf32>
    %c3_439 = arith.constant 3 : index
    %c27_440 = arith.constant 27 : index
    %1020 = memref.load %arg2[%c3_439, %c27_440] : memref<4x64xf32, #tpu.memory_space<smem>>
    %1021 = vector.broadcast %1020 : f32 to vector<8x8xf32>
    %1022 = arith.mulf %994, %1021 : vector<8x8xf32>
    %1023 = arith.addf %991, %1022 : vector<8x8xf32>
    %c3_441 = arith.constant 3 : index
    %c59_442 = arith.constant 59 : index
    %1024 = memref.load %arg2[%c3_441, %c59_442] : memref<4x64xf32, #tpu.memory_space<smem>>
    %1025 = vector.broadcast %1024 : f32 to vector<8x8xf32>
    %1026 = arith.mulf %995, %1025 : vector<8x8xf32>
    %1027 = arith.addf %1023, %1026 : vector<8x8xf32>
    %cst_443 = arith.constant 0.0316227749 : f32
    %1028 = vector.broadcast %cst_443 : f32 to vector<8x8xf32>
    %1029 = arith.mulf %883, %1028 : vector<8x8xf32>
    %1030 = math.sin %1029 : vector<8x8xf32>
    %1031 = math.cos %1029 : vector<8x8xf32>
    %c0_444 = arith.constant 0 : index
    %c28 = arith.constant 28 : index
    %1032 = memref.load %arg2[%c0_444, %c28] : memref<4x64xf32, #tpu.memory_space<smem>>
    %1033 = vector.broadcast %1032 : f32 to vector<8x8xf32>
    %1034 = arith.mulf %1030, %1033 : vector<8x8xf32>
    %1035 = arith.addf %1003, %1034 : vector<8x8xf32>
    %c0_445 = arith.constant 0 : index
    %c60 = arith.constant 60 : index
    %1036 = memref.load %arg2[%c0_445, %c60] : memref<4x64xf32, #tpu.memory_space<smem>>
    %1037 = vector.broadcast %1036 : f32 to vector<8x8xf32>
    %1038 = arith.mulf %1031, %1037 : vector<8x8xf32>
    %1039 = arith.addf %1035, %1038 : vector<8x8xf32>
    %c1_446 = arith.constant 1 : index
    %c28_447 = arith.constant 28 : index
    %1040 = memref.load %arg2[%c1_446, %c28_447] : memref<4x64xf32, #tpu.memory_space<smem>>
    %1041 = vector.broadcast %1040 : f32 to vector<8x8xf32>
    %1042 = arith.mulf %1030, %1041 : vector<8x8xf32>
    %1043 = arith.addf %1011, %1042 : vector<8x8xf32>
    %c1_448 = arith.constant 1 : index
    %c60_449 = arith.constant 60 : index
    %1044 = memref.load %arg2[%c1_448, %c60_449] : memref<4x64xf32, #tpu.memory_space<smem>>
    %1045 = vector.broadcast %1044 : f32 to vector<8x8xf32>
    %1046 = arith.mulf %1031, %1045 : vector<8x8xf32>
    %1047 = arith.addf %1043, %1046 : vector<8x8xf32>
    %c2_450 = arith.constant 2 : index
    %c28_451 = arith.constant 28 : index
    %1048 = memref.load %arg2[%c2_450, %c28_451] : memref<4x64xf32, #tpu.memory_space<smem>>
    %1049 = vector.broadcast %1048 : f32 to vector<8x8xf32>
    %1050 = arith.mulf %1030, %1049 : vector<8x8xf32>
    %1051 = arith.addf %1019, %1050 : vector<8x8xf32>
    %c2_452 = arith.constant 2 : index
    %c60_453 = arith.constant 60 : index
    %1052 = memref.load %arg2[%c2_452, %c60_453] : memref<4x64xf32, #tpu.memory_space<smem>>
    %1053 = vector.broadcast %1052 : f32 to vector<8x8xf32>
    %1054 = arith.mulf %1031, %1053 : vector<8x8xf32>
    %1055 = arith.addf %1051, %1054 : vector<8x8xf32>
    %c3_454 = arith.constant 3 : index
    %c28_455 = arith.constant 28 : index
    %1056 = memref.load %arg2[%c3_454, %c28_455] : memref<4x64xf32, #tpu.memory_space<smem>>
    %1057 = vector.broadcast %1056 : f32 to vector<8x8xf32>
    %1058 = arith.mulf %1030, %1057 : vector<8x8xf32>
    %1059 = arith.addf %1027, %1058 : vector<8x8xf32>
    %c3_456 = arith.constant 3 : index
    %c60_457 = arith.constant 60 : index
    %1060 = memref.load %arg2[%c3_456, %c60_457] : memref<4x64xf32, #tpu.memory_space<smem>>
    %1061 = vector.broadcast %1060 : f32 to vector<8x8xf32>
    %1062 = arith.mulf %1031, %1061 : vector<8x8xf32>
    %1063 = arith.addf %1059, %1062 : vector<8x8xf32>
    %cst_458 = arith.constant 0.013335214 : f32
    %1064 = vector.broadcast %cst_458 : f32 to vector<8x8xf32>
    %1065 = arith.mulf %883, %1064 : vector<8x8xf32>
    %1066 = math.sin %1065 : vector<8x8xf32>
    %1067 = math.cos %1065 : vector<8x8xf32>
    %c0_459 = arith.constant 0 : index
    %c29 = arith.constant 29 : index
    %1068 = memref.load %arg2[%c0_459, %c29] : memref<4x64xf32, #tpu.memory_space<smem>>
    %1069 = vector.broadcast %1068 : f32 to vector<8x8xf32>
    %1070 = arith.mulf %1066, %1069 : vector<8x8xf32>
    %1071 = arith.addf %1039, %1070 : vector<8x8xf32>
    %c0_460 = arith.constant 0 : index
    %c61 = arith.constant 61 : index
    %1072 = memref.load %arg2[%c0_460, %c61] : memref<4x64xf32, #tpu.memory_space<smem>>
    %1073 = vector.broadcast %1072 : f32 to vector<8x8xf32>
    %1074 = arith.mulf %1067, %1073 : vector<8x8xf32>
    %1075 = arith.addf %1071, %1074 : vector<8x8xf32>
    %c1_461 = arith.constant 1 : index
    %c29_462 = arith.constant 29 : index
    %1076 = memref.load %arg2[%c1_461, %c29_462] : memref<4x64xf32, #tpu.memory_space<smem>>
    %1077 = vector.broadcast %1076 : f32 to vector<8x8xf32>
    %1078 = arith.mulf %1066, %1077 : vector<8x8xf32>
    %1079 = arith.addf %1047, %1078 : vector<8x8xf32>
    %c1_463 = arith.constant 1 : index
    %c61_464 = arith.constant 61 : index
    %1080 = memref.load %arg2[%c1_463, %c61_464] : memref<4x64xf32, #tpu.memory_space<smem>>
    %1081 = vector.broadcast %1080 : f32 to vector<8x8xf32>
    %1082 = arith.mulf %1067, %1081 : vector<8x8xf32>
    %1083 = arith.addf %1079, %1082 : vector<8x8xf32>
    %c2_465 = arith.constant 2 : index
    %c29_466 = arith.constant 29 : index
    %1084 = memref.load %arg2[%c2_465, %c29_466] : memref<4x64xf32, #tpu.memory_space<smem>>
    %1085 = vector.broadcast %1084 : f32 to vector<8x8xf32>
    %1086 = arith.mulf %1066, %1085 : vector<8x8xf32>
    %1087 = arith.addf %1055, %1086 : vector<8x8xf32>
    %c2_467 = arith.constant 2 : index
    %c61_468 = arith.constant 61 : index
    %1088 = memref.load %arg2[%c2_467, %c61_468] : memref<4x64xf32, #tpu.memory_space<smem>>
    %1089 = vector.broadcast %1088 : f32 to vector<8x8xf32>
    %1090 = arith.mulf %1067, %1089 : vector<8x8xf32>
    %1091 = arith.addf %1087, %1090 : vector<8x8xf32>
    %c3_469 = arith.constant 3 : index
    %c29_470 = arith.constant 29 : index
    %1092 = memref.load %arg2[%c3_469, %c29_470] : memref<4x64xf32, #tpu.memory_space<smem>>
    %1093 = vector.broadcast %1092 : f32 to vector<8x8xf32>
    %1094 = arith.mulf %1066, %1093 : vector<8x8xf32>
    %1095 = arith.addf %1063, %1094 : vector<8x8xf32>
    %c3_471 = arith.constant 3 : index
    %c61_472 = arith.constant 61 : index
    %1096 = memref.load %arg2[%c3_471, %c61_472] : memref<4x64xf32, #tpu.memory_space<smem>>
    %1097 = vector.broadcast %1096 : f32 to vector<8x8xf32>
    %1098 = arith.mulf %1067, %1097 : vector<8x8xf32>
    %1099 = arith.addf %1095, %1098 : vector<8x8xf32>
    %cst_473 = arith.constant 0.00562341325 : f32
    %1100 = vector.broadcast %cst_473 : f32 to vector<8x8xf32>
    %1101 = arith.mulf %883, %1100 : vector<8x8xf32>
    %1102 = math.sin %1101 : vector<8x8xf32>
    %1103 = math.cos %1101 : vector<8x8xf32>
    %c0_474 = arith.constant 0 : index
    %c30 = arith.constant 30 : index
    %1104 = memref.load %arg2[%c0_474, %c30] : memref<4x64xf32, #tpu.memory_space<smem>>
    %1105 = vector.broadcast %1104 : f32 to vector<8x8xf32>
    %1106 = arith.mulf %1102, %1105 : vector<8x8xf32>
    %1107 = arith.addf %1075, %1106 : vector<8x8xf32>
    %c0_475 = arith.constant 0 : index
    %c62 = arith.constant 62 : index
    %1108 = memref.load %arg2[%c0_475, %c62] : memref<4x64xf32, #tpu.memory_space<smem>>
    %1109 = vector.broadcast %1108 : f32 to vector<8x8xf32>
    %1110 = arith.mulf %1103, %1109 : vector<8x8xf32>
    %1111 = arith.addf %1107, %1110 : vector<8x8xf32>
    %c1_476 = arith.constant 1 : index
    %c30_477 = arith.constant 30 : index
    %1112 = memref.load %arg2[%c1_476, %c30_477] : memref<4x64xf32, #tpu.memory_space<smem>>
    %1113 = vector.broadcast %1112 : f32 to vector<8x8xf32>
    %1114 = arith.mulf %1102, %1113 : vector<8x8xf32>
    %1115 = arith.addf %1083, %1114 : vector<8x8xf32>
    %c1_478 = arith.constant 1 : index
    %c62_479 = arith.constant 62 : index
    %1116 = memref.load %arg2[%c1_478, %c62_479] : memref<4x64xf32, #tpu.memory_space<smem>>
    %1117 = vector.broadcast %1116 : f32 to vector<8x8xf32>
    %1118 = arith.mulf %1103, %1117 : vector<8x8xf32>
    %1119 = arith.addf %1115, %1118 : vector<8x8xf32>
    %c2_480 = arith.constant 2 : index
    %c30_481 = arith.constant 30 : index
    %1120 = memref.load %arg2[%c2_480, %c30_481] : memref<4x64xf32, #tpu.memory_space<smem>>
    %1121 = vector.broadcast %1120 : f32 to vector<8x8xf32>
    %1122 = arith.mulf %1102, %1121 : vector<8x8xf32>
    %1123 = arith.addf %1091, %1122 : vector<8x8xf32>
    %c2_482 = arith.constant 2 : index
    %c62_483 = arith.constant 62 : index
    %1124 = memref.load %arg2[%c2_482, %c62_483] : memref<4x64xf32, #tpu.memory_space<smem>>
    %1125 = vector.broadcast %1124 : f32 to vector<8x8xf32>
    %1126 = arith.mulf %1103, %1125 : vector<8x8xf32>
    %1127 = arith.addf %1123, %1126 : vector<8x8xf32>
    %c3_484 = arith.constant 3 : index
    %c30_485 = arith.constant 30 : index
    %1128 = memref.load %arg2[%c3_484, %c30_485] : memref<4x64xf32, #tpu.memory_space<smem>>
    %1129 = vector.broadcast %1128 : f32 to vector<8x8xf32>
    %1130 = arith.mulf %1102, %1129 : vector<8x8xf32>
    %1131 = arith.addf %1099, %1130 : vector<8x8xf32>
    %c3_486 = arith.constant 3 : index
    %c62_487 = arith.constant 62 : index
    %1132 = memref.load %arg2[%c3_486, %c62_487] : memref<4x64xf32, #tpu.memory_space<smem>>
    %1133 = vector.broadcast %1132 : f32 to vector<8x8xf32>
    %1134 = arith.mulf %1103, %1133 : vector<8x8xf32>
    %1135 = arith.addf %1131, %1134 : vector<8x8xf32>
    %cst_488 = arith.constant 0.00237137382 : f32
    %1136 = vector.broadcast %cst_488 : f32 to vector<8x8xf32>
    %1137 = arith.mulf %883, %1136 : vector<8x8xf32>
    %1138 = math.sin %1137 : vector<8x8xf32>
    %1139 = math.cos %1137 : vector<8x8xf32>
    %c0_489 = arith.constant 0 : index
    %c31 = arith.constant 31 : index
    %1140 = memref.load %arg2[%c0_489, %c31] : memref<4x64xf32, #tpu.memory_space<smem>>
    %1141 = vector.broadcast %1140 : f32 to vector<8x8xf32>
    %1142 = arith.mulf %1138, %1141 : vector<8x8xf32>
    %1143 = arith.addf %1111, %1142 : vector<8x8xf32>
    %c0_490 = arith.constant 0 : index
    %c63 = arith.constant 63 : index
    %1144 = memref.load %arg2[%c0_490, %c63] : memref<4x64xf32, #tpu.memory_space<smem>>
    %1145 = vector.broadcast %1144 : f32 to vector<8x8xf32>
    %1146 = arith.mulf %1139, %1145 : vector<8x8xf32>
    %1147 = arith.addf %1143, %1146 : vector<8x8xf32>
    %c1_491 = arith.constant 1 : index
    %c31_492 = arith.constant 31 : index
    %1148 = memref.load %arg2[%c1_491, %c31_492] : memref<4x64xf32, #tpu.memory_space<smem>>
    %1149 = vector.broadcast %1148 : f32 to vector<8x8xf32>
    %1150 = arith.mulf %1138, %1149 : vector<8x8xf32>
    %1151 = arith.addf %1119, %1150 : vector<8x8xf32>
    %c1_493 = arith.constant 1 : index
    %c63_494 = arith.constant 63 : index
    %1152 = memref.load %arg2[%c1_493, %c63_494] : memref<4x64xf32, #tpu.memory_space<smem>>
    %1153 = vector.broadcast %1152 : f32 to vector<8x8xf32>
    %1154 = arith.mulf %1139, %1153 : vector<8x8xf32>
    %1155 = arith.addf %1151, %1154 : vector<8x8xf32>
    %c2_495 = arith.constant 2 : index
    %c31_496 = arith.constant 31 : index
    %1156 = memref.load %arg2[%c2_495, %c31_496] : memref<4x64xf32, #tpu.memory_space<smem>>
    %1157 = vector.broadcast %1156 : f32 to vector<8x8xf32>
    %1158 = arith.mulf %1138, %1157 : vector<8x8xf32>
    %1159 = arith.addf %1127, %1158 : vector<8x8xf32>
    %c2_497 = arith.constant 2 : index
    %c63_498 = arith.constant 63 : index
    %1160 = memref.load %arg2[%c2_497, %c63_498] : memref<4x64xf32, #tpu.memory_space<smem>>
    %1161 = vector.broadcast %1160 : f32 to vector<8x8xf32>
    %1162 = arith.mulf %1139, %1161 : vector<8x8xf32>
    %1163 = arith.addf %1159, %1162 : vector<8x8xf32>
    %c3_499 = arith.constant 3 : index
    %c31_500 = arith.constant 31 : index
    %1164 = memref.load %arg2[%c3_499, %c31_500] : memref<4x64xf32, #tpu.memory_space<smem>>
    %1165 = vector.broadcast %1164 : f32 to vector<8x8xf32>
    %1166 = arith.mulf %1138, %1165 : vector<8x8xf32>
    %1167 = arith.addf %1135, %1166 : vector<8x8xf32>
    %c3_501 = arith.constant 3 : index
    %c63_502 = arith.constant 63 : index
    %1168 = memref.load %arg2[%c3_501, %c63_502] : memref<4x64xf32, #tpu.memory_space<smem>>
    %1169 = vector.broadcast %1168 : f32 to vector<8x8xf32>
    %1170 = arith.mulf %1139, %1169 : vector<8x8xf32>
    %1171 = arith.addf %1167, %1170 : vector<8x8xf32>
    %c0_503 = arith.constant 0 : index
    %1172 = memref.load %arg3[%c0_503] : memref<4xf32, #tpu.memory_space<smem>>
    %1173 = vector.broadcast %1172 : f32 to vector<8x8xf32>
    %1174 = arith.addf %1147, %1173 : vector<8x8xf32>
    %cst_504 = arith.constant 9.99999997E-7 : f32
    %1175 = vector.broadcast %cst_504 : f32 to vector<8x8xf32>
    %1176 = arith.maximumf %1174, %1175 : vector<8x8xf32>
    %1177 = math.log %1176 : vector<8x8xf32>
    %c0_505 = arith.constant 0 : index
    %c0_506 = arith.constant 0 : index
    %c0_507 = arith.constant 0 : index
    %c0_508 = arith.constant 0 : index
    %1178 = vector.load %arg4[%c0_505, %c0_506, %c0_507, %c0_508] : memref<1x4x8x8xf32, #tpu.memory_space<vmem>>, vector<1x1x8x8xf32>
    %1179 = vector.shape_cast %1178 : vector<1x1x8x8xf32> to vector<8x8xf32>
    %1180 = vector.shape_cast %1177 : vector<8x8xf32> to vector<1x1x8x8xf32>
    tpu.vector_store %arg4[%c0_505, %c0_506, %c0_507, %c0_508], %1180 {strides = array<i32>} : memref<1x4x8x8xf32, #tpu.memory_space<vmem>>, vector<1x1x8x8xf32>,
    %c1_509 = arith.constant 1 : index
    %1181 = memref.load %arg3[%c1_509] : memref<4xf32, #tpu.memory_space<smem>>
    %1182 = vector.broadcast %1181 : f32 to vector<8x8xf32>
    %1183 = arith.addf %1155, %1182 : vector<8x8xf32>
    %cst_510 = arith.constant 9.99999997E-7 : f32
    %1184 = vector.broadcast %cst_510 : f32 to vector<8x8xf32>
    %1185 = arith.maximumf %1183, %1184 : vector<8x8xf32>
    %1186 = math.log %1185 : vector<8x8xf32>
    %c0_511 = arith.constant 0 : index
    %c1_512 = arith.constant 1 : index
    %c0_513 = arith.constant 0 : index
    %c0_514 = arith.constant 0 : index
    %1187 = vector.load %arg4[%c0_511, %c1_512, %c0_513, %c0_514] : memref<1x4x8x8xf32, #tpu.memory_space<vmem>>, vector<1x1x8x8xf32>
    %1188 = vector.shape_cast %1187 : vector<1x1x8x8xf32> to vector<8x8xf32>
    %1189 = vector.shape_cast %1186 : vector<8x8xf32> to vector<1x1x8x8xf32>
    tpu.vector_store %arg4[%c0_511, %c1_512, %c0_513, %c0_514], %1189 {strides = array<i32>} : memref<1x4x8x8xf32, #tpu.memory_space<vmem>>, vector<1x1x8x8xf32>,
    %c2_515 = arith.constant 2 : index
    %1190 = memref.load %arg3[%c2_515] : memref<4xf32, #tpu.memory_space<smem>>
    %1191 = vector.broadcast %1190 : f32 to vector<8x8xf32>
    %1192 = arith.addf %1163, %1191 : vector<8x8xf32>
    %cst_516 = arith.constant 9.99999997E-7 : f32
    %1193 = vector.broadcast %cst_516 : f32 to vector<8x8xf32>
    %1194 = arith.maximumf %1192, %1193 : vector<8x8xf32>
    %1195 = math.log %1194 : vector<8x8xf32>
    %c0_517 = arith.constant 0 : index
    %c2_518 = arith.constant 2 : index
    %c0_519 = arith.constant 0 : index
    %c0_520 = arith.constant 0 : index
    %1196 = vector.load %arg4[%c0_517, %c2_518, %c0_519, %c0_520] : memref<1x4x8x8xf32, #tpu.memory_space<vmem>>, vector<1x1x8x8xf32>
    %1197 = vector.shape_cast %1196 : vector<1x1x8x8xf32> to vector<8x8xf32>
    %1198 = vector.shape_cast %1195 : vector<8x8xf32> to vector<1x1x8x8xf32>
    tpu.vector_store %arg4[%c0_517, %c2_518, %c0_519, %c0_520], %1198 {strides = array<i32>} : memref<1x4x8x8xf32, #tpu.memory_space<vmem>>, vector<1x1x8x8xf32>,
    %c3_521 = arith.constant 3 : index
    %1199 = memref.load %arg3[%c3_521] : memref<4xf32, #tpu.memory_space<smem>>
    %1200 = vector.broadcast %1199 : f32 to vector<8x8xf32>
    %1201 = arith.addf %1171, %1200 : vector<8x8xf32>
    %cst_522 = arith.constant 9.99999997E-7 : f32
    %1202 = vector.broadcast %cst_522 : f32 to vector<8x8xf32>
    %1203 = arith.maximumf %1201, %1202 : vector<8x8xf32>
    %1204 = math.log %1203 : vector<8x8xf32>
    %c0_523 = arith.constant 0 : index
    %c3_524 = arith.constant 3 : index
    %c0_525 = arith.constant 0 : index
    %c0_526 = arith.constant 0 : index
    %1205 = vector.load %arg4[%c0_523, %c3_524, %c0_525, %c0_526] : memref<1x4x8x8xf32, #tpu.memory_space<vmem>>, vector<1x1x8x8xf32>
    %1206 = vector.shape_cast %1205 : vector<1x1x8x8xf32> to vector<8x8xf32>
    %1207 = vector.shape_cast %1204 : vector<8x8xf32> to vector<1x1x8x8xf32>
    tpu.vector_store %arg4[%c0_523, %c3_524, %c0_525, %c0_526], %1207 {strides = array<i32>} : memref<1x4x8x8xf32, #tpu.memory_space<vmem>>, vector<1x1x8x8xf32>,
    return
  }
  func.func @transform_0(%arg0: i32) -> (i32, i32, i32, i32) {
    %c0_i32 = arith.constant 0 : i32
    %c0_i32_0 = arith.constant 0 : i32
    %c0_i32_1 = arith.constant 0 : i32
    %c0_i32_2 = arith.constant 0 : i32
    return %arg0, %c0_i32, %c0_i32_0, %c0_i32_1 : i32, i32, i32, i32
  }
  func.func @transform_1(%arg0: i32) -> (i32, i32) {
    %c0_i32 = arith.constant 0 : i32
    %c0_i32_0 = arith.constant 0 : i32
    %c0_i32_1 = arith.constant 0 : i32
    return %c0_i32, %c0_i32_0 : i32, i32
  }
  func.func @transform_2(%arg0: i32) -> i32 {
    %c0_i32 = arith.constant 0 : i32
    %c0_i32_0 = arith.constant 0 : i32
    return %c0_i32 : i32
  }
  func.func @transform_3(%arg0: i32) -> (i32, i32, i32, i32) {
    %c0_i32 = arith.constant 0 : i32
    %c0_i32_0 = arith.constant 0 : i32
    %c0_i32_1 = arith.constant 0 : i32
    %c0_i32_2 = arith.constant 0 : i32
    return %arg0, %c0_i32, %c0_i32_0, %c0_i32_1 : i32, i32, i32, i32
  }
}

module attributes {stable_mosaic.version = 11 : i64} {
  func.func @_box_attention_kernel(%arg0: i32, %arg1: memref<1x8x32xf32, #tpu.memory_space<vmem>>, %arg2: memref<1x8x32xf32, #tpu.memory_space<vmem>>, %arg3: memref<1x8x32xf32, #tpu.memory_space<vmem>>, %arg4: memref<1x4x8x8xf32, #tpu.memory_space<vmem>>, %arg5: memref<32x32xf32, #tpu.memory_space<vmem>>, %arg6: memref<32x32xf32, #tpu.memory_space<vmem>>, %arg7: memref<32x32xf32, #tpu.memory_space<vmem>>, %arg8: memref<32x32xf32, #tpu.memory_space<vmem>>, %arg9: memref<4x32xf32, #tpu.memory_space<vmem>>, %arg10: memref<4x32xf32, #tpu.memory_space<vmem>>, %arg11: memref<1x8x32xf32, #tpu.memory_space<vmem>>) attributes {dimension_semantics = [#tpu.dimension_semantics<parallel>], iteration_bounds = array<i64: 2>, scalar_prefetch = 0 : i64, scratch_operands = 0 : i64, tpu.core_type = #tpu.core_type<tc>, window_params = [{transform_indices = @transform_0, window_bounds = array<i64: 1, 8, 32>}, {transform_indices = @transform_1, window_bounds = array<i64: 1, 8, 32>}, {transform_indices = @transform_2, window_bounds = array<i64: 1, 8, 32>}, {transform_indices = @transform_3, window_bounds = array<i64: 1, 4, 8, 8>}, {pipeline_mode = #tpu.pipeline_mode<synchronous>, transform_indices = @transform_4, window_bounds = array<i64: 32, 32>}, {pipeline_mode = #tpu.pipeline_mode<synchronous>, transform_indices = @transform_5, window_bounds = array<i64: 32, 32>}, {pipeline_mode = #tpu.pipeline_mode<synchronous>, transform_indices = @transform_6, window_bounds = array<i64: 32, 32>}, {pipeline_mode = #tpu.pipeline_mode<synchronous>, transform_indices = @transform_7, window_bounds = array<i64: 32, 32>}, {pipeline_mode = #tpu.pipeline_mode<synchronous>, transform_indices = @transform_8, window_bounds = array<i64: 4, 32>}, {pipeline_mode = #tpu.pipeline_mode<synchronous>, transform_indices = @transform_9, window_bounds = array<i64: 4, 32>}, {transform_indices = @transform_10, window_bounds = array<i64: 1, 8, 32>}]} {
    %c0 = arith.constant 0 : index
    %c0_0 = arith.constant 0 : index
    %c0_1 = arith.constant 0 : index
    %0 = vector.load %arg1[%c0, %c0_0, %c0_1] : memref<1x8x32xf32, #tpu.memory_space<vmem>>, vector<1x8x32xf32>
    %1 = vector.shape_cast %0 : vector<1x8x32xf32> to vector<8x32xf32>
    %c0_2 = arith.constant 0 : index
    %c0_3 = arith.constant 0 : index
    %c0_4 = arith.constant 0 : index
    %2 = vector.load %arg2[%c0_2, %c0_3, %c0_4] : memref<1x8x32xf32, #tpu.memory_space<vmem>>, vector<1x8x32xf32>
    %3 = vector.shape_cast %2 : vector<1x8x32xf32> to vector<8x32xf32>
    %c0_5 = arith.constant 0 : index
    %c0_6 = arith.constant 0 : index
    %c0_7 = arith.constant 0 : index
    %4 = vector.load %arg3[%c0_5, %c0_6, %c0_7] : memref<1x8x32xf32, #tpu.memory_space<vmem>>, vector<1x8x32xf32>
    %5 = vector.shape_cast %4 : vector<1x8x32xf32> to vector<8x32xf32>
    %c0_8 = arith.constant 0 : index
    %c0_9 = arith.constant 0 : index
    %6 = vector.load %arg5[%c0_8, %c0_9] : memref<32x32xf32, #tpu.memory_space<vmem>>, vector<32x32xf32>
    %cst = arith.constant dense<0.000000e+00> : vector<8x32xf32>
    %7 = tpu.matmul %1, %6, %cst {dimension_numbers = #tpu.dot_dimension_numbers<[1], [0], [0], [1], [0, 0, 1, 1], [], []>} : vector<8x32xf32>, vector<32x32xf32>, vector<8x32xf32> -> vector<8x32xf32>
    %c0_10 = arith.constant 0 : index
    %c0_11 = arith.constant 0 : index
    %8 = vector.load %arg9[%c0_10, %c0_11] : memref<4x32xf32, #tpu.memory_space<vmem>>, vector<1x32xf32>
    %9 = vector.broadcast %8 : vector<1x32xf32> to vector<8x32xf32>
    %10 = arith.addf %7, %9 : vector<8x32xf32>
    %c0_12 = arith.constant 0 : index
    %c0_13 = arith.constant 0 : index
    %11 = vector.load %arg6[%c0_12, %c0_13] : memref<32x32xf32, #tpu.memory_space<vmem>>, vector<32x32xf32>
    %cst_14 = arith.constant dense<0.000000e+00> : vector<8x32xf32>
    %12 = tpu.matmul %3, %11, %cst_14 {dimension_numbers = #tpu.dot_dimension_numbers<[1], [0], [0], [1], [0, 0, 1, 1], [], []>} : vector<8x32xf32>, vector<32x32xf32>, vector<8x32xf32> -> vector<8x32xf32>
    %c1 = arith.constant 1 : index
    %c0_15 = arith.constant 0 : index
    %13 = vector.load %arg9[%c1, %c0_15] : memref<4x32xf32, #tpu.memory_space<vmem>>, vector<1x32xf32>
    %14 = vector.broadcast %13 : vector<1x32xf32> to vector<8x32xf32>
    %15 = arith.addf %12, %14 : vector<8x32xf32>
    %c0_16 = arith.constant 0 : index
    %c0_17 = arith.constant 0 : index
    %16 = vector.load %arg7[%c0_16, %c0_17] : memref<32x32xf32, #tpu.memory_space<vmem>>, vector<32x32xf32>
    %cst_18 = arith.constant dense<0.000000e+00> : vector<8x32xf32>
    %17 = tpu.matmul %5, %16, %cst_18 {dimension_numbers = #tpu.dot_dimension_numbers<[1], [0], [0], [1], [0, 0, 1, 1], [], []>} : vector<8x32xf32>, vector<32x32xf32>, vector<8x32xf32> -> vector<8x32xf32>
    %c2 = arith.constant 2 : index
    %c0_19 = arith.constant 0 : index
    %18 = vector.load %arg9[%c2, %c0_19] : memref<4x32xf32, #tpu.memory_space<vmem>>, vector<1x32xf32>
    %19 = vector.broadcast %18 : vector<1x32xf32> to vector<8x32xf32>
    %20 = arith.addf %17, %19 : vector<8x32xf32>
    %21 = vector.extract_strided_slice %10 {offsets = [0, 0], sizes = [8, 8], strides = [1, 1]} : vector<8x32xf32> to vector<8x8xf32>
    %22 = vector.extract_strided_slice %15 {offsets = [0, 0], sizes = [8, 8], strides = [1, 1]} : vector<8x32xf32> to vector<8x8xf32>
    %23 = vector.extract_strided_slice %20 {offsets = [0, 0], sizes = [8, 8], strides = [1, 1]} : vector<8x32xf32> to vector<8x8xf32>
    %24 = tpu.transpose %22, [1, 0] : vector<8x8xf32> -> vector<8x8xf32>
    %cst_20 = arith.constant dense<0.000000e+00> : vector<8x8xf32>
    %25 = tpu.matmul %21, %24, %cst_20 {dimension_numbers = #tpu.dot_dimension_numbers<[1], [0], [0], [1], [0, 0, 1, 1], [], []>} : vector<8x8xf32>, vector<8x8xf32>, vector<8x8xf32> -> vector<8x8xf32>
    %cst_21 = arith.constant 0.353553385 : f32
    %26 = vector.broadcast %cst_21 : f32 to vector<8x8xf32>
    %27 = arith.mulf %25, %26 : vector<8x8xf32>
    %c0_22 = arith.constant 0 : index
    %c0_23 = arith.constant 0 : index
    %c0_24 = arith.constant 0 : index
    %c0_25 = arith.constant 0 : index
    %28 = vector.load %arg4[%c0_22, %c0_23, %c0_24, %c0_25] : memref<1x4x8x8xf32, #tpu.memory_space<vmem>>, vector<1x1x8x8xf32>
    %29 = vector.shape_cast %28 : vector<1x1x8x8xf32> to vector<8x8xf32>
    %30 = arith.addf %27, %29 : vector<8x8xf32>
    %cst_26 = arith.constant dense<0xFF800000> : vector<8xf32>
    %31 = vector.multi_reduction <maximumf>, %30, %cst_26 [1] : vector<8x8xf32> to vector<8xf32>
    %32 = vector.shape_cast %31 : vector<8xf32> to vector<8x1xf32>
    %33 = vector.broadcast %32 : vector<8x1xf32> to vector<8x8xf32>
    %34 = arith.subf %30, %33 : vector<8x8xf32>
    %35 = math.exp %34 : vector<8x8xf32>
    %cst_27 = arith.constant dense<0.000000e+00> : vector<8xf32>
    %36 = vector.multi_reduction <add>, %35, %cst_27 [1] : vector<8x8xf32> to vector<8xf32>
    %37 = vector.shape_cast %36 : vector<8xf32> to vector<8x1xf32>
    %38 = tpu.reciprocal %37 {approx = true} : vector<8x1xf32> -> vector<8x1xf32>
    %39 = vector.broadcast %38 : vector<8x1xf32> to vector<8x8xf32>
    %40 = arith.mulf %35, %39 : vector<8x8xf32>
    %cst_28 = arith.constant dense<0.000000e+00> : vector<8x8xf32>
    %41 = tpu.matmul %40, %23, %cst_28 {dimension_numbers = #tpu.dot_dimension_numbers<[1], [0], [0], [1], [0, 0, 1, 1], [], []>} : vector<8x8xf32>, vector<8x8xf32>, vector<8x8xf32> -> vector<8x8xf32>
    %42 = vector.extract_strided_slice %10 {offsets = [0, 8], sizes = [8, 8], strides = [1, 1]} : vector<8x32xf32> to vector<8x8xf32>
    %43 = vector.extract_strided_slice %15 {offsets = [0, 8], sizes = [8, 8], strides = [1, 1]} : vector<8x32xf32> to vector<8x8xf32>
    %44 = vector.extract_strided_slice %20 {offsets = [0, 8], sizes = [8, 8], strides = [1, 1]} : vector<8x32xf32> to vector<8x8xf32>
    %45 = tpu.transpose %43, [1, 0] : vector<8x8xf32> -> vector<8x8xf32>
    %cst_29 = arith.constant dense<0.000000e+00> : vector<8x8xf32>
    %46 = tpu.matmul %42, %45, %cst_29 {dimension_numbers = #tpu.dot_dimension_numbers<[1], [0], [0], [1], [0, 0, 1, 1], [], []>} : vector<8x8xf32>, vector<8x8xf32>, vector<8x8xf32> -> vector<8x8xf32>
    %cst_30 = arith.constant 0.353553385 : f32
    %47 = vector.broadcast %cst_30 : f32 to vector<8x8xf32>
    %48 = arith.mulf %46, %47 : vector<8x8xf32>
    %c0_31 = arith.constant 0 : index
    %c1_32 = arith.constant 1 : index
    %c0_33 = arith.constant 0 : index
    %c0_34 = arith.constant 0 : index
    %49 = vector.load %arg4[%c0_31, %c1_32, %c0_33, %c0_34] : memref<1x4x8x8xf32, #tpu.memory_space<vmem>>, vector<1x1x8x8xf32>
    %50 = vector.shape_cast %49 : vector<1x1x8x8xf32> to vector<8x8xf32>
    %51 = arith.addf %48, %50 : vector<8x8xf32>
    %cst_35 = arith.constant dense<0xFF800000> : vector<8xf32>
    %52 = vector.multi_reduction <maximumf>, %51, %cst_35 [1] : vector<8x8xf32> to vector<8xf32>
    %53 = vector.shape_cast %52 : vector<8xf32> to vector<8x1xf32>
    %54 = vector.broadcast %53 : vector<8x1xf32> to vector<8x8xf32>
    %55 = arith.subf %51, %54 : vector<8x8xf32>
    %56 = math.exp %55 : vector<8x8xf32>
    %cst_36 = arith.constant dense<0.000000e+00> : vector<8xf32>
    %57 = vector.multi_reduction <add>, %56, %cst_36 [1] : vector<8x8xf32> to vector<8xf32>
    %58 = vector.shape_cast %57 : vector<8xf32> to vector<8x1xf32>
    %59 = tpu.reciprocal %58 {approx = true} : vector<8x1xf32> -> vector<8x1xf32>
    %60 = vector.broadcast %59 : vector<8x1xf32> to vector<8x8xf32>
    %61 = arith.mulf %56, %60 : vector<8x8xf32>
    %cst_37 = arith.constant dense<0.000000e+00> : vector<8x8xf32>
    %62 = tpu.matmul %61, %44, %cst_37 {dimension_numbers = #tpu.dot_dimension_numbers<[1], [0], [0], [1], [0, 0, 1, 1], [], []>} : vector<8x8xf32>, vector<8x8xf32>, vector<8x8xf32> -> vector<8x8xf32>
    %63 = vector.extract_strided_slice %10 {offsets = [0, 16], sizes = [8, 8], strides = [1, 1]} : vector<8x32xf32> to vector<8x8xf32>
    %64 = vector.extract_strided_slice %15 {offsets = [0, 16], sizes = [8, 8], strides = [1, 1]} : vector<8x32xf32> to vector<8x8xf32>
    %65 = vector.extract_strided_slice %20 {offsets = [0, 16], sizes = [8, 8], strides = [1, 1]} : vector<8x32xf32> to vector<8x8xf32>
    %66 = tpu.transpose %64, [1, 0] : vector<8x8xf32> -> vector<8x8xf32>
    %cst_38 = arith.constant dense<0.000000e+00> : vector<8x8xf32>
    %67 = tpu.matmul %63, %66, %cst_38 {dimension_numbers = #tpu.dot_dimension_numbers<[1], [0], [0], [1], [0, 0, 1, 1], [], []>} : vector<8x8xf32>, vector<8x8xf32>, vector<8x8xf32> -> vector<8x8xf32>
    %cst_39 = arith.constant 0.353553385 : f32
    %68 = vector.broadcast %cst_39 : f32 to vector<8x8xf32>
    %69 = arith.mulf %67, %68 : vector<8x8xf32>
    %c0_40 = arith.constant 0 : index
    %c2_41 = arith.constant 2 : index
    %c0_42 = arith.constant 0 : index
    %c0_43 = arith.constant 0 : index
    %70 = vector.load %arg4[%c0_40, %c2_41, %c0_42, %c0_43] : memref<1x4x8x8xf32, #tpu.memory_space<vmem>>, vector<1x1x8x8xf32>
    %71 = vector.shape_cast %70 : vector<1x1x8x8xf32> to vector<8x8xf32>
    %72 = arith.addf %69, %71 : vector<8x8xf32>
    %cst_44 = arith.constant dense<0xFF800000> : vector<8xf32>
    %73 = vector.multi_reduction <maximumf>, %72, %cst_44 [1] : vector<8x8xf32> to vector<8xf32>
    %74 = vector.shape_cast %73 : vector<8xf32> to vector<8x1xf32>
    %75 = vector.broadcast %74 : vector<8x1xf32> to vector<8x8xf32>
    %76 = arith.subf %72, %75 : vector<8x8xf32>
    %77 = math.exp %76 : vector<8x8xf32>
    %cst_45 = arith.constant dense<0.000000e+00> : vector<8xf32>
    %78 = vector.multi_reduction <add>, %77, %cst_45 [1] : vector<8x8xf32> to vector<8xf32>
    %79 = vector.shape_cast %78 : vector<8xf32> to vector<8x1xf32>
    %80 = tpu.reciprocal %79 {approx = true} : vector<8x1xf32> -> vector<8x1xf32>
    %81 = vector.broadcast %80 : vector<8x1xf32> to vector<8x8xf32>
    %82 = arith.mulf %77, %81 : vector<8x8xf32>
    %cst_46 = arith.constant dense<0.000000e+00> : vector<8x8xf32>
    %83 = tpu.matmul %82, %65, %cst_46 {dimension_numbers = #tpu.dot_dimension_numbers<[1], [0], [0], [1], [0, 0, 1, 1], [], []>} : vector<8x8xf32>, vector<8x8xf32>, vector<8x8xf32> -> vector<8x8xf32>
    %84 = vector.extract_strided_slice %10 {offsets = [0, 24], sizes = [8, 8], strides = [1, 1]} : vector<8x32xf32> to vector<8x8xf32>
    %85 = vector.extract_strided_slice %15 {offsets = [0, 24], sizes = [8, 8], strides = [1, 1]} : vector<8x32xf32> to vector<8x8xf32>
    %86 = vector.extract_strided_slice %20 {offsets = [0, 24], sizes = [8, 8], strides = [1, 1]} : vector<8x32xf32> to vector<8x8xf32>
    %87 = tpu.transpose %85, [1, 0] : vector<8x8xf32> -> vector<8x8xf32>
    %cst_47 = arith.constant dense<0.000000e+00> : vector<8x8xf32>
    %88 = tpu.matmul %84, %87, %cst_47 {dimension_numbers = #tpu.dot_dimension_numbers<[1], [0], [0], [1], [0, 0, 1, 1], [], []>} : vector<8x8xf32>, vector<8x8xf32>, vector<8x8xf32> -> vector<8x8xf32>
    %cst_48 = arith.constant 0.353553385 : f32
    %89 = vector.broadcast %cst_48 : f32 to vector<8x8xf32>
    %90 = arith.mulf %88, %89 : vector<8x8xf32>
    %c0_49 = arith.constant 0 : index
    %c3 = arith.constant 3 : index
    %c0_50 = arith.constant 0 : index
    %c0_51 = arith.constant 0 : index
    %91 = vector.load %arg4[%c0_49, %c3, %c0_50, %c0_51] : memref<1x4x8x8xf32, #tpu.memory_space<vmem>>, vector<1x1x8x8xf32>
    %92 = vector.shape_cast %91 : vector<1x1x8x8xf32> to vector<8x8xf32>
    %93 = arith.addf %90, %92 : vector<8x8xf32>
    %cst_52 = arith.constant dense<0xFF800000> : vector<8xf32>
    %94 = vector.multi_reduction <maximumf>, %93, %cst_52 [1] : vector<8x8xf32> to vector<8xf32>
    %95 = vector.shape_cast %94 : vector<8xf32> to vector<8x1xf32>
    %96 = vector.broadcast %95 : vector<8x1xf32> to vector<8x8xf32>
    %97 = arith.subf %93, %96 : vector<8x8xf32>
    %98 = math.exp %97 : vector<8x8xf32>
    %cst_53 = arith.constant dense<0.000000e+00> : vector<8xf32>
    %99 = vector.multi_reduction <add>, %98, %cst_53 [1] : vector<8x8xf32> to vector<8xf32>
    %100 = vector.shape_cast %99 : vector<8xf32> to vector<8x1xf32>
    %101 = tpu.reciprocal %100 {approx = true} : vector<8x1xf32> -> vector<8x1xf32>
    %102 = vector.broadcast %101 : vector<8x1xf32> to vector<8x8xf32>
    %103 = arith.mulf %98, %102 : vector<8x8xf32>
    %cst_54 = arith.constant dense<0.000000e+00> : vector<8x8xf32>
    %104 = tpu.matmul %103, %86, %cst_54 {dimension_numbers = #tpu.dot_dimension_numbers<[1], [0], [0], [1], [0, 0, 1, 1], [], []>} : vector<8x8xf32>, vector<8x8xf32>, vector<8x8xf32> -> vector<8x8xf32>
    %105 = tpu.concatenate %41, %62, %83, %104 in 1 : vector<8x8xf32>, vector<8x8xf32>, vector<8x8xf32>, vector<8x8xf32> -> vector<8x32xf32>
    %106 = arith.addf %105, %1 : vector<8x32xf32>
    %c0_55 = arith.constant 0 : index
    %c0_56 = arith.constant 0 : index
    %107 = vector.load %arg10[%c0_55, %c0_56] : memref<4x32xf32, #tpu.memory_space<vmem>>, vector<1x32xf32>
    %c1_57 = arith.constant 1 : index
    %c0_58 = arith.constant 0 : index
    %108 = vector.load %arg10[%c1_57, %c0_58] : memref<4x32xf32, #tpu.memory_space<vmem>>, vector<1x32xf32>
    %cst_59 = arith.constant dense<0.000000e+00> : vector<8xf32>
    %109 = vector.multi_reduction <add>, %106, %cst_59 [1] : vector<8x32xf32> to vector<8xf32>
    %110 = vector.shape_cast %109 : vector<8xf32> to vector<8x1xf32>
    %cst_60 = arith.constant 3.200000e+01 : f32
    %111 = vector.broadcast %cst_60 : f32 to vector<8x1xf32>
    %112 = arith.divf %110, %111 : vector<8x1xf32>
    %113 = vector.broadcast %112 : vector<8x1xf32> to vector<8x32xf32>
    %114 = arith.subf %106, %113 : vector<8x32xf32>
    %115 = arith.mulf %114, %114 : vector<8x32xf32>
    %cst_61 = arith.constant dense<0.000000e+00> : vector<8xf32>
    %116 = vector.multi_reduction <add>, %115, %cst_61 [1] : vector<8x32xf32> to vector<8xf32>
    %117 = vector.shape_cast %116 : vector<8xf32> to vector<8x1xf32>
    %cst_62 = arith.constant 3.200000e+01 : f32
    %118 = vector.broadcast %cst_62 : f32 to vector<8x1xf32>
    %119 = arith.divf %117, %118 : vector<8x1xf32>
    %cst_63 = arith.constant 9.99999974E-6 : f32
    %120 = vector.broadcast %cst_63 : f32 to vector<8x1xf32>
    %121 = arith.addf %119, %120 : vector<8x1xf32>
    %122 = math.rsqrt %121 : vector<8x1xf32>
    %123 = vector.broadcast %122 : vector<8x1xf32> to vector<8x32xf32>
    %124 = arith.mulf %114, %123 : vector<8x32xf32>
    %125 = vector.broadcast %107 : vector<1x32xf32> to vector<8x32xf32>
    %126 = arith.mulf %124, %125 : vector<8x32xf32>
    %127 = vector.broadcast %108 : vector<1x32xf32> to vector<8x32xf32>
    %128 = arith.addf %126, %127 : vector<8x32xf32>
    %c0_64 = arith.constant 0 : index
    %c0_65 = arith.constant 0 : index
    %129 = vector.load %arg8[%c0_64, %c0_65] : memref<32x32xf32, #tpu.memory_space<vmem>>, vector<32x32xf32>
    %cst_66 = arith.constant dense<0.000000e+00> : vector<8x32xf32>
    %130 = tpu.matmul %128, %129, %cst_66 {dimension_numbers = #tpu.dot_dimension_numbers<[1], [0], [0], [1], [0, 0, 1, 1], [], []>} : vector<8x32xf32>, vector<32x32xf32>, vector<8x32xf32> -> vector<8x32xf32>
    %c3_67 = arith.constant 3 : index
    %c0_68 = arith.constant 0 : index
    %131 = vector.load %arg9[%c3_67, %c0_68] : memref<4x32xf32, #tpu.memory_space<vmem>>, vector<1x32xf32>
    %132 = vector.broadcast %131 : vector<1x32xf32> to vector<8x32xf32>
    %133 = arith.addf %130, %132 : vector<8x32xf32>
    %134 = arith.addf %133, %128 : vector<8x32xf32>
    %c2_69 = arith.constant 2 : index
    %c0_70 = arith.constant 0 : index
    %135 = vector.load %arg10[%c2_69, %c0_70] : memref<4x32xf32, #tpu.memory_space<vmem>>, vector<1x32xf32>
    %c3_71 = arith.constant 3 : index
    %c0_72 = arith.constant 0 : index
    %136 = vector.load %arg10[%c3_71, %c0_72] : memref<4x32xf32, #tpu.memory_space<vmem>>, vector<1x32xf32>
    %cst_73 = arith.constant dense<0.000000e+00> : vector<8xf32>
    %137 = vector.multi_reduction <add>, %134, %cst_73 [1] : vector<8x32xf32> to vector<8xf32>
    %138 = vector.shape_cast %137 : vector<8xf32> to vector<8x1xf32>
    %cst_74 = arith.constant 3.200000e+01 : f32
    %139 = vector.broadcast %cst_74 : f32 to vector<8x1xf32>
    %140 = arith.divf %138, %139 : vector<8x1xf32>
    %141 = vector.broadcast %140 : vector<8x1xf32> to vector<8x32xf32>
    %142 = arith.subf %134, %141 : vector<8x32xf32>
    %143 = arith.mulf %142, %142 : vector<8x32xf32>
    %cst_75 = arith.constant dense<0.000000e+00> : vector<8xf32>
    %144 = vector.multi_reduction <add>, %143, %cst_75 [1] : vector<8x32xf32> to vector<8xf32>
    %145 = vector.shape_cast %144 : vector<8xf32> to vector<8x1xf32>
    %cst_76 = arith.constant 3.200000e+01 : f32
    %146 = vector.broadcast %cst_76 : f32 to vector<8x1xf32>
    %147 = arith.divf %145, %146 : vector<8x1xf32>
    %cst_77 = arith.constant 9.99999974E-6 : f32
    %148 = vector.broadcast %cst_77 : f32 to vector<8x1xf32>
    %149 = arith.addf %147, %148 : vector<8x1xf32>
    %150 = math.rsqrt %149 : vector<8x1xf32>
    %151 = vector.broadcast %150 : vector<8x1xf32> to vector<8x32xf32>
    %152 = arith.mulf %142, %151 : vector<8x32xf32>
    %153 = vector.broadcast %135 : vector<1x32xf32> to vector<8x32xf32>
    %154 = arith.mulf %152, %153 : vector<8x32xf32>
    %155 = vector.broadcast %136 : vector<1x32xf32> to vector<8x32xf32>
    %156 = arith.addf %154, %155 : vector<8x32xf32>
    %c0_78 = arith.constant 0 : index
    %c0_79 = arith.constant 0 : index
    %c0_80 = arith.constant 0 : index
    %157 = vector.load %arg11[%c0_78, %c0_79, %c0_80] : memref<1x8x32xf32, #tpu.memory_space<vmem>>, vector<1x8x32xf32>
    %158 = vector.shape_cast %157 : vector<1x8x32xf32> to vector<8x32xf32>
    %159 = vector.shape_cast %156 : vector<8x32xf32> to vector<1x8x32xf32>
    tpu.vector_store %arg11[%c0_78, %c0_79, %c0_80], %159 {strides = array<i32>} : memref<1x8x32xf32, #tpu.memory_space<vmem>>, vector<1x8x32xf32>,
    return
  }
  func.func @transform_0(%arg0: i32) -> (i32, i32, i32) {
    %c0_i32 = arith.constant 0 : i32
    %c0_i32_0 = arith.constant 0 : i32
    %c0_i32_1 = arith.constant 0 : i32
    return %arg0, %c0_i32, %c0_i32_0 : i32, i32, i32
  }
  func.func @transform_1(%arg0: i32) -> (i32, i32, i32) {
    %c0_i32 = arith.constant 0 : i32
    %c0_i32_0 = arith.constant 0 : i32
    %c0_i32_1 = arith.constant 0 : i32
    return %arg0, %c0_i32, %c0_i32_0 : i32, i32, i32
  }
  func.func @transform_2(%arg0: i32) -> (i32, i32, i32) {
    %c0_i32 = arith.constant 0 : i32
    %c0_i32_0 = arith.constant 0 : i32
    %c0_i32_1 = arith.constant 0 : i32
    return %arg0, %c0_i32, %c0_i32_0 : i32, i32, i32
  }
  func.func @transform_3(%arg0: i32) -> (i32, i32, i32, i32) {
    %c0_i32 = arith.constant 0 : i32
    %c0_i32_0 = arith.constant 0 : i32
    %c0_i32_1 = arith.constant 0 : i32
    %c0_i32_2 = arith.constant 0 : i32
    return %arg0, %c0_i32, %c0_i32_0, %c0_i32_1 : i32, i32, i32, i32
  }
  func.func @transform_4(%arg0: i32) -> (i32, i32) {
    %c0_i32 = arith.constant 0 : i32
    %c0_i32_0 = arith.constant 0 : i32
    %c0_i32_1 = arith.constant 0 : i32
    return %c0_i32, %c0_i32_0 : i32, i32
  }
  func.func @transform_5(%arg0: i32) -> (i32, i32) {
    %c0_i32 = arith.constant 0 : i32
    %c0_i32_0 = arith.constant 0 : i32
    %c0_i32_1 = arith.constant 0 : i32
    return %c0_i32, %c0_i32_0 : i32, i32
  }
  func.func @transform_6(%arg0: i32) -> (i32, i32) {
    %c0_i32 = arith.constant 0 : i32
    %c0_i32_0 = arith.constant 0 : i32
    %c0_i32_1 = arith.constant 0 : i32
    return %c0_i32, %c0_i32_0 : i32, i32
  }
  func.func @transform_7(%arg0: i32) -> (i32, i32) {
    %c0_i32 = arith.constant 0 : i32
    %c0_i32_0 = arith.constant 0 : i32
    %c0_i32_1 = arith.constant 0 : i32
    return %c0_i32, %c0_i32_0 : i32, i32
  }
  func.func @transform_8(%arg0: i32) -> (i32, i32) {
    %c0_i32 = arith.constant 0 : i32
    %c0_i32_0 = arith.constant 0 : i32
    %c0_i32_1 = arith.constant 0 : i32
    return %c0_i32, %c0_i32_0 : i32, i32
  }
  func.func @transform_9(%arg0: i32) -> (i32, i32) {
    %c0_i32 = arith.constant 0 : i32
    %c0_i32_0 = arith.constant 0 : i32
    %c0_i32_1 = arith.constant 0 : i32
    return %c0_i32, %c0_i32_0 : i32, i32
  }
  func.func @transform_10(%arg0: i32) -> (i32, i32, i32) {
    %c0_i32 = arith.constant 0 : i32
    %c0_i32_0 = arith.constant 0 : i32
    %c0_i32_1 = arith.constant 0 : i32
    return %arg0, %c0_i32, %c0_i32_0 : i32, i32, i32
  }
}

</mosaic_0001>

<bundles_post_ra>
// kernel: _forward.3
= control target key start
LH: loop header
LB: loop body
LE: loop exit
PB: predicated region body
PF: predicated region fallthrough
CT: control target
= control target key end

     0   :  { %s2231_s0 = inlined_call_operand.vmem [shape: f32[2,8,32], index: 0, kind: input, shape index: {}]   ;;  %s2232_s1 = inlined_call_operand.vmem [shape: f32[2,8,32], index: 1, kind: input, shape index: {}]   ;;  %s2233_s2 = inlined_call_operand.vmem [shape: f32[2,8,32], index: 2, kind: input, shape index: {}]   ;;  %s2234_s3 = inlined_call_operand.vmem [shape: f32[2,4,8,8], index: 3, kind: input, shape index: {}]   ;;  %s2235_s4 = inlined_call_operand.vmem [shape: f32[32,32], index: 4, kind: input, shape index: {}]   ;;  %s2236_s5 = inlined_call_operand.vmem [shape: f32[32,32], index: 5, kind: input, shape index: {}]   ;;  %s2237_s6 = inlined_call_operand.vmem [shape: f32[32,32], index: 6, kind: input, shape index: {}]   ;;  %s2238_s7 = inlined_call_operand.vmem [shape: f32[32,32], index: 7, kind: input, shape index: {}]   ;;  %s2239_s8 = inlined_call_operand.vmem [shape: f32[4,32], index: 8, kind: input, shape index: {}]   ;;  %s2240_s9 = inlined_call_operand.vmem [shape: f32[4,32], index: 9, kind: input, shape index: {}]   ;;  %s2241_s10 = inlined_call_operand.hbm [shape: f32[2,8,32], index: 10, kind: output, shape index: {}]  }
   0x1   :  { %2244 = sst [smem:[#allocation6_spill]] %s2231_s0 }
   0x2   :  { %15 = vsyncpa [#allocation3], 0 }
   0x3   :  { %17 = vsyncpa [#allocation3 + $0x1], 0  ;;  %s1948_s13 = smov 0   ;;  %s1950_s14 = smov 0  }
   0x4   :  { %s1952_s15 = smov 0   ;;  %s1954_s16 = smov 0  }
   0x5 LB: > { %s1969_s17 = sadd.s32 4294967295, %s1882_s16   ;;  %s1593_s18 = sadd.s32 4294967294, %s1882_s16   ;;  %s1882_s16 = sphi %s1954_s16, %s2255_s16   ;;  %s1878_s15 = sphi %s1952_s15, %s2254_s15   ;;  %s1874_s14 = sphi %s1950_s14, %s2253_s14   ;;  %s1870_s13 = sphi %s1948_s13, %s2252_s13  }
   0x6   : > { %s1973_s19 = sadd.s32 1, %s1882_s16   ;;  %s260_s20 = sadd.s32 1, %s1878_s15 }
   0x7   : > { %s257_s21 = ssub.s32 %s1882_s16, %s1973_s19  ;;  %p270_p0 = scmp.ne.s32.totalorder %s1878_s15, %s1874_s14 }
   0x8   : > { %p258_p1 = scmp.eq.s32.totalorder %s257_s21, 0  ;;  %p271_p2 = scmp.eq.s32.totalorder %s1969_s17, 1 }
   0x9   : > { %p276_p3 = scmp.ne.s32.totalorder %s1874_s14, %s1870_s13  ;;  %p277_p4 = scmp.eq.s32.totalorder %s1593_s18, 1 }
   0xa   : > { %s1984_s22 = scalar_select %p258_p1, %s1878_s15, %s260_s20  }
   0xb   : > { %p1986_p5 = por %p271_p2, %p270_p0  ;;  %p1990_p6 = por %p277_p4, %p276_p3 }
   0xc   : > { %2245 = sst [smem:[#allocation5_spill]] %s1984_s22  ;;  %p1596_p7 = scmp.ge.s32.totalorder %s1882_s16, 1 }
   0xd   : > { %p342_p8 = scmp.lt.s32.totalorder %s1882_s16, 3 }
   0xf   : > { %p343_p9 = pnand %p1596_p7, %p342_p8 }
  0x10   : > { %p392_p10 = scmp.lt.s32.totalorder (!%p343_p9), %s1969_s17, 1  ;;  %s2248_s0 = sld [smem:[#allocation6_spill]] (!%p343_p9) }
  0x11   : > { %346 = sbr.rel (%p343_p9) target bundleno = 2453 (0x995), region = 60  ;;  %s2242_s11 = smov (!%p343_p9), 120  }
  0x12   : > { %s2243_s20 = smov (!%p343_p9), 104   ;;  %s2249_s28 = smov (!%p343_p9), 120  }
  0x13   : > { %s2250_s29 = smov (!%p343_p9), 104   ;;  %s1890_s30 = smov (!%p343_p9), 16  }
  0x14   : > { %s1891_s21 = smov (!%p343_p9), 24  }
  0x16   : > { %v498_v0 = vld [vmem:[%s2236_s5 + $0x18] sm:$0xff]  ;;  %v1884_v2 = vmov 0.0   ;;  %v497_v3 = vld [vmem:[%s2236_s5 + $0x10] sm:$0xff]  ;;  %s2012_s18 = scalar_select %p392_p10, %s1969_s17, 1  ;;  %v496_v5 = vld [vmem:[%s2236_s5 + $0x8] sm:$0xff]  ;;  %vm421_vm0 = vcmask 261120  }
  0x17   : > { %v415_v1 = vld [vmem:[%s2235_s4 + $0x18] sm:$0xff]  ;;  %1682 = vmatprep.subr.mxu1 %v1884_v2  ;;  %1671 = vmatprep.subr.mxu0 %v1884_v2  ;;  %v414_v4 = vld [vmem:[%s2235_s4 + $0x10] sm:$0xff]  ;;  %v413_v6 = vld [vmem:[%s2235_s4 + $0x8] sm:$0xff]  ;;  %vm1885_vm1 = vmmov 0   ;;  %vm659_vm2 = vcmask 64512   ;;  %vm1344_vm3 = vcmask 130048  }
  0x18   : > { %1683 = vmatpush3.msra.mxu1 %v498_v0  ;;  %1672 = vmatpush3.msra.mxu0 %v415_v1  ;;  %s2023_s27 = sshll.u32 %s2012_s18, 3  ;;  %v495_v7 = vld [vmem:[%s2236_s5] sm:$0xff]  ;;  %v580_v19 = vld [vmem:[%s2237_s6 + $0x18] sm:$0xff]  ;;  %v579_v20 = vld [vmem:[%s2237_s6 + $0x10] sm:$0xff]  ;;  %vm1346_vm4 = vcmask 195584  }
  0x19   : > { %1684 = vmatprep.subr.mxu1 %v1884_v2  ;;  %1673 = vmatprep.subr.mxu0 %v1884_v2  ;;  %s399_s12 = scalar_lea.vmem %s2232_s1, %s2023_s27  ;;  %s395_s25 = scalar_lea.vmem %s2248_s0, %s2023_s27  ;;  %v412_v9 = vld [vmem:[%s2235_s4] sm:$0xff]  ;;  %v578_v21 = vld [vmem:[%s2237_s6 + $0x8] sm:$0xff] }
  0x1a   : > { %1685 = vmatpush3.msra.mxu1 %v497_v3  ;;  %1674 = vmatpush3.msra.mxu0 %v414_v4  ;;  %v410_v8 = vld [vmem:[%s399_s12] sm:$0xff]  ;;  %s1887_s12 = smov 112  }
  0x1b   : > { %1686 = vmatprep.subr.mxu1 %v1884_v2  ;;  %1675 = vmatprep.subr.mxu0 %v1884_v2  ;;  %v2045_v10 = vld [vmem:[%s395_s25] sm:$0xff] }
  0x1c   : > { %1687 = vmatpush3.msra.mxu1 %v496_v5  ;;  %1676 = vmatpush3.msra.mxu0 %v413_v6  ;;  %v1605_v11 = vld [vmem:[%s2239_s8 + $0x1] ss:$0 sm:$0xff]  ;;  %v1603_v13 = vld [vmem:[%s2239_s8] ss:$0 sm:$0xff]  ;;  %v1607_v35 = vld [vmem:[%s2239_s8 + $0x2] ss:$0 sm:$0xff] }
  0x1d   : > { %1688 = vmatprep.subr.mxu1 %v1884_v2  ;;  %1690 = vmatprep.mubr.msk.f32.mxu1 %vm1885_vm1, %v1884_v2  ;;  %v577_v22 = vld [vmem:[%s2237_s6] sm:$0xff] }
  0x1e   : > { %1689 = vmatpush3.msra.mxu1 %v495_v7  ;;  %1677 = vmatprep.subr.mxu0 %v1884_v2 }
  0x1f   : > { %1691 = vmatmul.mubr.msk.f32.vlgmr.msra.gmra.mxu1 %vm421_vm0, %v410_v8  ;;  %1678 = vmatpush3.msra.mxu0 %v412_v9 }
  0x20   : > { %1679 = vmatprep.mubr.msk.f32.mxu0 %vm1885_vm1, %v1884_v2  ;;  %1704 = vmatprep.subr.mxu1 %v1884_v2 }
  0x21   : > { %1680 = vmatmul.mubr.msk.f32.vlgmr.msra.gmra.mxu0 %vm421_vm0, %v2045_v10  ;;  %1706 = vmatprep.mubr.msk.f32.mxu1 %vm1885_vm1, %v1884_v2 }
  0x22   : > { %1693 = vmatprep.subr.mxu0 %v1884_v2  ;;  %1701 = vmatprep.mubr.msk.f32.mxu0 %vm1885_vm1, %v1884_v2 }
  0x23   : > { %1694 = vmatpush3.msra.mxu0 %v580_v19 }
  0x24   : > { %1695 = vmatprep.subr.mxu0 %v1884_v2 }
  0x25   : > { %1696 = vmatpush3.msra.mxu0 %v579_v20 }
  0x26   : > { %1697 = vmatprep.subr.mxu0 %v1884_v2 }
  0x27   : > { %1698 = vmatpush3.msra.mxu0 %v578_v21 }
  0x28   : > { %1699 = vmatprep.subr.mxu0 %v1884_v2 }
  0x29   : > { %1700 = vmatpush3.msra.mxu0 %v577_v22 }
  0x2a   : > { %1724 = vmatprep.subr.mxu0 %v1884_v2 }
  0xdf   : > { %v573_v12 = vpop.f32.mrf.mxu1 }
  0xe0   : > { %v574_v14 = vadd.f32 %v1605_v11, %v573_v12 }
  0xe1   : > { %v491_v15 = vpop.f32.mrf.mxu0  ;;  %v1692_v16 = vpop.f32.mrf.mxu1 }
  0xe2   : > { %v492_v17 = vadd.f32 %v1603_v13, %v491_v15  ;;  %825 = vrot.lane.b32.xlu1 %v574_v14, %s2242_s11  ;;  %1705 = vmatpush3.xpose.msk.msra.mxu1 %vm659_vm2, %v574_v14 }
  0xe3   : > { %v1681_v18 = vpop.f32.mrf.mxu0  ;;  %1709 = vmatprep.subr.mxu1 %v1884_v2 }
  0xe5   : > { %1707 = vmatmul.mubr.msk.f32.vlgmr.msra.gmra.mxu1 %vm659_vm2, %v492_v17 }
  0xe6   : > { %823 = vrot.lane.b32.xlu1 %v492_v17, %s2242_s11  ;;  %1711 = vmatprep.mubr.msk.f32.mxu1 %vm1885_vm1, %v1884_v2  ;;  %s389_s11 = sand.u32 1, %s1874_s14  }
  0xe7   : > { %s1597_s26 = sshll.u32 %s389_s11, 3  ;;  %s1485_s0 = scalar_lea.sflag [#allocation3], %s389_s11 }
  0xea   : > { %993 = vrot.lane.b32.xlu1 %v492_v17, %s1887_s12 }
  0xee   : > { %1164 = vrot.lane.b32.xlu1 %v574_v14, %s2243_s20 }
  0xf2   : > { %1162 = vrot.lane.b32.xlu1 %v492_v17, %s2243_s20  ;;  %s403_s20 = scalar_lea.vmem %s2233_s2, %s2023_s27  ;;  %s1634_s27 = sshll.u32 %s2012_s18, 5 }
  0xf3   : > { %v411_v23 = vld [vmem:[%s403_s20] sm:$0xff]  ;;  %s2101_s22 = scalar_lea.vmem %s2234_s3, %s1634_s27  ;;  %s1892_s18 = smov [#allocation2]  }
  0xf4   : > { %1702 = vmatmul.mubr.msk.f32.vlgmr.msra.gmra.mxu0 %vm421_vm0, %v411_v23  ;;  %v737_v25 = vld [vmem:[%s2101_s22] sm:$0xff]  ;;  %v1618_v49 = vld [vmem:[%s2101_s22 + $0x10] sm:$0xff]  ;;  %v1614_v59 = vld [vmem:[%s2101_s22 + $0x8] sm:$0xff]  ;;  %s1826_s20 = sshll.u32 %s1892_s18, 4  ;;  %s1827_s20 = int_to_ptr.vmem [resolvable:$false] %s1826_s20 }
  0xf5   : > { %1726 = vmatprep.mubr.msk.f32.mxu0 %vm1885_vm1, %v1884_v2  ;;  %v1622_v63 = vld [vmem:[%s2101_s22 + $0x18] sm:$0xff] }
 0x154   : > { %v826_v39 = vpop.permute.xlu1 %825 }
 0x158   : > { %v824_v40 = vpop.permute.xlu1 %823 }
 0x15c   : > { %v994_v41 = vpop.permute.xlu1 %993 }
 0x160   : > { %v1165_v44 = vpop.permute.xlu1 %1164 }
 0x164   : > { %v1163_v45 = vpop.permute.xlu1 %1162 }
 0x1a5   : > { %v732_v24 = vpop.f32.mrf.mxu1 }
 0x1a6   : > { %v736_v26 = vmul.f32 0.35355338, %v732_v24 }
 0x1a7   : > { %v1708_v27 = vpop.f32.mrf.mxu1 }
 0x1a8   : > { %v738_v28 = vadd.f32 %v737_v25, %v736_v26 }
 0x1aa   : > { %v739_v29 = vsel %vm659_vm2, %v738_v28, -inf }
 0x1ab   : > { %740 = vmax.xlane.f32.xlu0 %v739_v29 }
 0x1b4   : > { %v655_v36 = vpop.f32.mrf.mxu0 }
 0x1b5   : > { %v2109_v37 = vadd.f32 %v1607_v35, %v655_v36 }
 0x1b6   : > { %v1703_v38 = vpop.f32.mrf.mxu0 }
 0x1b7   : > { %1710 = vmatpush3.msra.mxu1 %v2109_v37 }
 0x1b8   : > { %1714 = vmatprep.subr.mxu1 %v1884_v2 }
 0x234   : > { %v741_v30 = vpop.xlane.xlu0 %740 }
 0x235   : > { %v742_v31 = vsub.f32 %v738_v28, %v741_v30 }
 0x237   : > { %v743_v32 = vmul.f32 1.442695, %v742_v31 }
 0x239   : > { %1802 = vpow2.f32 %v743_v32 }
 0x246   : > { %v1803_v33 = vpop.eup %1802 }
 0x247   : > { %v745_v34 = vsel %vm659_vm2, %v1803_v33, 0.0 }
 0x248   : > { %746 = vadd.xlane.f32.xlu0 %v745_v34 }
 0x25e   : > { %995 = vrot.lane.b32.xlu0 %v574_v14, %s1887_s12 }
 0x2d1   : > { %v747_v42 = vpop.xlane.xlu0 %746 }
 0x2d2   : > { %1804 = vrcp.f32 %v747_v42 }
 0x2d5   : > { %v996_v43 = vpop.permute.xlu0 %995 }
 0x2d6   : > { %1725 = vmatpush3.xpose.msk.msra.mxu0 %vm659_vm2, %v996_v43 }
 0x2d7   : > { %1734 = vmatprep.subr.mxu0 %v1884_v2 }
 0x2d9   : > { %1727 = vmatmul.mubr.msk.f32.vlgmr.msra.gmra.mxu0 %vm659_vm2, %v994_v41 }
 0x2da   : > { %1735 = vmatpush3.xpose.msk.msra.mxu0 %vm659_vm2, %v1165_v44  ;;  %1736 = vmatprep.mubr.msk.f32.mxu0 %vm1885_vm1, %v1884_v2 }
 0x2db   : > { %1744 = vmatprep.subr.mxu0 %v1884_v2 }
 0x2dd   : > { %1737 = vmatmul.mubr.msk.f32.vlgmr.msra.gmra.mxu0 %vm659_vm2, %v1163_v45 }
 0x2de   : > { %1752 = vmatprep.mubr.msk.f32.mxu0 %vm1885_vm1, %v1884_v2 }
 0x2df   : > { %v1805_v46 = vpop.eup %1804 }
 0x2e0   : > { %v749_v47 = vmul.f32 %v1805_v46, %v1803_v33 }
 0x2e2   : > { %1712 = vmatmul.mubr.msk.f32.vlgmr.msra.gmra.mxu1 %vm659_vm2, %v749_v47 }
 0x2e3   : > { %1715 = vmatpush3.xpose.msk.msra.mxu1 %vm659_vm2, %v826_v39  ;;  %1716 = vmatprep.mubr.msk.f32.mxu1 %vm1885_vm1, %v1884_v2 }
 0x2e4   : > { %1719 = vmatprep.subr.mxu1 %v1884_v2 }
 0x2e6   : > { %1717 = vmatmul.mubr.msk.f32.vlgmr.msra.gmra.mxu1 %vm659_vm2, %v824_v40 }
 0x2e7   : > { %1721 = vmatprep.mubr.msk.f32.mxu1 %vm1885_vm1, %v1884_v2 }
 0x399   : > { %v1067_v48 = vpop.f32.mrf.mxu0 }
 0x39a   : > { %v1071_v50 = vmul.f32 0.35355338, %v1067_v48 }
 0x39b   : > { %v1728_v51 = vpop.f32.mrf.mxu0 }
 0x39c   : > { %v1074_v52 = vadd.f32 %v1618_v49, %v1071_v50 }
 0x39d   : > { %v1236_v53 = vpop.f32.mrf.mxu0 }
 0x39e   : > { %v1075_v54 = vsel %vm659_vm2, %v1074_v52, -inf  ;;  %v1240_v60 = vmul.f32 0.35355338, %v1236_v53  ;;  %v1377_v53 = vld [vmem:[%s2238_s7 + $0x10] sm:$0xff] }
 0x39f   : > { %1076 = vmax.xlane.f32.xlu0 %v1075_v54  ;;  %v1738_v55 = vpop.f32.mrf.mxu0  ;;  %v1375_v54 = vld [vmem:[%s2238_s7] sm:$0xff] }
 0x3a0   : > { %v1243_v3 = vadd.f32 %v1622_v63, %v1240_v60 }
 0x3a2   : > { %v2134_v56 = vpop.f32.mrf.mxu1  ;;  %v1244_v4 = vsel %vm659_vm2, %v1243_v3, -inf }
 0x3a4   : > { %v1713_v57 = vpop.f32.mrf.mxu1 }
 0x3a6   : > { %v897_v58 = vpop.f32.mrf.mxu1 }
 0x3a7   : > { %v901_v61 = vmul.f32 0.35355338, %v897_v58 }
 0x3a8   : > { %v1718_v62 = vpop.f32.mrf.mxu1 }
 0x3a9   : > { %v904_v0 = vadd.f32 %v1614_v59, %v901_v61  ;;  %v1624_v59 = vld [vmem:[%s2240_s9] ss:$0 sm:$0xff]  ;;  %v1625_v61 = vld [vmem:[%s2240_s9 + $0x1] ss:$0 sm:$0xff] }
 0x3ab   : > { %v905_v1 = vsel %vm659_vm2, %v904_v0, -inf }
 0x3ac   : > { %906 = vmax.xlane.f32.xlu1 %v905_v1 }
 0x3b0   : > { %1245 = vmax.xlane.f32.xlu1 %v1244_v4 }
 0x428   : > { %v1077_v5 = vpop.xlane.xlu0 %1076 }
 0x429   : > { %v1078_v6 = vsub.f32 %v1074_v52, %v1077_v5  ;;  %v1378_v52 = vld [vmem:[%s2238_s7 + $0x18] sm:$0xff] }
 0x42a   : > { %1745 = vmatpush3.msra.mxu0 %v1378_v52 }
 0x42b   : > { %v1079_v7 = vmul.f32 1.442695, %v1078_v6  ;;  %1746 = vmatprep.subr.mxu0 %v1884_v2 }
 0x42c   : > { %1747 = vmatpush3.msra.mxu0 %v1377_v53 }
 0x42d   : > { %1806 = vpow2.f32 %v1079_v7  ;;  %1748 = vmatprep.subr.mxu0 %v1884_v2 }
 0x435   : > { %v907_v8 = vpop.xlane.xlu1 %906 }
 0x436   : > { %v908_v17 = vsub.f32 %v904_v0, %v907_v8 }
 0x438   : > { %v909_v18 = vmul.f32 1.442695, %v908_v17 }
 0x439   : > { %v1246_v9 = vpop.xlane.xlu1 %1245 }
 0x43a   : > { %v1807_v11 = vpop.eup %1806  ;;  %v1247_v12 = vsub.f32 %v1243_v3, %v1246_v9 }
 0x43b   : > { %v1081_v13 = vsel %vm659_vm2, %v1807_v11, 0.0 }
 0x43c   : > { %v1248_v14 = vmul.f32 1.442695, %v1247_v12  ;;  %1082 = vadd.xlane.f32.xlu0 %v1081_v13 }
 0x43e   : > { %1808 = vpow2.f32 %v1248_v14 }
 0x43f   : > { %1810 = vpow2.f32 %v909_v18  ;;  %v1629_v18 = vld [vmem:[%s2240_s9 + $0x3] ss:$0 sm:$0xff] }
 0x44b   : > { %v1809_v15 = vpop.eup %1808 }
 0x44c   : > { %v1250_v16 = vsel %vm659_vm2, %v1809_v15, 0.0  ;;  %v1811_v19 = vpop.eup %1810 }
 0x44d   : > { %1251 = vadd.xlane.f32.xlu1 %v1250_v16  ;;  %v911_v20 = vsel %vm659_vm2, %v1811_v19, 0.0  ;;  %v1628_v16 = vld [vmem:[%s2240_s9 + $0x2] ss:$0 sm:$0xff] }
 0x452   : > { %917 = vrot.lane.b32.xlu0 %v2109_v37, %s2249_s28 }
 0x45e   : > { %1086 = vrot.lane.b32.xlu1 %v2109_v37, %s1887_s12  ;;  %s1889_s12 = smov 8  }
 0x482   : > { %912 = vadd.xlane.f32.xlu1 %v911_v20 }
 0x493   : > { %1255 = vrot.lane.b32.xlu1 %v2109_v37, %s2250_s29  ;;  %s1631_s29 = sshll.u32 %s1969_s17, 7  ;;  %s1828_s17 = scalar_lea.vmem %s1827_s20, 256 }
 0x494   : > { %s1496_s27 = scalar_lea.hbm %s2241_s10, %s1631_s29 }
 0x4c5   : > { %v1083_v21 = vpop.xlane.xlu0 %1082 }
 0x4c9   : > { %v918_v22 = vpop.permute.xlu0 %917 }
 0x4ca   : > { %1720 = vmatpush3.msra.mxu1 %v918_v22 }
 0x4cb   : > { %1729 = vmatprep.subr.mxu1 %v1884_v2 }
 0x4d6   : > { %v1252_v23 = vpop.xlane.xlu1 %1251 }
 0x4da   : > { %v1087_v24 = vpop.permute.xlu1 %1086 }
 0x50b   : > { %v913_v25 = vpop.xlane.xlu1 %912 }
 0x50c   : > { %1812 = vrcp.f32 %v913_v25 }
 0x50d   : > { %1814 = vrcp.f32 %v1083_v21 }
 0x50e   : > { %1816 = vrcp.f32 %v1252_v23 }
 0x50f   : > { %v1256_v31 = vpop.permute.xlu1 %1255 }
 0x519   : > { %v1813_v26 = vpop.eup %1812 }
 0x51a   : > { %v915_v27 = vmul.f32 %v1813_v26, %v1811_v19  ;;  %v1815_v28 = vpop.eup %1814 }
 0x51b   : > { %v1085_v29 = vmul.f32 %v1815_v28, %v1807_v11  ;;  %v1817_v30 = vpop.eup %1816 }
 0x51c   : > { %1722 = vmatmul.mubr.msk.f32.vlgmr.msra.gmra.mxu1 %vm659_vm2, %v915_v27  ;;  %v1254_v32 = vmul.f32 %v1817_v30, %v1809_v15 }
 0x51d   : > { %1730 = vmatpush3.msra.mxu1 %v1087_v24  ;;  %1731 = vmatprep.mubr.msk.f32.mxu1 %vm1885_vm1, %v1884_v2 }
 0x51e   : > { %1739 = vmatprep.subr.mxu1 %v1884_v2 }
 0x520   : > { %1732 = vmatmul.mubr.msk.f32.vlgmr.msra.gmra.mxu1 %vm659_vm2, %v1085_v29 }
 0x521   : > { %1740 = vmatpush3.msra.mxu1 %v1256_v31  ;;  %1741 = vmatprep.mubr.msk.f32.mxu1 %vm1885_vm1, %v1884_v2 }
 0x524   : > { %1742 = vmatmul.mubr.msk.f32.vlgmr.msra.gmra.mxu1 %vm659_vm2, %v1254_v32 }
 0x5dc   : > { %v989_v33 = vpop.f32.mrf.mxu1 }
 0x5dd   : > { %1332 = vrot.lane.b32.xlu0 %v989_v33, %s1889_s12  ;;  %s391_s12 = scalar_lea.vmem [#allocation2], %s1597_s26 }
 0x5de   : > { %v1723_v34 = vpop.f32.mrf.mxu1 }
 0x5e0   : > { %v1158_v35 = vpop.f32.mrf.mxu1 }
 0x5e1   : > { %1336 = vrot.lane.b32.xlu1 %v1158_v35, %s1890_s30  ;;  %s1498_s30 = sshll.u32 %s391_s12, 4  ;;  %s1499_s30 = int_to_ptr.vmem [resolvable:$true] %s1498_s30 }
 0x5e2   : > { %v1733_v36 = vpop.f32.mrf.mxu1  ;;  %s1822_s22 = scalar_lea.vmem %s1499_s30, 128  ;;  %p1829_p0 = scmp.lt.s32.totalorder %s1499_s30, %s1827_s20 }
 0x5e3   : > { %p1823_p11 = scmp.ne.s32.totalorder %s1499_s30, %s1822_s22  ;;  %p1830_p1 = scmp.lt.s32.totalorder %s1828_s17, %s1822_s22 }
 0x5e4   : > { %v1327_v37 = vpop.f32.mrf.mxu1 }
 0x5e5   : > { %1340 = vrot.lane.b32.xlu0 %v1327_v37, %s1891_s21  ;;  %p1824_p12 = pnand %p1823_p11, %p1986_p5  ;;  %p1831_p2 = por %p1830_p1, %p1829_p0 }
 0x5e6   : > { %v1743_v38 = vpop.f32.mrf.mxu1 }
 0x5e7   : > { %p1825_p13 = pneg %p1824_p12 }
 0x5e9   : > { %p1832_p3 = pnand %p1831_p2, %p1825_p13 }
 0x64f   : > { %v1333_v39 = vpop.permute.xlu0 %1332 }
 0x650   : > { %v1343_v41 = vsel %vm659_vm2, %v2134_v56, %v1333_v39 }
 0x653   : > { %v1337_v40 = vpop.permute.xlu1 %1336 }
 0x654   : > { %v1345_v42 = vsel %vm1344_vm3, %v1343_v41, %v1337_v40 }
 0x657   : > { %v1341_v43 = vpop.permute.xlu0 %1340 }
 0x658   : > { %v1347_v44 = vsel %vm1346_vm4, %v1345_v42, %v1341_v43 }
 0x659   : > { %v1348_v45 = vadd.f32 %v1347_v44, %v2045_v10  ;;  %v1376_v10 = vld [vmem:[%s2238_s7 + $0x8] sm:$0xff] }
 0x65a   : > { %1749 = vmatpush3.msra.mxu0 %v1376_v10 }
 0x65b   : > { %v1351_v46 = vsel %vm421_vm0, %v1348_v45, 0.0  ;;  %1750 = vmatprep.subr.mxu0 %v1884_v2  ;;  %v1626_v2 = vld [vmem:[%s2239_s8 + $0x3] ss:$0 sm:$0xff] }
 0x65c   : > { %1352 = vadd.xlane.f32.xlu1 %v1351_v46  ;;  %1751 = vmatpush3.msra.mxu0 %v1375_v54 }
 0x6e5   : > { %v1353_v47 = vpop.xlane.xlu1 %1352 }
 0x6e6   : > { %v1355_v48 = vmul.f32 0.03125, %v1353_v47 }
 0x6e8   : > { %v1356_v49 = vsub.f32 %v1348_v45, %v1355_v48 }
 0x6ea   : > { %v1357_v50 = vmul.f32 %v1356_v49, %v1356_v49 }
 0x6ec   : > { %v1358_v51 = vsel %vm421_vm0, %v1357_v50, 0.0 }
 0x6ed   : > { %1359 = vadd.xlane.f32.xlu0 %v1358_v51 }
 0x776   : > { %v1360_v55 = vpop.xlane.xlu0 %1359 }
 0x777   : > { %v1361_v56 = vmul.f32 0.03125, %v1360_v55 }
 0x779   : > { %v1362_v57 = vadd.f32 1e-05, %v1361_v56 }
 0x77b   : > { %1818 = vrsqrt.f32 %v1362_v57 }
 0x788   : > { %v1819_v58 = vpop.eup %1818 }
 0x789   : > { %v1364_v60 = vmul.f32 %v1819_v58, %v1356_v49 }
 0x78b   : > { %v1369_v62 = vmul.f32 %v1624_v59, %v1364_v60 }
 0x78d   : > { %v1374_v63 = vadd.f32 %v1625_v61, %v1369_v62 }
 0x78f   : > { %1753 = vmatmul.mubr.msk.f32.vlgmr.msra.gmra.mxu0 %vm421_vm0, %v1374_v63 }
 0x84f   : > { %v1453_v0 = vpop.f32.mrf.mxu0 }
 0x850   : > { %v1454_v1 = vadd.f32 %v1626_v2, %v1453_v0 }
 0x851   : > { %v1754_v3 = vpop.f32.mrf.mxu0 }
 0x852   : > { %v1457_v4 = vadd.f32 %v1454_v1, %v1374_v63 }
 0x854   : > { %v1460_v5 = vsel %vm421_vm0, %v1457_v4, 0.0 }
 0x855   : > { %1461 = vadd.xlane.f32.xlu0 %v1460_v5 }
 0x8de   : > { %v1462_v6 = vpop.xlane.xlu0 %1461 }
 0x8df   : > { %v1463_v7 = vmul.f32 0.03125, %v1462_v6 }
 0x8e1   : > { %v1464_v8 = vsub.f32 %v1457_v4, %v1463_v7 }
 0x8e3   : > { %v1465_v9 = vmul.f32 %v1464_v8, %v1464_v8 }
 0x8e5   : > { %v1466_v11 = vsel %vm421_vm0, %v1465_v9, 0.0 }
 0x8e6   : > { %1467 = vadd.xlane.f32.xlu1 %v1466_v11 }
 0x96f   : > { %v1468_v12 = vpop.xlane.xlu1 %1467 }
 0x970   : > { %v1469_v13 = vmul.f32 0.03125, %v1468_v12 }
 0x972   : > { %v1470_v14 = vadd.f32 1e-05, %v1469_v13 }
 0x974   : > { %1820 = vrsqrt.f32 %v1470_v14 }
 0x981   : > { %v1821_v15 = vpop.eup %1820 }
 0x982   : > { %v1472_v17 = vmul.f32 %v1821_v15, %v1464_v8 }
 0x984   : > { %v1477_v19 = vmul.f32 %v1628_v16, %v1472_v17 }
 0x986   : > { %v1482_v20 = vadd.f32 %v1629_v18, %v1477_v19 }
 0x988   : > { %1483 = vst.msk [vmem:[%s391_s12] sm:$0xff] %vm421_vm0, %v1482_v20 }
 0x989   : > { %1835 = shalt.err (!%p1832_p3)
}
 0x98a   : > { %s1836_s26 = scalar_lea.hbm %s1496_s27, 128  ;;  %s1840_s29 = scalar_lea.hbm %s2241_s10, 256 }
 0x98b   : > { %p1837_p4 = scmp.ne.s32.totalorder %s1496_s27, %s1836_s26  ;;  %p1841_p9 = scmp.lt.s32.totalorder %s1496_s27, %s2241_s10 }
 0x98c   : > { %p1842_p10 = scmp.lt.s32.totalorder %s1840_s29, %s1836_s26 }
 0x98d   : > { %p1838_p7 = pnand %p1837_p4, %p1986_p5 }
 0x98e   : > { %p1843_p11 = por %p1842_p10, %p1841_p9 }
 0x98f   : > { %p1839_p8 = pneg %p1838_p7 }
 0x991   : > { %p1844_p12 = pnand %p1843_p11, %p1839_p8 }
 0x993   : > { %1847 = shalt.err (!%p1844_p12)
}
 0x994   : > { %1755 = dma.vmem_to_hbm [thread:$0]  (%p1986_p5), %s1499_s30, 128, %s1496_s27, %s1485_s0  }
 0x995 PF: > { %p1761_p13 = scmp.ge.s32.totalorder %s1882_s16, 2  ;;  %s1510_s25 = sand.u32 1, %s1870_s13  }
 0x996   : > { %s1511_s22 = scalar_lea.sflag [#allocation3], %s1510_s25 }
 0x997   : > { %p1758_p0 = pnand %p1761_p13, %p1990_p6 }
 0x999   : > { %p1759_p1 = pneg %p1758_p0 }
 0x99b   : > { %1865 = dma.done.wait (%p1759_p1), %s1511_s22, 128  }
 0x99c   : > { %1867 = vsyncadd (%p1759_p1), %s1511_s22, 4294967168  ;;  %s2251_s18 = sld [smem:[#allocation5_spill]]  ;;  %p20_p2 = scmp.ge.s32.totalorder %s1973_s19, 4  }
 0x99d   : > { %s2252_s13 = smov %s1874_s14  ;;  %s2253_s14 = smov %s1878_s15 }
 0x99e   : > { %s2255_s16 = smov %s1973_s19  ;;  %22 = sbr.rel (!%p20_p2) target bundleno = 5 (0x5), region = 107 }
 0x9a2   : > { %s2254_s15 = smov %s2251_s18 }
 0x9a3   :  { %1516 = vsyncpa [#allocation3], 1 }
 0x9a4   :  { %1518 = vsyncpa [#allocation3 + $0x1], 1 }

// kernel: _forward.2
= control target key start
LH: loop header
LB: loop body
LE: loop exit
PB: predicated region body
PF: predicated region fallthrough
CT: control target
= control target key end

     0   :  { %s15119_s0 = inlined_call_operand.vmem [shape: f32[2,4,8,8], index: 0, kind: input, shape index: {}]   ;;  %s15120_s1 = inlined_call_operand.vmem [shape: f32[4,64], index: 1, kind: input, shape index: {}]   ;;  %s15121_s2 = inlined_call_operand.vmem [shape: f32[4], index: 2, kind: input, shape index: {}]   ;;  %s15122_s3 = inlined_call_operand.vmem [shape: f32[2,4,8,8], index: 3, kind: output, shape index: {}]  }
   0x1   :  { %15187 = sst [smem:[#allocation16_spill]] %s15119_s0 }
   0x2   :  { %15188 = sst [smem:[#allocation17_spill]] %s15120_s1 }
   0x3   :  { %15189 = sst [smem:[#allocation18_spill]] %s15121_s2 }
   0x4   :  { %15190 = sst [smem:[#allocation19_spill]] %s15122_s3 }
   0x5   :  { %8 = vsyncpa [#allocation3], 0 }
   0x6   :  { %9 = vsyncpa [#allocation5], 0  ;;  %s8904_s12 = smov 0  }
   0x7 LB: > { %15191 = sst [smem:[#allocation8_spill]] %s8874_s12  ;;  %s8910_s13 = sadd.s32 4294967295, %s8874_s12   ;;  %s8874_s12 = sphi %s8904_s12, %s15_s12  }
   0x8   : > { %p7996_p0 = scmp.ge.s32.totalorder %s8874_s12, 1  ;;  %p114_p1 = scmp.lt.s32.totalorder %s8874_s12, 3 }
   0x9   : > { %s15192_s1 = sld [smem:[#allocation17_spill]]  ;;  %p15123_p3 = scmp.eq.s32.totalorder %s8910_s13, 0 }
   0xa   : > { %p8917_p2 = pnand %p7996_p0, %p114_p1  ;;  %s15194_s2 = sld [smem:[#allocation18_spill]] }
   0xc   : > { %s15193_s17 = scalar_select %p8917_p2, 1, 0 }
   0xd   : > { %p8667_p4 = pneg %p8917_p2 }
   0xf   : > { %s127_s16 = sshll.u32 %s15192_s1, 4  ;;  %p8929_p5 = pnand %p15123_p3, %p8667_p4  ;;  %s128_s16 = int_to_ptr.vmem [resolvable:$true] %s127_s16 }
  0x10   : > { %s138_s20 = sshll.u32 %s15194_s2, 4  ;;  %s8830_s22 = scalar_lea.vmem %s128_s16, 64  ;;  %s139_s20 = int_to_ptr.vmem [resolvable:$true] %s138_s20 }
  0x11   : > { %p8831_p6 = scmp.ne.s32.totalorder %s128_s16, %s8830_s22  ;;  %p8832_p7 = pneg %p8929_p5 }
  0x12   : > { %p8838_p10 = scmp.lt.s32.totalorder %s128_s16, %s128_s16  ;;  %p8839_p11 = scmp.lt.s32.totalorder %s8830_s22, %s8830_s22 }
  0x13   : > { %p8833_p8 = pnand %p8832_p7, %p8831_p6 }
  0x14   : > { %p8840_p12 = por %p8839_p11, %p8838_p10 }
  0x15   : > { %p8834_p9 = pneg %p8833_p8 }
  0x17   : > { %p8841_p13 = pnand %p8840_p12, %p8834_p9 }
  0x19   : > { %8844 = shalt.err (!%p8841_p13)
}
  0x1a   : > { %s8876_s23 = smov [#allocation2]   ;;  %s8845_s24 = scalar_lea.vmem %s139_s20, 16 }
  0x1b   : > { %8670 = dma.vmem_to_smem (!%p8929_p5), %s128_s16, 64, %s8876_s23, [#allocation3]  }
  0x1c   : > { %p8846_p0 = scmp.ne.s32.totalorder %s139_s20, %s8845_s24  ;;  %p8853_p3 = scmp.lt.s32.totalorder %s139_s20, %s139_s20 }
  0x1d   : > { %p8854_p2 = scmp.lt.s32.totalorder %s8845_s24, %s8845_s24 }
  0x1e   : > { %p8848_p1 = pnand %p8846_p0, %p8832_p7 }
  0x1f   : > { %p8855_p6 = por %p8854_p2, %p8853_p3 }
  0x20   : > { %p8849_p4 = pneg %p8848_p1 }
  0x22   : > { %p8856_p8 = pnand %p8855_p6, %p8849_p4 }
  0x24   : > { %8859 = shalt.err (!%p8856_p8)
}
  0x25   : > { %s8877_s25 = smov [#allocation4]   ;;  %p15196_p9 = scmp.ne.s32.totalorder %s15193_s17, 0 }
  0x26   : > { %8673 = dma.vmem_to_smem (!%p8929_p5), %s139_s20, 16, %s8877_s25, [#allocation5]  }
  0x27   : > { %159 = sbr.rel (%p15196_p9) target bundleno = 1152 (0x480), region = 32 }
  0x2c   : > { %p15197_p10 = scmp.eq.s32.totalorder %s8910_s13, 0 }
  0x2e   : > { %8865 = dma.done.wait (%p15197_p10), [#allocation3], 64   ;;  %p15198_p11 = pmov %p15197_p10 }
  0x2f   : > { %p15199_p7 = pmov %p15197_p10 }
  0x30   : > { %8867 = vsyncadd (%p15198_p11), [#allocation3], 4294967232 }
  0x31   : > { %8869 = dma.done.wait (%p15199_p7), [#allocation5], 16   ;;  %p15200_p2 = pmov %p15199_p7 }
  0x33   : > { %8871 = vsyncadd (%p15200_p2), [#allocation5], 4294967280 }
  0x34   : > { %169 = sfence }
  0x35   : > { %p188_p3 = scmp.lt.s32.totalorder %s8910_s13, 1  ;;  %s15202_s0 = sld [smem:[#allocation16_spill]]  ;;  %v15145_v13 = vmov 2102212464   ;;  %v15137_v15 = vmov 920167782  }
  0x36   : > { %v15133_v20 = vmov 1326507024   ;;  %v15152_v22 = vmov 683565275   ;;  %v15135_v24 = vmov 2475754826  }
  0x37   : > { %s15522_s13 = smov (!%p188_p3, %s8910_s13), 1  ;;  %v15140_v28 = vmov 2131351028   ;;  %s9134_s30 = sld [smem:[#allocation2]] }
  0x38   : > { %15201 = sst [smem:[#allocation9_spill]] %s15522_s13  ;;  %s15125_s26 = sshll.u32 %s15522_s13, 5 }
  0x39   : > { %s9143_s4 = sld [smem:[#allocation2 + $0x20]] }
  0x3a   : > { %s9145_s5 = sld [smem:[#allocation2 + $0x80]] }
  0x3b   : > { %s8959_s29 = scalar_lea.vmem %s15202_s0, %s15125_s26  ;;  %s9152_s6 = sld [smem:[#allocation2 + $0xa0]] }
  0x3c   : > { %v198_v0 = vld [vmem:[%s8959_s29] sm:$0xff]  ;;  %s9160_s7 = sld [smem:[#allocation2 + $0x100]] }
  0x3d   : > { %v8962_v1 = vmul.f32 100.0, %v198_v0  ;;  %s9164_s8 = sld [smem:[#allocation2 + $0x120]] }
  0x3e   : > { %s9168_s9 = sld [smem:[#allocation2 + $0x180]] }
  0x3f   : > { %v203_v2 = vand.u32 2139095040, %v8962_v1  ;;  %v8966_v6 = vmul.f32 0.4216965, %v8962_v1  ;;  %v200_v17 = vand.u32 2147483647, %v8962_v1  ;;  %s9173_s10 = sld [smem:[#allocation2 + $0x1a0]] }
  0x40   : > { %v8991_v51 = vmul.f32 0.17782794, %v8962_v1  ;;  %s9176_s11 = sld [smem:[#allocation2 + $0x1]] }
  0x41   : > { %v204_v3 = vshrl.u32 %v203_v2, 23  ;;  %v443_v8 = vand.u32 2139095040, %v8966_v6  ;;  %v207_v33 = vand.u32 8388607, %v200_v17  ;;  %v440_v58 = vand.u32 2147483647, %v8966_v6 }
  0x42   : > { %v683_v62 = vand.u32 2139095040, %v8991_v51  ;;  %s9183_s14 = sld [smem:[#allocation2 + $0x21]] }
  0x43   : > { %v8007_v4 = vadd.s32 4294967169, %v204_v3  ;;  %v444_v10 = vshrl.u32 %v443_v8, 23  ;;  %v208_v39 = vor.u32 8388608, %v207_v33  ;;  %s9191_s15 = sld [smem:[#allocation2 + $0x81]] }
  0x44   : > { %s9197_s16 = sld [smem:[#allocation2 + $0xa1]] }
  0x45   : > { %v210_v5 = vadd.s32 1, %v8007_v4  ;;  %v8022_v12 = vadd.s32 4294967169, %v444_v10  ;;  %v248_v47 = vshll.u32 %v208_v39, 8  ;;  %s9240_s17 = sld [smem:[#allocation2 + $0x101]] }
  0x46   : > { %s9250_s18 = sld [smem:[#allocation2 + $0x121]] }
  0x47   : > { %vm211_vm0 = vcmp.gt.s32.totalorder %v210_v5, 0  ;;  %v450_v26 = vadd.s32 1, %v8022_v12  ;;  %s9256_s19 = sld [smem:[#allocation2 + $0x181]] }
  0x48   : > { %v212_v7 = vsel %vm211_vm0, %v210_v5, 0  ;;  %s9262_s20 = sld [smem:[#allocation2 + $0x1a1]] }
  0x49   : > { %v214_v9 = vand.u32 31, %v212_v7  ;;  %v213_v18 = vshrl.u32 %v212_v7, 5  ;;  %vm451_vm2 = vcmp.gt.s32.totalorder %v450_v26, 0  ;;  %s9270_s21 = sld [smem:[#allocation2 + $0x2]] }
  0x4a   : > { %v452_v41 = vsel %vm451_vm2, %v450_v26, 0  ;;  %s9276_s22 = sld [smem:[#allocation2 + $0x22]] }
  0x4b   : > { %v215_v11 = vsub.s32 32, %v214_v9  ;;  %v226_v14 = vshll.u32 %v15145_v13, %v214_v9  ;;  %v229_v19 = vshll.u32 %v15137_v15, %v214_v9  ;;  %v217_v23 = vshll.u32 %v15152_v22, %v214_v9  ;;  %s9286_s23 = sld [smem:[#allocation2 + $0x82]] }
  0x4c   : > { %v220_v25 = vshll.u32 %v15135_v24, %v214_v9  ;;  %v223_v30 = vshll.u32 %v15140_v28, %v214_v9  ;;  %vm235_vm1 = vcmp.lt.s32.totalorder %v213_v18, 4  ;;  %vm232_vm3 = vcmp.lt.s32.totalorder %v213_v18, 1  ;;  %s9294_s24 = sld [smem:[#allocation2 + $0xa2]] }
  0x4d   : > { %v227_v16 = vshrl.u32 %v15137_v15, %v215_v11  ;;  %v230_v21 = vshrl.u32 %v15133_v20, %v215_v11  ;;  %v218_v27 = vshrl.u32 %v15135_v24, %v215_v11  ;;  %v221_v29 = vshrl.u32 %v15140_v28, %v215_v11  ;;  %s9302_s25 = sld [smem:[#allocation2 + $0x102]] }
  0x4e   : > { %v224_v31 = vshrl.u32 %v15145_v13, %v215_v11  ;;  %vm234_vm4 = vcmp.lt.s32.totalorder %v213_v18, 3  ;;  %vm233_vm5 = vcmp.lt.s32.totalorder %v213_v18, 2  ;;  %v454_v46 = vand.u32 31, %v452_v41  ;;  %s9319_s27 = sld [smem:[#allocation2 + $0x122]] }
  0x4f   : > { %v228_v32 = vor.u32 %v227_v16, %v226_v14  ;;  %v231_v34 = vor.u32 %v230_v21, %v229_v19  ;;  %v219_v35 = vor.u32 %v218_v27, %v217_v23  ;;  %v222_v36 = vor.u32 %v221_v29, %v220_v25  ;;  %s9321_s28 = sld [smem:[#allocation2 + $0x182]] }
  0x50   : > { %v225_v37 = vor.u32 %v224_v31, %v223_v30  ;;  %v455_v50 = vsub.s32 32, %v454_v46  ;;  %v216_v52 = vshrl.u32 %v15152_v22, %v215_v11  ;;  %v453_v59 = vshrl.u32 %v452_v41, 5  ;;  %s9330_s26 = sld [smem:[#allocation2 + $0x1a2]] }
  0x51   : > { %v241_v38 = vsel %vm235_vm1, %v228_v32, 920167782  ;;  %v245_v40 = vsel %vm235_vm1, %v231_v34, 1326507024  ;;  %v240_v42 = vsel %vm232_vm3, %v219_v35, %v222_v36  ;;  %v466_v60 = vshll.u32 %v15145_v13, %v454_v46  ;;  %s9344_s0 = sld [smem:[#allocation2 + $0x3]] }
  0x52   : > { %v242_v43 = vsel %vm234_vm4, %v225_v37, %v241_v38  ;;  %v244_v44 = vsel %vm232_vm3, %v222_v36, %v225_v37  ;;  %v246_v45 = vsel %vm234_vm4, %v228_v32, %v245_v40  ;;  %v237_v55 = vsel %vm235_vm1, %v225_v37, 2102212464  ;;  %s9359_s1 = sld [smem:[#allocation2 + $0x23]] }
  0x53   : > { %v243_v48 = vsel %vm233_vm5, %v240_v42, %v242_v43  ;;  %v247_v49 = vsel %vm233_vm5, %v244_v44, %v246_v45  ;;  %v467_v61 = vshrl.u32 %v15137_v15, %v455_v50  ;;  %v236_v63 = vsel %vm232_vm3, %v216_v52, %v219_v35  ;;  %s9367_s2 = sld [smem:[#allocation2 + $0x83]] }
  0x54   : > { %v8994_v53 = vmul.u32.u64.low %v248_v47, %v243_v48  ;;  %v8995_v54 = vmul.u32.u64.high %v248_v47, %v243_v48, %v8994_v53  ;;  %v8999_v56 = vmul.u32.u64.low %v248_v47, %v247_v49  ;;  %v9000_v57 = vmul.u32.u64.high %v248_v47, %v247_v49, %v8999_v56  ;;  %s9372_s12 = sld [smem:[#allocation2 + $0xa3]] }
  0x55   : > { %v238_v0 = vsel %vm234_vm4, %v222_v36, %v237_v55  ;;  %v469_v2 = vshll.u32 %v15137_v15, %v454_v46  ;;  %v470_v3 = vshrl.u32 %v15133_v20, %v455_v50  ;;  %v457_v4 = vshll.u32 %v15152_v22, %v454_v46  ;;  %s9382_s3 = sld [smem:[#allocation2 + $0x103]] }
  0x56   : > { %v458_v5 = vshrl.u32 %v15135_v24, %v455_v50  ;;  %v460_v7 = vshll.u32 %v15135_v24, %v454_v46  ;;  %v461_v8 = vshrl.u32 %v15140_v28, %v455_v50  ;;  %v463_v9 = vshll.u32 %v15140_v28, %v454_v46  ;;  %s9391_s13 = sld [smem:[#allocation2 + $0x123]] }
  0x57   : > { %v464_v10 = vshrl.u32 %v15145_v13, %v455_v50  ;;  %v239_v11 = vsel %vm233_vm5, %v236_v63, %v238_v0  ;;  %v468_v12 = vor.u32 %v467_v61, %v466_v60  ;;  %v684_v14 = vshrl.u32 %v683_v62, 23 }
  0x58   : > { %v258_v16 = vadd.s32 1, %v8995_v54  ;;  %v447_v19 = vand.u32 8388607, %v440_v58  ;;  %v471_v21 = vor.u32 %v470_v3, %v469_v2  ;;  %vm475_vm6 = vcmp.lt.s32.totalorder %v453_v59, 4  ;;  %15207 = sst [smem:[#allocation10_spill]] %s9359_s1 }
  0x59   : > { %vm257_vm7 = vc.u32 %v9000_v57, %v8994_v53  ;;  %v255_v23 = vmul.u32 %v248_v47, %v239_v11  ;;  %v459_v25 = vor.u32 %v458_v5, %v457_v4  ;;  %v462_v26 = vor.u32 %v461_v8, %v460_v7  ;;  %s9429_s1 = sld [smem:[#allocation2 + $0x183]] }
  0x5a   : > { %v465_v27 = vor.u32 %v464_v10, %v463_v9  ;;  %vm472_vm8 = vcmp.lt.s32.totalorder %v453_v59, 1  ;;  %vm474_vm9 = vcmp.lt.s32.totalorder %v453_v59, 3  ;;  %v481_v18 = vsel %vm475_vm6, %v468_v12, 920167782 }
  0x5b   : > { %v8038_v29 = vadd.s32 4294967169, %v684_v14  ;;  %v259_v30 = vsel %vm257_vm7, %v258_v16, %v8995_v54  ;;  %v448_v31 = vor.u32 8388608, %v447_v19  ;;  %v485_v32 = vsel %vm475_vm6, %v471_v21, 1326507024  ;;  %15208 = sst [smem:[#allocation11_spill]] %s9382_s3 }
  0x5c   : > { %vm473_vm10 = vcmp.lt.s32.totalorder %v453_v59, 2  ;;  %v480_v33 = vsel %vm472_vm8, %v459_v25, %v462_v26  ;;  %v482_v34 = vsel %vm474_vm9, %v465_v27, %v481_v18  ;;  %v260_v35 = vadd.s32 %v259_v30, %v255_v23  ;;  %15209 = sst [smem:[#allocation12_spill]] %s9391_s13 }
  0x5d   : > { %v484_v36 = vsel %vm472_vm8, %v462_v26, %v465_v27  ;;  %v486_v37 = vsel %vm474_vm9, %v468_v12, %v485_v32  ;;  %v690_v38 = vadd.s32 1, %v8038_v29  ;;  %v488_v39 = vshll.u32 %v448_v31, 8  ;;  %s9476_s13 = sld [smem:[#allocation2 + $0x1a3]] }
  0x5e   : > { %v483_v40 = vsel %vm473_vm10, %v480_v33, %v482_v34  ;;  %v487_v41 = vsel %vm473_vm10, %v484_v36, %v486_v37  ;;  %v261_v42 = vadd.s32 536870912, %v260_v35  ;;  %v456_v45 = vshrl.u32 %v15152_v22, %v455_v50  ;;  %s9486_s3 = sld [smem:[#allocation2 + $0x4]] }
  0x5f   : > { %vm691_vm11 = vcmp.gt.s32.totalorder %v690_v38, 0  ;;  %v9031_v43 = vmul.u32.u64.low %v488_v39, %v483_v40  ;;  %v9032_v44 = vmul.u32.u64.high %v488_v39, %v483_v40, %v9031_v43  ;;  %v477_v48 = vsel %vm475_vm6, %v465_v27, 2102212464 }
  0x60   : > { %v9036_v46 = vmul.u32.u64.low %v488_v39, %v487_v41  ;;  %v9037_v47 = vmul.u32.u64.high %v488_v39, %v487_v41, %v9036_v46  ;;  %v692_v49 = vsel %vm691_vm11, %v690_v38, 0  ;;  %v9040_v52 = vshrl.u32 %v261_v42, 30 }
  0x61   : > { %v476_v54 = vsel %vm472_vm8, %v456_v45, %v459_v25  ;;  %v478_v55 = vsel %vm474_vm9, %v462_v26, %v477_v48  ;;  %v694_v56 = vand.u32 31, %v692_v49  ;;  %v498_v62 = vadd.s32 1, %v9032_v44 }
  0x62   : > { %v263_v60 = vshll.u32 %v9040_v52, 30  ;;  %v479_v61 = vsel %vm473_vm10, %v476_v54, %v478_v55  ;;  %vm497_vm12 = vc.u32 %v9037_v47, %v9031_v43  ;;  %v9050_v63 = vmul.f32 0.07498942, %v8962_v1 }
  0x63   : > { %v695_v50 = vsub.s32 32, %v694_v56  ;;  %v495_v2 = vmul.u32 %v488_v39, %v479_v61  ;;  %v499_v3 = vsel %vm497_vm12, %v498_v62, %v9032_v44  ;;  %v706_v4 = vshll.u32 %v15145_v13, %v694_v56 }
  0x64   : > { %v9052_v0 = vsub.s32 %v260_v35, %v263_v60  ;;  %v923_v59 = vand.u32 2139095040, %v9050_v63  ;;  %v680_v7 = vand.u32 2147483647, %v8991_v51  ;;  %v693_v8 = vshrl.u32 %v692_v49, 5 }
  0x65   : > { %v707_v5 = vshrl.u32 %v15137_v15, %v695_v50  ;;  %v709_v9 = vshll.u32 %v15137_v15, %v694_v56  ;;  %v710_v10 = vshrl.u32 %v15133_v20, %v695_v50  ;;  %v500_v12 = vadd.s32 %v499_v3, %v495_v2 }
  0x66   : > { %v266_v11 = vsub.s32 0, %v9052_v0  ;;  %v697_v14 = vshll.u32 %v15152_v22, %v694_v56  ;;  %v700_v16 = vshll.u32 %v15135_v24, %v694_v56  ;;  %v698_v19 = vshrl.u32 %v15135_v24, %v695_v50 }
  0x67   : > { %v701_v21 = vshrl.u32 %v15140_v28, %v695_v50  ;;  %v703_v23 = vshll.u32 %v15140_v28, %v694_v56  ;;  %v704_v25 = vshrl.u32 %v15145_v13, %v695_v50  ;;  %v708_v26 = vor.u32 %v707_v5, %v706_v4 }
  0x68   : > { %v924_v27 = vshrl.u32 %v923_v59, 23  ;;  %v687_v18 = vand.u32 8388607, %v680_v7  ;;  %v711_v29 = vor.u32 %v710_v10, %v709_v9  ;;  %vm715_vm13 = vcmp.lt.s32.totalorder %v693_v8, 4 }
  0x69   : > { %v8008_v30 = vmin.u32 %v266_v11, %v9052_v0  ;;  %v501_v31 = vadd.s32 536870912, %v500_v12  ;;  %v699_v32 = vor.u32 %v698_v19, %v697_v14  ;;  %v702_v33 = vor.u32 %v701_v21, %v700_v16 }
  0x6a   : > { %v705_v34 = vor.u32 %v704_v25, %v703_v23  ;;  %vm712_vm14 = vcmp.lt.s32.totalorder %v693_v8, 1  ;;  %vm714_vm15 = vcmp.lt.s32.totalorder %v693_v8, 3  ;;  %v721_v35 = vsel %vm715_vm13, %v708_v26, 920167782 }
  0x6b   : > { %v8054_v36 = vadd.s32 4294967169, %v924_v27  ;;  %v688_v37 = vor.u32 8388608, %v687_v18  ;;  %v725_v38 = vsel %vm715_vm13, %v711_v29, 1326507024  ;;  %v268_v39 = vclz %v8008_v30 }
  0x6c   : > { %vm713_vm0 = vcmp.lt.s32.totalorder %v693_v8, 2  ;;  %v720_v40 = vsel %vm712_vm14, %v699_v32, %v702_v33  ;;  %v722_v41 = vsel %vm714_vm15, %v705_v34, %v721_v35  ;;  %v9075_v42 = vshrl.u32 %v501_v31, 30 }
  0x6d   : > { %v724_v44 = vsel %vm712_vm14, %v702_v33, %v705_v34  ;;  %v726_v45 = vsel %vm714_vm15, %v708_v26, %v725_v38  ;;  %v930_v46 = vadd.s32 1, %v8054_v36  ;;  %v728_v48 = vshll.u32 %v688_v37, 8 }
  0x6e   : > { %v723_v49 = vsel %vm713_vm0, %v720_v40, %v722_v41  ;;  %v727_v54 = vsel %vm713_vm0, %v724_v44, %v726_v45  ;;  %v8009_v55 = vadd.s32 4294967294, %v268_v39  ;;  %v503_v56 = vshll.u32 %v9075_v42, 30 }
  0x6f   : > { %vm931_vm1 = vcmp.gt.s32.totalorder %v930_v46, 0  ;;  %v9082_v60 = vmul.u32.u64.low %v728_v48, %v723_v49  ;;  %v9083_v61 = vmul.u32.u64.high %v728_v48, %v723_v49, %v9082_v60  ;;  %v696_v62 = vshrl.u32 %v15152_v22, %v695_v50 }
  0x70   : > { %v9087_v2 = vmul.u32.u64.low %v728_v48, %v727_v54  ;;  %v9088_v3 = vmul.u32.u64.high %v728_v48, %v727_v54, %v9087_v2  ;;  %v717_v4 = vsel %vm715_vm13, %v705_v34, 2102212464  ;;  %v932_v5 = vsel %vm931_vm1, %v930_v46, 0 }
  0x71   : > { %vm8010_vm2 = vcmp.lt.s32.totalorder %v8009_v55, 0  ;;  %v9091_v59 = vsub.s32 %v500_v12, %v503_v56  ;;  %v716_v9 = vsel %vm712_vm14, %v696_v62, %v699_v32  ;;  %v718_v10 = vsel %vm714_vm15, %v702_v33, %v717_v4 }
  0x72   : > { %v934_v11 = vand.u32 31, %v932_v5  ;;  %v271_v14 = vsel %vm8010_vm2, 0, %v8009_v55  ;;  %v719_v19 = vsel %vm713_vm0, %v716_v9, %v718_v10  ;;  %v738_v50 = vadd.s32 1, %v9083_v61 }
  0x73   : > { %v506_v16 = vsub.s32 0, %v9091_v59  ;;  %v276_v21 = vsub.s32 4294967266, %v271_v14  ;;  %vm737_vm3 = vc.u32 %v9088_v3, %v9082_v60  ;;  %v9103_v12 = vmul.f32 0.031622775, %v8962_v1 }
  0x74   : > { %v9100_v23 = vsub.s32 32, %v934_v11  ;;  %v735_v26 = vmul.u32 %v728_v48, %v719_v19  ;;  %v256_v27 = vadd.s32 %v8994_v53, %v9000_v57  ;;  %v272_v18 = vsub.s32 32, %v271_v14 }
  0x75   : > { %v8023_v25 = vmin.u32 %v506_v16, %v9091_v59  ;;  %v739_v8 = vsel %vm737_vm3, %v738_v50, %v9083_v61  ;;  %v277_v29 = vadd.s32 127, %v276_v21  ;;  %v946_v30 = vshll.u32 %v15145_v13, %v934_v11 }
  0x76   : > { %v947_v31 = vshrl.u32 %v15137_v15, %v9100_v23  ;;  %v1163_v32 = vand.u32 2139095040, %v9103_v12  ;;  %v15127_v33 = vand.u32 2147483647, %v9050_v63  ;;  %v9114_v34 = vshrl.u32 %v932_v5, 5 }
  0x77   : > { %v949_v35 = vshll.u32 %v15137_v15, %v934_v11  ;;  %v950_v53 = vshrl.u32 %v15133_v20, %v9100_v23  ;;  %v508_v57 = vclz %v8023_v25  ;;  %v9119_v36 = vadd.s32 %v739_v8, %v735_v26 }
  0x78   : > { %v937_v37 = vshll.u32 %v15152_v22, %v934_v11  ;;  %v940_v38 = vshll.u32 %v15135_v24, %v934_v11  ;;  %v938_v39 = vshrl.u32 %v15135_v24, %v9100_v23  ;;  %v941_v40 = vshrl.u32 %v15140_v28, %v9100_v23 }
  0x79   : > { %v943_v41 = vshll.u32 %v15140_v28, %v934_v11  ;;  %v944_v44 = vshrl.u32 %v15145_v13, %v9100_v23  ;;  %v273_v45 = vshll.u32 %v9052_v0, %v271_v14  ;;  %v274_v46 = vshrl.u32 %v256_v27, %v272_v18 }
  0x7a   : > { %v948_v48 = vor.u32 %v947_v31, %v946_v30  ;;  %v1164_v49 = vshrl.u32 %v1163_v32, 23  ;;  %v278_v54 = vshll.u32 %v277_v29, 23  ;;  %v927_v55 = vand.u32 8388607, %v15127_v33 }
  0x7b   : > { %v951_v56 = vor.u32 %v950_v53, %v949_v35  ;;  %vm955_vm4 = vcmp.lt.s32.totalorder %v9114_v34, 4  ;;  %v8024_v61 = vadd.s32 4294967294, %v508_v57  ;;  %v741_v62 = vadd.s32 536870912, %v9119_v36 }
  0x7c   : > { %v939_v2 = vor.u32 %v938_v39, %v937_v37  ;;  %v942_v4 = vor.u32 %v941_v40, %v940_v38  ;;  %v945_v5 = vor.u32 %v944_v44, %v943_v41  ;;  %vm952_vm5 = vcmp.lt.s32.totalorder %v9114_v34, 1 }
  0x7d   : > { %vm954_vm6 = vcmp.lt.s32.totalorder %v9114_v34, 3  ;;  %v961_v0 = vsel %vm955_vm4, %v948_v48, 920167782  ;;  %v8070_v9 = vadd.s32 4294967169, %v1164_v49  ;;  %v275_v10 = vor.u32 %v274_v46, %v273_v45 }
  0x7e   : > { %v279_v11 = vor.u32 4788187, %v278_v54  ;;  %v928_v14 = vor.u32 8388608, %v927_v55  ;;  %v965_v16 = vsel %vm955_vm4, %v951_v56, 1326507024  ;;  %vm8025_vm7 = vcmp.lt.s32.totalorder %v8024_v61, 0 }
  0x7f   : > { %vm953_vm8 = vcmp.lt.s32.totalorder %v9114_v34, 2  ;;  %v960_v19 = vsel %vm952_vm5, %v939_v2, %v942_v4  ;;  %v962_v50 = vsel %vm954_vm6, %v945_v5, %v961_v0  ;;  %v9154_v21 = vshrl.u32 %v741_v62, 30 }
  0x80   : > { %v964_v25 = vsel %vm952_vm5, %v942_v4, %v945_v5  ;;  %v966_v26 = vsel %vm954_vm6, %v948_v48, %v965_v16  ;;  %v1170_v27 = vadd.s32 1, %v8070_v9  ;;  %v280_v18 = vand.u32 2147483647, %v279_v11 }
  0x81   : > { %v282_v8 = vcvt.s32.f32 %v275_v10  ;;  %v9162_v29 = vshll.u32 %v928_v14, 8  ;;  %v963_v30 = vsel %vm953_vm8, %v960_v19, %v962_v50  ;;  %v511_v31 = vsel %vm8025_vm7, 0, %v8024_v61 }
  0x82   : > { %v967_v32 = vsel %vm953_vm8, %v964_v25, %v966_v26  ;;  %v743_v35 = vshll.u32 %v9154_v21, 30  ;;  %vm1171_vm9 = vcmp.gt.s32.totalorder %v1170_v27, 0  ;;  %v516_v38 = vsub.s32 4294967266, %v511_v31 }
  0x83   : > { %v283_v53 = vmul.f32 %v282_v8, %v280_v18  ;;  %v9179_v57 = vmul.u32.u64.low %v9162_v29, %v963_v30  ;;  %v9180_v37 = vmul.u32.u64.high %v9162_v29, %v963_v30, %v9179_v57  ;;  %v936_v39 = vshrl.u32 %v15152_v22, %v9100_v23 }
  0x84   : > { %v9188_v40 = vmul.u32.u64.low %v9162_v29, %v967_v32  ;;  %v9189_v41 = vmul.u32.u64.high %v9162_v29, %v967_v32, %v9188_v40  ;;  %v957_v44 = vsel %vm955_vm4, %v945_v5, 2102212464  ;;  %v1172_v45 = vsel %vm1171_vm9, %v1170_v27, 0 }
  0x85   : > { %vm202_vm10 = vcmp.lt.s32.totalorder %v8962_v1, 0  ;;  %v408_v46 = vstv %s9134_s30  ;;  %v9200_v23 = vsub.s32 %v9119_v36, %v743_v35  ;;  %v284_v48 = vxor.u32 2147483648, %v283_v53  ;;  %s9599_s30 = sld [smem:[#allocation2 + $0x24]] }
  0x86   : > { %v412_v49 = vstv %s9143_s4  ;;  %v496_v54 = vadd.s32 %v9031_v43, %v9037_v47  ;;  %v512_v55 = vsub.s32 32, %v511_v31  ;;  %v517_v56 = vadd.s32 127, %v516_v38  ;;  %s9609_s4 = sld [smem:[#allocation2 + $0x84]] }
  0x87   : > { %v956_v61 = vsel %vm952_vm5, %v936_v39, %v939_v2  ;;  %v958_v62 = vsel %vm954_vm6, %v942_v4, %v957_v44  ;;  %v1174_v5 = vand.u32 31, %v1172_v45  ;;  %vm9211_vm11 = vcmp.le.f32.partialorder %v200_v17, 0.7853982 }
  0x88   : > { %v416_v36 = vstv %s9145_s5  ;;  %v420_v9 = vstv %s9152_s6  ;;  %v424_v43 = vstv %s9160_s7  ;;  %v286_v47 = vsub.s32 4, %v9040_v52  ;;  %s9663_s5 = sld [smem:[#allocation2 + $0xa4]] }
  0x89   : > { %v428_v2 = vstv %s9164_s8  ;;  %v513_v4 = vshll.u32 %v9091_v59, %v511_v31  ;;  %v746_v10 = vsub.s32 0, %v9200_v23  ;;  %v285_v17 = vsel %vm202_vm10, %v284_v48, %v283_v53  ;;  %s9690_s6 = sld [smem:[#allocation2 + $0x104]] }
  0x8a   : > { %v514_v11 = vshrl.u32 %v496_v54, %v512_v55  ;;  %v959_v14 = vsel %vm953_vm8, %v956_v61, %v958_v62  ;;  %v978_v16 = vadd.s32 1, %v9180_v37  ;;  %v518_v19 = vshll.u32 %v517_v56, 23  ;;  %s9701_s7 = sld [smem:[#allocation2 + $0x124]] }
  0x8b   : > { %vm977_vm12 = vc.u32 %v9189_v41, %v9179_v57  ;;  %v9229_v50 = vsub.s32 32, %v1174_v5  ;;  %v9232_v25 = vmul.f32 0.013335214, %v8962_v1  ;;  %v432_v59 = vstv %s9168_s9  ;;  %s9705_s8 = sld [smem:[#allocation2 + $0x184]] }
  0x8c   : > { %v436_v26 = vstv %s9173_s10  ;;  %v648_v27 = vstv %s9176_s11  ;;  %v652_v18 = vstv %s9183_s14  ;;  %v656_v8 = vstv %s9191_s15  ;;  %s9732_s9 = sld [smem:[#allocation2 + $0x1a4]] }
  0x8d   : > { %v8039_v34 = vmin.u32 %v746_v10, %v9200_v23  ;;  %v975_v31 = vmul.u32 %v9162_v29, %v959_v14  ;;  %v287_v32 = vsel %vm202_vm10, %v286_v47, %v9040_v52  ;;  %v288_v35 = vsel %vm9211_vm11, %v8962_v1, %v285_v17  ;;  %s9741_s10 = sld [smem:[#allocation2 + $0x5]] }
  0x8e   : > { %v515_v53 = vor.u32 %v514_v11, %v513_v4  ;;  %v979_v38 = vsel %vm977_vm12, %v978_v16, %v9180_v37  ;;  %v519_v39 = vor.u32 4788187, %v518_v19  ;;  %v1186_v29 = vshll.u32 %v15145_v13, %v1174_v5  ;;  %s9769_s11 = sld [smem:[#allocation2 + $0x25]] }
  0x8f   : > { %v1187_v52 = vshrl.u32 %v15137_v15, %v9229_v50  ;;  %v1403_v40 = vand.u32 2139095040, %v9232_v25  ;;  %v15126_v44 = vand.u32 2147483647, %v9103_v12  ;;  %v9265_v48 = vshrl.u32 %v1172_v45, 5  ;;  %s9849_s14 = sld [smem:[#allocation2 + $0x85]] }
  0x90   : > { %v1189_v54 = vshll.u32 %v15137_v15, %v1174_v5  ;;  %v1190_v37 = vshrl.u32 %v15133_v20, %v9229_v50  ;;  %v748_v55 = vclz %v8039_v34  ;;  %v9272_v56 = vadd.s32 %v979_v38, %v975_v31  ;;  %s9862_s15 = sld [smem:[#allocation2 + $0x105]] }
  0x91   : > { %v1177_v61 = vshll.u32 %v15152_v22, %v1174_v5  ;;  %v1180_v62 = vshll.u32 %v15135_v24, %v1174_v5  ;;  %v1178_v45 = vshrl.u32 %v15135_v24, %v9229_v50  ;;  %v1181_v47 = vshrl.u32 %v15140_v28, %v9229_v50 }
  0x92   : > { %v1183_v4 = vshll.u32 %v15140_v28, %v1174_v5  ;;  %v1184_v10 = vshrl.u32 %v15145_v13, %v9229_v50  ;;  %8694 = vcosq.f32 %v288_v35  ;;  %vm442_vm13 = vcmp.lt.s32.totalorder %v8966_v6, 0 }
  0x93   : > { %v522_v17 = vcvt.s32.f32 %v515_v53  ;;  %v1188_v11 = vor.u32 %v1187_v52, %v1186_v29  ;;  %v1404_v14 = vshrl.u32 %v1403_v40, 23  ;;  %v520_v16 = vand.u32 2147483647, %v519_v39 }
  0x94   : > { %v1167_v19 = vand.u32 8388607, %v15126_v44  ;;  %v1191_v34 = vor.u32 %v1190_v37, %v1189_v54  ;;  %vm1195_vm14 = vcmp.lt.s32.totalorder %v9265_v48, 4  ;;  %v289_v5 = vsel %vm9211_vm11, 0, %v287_v32 }
  0x95   : > { %8696 = vsinq.f32 %v288_v35  ;;  %v664_v31 = vstv %s9240_s17  ;;  %v8040_v38 = vadd.s32 4294967294, %v748_v55  ;;  %vm9298_vm15 = vcmp.le.f32.partialorder %v440_v58, 0.7853982  ;;  %s9894_s17 = sld [smem:[#allocation2 + $0x185]] }
  0x96   : > { %v981_v39 = vadd.s32 536870912, %v9272_v56  ;;  %v9305_v0 = vor.u32 %v1178_v45, %v1177_v61  ;;  %v9307_v32 = vor.u32 %v1181_v47, %v1180_v62  ;;  %v1185_v35 = vor.u32 %v1184_v10, %v1183_v4 }
  0x97   : > { %vm1192_vm0 = vcmp.lt.s32.totalorder %v9265_v48, 1  ;;  %vm1194_vm1 = vcmp.lt.s32.totalorder %v9265_v48, 3  ;;  %v1201_v58 = vsel %vm1195_vm14, %v1188_v11, 920167782  ;;  %v8086_v29 = vadd.s32 4294967169, %v1404_v14 }
  0x98   : > { %v523_v52 = vmul.f32 %v522_v17, %v520_v16  ;;  %v526_v40 = vsub.s32 4, %v9075_v42  ;;  %v1168_v54 = vor.u32 8388608, %v1167_v19  ;;  %v1205_v37 = vsel %vm1195_vm14, %v1191_v34, 1326507024 }
  0x99   : > { %v293_v55 = vadd.s32 3, %v289_v5  ;;  %vm8041_vm2 = vcmp.lt.s32.totalorder %v8040_v38, 0  ;;  %vm1193_vm3 = vcmp.lt.s32.totalorder %v9265_v48, 2  ;;  %v1200_v47 = vsel %vm1192_vm0, %v9305_v0, %v9307_v32 }
  0x9a   : > { %v1202_v4 = vsel %vm1194_vm1, %v1185_v35, %v1201_v58  ;;  %v9332_v10 = vshrl.u32 %v981_v39, 30  ;;  %v1204_v17 = vsel %vm1192_vm0, %v9307_v32, %v1185_v35  ;;  %v1206_v14 = vsel %vm1194_vm1, %v1188_v11, %v1205_v37 }
  0x9b   : > { %v1410_v16 = vadd.s32 1, %v8086_v29  ;;  %v9339_v19 = vand.u32 3, %v289_v5  ;;  %v524_v34 = vxor.u32 2147483648, %v523_v52  ;;  %v527_v58 = vsel %vm442_vm13, %v526_v40, %v9075_v42 }
  0x9c   : > { %v9346_v39 = vshll.u32 %v1168_v54, 8  ;;  %v9348_v44 = vand.u32 3, %v293_v55  ;;  %v1203_v11 = vsel %vm1193_vm3, %v1200_v47, %v1202_v4  ;;  %v9355_v29 = vsel %vm8041_vm2, 0, %v8040_v38 }
  0x9d   : > { %v1207_v42 = vsel %vm1193_vm3, %v1204_v17, %v1206_v14  ;;  %v529_v40 = vsel %vm9298_vm15, 0, %v527_v58  ;;  %v983_v55 = vshll.u32 %v9332_v10, 30  ;;  %vm1411_vm4 = vcmp.gt.s32.totalorder %v1410_v16, 0 }
  0x9e   : > { %vm402_vm5 = vcmp.eq.s32.totalorder %v9339_v19, 2  ;;  %v525_v38 = vsel %vm442_vm13, %v524_v34, %v523_v52  ;;  %v9375_v4 = vmul.u32.u64.low %v9346_v39, %v1203_v11  ;;  %v9376_v17 = vmul.u32.u64.high %v9346_v39, %v1203_v11, %v9375_v4 }
  0x9f   : > { %v8695_v47 = vpop.eup %8694  ;;  %vm296_vm6 = vcmp.eq.s32.totalorder %v9348_v44, 0  ;;  %vm399_vm7 = vcmp.eq.s32.totalorder %v9339_v19, 0  ;;  %v756_v14 = vsub.s32 4294967266, %v9355_v29  ;;  %v1176_v52 = vshrl.u32 %v15152_v22, %v9229_v50 }
  0xa0   : > { %v9387_v34 = vmul.u32.u64.low %v9346_v39, %v1207_v42  ;;  %v9388_v58 = vmul.u32.u64.high %v9346_v39, %v1207_v42, %v9387_v34  ;;  %v533_v37 = vadd.s32 3, %v529_v40  ;;  %v1197_v5 = vsel %vm1195_vm14, %v1185_v35, 2102212464 }
  0xa1   : > { %v1412_v45 = vsel %vm1411_vm4, %v1410_v16, 0  ;;  %vm299_vm8 = vcmp.eq.s32.totalorder %v9348_v44, 2  ;;  %v528_v50 = vsel %vm9298_vm15, %v8966_v6, %v525_v38  ;;  %v9402_v42 = vsub.s32 %v9272_v56, %v983_v55 }
  0xa2   : > { %v8697_v11 = vpop.eup %8696  ;;  %v736_v34 = vadd.s32 %v9082_v60, %v9088_v3  ;;  %v752_v54 = vsub.s32 32, %v9355_v29  ;;  %v757_v30 = vadd.s32 127, %v756_v14  ;;  %v1196_v16 = vsel %vm1192_vm0, %v1176_v52, %v9305_v0 }
  0xa3   : > { %v1198_v53 = vsel %vm1194_vm1, %v9307_v32, %v1197_v5  ;;  %v1414_v38 = vand.u32 31, %v1412_v45  ;;  %8698 = vcosq.f32 %v528_v50  ;;  %v9415_v56 = vand.u32 3, %v533_v37 }
  0xa4   : > { %v9417_v55 = vand.u32 3, %v529_v40  ;;  %v297_v3 = vxor.u32 2147483648, %v8697_v11  ;;  %v300_v61 = vxor.u32 2147483648, %v8695_v47  ;;  %8700 = vsinq.f32 %v528_v50 }
  0xa5   : > { %v986_v14 = vsub.s32 0, %v9402_v42  ;;  %vm295_vm9 = vcmp.lt.s32.totalorder %v9348_v44, 2  ;;  %vm398_vm10 = vcmp.lt.s32.totalorder %v9339_v19, 2  ;;  %v753_v0 = vshll.u32 %v9200_v23, %v9355_v29 }
  0xa6   : > { %v754_v32 = vshrl.u32 %v736_v34, %v752_v54  ;;  %v1199_v5 = vsel %vm1193_vm3, %v1196_v16, %v1198_v53  ;;  %v1218_v37 = vadd.s32 1, %v9376_v17  ;;  %v758_v40 = vshll.u32 %v757_v30, 23 }
  0xa7   : > { %vm1217_vm11 = vc.u32 %v9388_v58, %v9375_v4  ;;  %v9433_v50 = vsub.s32 32, %v1414_v38  ;;  %vm682_vm12 = vcmp.lt.s32.totalorder %v8991_v51, 0  ;;  %v766_v60 = vsub.s32 4, %v9154_v21 }
  0xa8   : > { %v301_v48 = vsel %vm299_vm8, %v300_v61, %v8697_v11  ;;  %v404_v30 = vsel %vm402_vm5, %v300_v61, %v8697_v11  ;;  %v8055_v34 = vmin.u32 %v986_v14, %v9402_v42  ;;  %v1215_v16 = vmul.u32 %v9346_v39, %v1199_v5 }
  0xa9   : > { %vm292_vm13 = vweird.f32 %v8962_v1  ;;  %v298_v53 = vsel %vm296_vm6, %v8695_v47, %v297_v3  ;;  %v401_v23 = vsel %vm399_vm7, %v8695_v47, %v297_v3  ;;  %v755_v29 = vor.u32 %v754_v32, %v753_v0 }
  0xaa   : > { %v1219_v54 = vsel %vm1217_vm11, %v1218_v37, %v9376_v17  ;;  %vm9454_vm14 = vcmp.le.f32.partialorder %v680_v7, 0.7853982  ;;  %v759_v61 = vor.u32 4788187, %v758_v40  ;;  %v1426_v39 = vshll.u32 %v15145_v13, %v1414_v38 }
  0xab   : > { %v1427_v11 = vshrl.u32 %v15137_v15, %v9433_v50  ;;  %v9462_v14 = vmul.f32 0.0056234132, %v8962_v1  ;;  %v15139_v47 = vand.u32 2147483647, %v9232_v25  ;;  %v9465_v3 = vshrl.u32 %v1412_v45, 5 }
  0xac   : > { %v1429_v17 = vshll.u32 %v15137_v15, %v1414_v38  ;;  %v1430_v7 = vshrl.u32 %v15133_v20, %v9433_v50  ;;  %v988_v0 = vclz %v8055_v34  ;;  %v9470_v32 = vadd.s32 %v1219_v54, %v1215_v16 }
  0xad   : > { %v1417_v5 = vshll.u32 %v15152_v22, %v1414_v38  ;;  %v1420_v37 = vshll.u32 %v15135_v24, %v1414_v38  ;;  %vm536_vm15 = vcmp.eq.s32.totalorder %v9415_v56, 0  ;;  %vm539_vm0 = vcmp.eq.s32.totalorder %v9415_v56, 2 }
  0xae   : > { %v1418_v45 = vshrl.u32 %v15135_v24, %v9433_v50  ;;  %v1421_v40 = vshrl.u32 %v15140_v28, %v9433_v50  ;;  %v1423_v34 = vshll.u32 %v15140_v28, %v1414_v38  ;;  %v1424_v54 = vshrl.u32 %v15145_v13, %v9433_v50 }
  0xaf   : > { %v762_v16 = vcvt.s32.f32 %v755_v29  ;;  %v1428_v33 = vor.u32 %v1427_v11, %v1426_v39  ;;  %v1643_v20 = vand.u32 2139095040, %v9462_v14  ;;  %vm639_vm1 = vcmp.eq.s32.totalorder %v9417_v55, 0 }
  0xb0   : > { %vm642_vm2 = vcmp.eq.s32.totalorder %v9417_v55, 2  ;;  %v760_v24 = vand.u32 2147483647, %v759_v61  ;;  %v1407_v15 = vand.u32 8388607, %v15139_v47  ;;  %v1431_v62 = vor.u32 %v1430_v7, %v1429_v17  ;;  %v8699_v38 = vpop.eup %8698 }
  0xb1   : > { %vm1435_vm3 = vcmp.lt.s32.totalorder %v9465_v3, 4  ;;  %v302_v29 = vsel %vm295_vm9, %v298_v53, %v301_v48  ;;  %v405_v39 = vsel %vm398_vm10, %v401_v23, %v404_v30  ;;  %vm535_vm4 = vcmp.lt.s32.totalorder %v9415_v56, 2  ;;  %v8701_v35 = vpop.eup %8700 }
  0xb2   : > { %v767_v11 = vsel %vm682_vm12, %v766_v60, %v9154_v21  ;;  %v8056_v61 = vadd.s32 4294967294, %v988_v0  ;;  %v1221_v47 = vadd.s32 536870912, %v9470_v32  ;;  %v9503_v17 = vor.u32 %v1418_v45, %v1417_v5 }
  0xb3   : > { %v9505_v7 = vor.u32 %v1421_v40, %v1420_v37  ;;  %v1425_v28 = vor.u32 %v1424_v54, %v1423_v34  ;;  %vm1432_vm5 = vcmp.lt.s32.totalorder %v9465_v3, 1  ;;  %vm1434_vm6 = vcmp.lt.s32.totalorder %v9465_v3, 3 }
  0xb4   : > { %v1441_v44 = vsel %vm1435_vm3, %v1428_v33, 920167782  ;;  %v1644_v19 = vshrl.u32 %v1643_v20, 23  ;;  %v763_v23 = vmul.f32 %v762_v16, %v760_v24  ;;  %v9513_v21 = vsel %vm9454_vm14, 0, %v767_v11 }
  0xb5   : > { %v1408_v60 = vor.u32 8388608, %v1407_v15  ;;  %v1445_v48 = vsel %vm1435_vm3, %v1431_v62, 1326507024  ;;  %v303_v30 = vsel %vm292_vm13, nan, %v302_v29  ;;  %v406_v53 = vsel %vm292_vm13, nan, %v405_v39 }
  0xb6   : > { %vm532_vm7 = vweird.f32 %v8966_v6  ;;  %v537_v20 = vxor.u32 2147483648, %v8701_v35  ;;  %v540_v24 = vxor.u32 2147483648, %v8699_v38  ;;  %vm638_vm8 = vcmp.lt.s32.totalorder %v9417_v55, 2 }
  0xb7   : > { %vm8057_vm9 = vcmp.lt.s32.totalorder %v8056_v61, 0  ;;  %vm1433_vm10 = vcmp.lt.s32.totalorder %v9465_v3, 2  ;;  %v1440_v15 = vsel %vm1432_vm5, %v9503_v17, %v9505_v7  ;;  %v1442_v62 = vsel %vm1434_vm6, %v1425_v28, %v1441_v44 }
  0xb8   : > { %v9530_v0 = vshrl.u32 %v1221_v47, 30  ;;  %v1444_v5 = vsel %vm1432_vm5, %v9505_v7, %v1425_v28  ;;  %v1446_v37 = vsel %vm1434_vm6, %v1428_v33, %v1445_v48  ;;  %v8102_v45 = vadd.s32 4294967169, %v1644_v19 }
  0xb9   : > { %v764_v40 = vxor.u32 2147483648, %v763_v23  ;;  %v9539_v16 = vshll.u32 %v1408_v60, 8  ;;  %v538_v29 = vsel %vm536_vm15, %v8699_v38, %v537_v20  ;;  %v541_v47 = vsel %vm539_vm0, %v540_v24, %v8701_v35 }
  0xba   : > { %v773_v39 = vadd.s32 3, %v9513_v21  ;;  %v1443_v11 = vsel %vm1433_vm10, %v1440_v15, %v1442_v62  ;;  %v409_v33 = vmul.f32 %v408_v46, %v303_v30  ;;  %v413_v44 = vmul.f32 %v412_v49, %v406_v53 }
  0xbb   : > { %v991_v19 = vsel %vm8057_vm9, 0, %v8056_v61  ;;  %v1447_v60 = vsel %vm1433_vm10, %v1444_v5, %v1446_v37  ;;  %v641_v48 = vsel %vm639_vm1, %v8699_v38, %v537_v20  ;;  %v644_v54 = vsel %vm642_vm2, %v540_v24, %v8701_v35 }
  0xbc   : > { %v1223_v15 = vshll.u32 %v9530_v0, 30  ;;  %v1650_v62 = vadd.s32 1, %v8102_v45  ;;  %v542_v46 = vsel %vm535_vm4, %v538_v29, %v541_v47  ;;  %v765_v49 = vsel %vm682_vm12, %v764_v40, %v763_v23 }
  0xbd   : > { %v9565_v61 = vmul.u32.u64.low %v9539_v16, %v1443_v11  ;;  %v9566_v34 = vmul.u32.u64.high %v9539_v16, %v1443_v11, %v9565_v61  ;;  %v996_v5 = vsub.s32 4294967266, %v991_v19  ;;  %v1416_v38 = vshrl.u32 %v15152_v22, %v9433_v50 }
  0xbe   : > { %v9572_v35 = vmul.u32.u64.low %v9539_v16, %v1447_v60  ;;  %v9573_v20 = vmul.u32.u64.high %v9539_v16, %v1447_v60, %v9572_v35  ;;  %v417_v56 = vmul.f32 %v416_v36, %v303_v30  ;;  %v421_v24 = vmul.f32 %v420_v9, %v406_v53 }
  0xbf   : > { %v425_v23 = vmul.f32 %v424_v43, %v303_v30  ;;  %v1437_v37 = vsel %vm1435_vm3, %v1425_v28, 2102212464  ;;  %v429_v45 = vmul.f32 %v428_v2, %v406_v53  ;;  %v768_v50 = vsel %vm9454_vm14, %v8991_v51, %v765_v49 }
  0xc0   : > { %v9589_v40 = vsub.s32 %v9470_v32, %v1223_v15  ;;  %vm1651_vm11 = vcmp.gt.s32.totalorder %v1650_v62, 0  ;;  %v543_v36 = vsel %vm532_vm7, nan, %v542_v46  ;;  %v645_v9 = vsel %vm638_vm8, %v641_v48, %v644_v54 }
  0xc1   : > { %v976_v28 = vadd.s32 %v9179_v57, %v9189_v41  ;;  %v992_v43 = vsub.s32 32, %v991_v19  ;;  %v433_v2 = vmul.f32 %v432_v59, %v303_v30  ;;  %v997_v29 = vadd.s32 127, %v996_v5 }
  0xc2   : > { %v1436_v52 = vsel %vm1432_vm5, %v1416_v38, %v9503_v17  ;;  %v1438_v32 = vsel %vm1434_vm6, %v9505_v7, %v1437_v37  ;;  %v414_v47 = vadd.f32 %v413_v44, %v409_v33  ;;  %v437_v55 = vmul.f32 %v436_v26, %v406_v53 }
  0xc3   : > { %8702 = vcosq.f32 %v768_v50  ;;  %v1652_v57 = vsel %vm1651_vm11, %v1650_v62, 0  ;;  %v646_v41 = vsel %vm532_vm7, nan, %v645_v9  ;;  %v649_v59 = vmul.f32 %v648_v27, %v543_v36 }
  0xc4   : > { %8704 = vsinq.f32 %v768_v50  ;;  %v1226_v17 = vsub.s32 0, %v9589_v40  ;;  %v993_v7 = vshll.u32 %v9402_v42, %v991_v19  ;;  %v994_v30 = vshrl.u32 %v976_v28, %v992_v43 }
  0xc5   : > { %v1439_v26 = vsel %vm1433_vm10, %v1436_v52, %v1438_v32  ;;  %v1458_v53 = vadd.s32 1, %v9566_v34  ;;  %v422_v54 = vadd.f32 %v421_v24, %v417_v56  ;;  %v998_v11 = vshll.u32 %v997_v29, 23 }
  0xc6   : > { %vm1457_vm12 = vc.u32 %v9573_v20, %v9565_v61  ;;  %v1654_v6 = vand.u32 31, %v1652_v57  ;;  %v430_v27 = vadd.f32 %v429_v45, %v425_v23  ;;  %v438_v33 = vadd.f32 %v437_v55, %v433_v2 }
  0xc7   : > { %v653_v42 = vmul.f32 %v652_v18, %v646_v41  ;;  %v9625_v44 = vand.u32 3, %v773_v39  ;;  %v657_v3 = vmul.f32 %v656_v8, %v543_v36  ;;  %v665_v19 = vmul.f32 %v664_v31, %v543_v36 }
  0xc8   : > { %v8071_v60 = vmin.u32 %v1226_v17, %v9589_v40  ;;  %v1455_v48 = vmul.u32 %v9539_v16, %v1439_v26  ;;  %v650_v15 = vadd.f32 %v649_v59, %v414_v47  ;;  %v15212_v62 = vstv %s9256_s19  ;;  %s9936_s19 = sld [smem:[#allocation2 + $0x6]] }
  0xc9   : > { %v673_v46 = vmul.f32 %v15212_v62, %v543_v36  ;;  %v995_v49 = vor.u32 %v994_v30, %v993_v7  ;;  %v1459_v5 = vsel %vm1457_vm12, %v1458_v53, %v9566_v34  ;;  %v999_v38 = vor.u32 4788187, %v998_v11 }
  0xca   : > { %v9637_v39 = vsub.s32 32, %v1654_v6  ;;  %v9640_v35 = vmul.f32 0.0023713738, %v8962_v1  ;;  %v15213_v8 = vstv %s9197_s16  ;;  %v15214_v56 = vstv %s9250_s18  ;;  %s9884_s16 = sld [smem:[#allocation2 + $0x125]] }
  0xcb   : > { %v661_v31 = vmul.f32 %v15213_v8, %v646_v41  ;;  %v669_v24 = vmul.f32 %v15214_v56, %v646_v41  ;;  %v9647_v23 = vand.u32 3, %v9513_v21  ;;  %v1376_v16 = vstv %s9609_s4  ;;  %s9926_s18 = sld [smem:[#allocation2 + $0x1a5]] }
  0xcc   : > { %v658_v37 = vadd.f32 %v657_v3, %v422_v54  ;;  %v15215_v45 = vstv %s9262_s20  ;;  %v1228_v36 = vclz %v8071_v60  ;;  %v9652_v34 = vadd.s32 %v1459_v5, %v1455_v48  ;;  %s9946_s20 = sld [smem:[#allocation2 + $0x26]] }
  0xcd   : > { %v677_v50 = vmul.f32 %v15215_v45, %v646_v41  ;;  %v9654_v9 = vadd.f32 %v653_v42, %v650_v15  ;;  %v666_v28 = vadd.f32 %v665_v19, %v430_v27  ;;  %v674_v43 = vadd.f32 %v673_v46, %v438_v33  ;;  %s10242_s4 = sld [smem:[#allocation2 + $0x1a7]] }
  0xce   : > { %vm779_vm13 = vcmp.eq.s32.totalorder %v9625_v44, 2  ;;  %v1002_v1 = vcvt.s32.f32 %v995_v49  ;;  %vm776_vm14 = vcmp.eq.s32.totalorder %v9625_v44, 0  ;;  %v1000_v2 = vand.u32 2147483647, %v999_v38 }
  0xcf   : > { %v1666_v21 = vshll.u32 %v15145_v13, %v1654_v6  ;;  %v15216_v29 = vmov 920167782   ;;  %v1883_v32 = vand.u32 2139095040, %v9640_v35  ;;  %vm922_vm15 = vcmp.lt.s32.totalorder %v9050_v63, 0 }
  0xd0   : > { %v1667_v52 = vshrl.u32 %v15216_v29, %v9637_v39  ;;  %v15142_v47 = vand.u32 2147483647, %v9462_v14  ;;  %v9666_v55 = vshrl.u32 %v1652_v57, 5  ;;  %v1669_v41 = vshll.u32 %v15216_v29, %v1654_v6  ;;  %v8703_v7 = vpop.eup %8702 }
  0xd1   : > { %v15217_v59 = vmov 1326507024   ;;  %vm879_vm0 = vcmp.eq.s32.totalorder %v9647_v23, 0  ;;  %vm882_vm1 = vcmp.eq.s32.totalorder %v9647_v23, 2  ;;  %v8072_v30 = vadd.s32 4294967294, %v1228_v36  ;;  %v8705_v27 = vpop.eup %8704 }
  0xd2   : > { %v1670_v17 = vshrl.u32 %v15217_v59, %v9637_v39  ;;  %v1461_v26 = vadd.s32 536870912, %v9652_v34  ;;  %v1657_v53 = vshll.u32 %v15152_v22, %v1654_v6  ;;  %v15218_v54 = vmov 2475754826  }
  0xd3   : > { %v1660_v11 = vshll.u32 %v15218_v54, %v1654_v6  ;;  %v1658_v57 = vshrl.u32 %v15218_v54, %v9637_v39  ;;  %v15219_v33 = vmov 2131351028   ;;  %v1664_v19 = vshrl.u32 %v15145_v13, %v9637_v39 }
  0xd4   : > { %v1661_v42 = vshrl.u32 %v15219_v33, %v9637_v39  ;;  %v1663_v3 = vshll.u32 %v15219_v33, %v1654_v6  ;;  %v9683_v60 = vadd.f32 %v661_v31, %v658_v37  ;;  %v9685_v48 = vadd.f32 %v669_v24, %v666_v28 }
  0xd5   : > { %vm775_vm2 = vcmp.lt.s32.totalorder %v9625_v44, 2  ;;  %v1668_v15 = vor.u32 %v1667_v52, %v1666_v21  ;;  %v1884_v62 = vshrl.u32 %v1883_v32, 23  ;;  %vm878_vm3 = vcmp.lt.s32.totalorder %v9647_v23, 2 }
  0xd6   : > { %v1006_v46 = vsub.s32 4, %v9332_v10  ;;  %v1647_v6 = vand.u32 8388607, %v15142_v47  ;;  %v1671_v49 = vor.u32 %v1670_v17, %v1669_v41  ;;  %vm1675_vm4 = vcmp.lt.s32.totalorder %v9666_v55, 4 }
  0xd7   : > { %v777_v5 = vxor.u32 2147483648, %v8705_v27  ;;  %v780_v38 = vxor.u32 2147483648, %v8703_v7  ;;  %v15220_v8 = vand.u32 2147483647, %v9050_v63  ;;  %v1003_v56 = vmul.f32 %v1002_v1, %v1000_v2 }
  0xd8   : > { %v9703_v24 = vshrl.u32 %v1461_v26, 30  ;;  %vm8073_vm6 = vcmp.lt.s32.totalorder %v8072_v30, 0  ;;  %v9707_v37 = vor.u32 %v1658_v57, %v1657_v53  ;;  %v9709_v45 = vor.u32 %v1661_v42, %v1660_v11 }
  0xd9   : > { %vm9697_vm5 = vcmp.le.f32.partialorder %v15220_v8, 0.7853982  ;;  %v1665_v36 = vor.u32 %v1664_v19, %v1663_v3  ;;  %vm1672_vm7 = vcmp.lt.s32.totalorder %v9666_v55, 1  ;;  %vm1674_vm8 = vcmp.lt.s32.totalorder %v9666_v55, 3 }
  0xda   : > { %v1681_v28 = vsel %vm1675_vm4, %v1668_v15, 920167782  ;;  %v8118_v1 = vadd.s32 4294967169, %v1884_v62  ;;  %v9715_v2 = vadd.f32 %v677_v50, %v674_v43  ;;  %vm772_vm9 = vweird.f32 %v8991_v51 }
  0xdb   : > { %v1648_v52 = vor.u32 8388608, %v1647_v6  ;;  %v1685_v32 = vsel %vm1675_vm4, %v1671_v49, 1326507024  ;;  %v781_v41 = vsel %vm779_vm13, %v780_v38, %v8705_v27  ;;  %v1007_v17 = vsel %vm922_vm15, %v1006_v46, %v9332_v10 }
  0xdc   : > { %v9727_v26 = vsel %vm8073_vm6, 0, %v8072_v30  ;;  %v1463_v50 = vshll.u32 %v9703_v24, 30  ;;  %v778_v43 = vsel %vm776_vm14, %v8703_v7, %v777_v5  ;;  %vm1673_vm10 = vcmp.lt.s32.totalorder %v9666_v55, 2 }
  0xdd   : > { %v1680_v53 = vsel %vm1672_vm7, %v9707_v37, %v9709_v45  ;;  %v1682_v10 = vsel %vm1674_vm8, %v1665_v36, %v1681_v28  ;;  %v1004_v30 = vxor.u32 2147483648, %v1003_v56  ;;  %v1684_v11 = vsel %vm1672_vm7, %v9709_v45, %v1665_v36 }
  0xde   : > { %v1686_v57 = vsel %vm1674_vm8, %v1668_v15, %v1685_v32  ;;  %v1890_v42 = vadd.s32 1, %v8118_v1  ;;  %v881_v3 = vsel %vm879_vm0, %v8703_v7, %v777_v5  ;;  %v884_v19 = vsel %vm882_vm1, %v780_v38, %v8705_v27 }
  0xdf   : > { %v1236_v62 = vsub.s32 4294967266, %v9727_v26  ;;  %v9753_v46 = vshll.u32 %v1648_v52, 8  ;;  %v1384_v6 = vstv %s9690_s6  ;;  %v9758_v8 = vsub.s32 %v9652_v34, %v1463_v50  ;;  %s10247_s6 = sld [smem:[#allocation2 + $0x8]] }
  0xe0   : > { %v1683_v15 = vsel %vm1673_vm10, %v1680_v53, %v1682_v10  ;;  %v782_v28 = vsel %vm775_vm2, %v778_v43, %v781_v41  ;;  %v9766_v7 = vsel %vm9697_vm5, 0, %v1007_v17  ;;  %v1392_v27 = vstv %s9705_s8  ;;  %v8134_v17 = vld [vmem:[%s8959_s29 + $0x8] sm:$0xff]  ;;  %s10346_s8 = sld [smem:[#allocation2 + $0x108]] }
  0xe1   : > { %v1687_v5 = vsel %vm1673_vm10, %v1684_v11, %v1686_v57  ;;  %v885_v34 = vsel %vm878_vm3, %v881_v3, %v884_v19  ;;  %v1005_v38 = vsel %vm922_vm15, %v1004_v30, %v1003_v56  ;;  %v1216_v44 = vadd.s32 %v9375_v4, %v9388_v58 }
  0xe2   : > { %vm1891_vm11 = vcmp.gt.s32.totalorder %v1890_v42, 0  ;;  %v1232_v1 = vsub.s32 32, %v9727_v26  ;;  %v1237_v52 = vadd.s32 127, %v1236_v62  ;;  %v1466_v23 = vsub.s32 0, %v9758_v8 }
  0xe3   : > { %v9781_v32 = vmul.u32.u64.low %v9753_v46, %v1683_v15  ;;  %v9782_v41 = vmul.u32.u64.high %v9753_v46, %v1683_v15, %v9781_v32  ;;  %v1656_v50 = vshrl.u32 %v15152_v22, %v9637_v39  ;;  %v1013_v4 = vadd.s32 3, %v9766_v7 }
  0xe4   : > { %v9790_v56 = vmul.u32.u64.low %v9753_v46, %v1687_v5  ;;  %v9791_v43 = vmul.u32.u64.high %v9753_v46, %v1687_v5, %v9790_v56  ;;  %v1677_v53 = vsel %vm1675_vm4, %v1665_v36, 2102212464  ;;  %v1892_v10 = vsel %vm1891_vm11, %v1890_v42, 0 }
  0xe5   : > { %v783_v30 = vsel %vm772_vm9, nan, %v782_v28  ;;  %v886_v39 = vsel %vm772_vm9, nan, %v885_v34  ;;  %v9802_v57 = vmul.f32 100.0, %v8134_v17  ;;  %v1008_v3 = vsel %vm9697_vm5, %v9050_v63, %v1005_v38 }
  0xe6   : > { %v1233_v36 = vshll.u32 %v9589_v40, %v9727_v26  ;;  %v1234_v42 = vshrl.u32 %v1216_v44, %v1232_v1  ;;  %v1238_v19 = vshll.u32 %v1237_v52, 23  ;;  %v8087_v62 = vmin.u32 %v1466_v23, %v9758_v8 }
  0xe7   : > { %v1676_v51 = vsel %vm1672_vm7, %v1656_v50, %v9707_v37  ;;  %v1678_v15 = vsel %vm1674_vm8, %v9709_v45, %v1677_v53  ;;  %v1894_v28 = vand.u32 31, %v1892_v10  ;;  %v15223_v5 = vstv %s9270_s21  ;;  %s10017_s21 = sld [smem:[#allocation2 + $0x86]] }
  0xe8   : > { %v889_v34 = vmul.f32 %v15223_v5, %v783_v30  ;;  %v15224_v31 = vstv %s9276_s22  ;;  %v9820_v40 = vand.u32 3, %v1013_v4  ;;  %v15225_v44 = vstv %s9286_s23  ;;  %s10026_s22 = sld [smem:[#allocation2 + $0xa6]] }
  0xe9   : > { %v893_v38 = vmul.f32 %v15224_v31, %v886_v39  ;;  %v897_v1 = vmul.f32 %v15225_v44, %v783_v30  ;;  %v15226_v52 = vstv %s9302_s25  ;;  %v15227_v37 = vstv %s9321_s28  ;;  %s15234_s23 = sld [smem:[#allocation10_spill]] }
  0xea   : > { %v905_v17 = vmul.f32 %v15226_v52, %v783_v30  ;;  %v913_v23 = vmul.f32 %v15227_v37, %v783_v30  ;;  %v2125_v50 = vand.u32 2139095040, %v9802_v57  ;;  %8706 = vcosq.f32 %v1008_v3  ;;  %s10191_s25 = sld [smem:[#allocation2 + $0x7]] }
  0xeb   : > { %v1235_v45 = vor.u32 %v1234_v42, %v1233_v36  ;;  %v1679_v56 = vsel %vm1673_vm10, %v1676_v51, %v1678_v15  ;;  %v1698_v53 = vadd.s32 1, %v9782_v41  ;;  %v1239_v5 = vor.u32 4788187, %v1238_v19  ;;  %s10203_s28 = sld [smem:[#allocation2 + $0x27]] }
  0xec   : > { %v1468_v4 = vclz %v8087_v62  ;;  %vm1697_vm12 = vc.u32 %v9791_v43, %v9781_v32  ;;  %v9835_v31 = vsub.s32 32, %v1894_v28  ;;  %v15228_v44 = vstv %s9294_s24  ;;  %s15241_s24 = sld [smem:[#allocation12_spill]] }
  0xed   : > { %v901_v52 = vmul.f32 %v15228_v44, %v886_v39  ;;  %v15229_v26 = vstv %s9319_s27  ;;  %v15230_v37 = vstv %s9330_s26  ;;  %8708 = vsinq.f32 %v1008_v3  ;;  %s9854_s26 = sld [smem:[#allocation2 + $0xa5]] }
  0xee   : > { %v909_v30 = vmul.f32 %v15229_v26, %v886_v39  ;;  %v917_v11 = vmul.f32 %v15230_v37, %v886_v39  ;;  %v890_v36 = vadd.f32 %v889_v34, %v9654_v9  ;;  %v898_v55 = vadd.f32 %v897_v1, %v9683_v60  ;;  %s10195_s27 = sld [smem:[#allocation2 + $0x87]] }
  0xef   : > { %v1695_v42 = vmul.u32 %v9753_v46, %v1679_v56  ;;  %v2126_v19 = vshrl.u32 %v2125_v50, 23  ;;  %v906_v62 = vadd.f32 %v905_v17, %v9685_v48  ;;  %v914_v51 = vadd.f32 %v913_v23, %v9715_v2 }
  0xf0   : > { %v1242_v15 = vcvt.s32.f32 %v1235_v45  ;;  %v1699_v47 = vsel %vm1697_vm12, %v1698_v53, %v9782_v41  ;;  %v1240_v44 = vand.u32 2147483647, %v1239_v5  ;;  %v8088_v58 = vadd.s32 4294967294, %v1468_v4 }
  0xf1   : > { %v1906_v39 = vshll.u32 %v15145_v13, %v1894_v28  ;;  %v1907_v9 = vshrl.u32 %v15216_v29, %v9835_v31  ;;  %v15143_v60 = vand.u32 2147483647, %v9640_v35  ;;  %v9857_v46 = vshrl.u32 %v1892_v10, 5 }
  0xf2   : > { %v1909_v48 = vshll.u32 %v15216_v29, %v1894_v28  ;;  %v1910_v2 = vshrl.u32 %v15217_v59, %v9835_v31  ;;  %v9864_v41 = vadd.s32 %v1699_v47, %v1695_v42  ;;  %v1897_v3 = vshll.u32 %v15152_v22, %v1894_v28 }
  0xf3   : > { %v1900_v34 = vshll.u32 %v15218_v54, %v1894_v28  ;;  %v8135_v26 = vadd.s32 4294967169, %v2126_v19  ;;  %v1898_v1 = vshrl.u32 %v15218_v54, %v9835_v31  ;;  %v1901_v10 = vshrl.u32 %v15219_v33, %v9835_v31 }
  0xf4   : > { %v1903_v17 = vshll.u32 %v15219_v33, %v1894_v28  ;;  %v1904_v23 = vshrl.u32 %v15145_v13, %v9835_v31  ;;  %v9875_v50 = vadd.f32 %v893_v38, %v890_v36  ;;  %v9877_v47 = vadd.f32 %v901_v52, %v898_v55 }
  0xf5   : > { %v9880_v45 = vand.u32 3, %v9766_v7  ;;  %vm1162_vm13 = vcmp.lt.s32.totalorder %v9103_v12, 0  ;;  %v1908_v56 = vor.u32 %v1907_v9, %v1906_v39  ;;  %vm1019_vm14 = vcmp.eq.s32.totalorder %v9820_v40, 2 }
  0xf6   : > { %vm8089_vm15 = vcmp.lt.s32.totalorder %v8088_v58, 0  ;;  %v1887_v28 = vand.u32 8388607, %v15143_v60  ;;  %v1911_v53 = vor.u32 %v1910_v2, %v1909_v48  ;;  %vm1915_vm0 = vcmp.lt.s32.totalorder %v9857_v46, 4 }
  0xf7   : > { %v9889_v38 = vadd.f32 %v909_v30, %v906_v62  ;;  %v9891_v5 = vadd.f32 %v917_v11, %v914_v51  ;;  %vm1016_vm1 = vcmp.eq.s32.totalorder %v9820_v40, 0  ;;  %v1701_v7 = vadd.s32 536870912, %v9864_v41  ;;  %v8707_v42 = vpop.eup %8706 }
  0xf8   : > { %v2132_v4 = vadd.s32 1, %v8135_v26  ;;  %v15231_v52 = vand.u32 2147483647, %v9103_v12  ;;  %v1243_v36 = vmul.f32 %v1242_v15, %v1240_v44  ;;  %v9903_v30 = vor.u32 %v1898_v1, %v1897_v3 }
  0xf9   : > { %v9905_v11 = vor.u32 %v1901_v10, %v1900_v34  ;;  %v1905_v55 = vor.u32 %v1904_v23, %v1903_v17  ;;  %v9908_v19 = vsel %vm8089_vm15, 0, %v8088_v58  ;;  %vm1912_vm3 = vcmp.lt.s32.totalorder %v9857_v46, 1 }
  0xfa   : > { %vm9899_vm2 = vcmp.le.f32.partialorder %v15231_v52, 0.7853982  ;;  %vm1914_vm4 = vcmp.lt.s32.totalorder %v9857_v46, 3  ;;  %v1921_v62 = vsel %vm1915_vm0, %v1908_v56, 920167782  ;;  %vm1119_vm5 = vcmp.eq.s32.totalorder %v9880_v45, 0  ;;  %v8709_v58 = vpop.eup %8708 }
  0xfb   : > { %vm1122_vm6 = vcmp.eq.s32.totalorder %v9880_v45, 2  ;;  %v1246_v51 = vsub.s32 4, %v9530_v0  ;;  %v1888_v44 = vor.u32 8388608, %v1887_v28  ;;  %v1925_v39 = vsel %vm1915_vm0, %v1911_v53, 1326507024 }
  0xfc   : > { %v9922_v2 = vshrl.u32 %v1701_v7, 30  ;;  %vm2133_vm7 = vcmp.gt.s32.totalorder %v2132_v4, 0  ;;  %vm1015_vm8 = vcmp.lt.s32.totalorder %v9820_v40, 2  ;;  %v1476_v3 = vsub.s32 4294967266, %v9908_v19 }
  0xfd   : > { %vm1913_vm9 = vcmp.lt.s32.totalorder %v9857_v46, 2  ;;  %v1920_v34 = vsel %vm1912_vm3, %v9903_v30, %v9905_v11  ;;  %v1922_v26 = vsel %vm1914_vm4, %v1905_v55, %v1921_v62  ;;  %v1020_v1 = vxor.u32 2147483648, %v8707_v42 }
  0xfe   : > { %vm1118_vm10 = vcmp.lt.s32.totalorder %v9880_v45, 2  ;;  %v1244_v10 = vxor.u32 2147483648, %v1243_v36  ;;  %v1924_v17 = vsel %vm1912_vm3, %v9905_v11, %v1905_v55  ;;  %v1926_v23 = vsel %vm1914_vm4, %v1908_v56, %v1925_v39 }
  0xff   : > { %v1017_v28 = vxor.u32 2147483648, %v8709_v58  ;;  %v1247_v53 = vsel %vm1162_vm13, %v1246_v51, %v9530_v0  ;;  %v9948_v7 = vshll.u32 %v1888_v44, 8  ;;  %v2134_v52 = vsel %vm2133_vm7, %v2132_v4, 0 }
 0x100   : > { %v1703_v48 = vshll.u32 %v9922_v2, 30  ;;  %v1923_v9 = vsel %vm1913_vm9, %v1920_v34, %v1922_v26  ;;  %v1456_v56 = vadd.s32 %v9565_v61, %v9573_v20  ;;  %v1472_v39 = vsub.s32 32, %v9908_v19 }
 0x101   : > { %v1477_v15 = vadd.s32 127, %v1476_v3  ;;  %v1927_v0 = vsel %vm1913_vm9, %v1924_v17, %v1926_v23  ;;  %v1021_v51 = vsel %vm1019_vm14, %v1020_v1, %v8709_v58  ;;  %v1245_v4 = vsel %vm1162_vm13, %v1244_v10, %v1243_v36 }
 0x102   : > { %v1249_v44 = vsel %vm9899_vm2, 0, %v1247_v53  ;;  %v2136_v34 = vand.u32 31, %v2134_v52  ;;  %v1018_v61 = vsel %vm1016_vm1, %v8707_v42, %v1017_v28  ;;  %v1896_v20 = vshrl.u32 %v15152_v22, %v9835_v31 }
 0x103   : > { %v9972_v3 = vmul.u32.u64.low %v9948_v7, %v1923_v9  ;;  %v9973_v26 = vmul.u32.u64.high %v9948_v7, %v1923_v9, %v9972_v3  ;;  %v9977_v36 = vsub.s32 %v9864_v41, %v1703_v48  ;;  %v1917_v10 = vsel %vm1915_vm0, %v1905_v55, 2102212464 }
 0x104   : > { %v9982_v17 = vmul.u32.u64.low %v9948_v7, %v1927_v0  ;;  %v9983_v23 = vmul.u32.u64.high %v9948_v7, %v1927_v0, %v9982_v17  ;;  %vm1012_vm11 = vweird.f32 %v9050_v63  ;;  %v1248_v31 = vsel %vm9899_vm2, %v9103_v12, %v1245_v4 }
 0x105   : > { %v1473_v9 = vshll.u32 %v9758_v8, %v9908_v19  ;;  %v1474_v53 = vshrl.u32 %v1456_v56, %v1472_v39  ;;  %v1478_v60 = vshll.u32 %v1477_v15, 23  ;;  %v1121_v41 = vsel %vm1119_vm5, %v8707_v42, %v1017_v28 }
 0x106   : > { %v1124_v55 = vsel %vm1122_vm6, %v1020_v1, %v8709_v58  ;;  %v9996_v0 = vsub.s32 32, %v2136_v34  ;;  %v1916_v37 = vsel %vm1912_vm3, %v1896_v20, %v9903_v30  ;;  %v1918_v8 = vsel %vm1914_vm4, %v9905_v11, %v1917_v10 }
 0x107   : > { %v1022_v19 = vsel %vm1015_vm8, %v1018_v61, %v1021_v51  ;;  %8710 = vcosq.f32 %v1248_v31  ;;  %v1253_v42 = vadd.s32 3, %v1249_v44  ;;  %v1706_v15 = vsub.s32 0, %v9977_v36 }
 0x108   : > { %v1125_v58 = vsel %vm1118_vm10, %v1121_v41, %v1124_v55  ;;  %8712 = vsinq.f32 %v1248_v31  ;;  %v1475_v1 = vor.u32 %v1474_v53, %v1473_v9  ;;  %v1479_v28 = vor.u32 4788187, %v1478_v60 }
 0x109   : > { %v1919_v30 = vsel %vm1913_vm9, %v1916_v37, %v1918_v8  ;;  %v15144_v56 = vand.u32 2147483647, %v9802_v57  ;;  %v2148_v11 = vshll.u32 %v15145_v13, %v2136_v34  ;;  %v2149_v40 = vshrl.u32 %v15216_v29, %v9996_v0 }
 0x10a   : > { %v1938_v39 = vadd.s32 1, %v9973_v26  ;;  %v10020_v51 = vshrl.u32 %v2134_v52, 5  ;;  %v2151_v45 = vshll.u32 %v15216_v29, %v2136_v34  ;;  %v2152_v60 = vshrl.u32 %v15217_v59, %v9996_v0 }
 0x10b   : > { %v8103_v46 = vmin.u32 %v1706_v15, %v9977_v36  ;;  %vm1937_vm12 = vc.u32 %v9983_v23, %v9972_v3  ;;  %v2139_v4 = vshll.u32 %v15152_v22, %v2136_v34  ;;  %v2142_v61 = vshll.u32 %v15218_v54, %v2136_v34 }
 0x10c   : > { %v2140_v52 = vshrl.u32 %v15218_v54, %v9996_v0  ;;  %v2143_v20 = vshrl.u32 %v15219_v33, %v9996_v0  ;;  %v2145_v10 = vshll.u32 %v15219_v33, %v2136_v34  ;;  %v2146_v31 = vshrl.u32 %v15145_v13, %v9996_v0 }
 0x10d   : > { %v10039_v9 = vand.u32 3, %v1253_v42  ;;  %v10041_v53 = vand.u32 3, %v1249_v44  ;;  %v1935_v41 = vmul.u32 %v9948_v7, %v1919_v30  ;;  %v2150_v55 = vor.u32 %v2149_v40, %v2148_v11 }
 0x10e   : > { %v1939_v37 = vsel %vm1937_vm12, %v1938_v39, %v9973_v26  ;;  %v2129_v8 = vand.u32 8388607, %v15144_v56  ;;  %v2153_v15 = vor.u32 %v2152_v60, %v2151_v45  ;;  %vm2157_vm13 = vcmp.lt.s32.totalorder %v10020_v51, 4 }
 0x10f   : > { %v1023_v34 = vsel %vm1012_vm11, nan, %v1022_v19  ;;  %v10052_v42 = vsel %vm1012_vm11, nan, %v1125_v58  ;;  %v1480_v44 = vand.u32 2147483647, %v1479_v28  ;;  %v1482_v7 = vcvt.s32.f32 %v1475_v1 }
 0x110   : > { %vm1402_vm14 = vcmp.lt.s32.totalorder %v9232_v25, 0  ;;  %v1708_v26 = vclz %v8103_v46  ;;  %v10055_v30 = vor.u32 %v2140_v52, %v2139_v4  ;;  %v10057_v11 = vor.u32 %v2143_v20, %v2142_v61 }
 0x111   : > { %v2147_v40 = vor.u32 %v2146_v31, %v2145_v10  ;;  %vm1256_vm15 = vcmp.eq.s32.totalorder %v10039_v9, 0  ;;  %v10060_v19 = vadd.s32 %v1939_v37, %v1935_v41  ;;  %vm2154_vm0 = vcmp.lt.s32.totalorder %v10020_v51, 1 }
 0x112   : > { %vm2156_vm1 = vcmp.lt.s32.totalorder %v10020_v51, 3  ;;  %v2163_v63 = vsel %vm2157_vm13, %v2150_v55, 920167782  ;;  %vm1259_vm2 = vcmp.eq.s32.totalorder %v10039_v9, 2  ;;  %v2130_v1 = vor.u32 8388608, %v2129_v8 }
 0x113   : > { %v2167_v28 = vsel %vm2157_vm13, %v2153_v15, 1326507024  ;;  %v15235_v39 = vstv %s9344_s0  ;;  %v15236_v60 = vstv %s15234_s23  ;;  %vm1359_vm3 = vcmp.eq.s32.totalorder %v10041_v53, 0  ;;  %s15240_s0 = sld [smem:[#allocation11_spill]] }
 0x114   : > { %v1129_v45 = vmul.f32 %v15235_v39, %v1023_v34  ;;  %v10075_v46 = vmul.f32 %v15236_v60, %v10052_v42  ;;  %vm1362_vm4 = vcmp.eq.s32.totalorder %v10041_v53, 2  ;;  %v15237_v4 = vand.u32 2147483647, %v9232_v25  ;;  %v8711_v10 = vpop.eup %8710  ;;  %s10211_s23 = sld [smem:[#allocation2 + $0xa7]] }
 0x115   : > { %v1483_v52 = vmul.f32 %v1482_v7, %v1480_v44  ;;  %vm1255_vm6 = vcmp.lt.s32.totalorder %v10039_v9, 2  ;;  %v8104_v31 = vadd.s32 4294967294, %v1708_v26  ;;  %vm2155_vm7 = vcmp.lt.s32.totalorder %v10020_v51, 2  ;;  %v8713_v8 = vpop.eup %8712 }
 0x116   : > { %vm10081_vm5 = vcmp.le.f32.partialorder %v15237_v4, 0.7853982  ;;  %v2162_v41 = vsel %vm2154_vm0, %v10055_v30, %v10057_v11  ;;  %v2164_v37 = vsel %vm2156_vm1, %v2147_v40, %v2163_v63  ;;  %v1941_v15 = vadd.s32 536870912, %v10060_v19 }
 0x117   : > { %v2166_v44 = vsel %vm2154_vm0, %v10057_v11, %v2147_v40  ;;  %v2168_v7 = vsel %vm2156_vm1, %v2150_v55, %v2167_v28  ;;  %v10101_v26 = vmul.f32 0.4216965, %v9802_v57  ;;  %v15242_v39 = vstv %s9367_s2  ;;  %s10169_s2 = sld [smem:[#allocation2 + $0x126]] }
 0x118   : > { %v1137_v60 = vmul.f32 %v15242_v39, %v1023_v34  ;;  %v15243_v4 = vstv %s9372_s12  ;;  %vm1358_vm8 = vcmp.lt.s32.totalorder %v10041_v53, 2  ;;  %v1486_v63 = vsub.s32 4, %v9703_v24  ;;  %s10174_s12 = sld [smem:[#allocation2 + $0x186]] }
 0x119   : > { %v1141_v56 = vmul.f32 %v15243_v4, %v10052_v42  ;;  %v10110_v20 = vshll.u32 %v2130_v1, 8  ;;  %v15244_v62 = vstv %s15240_s0  ;;  %v15245_v17 = vstv %s15241_s24  ;;  %s10216_s0 = sld [smem:[#allocation2 + $0x107]] }
 0x11a   : > { %v1145_v58 = vmul.f32 %v15244_v62, %v1023_v34  ;;  %v1149_v48 = vmul.f32 %v15245_v17, %v10052_v42  ;;  %vm1252_vm9 = vweird.f32 %v9103_v12  ;;  %v1484_v55 = vxor.u32 2147483648, %v1483_v52  ;;  %s10225_s24 = sld [smem:[#allocation2 + $0x127]] }
 0x11b   : > { %v2165_v28 = vsel %vm2155_vm7, %v2162_v41, %v2164_v37  ;;  %v15246_v39 = vstv %s9429_s1  ;;  %v1257_v4 = vxor.u32 2147483648, %v8713_v8  ;;  %v1260_v49 = vxor.u32 2147483648, %v8711_v10  ;;  %s10158_s1 = sld [smem:[#allocation2 + $0x106]] }
 0x11c   : > { %v1153_v13 = vmul.f32 %v15246_v39, %v1023_v34  ;;  %v2169_v1 = vsel %vm2155_vm7, %v2166_v44, %v2168_v7  ;;  %v1130_v21 = vadd.f32 %v1129_v45, %v9875_v50  ;;  %vm8105_vm10 = vcmp.lt.s32.totalorder %v8104_v31, 0 }
 0x11d   : > { %v10125_v62 = vshrl.u32 %v1941_v15, 30  ;;  %v2365_v17 = vand.u32 2139095040, %v10101_v26  ;;  %v1138_v18 = vadd.f32 %v1137_v60, %v9877_v47  ;;  %v1487_v41 = vsel %vm1402_vm14, %v1486_v63, %v9703_v24 }
 0x11e   : > { %v10133_v34 = vmul.u32.u64.low %v10110_v20, %v2165_v28  ;;  %v10134_v37 = vmul.u32.u64.high %v10110_v20, %v2165_v28, %v10133_v34  ;;  %v1485_v44 = vsel %vm1402_vm14, %v1484_v55, %v1483_v52  ;;  %v2138_v50 = vshrl.u32 %v15152_v22, %v9996_v0 }
 0x11f   : > { %v10142_v45 = vmul.u32.u64.low %v10110_v20, %v2169_v1  ;;  %v10143_v15 = vmul.u32.u64.high %v10110_v20, %v2169_v1, %v10142_v45  ;;  %v1258_v47 = vsel %vm1256_vm15, %v8711_v10, %v1257_v4  ;;  %v1261_v24 = vsel %vm1259_vm2, %v1260_v49, %v8713_v8 }
 0x120   : > { %v10149_v7 = vsel %vm8105_vm10, 0, %v8104_v31  ;;  %v2159_v60 = vsel %vm2157_vm13, %v2147_v40, 2102212464  ;;  %v15247_v52 = vstv %s9476_s13  ;;  %v1489_v0 = vsel %vm10081_vm5, 0, %v1487_v41  ;;  %s10184_s13 = sld [smem:[#allocation2 + $0x1a6]] }
 0x121   : > { %v1157_v63 = vmul.f32 %v15247_v52, %v10052_v42  ;;  %v1943_v55 = vshll.u32 %v10125_v62, 30  ;;  %v2366_v28 = vshrl.u32 %v2365_v17, 23  ;;  %v1146_v39 = vadd.f32 %v1145_v58, %v9889_v38 }
 0x122   : > { %v1361_v31 = vsel %vm1359_vm3, %v8711_v10, %v1257_v4  ;;  %v1364_v1 = vsel %vm1362_vm4, %v1260_v49, %v8713_v8  ;;  %v1488_v42 = vsel %vm10081_vm5, %v9232_v25, %v1485_v44  ;;  %v1262_v40 = vsel %vm1255_vm6, %v1258_v47, %v1261_v24 }
 0x123   : > { %v1716_v41 = vsub.s32 4294967266, %v10149_v7  ;;  %v2158_v38 = vsel %vm2154_vm0, %v2138_v50, %v10055_v30  ;;  %v2160_v49 = vsel %vm2156_vm1, %v10057_v11, %v2159_v60  ;;  %v1134_v58 = vadd.f32 %v10075_v46, %v1130_v21 }
 0x124   : > { %v1142_v61 = vadd.f32 %v1141_v56, %v1138_v18  ;;  %v1154_v10 = vadd.f32 %v1153_v13, %v9891_v5  ;;  %v1493_v8 = vadd.s32 3, %v1489_v0  ;;  %v1365_v9 = vsel %vm1358_vm8, %v1361_v31, %v1364_v1 }
 0x125   : > { %8714 = vcosq.f32 %v1488_v42  ;;  %v10189_v4 = vsub.s32 %v10060_v19, %v1943_v55  ;;  %v8151_v30 = vadd.s32 4294967169, %v2366_v28  ;;  %v1263_v21 = vsel %vm1252_vm9, nan, %v1262_v40 }
 0x126   : > { %8716 = vsinq.f32 %v1488_v42  ;;  %v2161_v13 = vsel %vm2155_vm7, %v2158_v38, %v2160_v49  ;;  %v2180_v18 = vadd.s32 1, %v10134_v37  ;;  %v1696_v5 = vadd.s32 %v9781_v32, %v9791_v43 }
 0x127   : > { %v1712_v56 = vsub.s32 32, %v10149_v7  ;;  %v1717_v53 = vadd.s32 127, %v1716_v41  ;;  %vm2179_vm11 = vc.u32 %v10143_v15, %v10133_v34  ;;  %v1150_v11 = vadd.f32 %v1149_v48, %v1146_v39 }
 0x128   : > { %v1158_v19 = vadd.f32 %v1157_v63, %v1154_v10  ;;  %v1366_v51 = vsel %vm1252_vm9, nan, %v1365_v9  ;;  %v10209_v46 = vand.u32 3, %v1489_v0  ;;  %v15248_v32 = vstv %s9486_s3  ;;  %s10232_s3 = sld [smem:[#allocation2 + $0x187]] }
 0x129   : > { %v1369_v43 = vmul.f32 %v15248_v32, %v1263_v21  ;;  %v1946_v17 = vsub.s32 0, %v10189_v4  ;;  %v2177_v48 = vmul.u32 %v10110_v20, %v2161_v13  ;;  %v2372_v44 = vadd.s32 1, %v8151_v30 }
 0x12a   : > { %v1377_v12 = vmul.f32 %v1376_v16, %v1263_v21  ;;  %v1385_v50 = vmul.f32 %v1384_v6, %v1263_v21  ;;  %v1393_v45 = vmul.f32 %v1392_v27, %v1263_v21  ;;  %v2181_v47 = vsel %vm2179_vm11, %v2180_v18, %v10134_v37 }
 0x12b   : > { %v10228_v24 = vand.u32 3, %v1493_v8  ;;  %v1713_v60 = vshll.u32 %v9977_v36, %v10149_v7  ;;  %v1714_v52 = vshrl.u32 %v1696_v5, %v1712_v56  ;;  %v1718_v63 = vshll.u32 %v1717_v53, 23 }
 0x12c   : > { %v15249_v20 = vstv %s9599_s30  ;;  %v15250_v16 = vstv %s9663_s5  ;;  %v15251_v6 = vstv %s9701_s7  ;;  %v15252_v27 = vstv %s9732_s9  ;;  %s10249_s30 = sld [smem:[#allocation2 + $0x88]] }
 0x12d   : > { %v1373_v0 = vmul.f32 %v15249_v20, %v1366_v51  ;;  %v1381_v55 = vmul.f32 %v15250_v16, %v1366_v51  ;;  %v1389_v28 = vmul.f32 %v15251_v6, %v1366_v51  ;;  %v1397_v39 = vmul.f32 %v15252_v27, %v1366_v51  ;;  %s10257_s5 = sld [smem:[#allocation2 + $0x28]] }
 0x12e   : > { %v1370_v37 = vadd.f32 %v1369_v43, %v1134_v58  ;;  %v8119_v31 = vmin.u32 %v1946_v17, %v10189_v4  ;;  %v10245_v1 = vadd.s32 %v2181_v47, %v2177_v48  ;;  %vm2373_vm12 = vcmp.gt.s32.totalorder %v2372_v44, 0  ;;  %s10263_s7 = sld [smem:[#allocation2 + $0xa8]] }
 0x12f   : > { %v1378_v36 = vadd.f32 %v1377_v12, %v1142_v61  ;;  %v1386_v7 = vadd.f32 %v1385_v50, %v1150_v11  ;;  %v1394_v42 = vadd.f32 %v1393_v45, %v1158_v19  ;;  %v10252_v40 = vmul.f32 0.17782794, %v9802_v57  ;;  %s10514_s9 = sld [smem:[#allocation2 + $0x128]] }
 0x130   : > { %vm1496_vm13 = vcmp.eq.s32.totalorder %v10228_v24, 0  ;;  %vm1599_vm14 = vcmp.eq.s32.totalorder %v10209_v46, 0  ;;  %vm1602_vm15 = vcmp.eq.s32.totalorder %v10209_v46, 2  ;;  %v1715_v41 = vor.u32 %v1714_v52, %v1713_v60 }
 0x131   : > { %v1719_v38 = vor.u32 4788187, %v1718_v63  ;;  %vm1499_vm0 = vcmp.eq.s32.totalorder %v10228_v24, 2  ;;  %vm1642_vm1 = vcmp.lt.s32.totalorder %v9462_v14, 0  ;;  %v1864_v49 = vstv %s10158_s1  ;;  %s10749_s1 = sld [smem:[#allocation2 + $0x8a]] }
 0x132   : > { %v2374_v61 = vsel %vm2373_vm12, %v2372_v44, 0  ;;  %v10266_v10 = vadd.f32 %v1373_v0, %v1370_v37  ;;  %v1948_v9 = vclz %v8119_v31  ;;  %v2183_v30 = vadd.s32 536870912, %v10245_v1  ;;  %v8715_v21 = vpop.eup %8714 }
 0x133   : > { %v10270_v13 = vadd.f32 %v1381_v55, %v1378_v36  ;;  %v10272_v18 = vadd.f32 %v1389_v28, %v1386_v7  ;;  %v10274_v5 = vadd.f32 %v1397_v39, %v1394_v42  ;;  %v2605_v56 = vand.u32 2139095040, %v10252_v40  ;;  %v8717_v53 = vpop.eup %8716 }
 0x134   : > { %v1720_v11 = vand.u32 2147483647, %v1719_v38  ;;  %v1722_v19 = vcvt.s32.f32 %v1715_v41  ;;  %v2376_v32 = vand.u32 31, %v2374_v61  ;;  %vm1495_vm2 = vcmp.lt.s32.totalorder %v10228_v24, 2 }
 0x135   : > { %v1500_v12 = vxor.u32 2147483648, %v8715_v21  ;;  %vm1598_vm3 = vcmp.lt.s32.totalorder %v10209_v46, 2  ;;  %v1726_v50 = vsub.s32 4, %v9922_v2  ;;  %v8120_v45 = vadd.s32 4294967294, %v1948_v9 }
 0x136   : > { %v10285_v47 = vshrl.u32 %v2183_v30, 30  ;;  %v1497_v60 = vxor.u32 2147483648, %v8717_v53  ;;  %v15253_v52 = vand.u32 2147483647, %v9462_v14  ;;  %v2606_v16 = vshrl.u32 %v2605_v56, 23 }
 0x137   : > { %v1723_v55 = vmul.f32 %v1722_v19, %v1720_v11  ;;  %v10297_v27 = vsub.s32 32, %v2376_v32  ;;  %vm1492_vm5 = vweird.f32 %v9232_v25  ;;  %v1501_v7 = vsel %vm1499_vm0, %v1500_v12, %v8717_v53 }
 0x138   : > { %vm10289_vm4 = vcmp.le.f32.partialorder %v15253_v52, 0.7853982  ;;  %v1727_v42 = vsel %vm1642_vm1, %v1726_v50, %v9922_v2  ;;  %vm8121_vm6 = vcmp.lt.s32.totalorder %v8120_v45, 0  ;;  %v2185_v41 = vshll.u32 %v10285_v47, 30 }
 0x139   : > { %v1498_v38 = vsel %vm1496_vm13, %v8715_v21, %v1497_v60  ;;  %v1601_v9 = vsel %vm1599_vm14, %v8715_v21, %v1497_v60  ;;  %v1604_v30 = vsel %vm1602_vm15, %v1500_v12, %v8717_v53  ;;  %v8167_v56 = vadd.s32 4294967169, %v2606_v16 }
 0x13a   : > { %v1724_v11 = vxor.u32 2147483648, %v1723_v55  ;;  %v15147_v19 = vand.u32 2147483647, %v10101_v26  ;;  %v15256_v52 = vmov 2102212464   ;;  %v2389_v2 = vshrl.u32 %v15216_v29, %v10297_v27 }
 0x13b   : > { %v2388_v36 = vshll.u32 %v15256_v52, %v2376_v32  ;;  %v10320_v50 = vsel %vm8121_vm6, 0, %v8120_v45  ;;  %v10322_v31 = vshrl.u32 %v2374_v61, 5  ;;  %v2391_v37 = vshll.u32 %v15216_v29, %v2376_v32 }
 0x13c   : > { %v2392_v21 = vshrl.u32 %v15217_v59, %v10297_v27  ;;  %v10328_v53 = vsub.s32 %v10245_v1, %v2185_v41  ;;  %v2379_v12 = vshll.u32 %v15152_v22, %v2376_v32  ;;  %v2380_v60 = vshrl.u32 %v15218_v54, %v10297_v27 }
 0x13d   : > { %v2382_v16 = vshll.u32 %v15218_v54, %v2376_v32  ;;  %v2383_v45 = vshrl.u32 %v15219_v33, %v10297_v27  ;;  %v2385_v61 = vshll.u32 %v15219_v33, %v2376_v32  ;;  %v2386_v39 = vshrl.u32 %v15256_v52, %v10297_v27 }
 0x13e   : > { %v2612_v28 = vadd.s32 1, %v8167_v56  ;;  %v1502_v1 = vsel %vm1495_vm2, %v1498_v38, %v1501_v7  ;;  %v1729_v41 = vsel %vm10289_vm4, 0, %v1727_v42  ;;  %v1956_v0 = vsub.s32 4294967266, %v10320_v50 }
 0x13f   : > { %v2390_v44 = vor.u32 %v2389_v2, %v2388_v36  ;;  %v1605_v6 = vsel %vm1598_vm3, %v1601_v9, %v1604_v30  ;;  %v2369_v32 = vand.u32 8388607, %v15147_v19  ;;  %v2393_v20 = vor.u32 %v2392_v21, %v2391_v37 }
 0x140   : > { %vm2397_vm7 = vcmp.lt.s32.totalorder %v10322_v31, 4  ;;  %v1725_v24 = vsel %vm1642_vm1, %v1724_v11, %v1723_v55  ;;  %v1936_v7 = vadd.s32 %v9972_v3, %v9983_v23  ;;  %v1952_v42 = vsub.s32 32, %v10320_v50 }
 0x141   : > { %v2188_v36 = vsub.s32 0, %v10328_v53  ;;  %v2381_v46 = vor.u32 %v2380_v60, %v2379_v12  ;;  %v2384_v38 = vor.u32 %v2383_v45, %v2382_v16  ;;  %v2387_v9 = vor.u32 %v2386_v39, %v2385_v61 }
 0x142   : > { %vm2613_vm8 = vcmp.gt.s32.totalorder %v2612_v28, 0  ;;  %v1957_v30 = vadd.s32 127, %v1956_v0  ;;  %vm2394_vm9 = vcmp.lt.s32.totalorder %v10322_v31, 1  ;;  %vm2396_vm10 = vcmp.lt.s32.totalorder %v10322_v31, 3 }
 0x143   : > { %v2403_v37 = vsel %vm2397_vm7, %v2390_v44, 920167782  ;;  %v1503_v55 = vsel %vm1492_vm5, nan, %v1502_v1  ;;  %v1733_v3 = vadd.s32 3, %v1729_v41  ;;  %v2370_v23 = vor.u32 8388608, %v2369_v32 }
 0x144   : > { %v2407_v56 = vsel %vm2397_vm7, %v2393_v20, 1326507024  ;;  %v1606_v39 = vsel %vm1492_vm5, nan, %v1605_v6  ;;  %v1728_v0 = vsel %vm10289_vm4, %v9462_v14, %v1725_v24  ;;  %v1953_v11 = vshll.u32 %v10189_v4, %v10320_v50 }
 0x145   : > { %v2614_v2 = vsel %vm2613_vm8, %v2612_v28, 0  ;;  %v8136_v21 = vmin.u32 %v2188_v36, %v10328_v53  ;;  %vm2395_vm11 = vcmp.lt.s32.totalorder %v10322_v31, 2  ;;  %v2402_v20 = vsel %vm2394_vm9, %v2381_v46, %v2384_v38 }
 0x146   : > { %v2404_v25 = vsel %vm2396_vm10, %v2387_v9, %v2403_v37  ;;  %v1954_v6 = vshrl.u32 %v1936_v7, %v1952_v42  ;;  %v1958_v63 = vshll.u32 %v1957_v30, 23  ;;  %v2406_v12 = vsel %vm2394_vm9, %v2384_v38, %v2387_v9 }
 0x147   : > { %v2408_v4 = vsel %vm2396_vm10, %v2390_v44, %v2407_v56  ;;  %v10382_v28 = vand.u32 3, %v1729_v41  ;;  %v10385_v60 = vshll.u32 %v2370_v23, 8  ;;  %v2616_v16 = vand.u32 31, %v2614_v2 }
 0x148   : > { %v15257_v45 = vstv %s9741_s10  ;;  %v15258_v1 = vstv %s9769_s11  ;;  %v10393_v24 = vand.u32 3, %v1733_v3  ;;  %v2405_v7 = vsel %vm2395_vm11, %v2402_v20, %v2404_v25  ;;  %s10524_s10 = sld [smem:[#allocation2 + $0x188]] }
 0x149   : > { %v1609_v61 = vmul.f32 %v15257_v45, %v1503_v55  ;;  %v10391_v32 = vmul.f32 %v15258_v1, %v1606_v39  ;;  %v15259_v42 = vstv %s9849_s14  ;;  %8718 = vcosq.f32 %v1728_v0  ;;  %s10535_s11 = sld [smem:[#allocation2 + $0x1a8]] }
 0x14a   : > { %v1617_v44 = vmul.f32 %v15259_v42, %v1503_v55  ;;  %v2190_v41 = vclz %v8136_v21  ;;  %v2409_v36 = vsel %vm2395_vm11, %v2406_v12, %v2408_v4  ;;  %v15260_v30 = vstv %s9854_s26  ;;  %s10544_s14 = sld [smem:[#allocation2 + $0x9]] }
 0x14b   : > { %v10403_v37 = vmul.f32 %v15260_v30, %v1606_v39  ;;  %8720 = vsinq.f32 %v1728_v0  ;;  %v1955_v23 = vor.u32 %v1954_v6, %v1953_v11  ;;  %v1959_v3 = vor.u32 4788187, %v1958_v63  ;;  %s10557_s26 = sld [smem:[#allocation2 + $0x29]] }
 0x14c   : > { %v2378_v56 = vshrl.u32 %v15152_v22, %v10297_v27  ;;  %v10408_v20 = vmul.u32.u64.low %v10385_v60, %v2405_v7  ;;  %v10409_v25 = vmul.u32.u64.high %v10385_v60, %v2405_v7, %v10408_v20  ;;  %v10412_v45 = vsub.s32 32, %v2616_v16 }
 0x14d   : > { %v15261_v21 = vstv %s9862_s15  ;;  %v2399_v12 = vsel %vm2397_vm7, %v2387_v9, 2102212464  ;;  %v10419_v4 = vmul.u32.u64.low %v10385_v60, %v2409_v36  ;;  %v10420_v0 = vmul.u32.u64.high %v10385_v60, %v2409_v36, %v10419_v4  ;;  %s10580_s15 = sld [smem:[#allocation2 + $0x89]] }
 0x14e   : > { %v1625_v1 = vmul.f32 %v15261_v21, %v1503_v55  ;;  %v15262_v11 = vstv %s9884_s16  ;;  %v15263_v27 = vstv %s9894_s17  ;;  %v8137_v42 = vadd.s32 4294967294, %v2190_v41  ;;  %s10682_s16 = sld [smem:[#allocation2 + $0xa9]] }
 0x14f   : > { %v10424_v6 = vmul.f32 %v15262_v11, %v1606_v39  ;;  %v1633_v63 = vmul.f32 %v15263_v27, %v1503_v55  ;;  %v10429_v7 = vmul.f32 0.07498942, %v9802_v57  ;;  %v10432_v30 = vadd.f32 %v1609_v61, %v10266_v10  ;;  %s10693_s17 = sld [smem:[#allocation2 + $0x109]] }
 0x150   : > { %v15264_v21 = vstv %s9926_s18  ;;  %v1960_v9 = vand.u32 2147483647, %v1959_v3  ;;  %v1962_v19 = vcvt.s32.f32 %v1955_v23  ;;  %v2398_v36 = vsel %vm2394_vm9, %v2378_v56, %v2381_v46  ;;  %s10698_s18 = sld [smem:[#allocation2 + $0x129]] }
 0x151   : > { %v10436_v50 = vmul.f32 %v15264_v21, %v1606_v39  ;;  %v2400_v4 = vsel %vm2396_vm10, %v2384_v38, %v2399_v12  ;;  %v2628_v55 = vshll.u32 %v15256_v52, %v2616_v16  ;;  %v2629_v41 = vshrl.u32 %v15216_v29, %v10412_v45 }
 0x152   : > { %v15148_v11 = vand.u32 2147483647, %v10252_v40  ;;  %v10446_v10 = vshrl.u32 %v2614_v2, 5  ;;  %v2631_v39 = vshll.u32 %v15216_v29, %v2616_v16  ;;  %v2632_v61 = vshrl.u32 %v15217_v59, %v10412_v45 }
 0x153   : > { %vm1882_vm12 = vcmp.lt.s32.totalorder %v9640_v35, 0  ;;  %vm8138_vm13 = vcmp.lt.s32.totalorder %v8137_v42, 0  ;;  %v2619_v46 = vshll.u32 %v15152_v22, %v2616_v16  ;;  %v2622_v38 = vshll.u32 %v15218_v54, %v2616_v16 }
 0x154   : > { %v2845_v23 = vand.u32 2139095040, %v10429_v7  ;;  %v2620_v3 = vshrl.u32 %v15218_v54, %v10412_v45  ;;  %v2623_v2 = vshrl.u32 %v15219_v33, %v10412_v45  ;;  %v2625_v56 = vshll.u32 %v15219_v33, %v2616_v16 }
 0x155   : > { %v2626_v12 = vshrl.u32 %v15256_v52, %v10412_v45  ;;  %vm1739_vm14 = vcmp.eq.s32.totalorder %v10393_v24, 2  ;;  %vm1842_vm15 = vcmp.eq.s32.totalorder %v10382_v28, 2  ;;  %v1963_v27 = vmul.f32 %v1962_v19, %v1960_v9 }
 0x156   : > { %v2401_v21 = vsel %vm2395_vm11, %v2398_v36, %v2400_v4  ;;  %v2420_v48 = vadd.s32 1, %v10409_v25  ;;  %v2630_v17 = vor.u32 %v2629_v41, %v2628_v55  ;;  %vm1736_vm0 = vcmp.eq.s32.totalorder %v10393_v24, 0  ;;  %v8719_v41 = vpop.eup %8718 }
 0x157   : > { %vm1839_vm1 = vcmp.eq.s32.totalorder %v10382_v28, 0  ;;  %v15265_v16 = vand.u32 2147483647, %v9640_v35  ;;  %vm2419_vm3 = vc.u32 %v10420_v0, %v10408_v20  ;;  %v2609_v31 = vand.u32 8388607, %v15148_v11 }
 0x158   : > { %v2633_v19 = vor.u32 %v2632_v61, %v2631_v39  ;;  %vm2637_vm4 = vcmp.lt.s32.totalorder %v10446_v10, 4  ;;  %v1618_v9 = vadd.f32 %v1617_v44, %v10270_v13  ;;  %v1626_v36 = vadd.f32 %v1625_v1, %v10272_v18  ;;  %v8721_v11 = vpop.eup %8720 }
 0x159   : > { %vm10471_vm2 = vcmp.le.f32.partialorder %v15265_v16, 0.7853982  ;;  %v10483_v4 = vsel %vm8138_vm13, 0, %v8137_v42  ;;  %v2846_v55 = vshrl.u32 %v2845_v23, 23  ;;  %v2417_v16 = vmul.u32 %v10385_v60, %v2401_v21 }
 0x15a   : > { %v10486_v51 = vor.u32 %v2620_v3, %v2619_v46  ;;  %v10488_v58 = vor.u32 %v2623_v2, %v2622_v38  ;;  %v2627_v8 = vor.u32 %v2626_v12, %v2625_v56  ;;  %v2421_v39 = vsel %vm2419_vm3, %v2420_v48, %v10409_v25 }
 0x15b   : > { %vm2634_vm5 = vcmp.lt.s32.totalorder %v10446_v10, 1  ;;  %vm2636_vm6 = vcmp.lt.s32.totalorder %v10446_v10, 3  ;;  %v2643_v13 = vsel %vm2637_vm4, %v2630_v17, 920167782  ;;  %vm1735_vm7 = vcmp.lt.s32.totalorder %v10393_v24, 2 }
 0x15c   : > { %v1964_v18 = vxor.u32 2147483648, %v1963_v27  ;;  %v2198_v60 = vsub.s32 4294967266, %v10483_v4  ;;  %v2610_v44 = vor.u32 8388608, %v2609_v31  ;;  %v2647_v1 = vsel %vm2637_vm4, %v2633_v19, 1326507024 }
 0x15d   : > { %v1634_v42 = vadd.f32 %v1633_v63, %v10274_v5  ;;  %v1740_v61 = vxor.u32 2147483648, %v8719_v41  ;;  %vm1838_vm8 = vcmp.lt.s32.totalorder %v10382_v28, 2  ;;  %v1966_v48 = vsub.s32 4, %v10125_v62 }
 0x15e   : > { %v8183_v25 = vadd.s32 4294967169, %v2846_v55  ;;  %v10502_v46 = vadd.s32 %v2421_v39, %v2417_v16  ;;  %vm2635_vm9 = vcmp.lt.s32.totalorder %v10446_v10, 2  ;;  %v2642_v38 = vsel %vm2634_vm5, %v10486_v51, %v10488_v58 }
 0x15f   : > { %v2644_v23 = vsel %vm2636_vm6, %v2627_v8, %v2643_v13  ;;  %vm1732_vm10 = vweird.f32 %v9462_v14  ;;  %v1737_v5 = vxor.u32 2147483648, %v8721_v11  ;;  %v2178_v63 = vadd.s32 %v10133_v34, %v10143_v15 }
 0x160   : > { %v2646_v3 = vsel %vm2634_vm5, %v10488_v58, %v2627_v8  ;;  %v2648_v2 = vsel %vm2636_vm6, %v2630_v17, %v2647_v1  ;;  %v1965_v56 = vsel %vm1882_vm12, %v1964_v18, %v1963_v27  ;;  %v2194_v12 = vsub.s32 32, %v10483_v4 }
 0x161   : > { %v2199_v21 = vadd.s32 127, %v2198_v60  ;;  %v10526_v31 = vshll.u32 %v2610_v44, 8  ;;  %v10530_v34 = vadd.f32 %v10391_v32, %v10432_v30  ;;  %v1967_v15 = vsel %vm1882_vm12, %v1966_v48, %v10125_v62 }
 0x162   : > { %v2645_v17 = vsel %vm2635_vm9, %v2642_v38, %v2644_v23  ;;  %v2852_v27 = vadd.s32 1, %v8183_v25  ;;  %v1741_v19 = vsel %vm1739_vm14, %v1740_v61, %v8721_v11  ;;  %v1844_v55 = vsel %vm1842_vm15, %v1740_v61, %v8721_v11 }
 0x163   : > { %v2423_v16 = vadd.s32 536870912, %v10502_v46  ;;  %v2649_v32 = vsel %vm2635_vm9, %v2646_v3, %v2648_v2  ;;  %v1738_v62 = vsel %vm1736_vm0, %v8719_v41, %v1737_v5  ;;  %v1841_v30 = vsel %vm1839_vm1, %v8719_v41, %v1737_v5 }
 0x164   : > { %v1968_v39 = vsel %vm10471_vm2, %v9640_v35, %v1965_v56  ;;  %v2195_v11 = vshll.u32 %v10328_v53, %v10483_v4  ;;  %v2196_v13 = vshrl.u32 %v2178_v63, %v2194_v12  ;;  %v2200_v18 = vshll.u32 %v2199_v21, 23 }
 0x165   : > { %v10560_v60 = vmul.u32.u64.low %v10526_v31, %v2645_v17  ;;  %v10561_v44 = vmul.u32.u64.high %v10526_v31, %v2645_v17, %v10560_v60  ;;  %v2618_v41 = vshrl.u32 %v15152_v22, %v10412_v45  ;;  %vm2853_vm11 = vcmp.gt.s32.totalorder %v2852_v27, 0 }
 0x166   : > { %v10567_v1 = vmul.u32.u64.low %v10526_v31, %v2649_v32  ;;  %v10568_v61 = vmul.u32.u64.high %v10526_v31, %v2649_v32, %v10567_v1  ;;  %v1622_v48 = vadd.f32 %v10403_v37, %v1618_v9  ;;  %v1630_v53 = vadd.f32 %v10424_v6, %v1626_v36 }
 0x167   : > { %v10572_v4 = vshrl.u32 %v2423_v16, 30  ;;  %v2639_v25 = vsel %vm2637_vm4, %v2627_v8, 2102212464  ;;  %v1638_v38 = vadd.f32 %v10436_v50, %v1634_v42  ;;  %v1742_v45 = vsel %vm1735_vm7, %v1738_v62, %v1741_v19 }
 0x168   : > { %8722 = vcosq.f32 %v1968_v39  ;;  %v1845_v37 = vsel %vm1838_vm8, %v1841_v30, %v1844_v55  ;;  %v1969_v6 = vsel %vm10471_vm2, 0, %v1967_v15  ;;  %v2854_v8 = vsel %vm2853_vm11, %v2852_v27, 0 }
 0x169   : > { %8724 = vsinq.f32 %v1968_v39  ;;  %v2197_v9 = vor.u32 %v2196_v13, %v2195_v11  ;;  %v2201_v50 = vor.u32 4788187, %v2200_v18  ;;  %v2638_v24 = vsel %vm2634_vm5, %v2618_v41, %v10486_v51 }
 0x16a   : > { %v2640_v36 = vsel %vm2636_vm6, %v10488_v58, %v2639_v25  ;;  %v1743_v28 = vsel %vm1732_vm10, nan, %v1742_v45  ;;  %v2354_v42 = vstv %s10524_s10  ;;  %v2425_v5 = vshll.u32 %v10572_v4, 30  ;;  %s11381_s10 = sld [smem:[#allocation2 + $0x10c]] }
 0x16b   : > { %v1973_v63 = vadd.s32 3, %v1969_v6  ;;  %v2856_v56 = vand.u32 31, %v2854_v8  ;;  %v1846_v51 = vsel %vm1732_vm10, nan, %v1845_v37  ;;  %v10601_v12 = vand.u32 3, %v1969_v6 }
 0x16c   : > { %v2641_v58 = vsel %vm2635_vm9, %v2638_v24, %v2640_v36  ;;  %v2660_v21 = vadd.s32 1, %v10561_v44  ;;  %v15268_v15 = vstv %s9936_s19  ;;  %v2202_v27 = vand.u32 2147483647, %v2201_v50  ;;  %s10704_s19 = sld [smem:[#allocation2 + $0x189]] }
 0x16d   : > { %v1849_v17 = vmul.f32 %v15268_v15, %v1743_v28  ;;  %v2204_v19 = vcvt.s32.f32 %v2197_v9  ;;  %vm2659_vm12 = vc.u32 %v10568_v61, %v10560_v60  ;;  %v15269_v55 = vstv %s10017_s21  ;;  %s10729_s21 = sld [smem:[#allocation2 + $0xa]] }
 0x16e   : > { %v1857_v14 = vmul.f32 %v15269_v55, %v1743_v28  ;;  %v1865_v16 = vmul.f32 %v1864_v49, %v1743_v28  ;;  %v15270_v32 = vstv %s10174_s12  ;;  %v10617_v62 = vsub.s32 %v10502_v46, %v2425_v5  ;;  %s10765_s12 = sld [smem:[#allocation2 + $0x10a]] }
 0x16f   : > { %v1873_v10 = vmul.f32 %v15270_v32, %v1743_v28  ;;  %v10619_v30 = vand.u32 3, %v1973_v63  ;;  %vm2124_vm13 = vcmp.lt.s32.totalorder %v9802_v57, 0  ;;  %v2657_v11 = vmul.u32 %v10526_v31, %v2641_v58 }
 0x170   : > { %v10624_v13 = vsub.s32 32, %v2856_v56  ;;  %v15271_v18 = vstv %s9946_s20  ;;  %v15272_v1 = vstv %s10026_s22  ;;  %v2661_v49 = vsel %vm2659_vm12, %v2660_v21, %v10561_v44  ;;  %s10724_s20 = sld [smem:[#allocation2 + $0x1a9]] }
 0x171   : > { %v1853_v41 = vmul.f32 %v15271_v18, %v1846_v51  ;;  %v1861_v25 = vmul.f32 %v15272_v1, %v1846_v51  ;;  %v10632_v45 = vmul.f32 0.031622775, %v9802_v57  ;;  %v1850_v46 = vadd.f32 %v1849_v17, %v10530_v34  ;;  %s10741_s22 = sld [smem:[#allocation2 + $0x2a]] }
 0x172   : > { %v15273_v37 = vstv %s10169_s2  ;;  %v15274_v9 = vstv %s10184_s13  ;;  %v2205_v24 = vmul.f32 %v2204_v19, %v2202_v27  ;;  %v1858_v36 = vadd.f32 %v1857_v14, %v1622_v48  ;;  %s10755_s2 = sld [smem:[#allocation2 + $0xaa]] }
 0x173   : > { %v1869_v6 = vmul.f32 %v15273_v37, %v1846_v51  ;;  %v1877_v50 = vmul.f32 %v15274_v9, %v1846_v51  ;;  %v1866_v31 = vadd.f32 %v1865_v16, %v1630_v53  ;;  %v1874_v28 = vadd.f32 %v1873_v10, %v1638_v38  ;;  %s10806_s13 = sld [smem:[#allocation2 + $0x12a]] }
 0x174   : > { %v15275_v5 = vand.u32 2147483647, %v9802_v57  ;;  %v2428_v44 = vsub.s32 0, %v10617_v62  ;;  %vm1979_vm15 = vcmp.eq.s32.totalorder %v10619_v30, 2  ;;  %v10647_v58 = vadd.s32 %v2661_v49, %v2657_v11 }
 0x175   : > { %v15150_v34 = vand.u32 2147483647, %v10429_v7  ;;  %v2868_v51 = vshll.u32 %v15256_v52, %v2856_v56  ;;  %v2869_v48 = vshrl.u32 %v15216_v29, %v10624_v13  ;;  %v10653_v53 = vpop.eup %8722  ;;  %vm1976_vm0 = vcmp.eq.s32.totalorder %v10619_v30, 0 }
 0x176   : > { %vm10641_vm14 = vcmp.le.f32.partialorder %v15275_v5, 0.7853982  ;;  %v10656_v38 = vshrl.u32 %v2854_v8, 5  ;;  %v2871_v21 = vshll.u32 %v15216_v29, %v2856_v56  ;;  %v2872_v15 = vshrl.u32 %v15217_v59, %v10624_v13  ;;  %v10662_v27 = vpop.eup %8724 }
 0x177   : > { %v3085_v17 = vand.u32 2139095040, %v10632_v45  ;;  %v2206_v19 = vxor.u32 2147483648, %v2205_v24  ;;  %v2208_v55 = vsub.s32 4, %v10285_v47  ;;  %v2859_v14 = vshll.u32 %v15152_v22, %v2856_v56 }
 0x178   : > { %v2862_v16 = vshll.u32 %v15218_v54, %v2856_v56  ;;  %v2860_v8 = vshrl.u32 %v15218_v54, %v10624_v13  ;;  %v2863_v32 = vshrl.u32 %v15219_v33, %v10624_v13  ;;  %v2865_v10 = vshll.u32 %v15219_v33, %v2856_v56 }
 0x179   : > { %v2866_v11 = vshrl.u32 %v15256_v52, %v10624_v13  ;;  %v10674_v18 = vadd.f32 %v1853_v41, %v1850_v46  ;;  %vm2079_vm1 = vcmp.eq.s32.totalorder %v10601_v12, 0  ;;  %vm2082_vm2 = vcmp.eq.s32.totalorder %v10601_v12, 2 }
 0x17a   : > { %v8152_v1 = vmin.u32 %v2428_v44, %v10617_v62  ;;  %v2849_v49 = vand.u32 8388607, %v15150_v34  ;;  %v2870_v37 = vor.u32 %v2869_v48, %v2868_v51  ;;  %vm1975_vm3 = vcmp.lt.s32.totalorder %v10619_v30, 2 }
 0x17b   : > { %v2663_v56 = vadd.s32 536870912, %v10647_v58  ;;  %v2873_v9 = vor.u32 %v2872_v15, %v2871_v21  ;;  %vm2877_vm4 = vcmp.lt.s32.totalorder %v10656_v38, 4  ;;  %v3086_v41 = vshrl.u32 %v3085_v17, 23 }
 0x17c   : > { %v10686_v46 = vadd.f32 %v1861_v25, %v1858_v36  ;;  %v1977_v5 = vxor.u32 2147483648, %v10662_v27  ;;  %v1980_v44 = vxor.u32 2147483648, %v10653_v53  ;;  %v2209_v51 = vsel %vm2124_vm13, %v2208_v55, %v10285_v47 }
 0x17d   : > { %vm2078_vm5 = vcmp.lt.s32.totalorder %v10601_v12, 2  ;;  %v2207_v48 = vsel %vm2124_vm13, %v2206_v19, %v2205_v24  ;;  %v10700_v21 = vor.u32 %v2860_v8, %v2859_v14  ;;  %v10702_v25 = vor.u32 %v2863_v32, %v2862_v16 }
 0x17e   : > { %v2867_v36 = vor.u32 %v2866_v11, %v2865_v10  ;;  %v2430_v15 = vclz %v8152_v1  ;;  %vm2874_vm6 = vcmp.lt.s32.totalorder %v10656_v38, 1  ;;  %vm2876_vm7 = vcmp.lt.s32.totalorder %v10656_v38, 3 }
 0x17f   : > { %v2883_v47 = vsel %vm2877_vm4, %v2870_v37, 920167782  ;;  %v10710_v17 = vshrl.u32 %v2663_v56, 30  ;;  %v2850_v24 = vor.u32 8388608, %v2849_v49  ;;  %v2887_v19 = vsel %vm2877_vm4, %v2873_v9, 1326507024 }
 0x180   : > { %v8199_v55 = vadd.s32 4294967169, %v3086_v41  ;;  %v10714_v14 = vadd.f32 %v1869_v6, %v1866_v31  ;;  %v10716_v16 = vadd.f32 %v1877_v50, %v1874_v28  ;;  %vm1972_vm8 = vweird.f32 %v9640_v35 }
 0x181   : > { %v2210_v8 = vsel %vm10641_vm14, %v9802_v57, %v2207_v48  ;;  %v2211_v32 = vsel %vm10641_vm14, 0, %v2209_v51  ;;  %v1981_v10 = vsel %vm1979_vm15, %v1980_v44, %v10662_v27  ;;  %vm2875_vm9 = vcmp.lt.s32.totalorder %v10656_v38, 2 }
 0x182   : > { %v2882_v6 = vsel %vm2874_vm6, %v10700_v21, %v10702_v25  ;;  %v2884_v50 = vsel %vm2876_vm7, %v2867_v36, %v2883_v47  ;;  %v1978_v31 = vsel %vm1976_vm0, %v10653_v53, %v1977_v5  ;;  %v8153_v28 = vadd.s32 4294967294, %v2430_v15 }
 0x183   : > { %v2886_v63 = vsel %vm2874_vm6, %v10702_v25, %v2867_v36  ;;  %v2888_v11 = vsel %vm2876_vm7, %v2870_v37, %v2887_v19  ;;  %8726 = vcosq.f32 %v2210_v8  ;;  %v2665_v1 = vshll.u32 %v10710_v17, 30 }
 0x184   : > { %v10751_v49 = vshll.u32 %v2850_v24, 8  ;;  %v3092_v56 = vadd.s32 1, %v8199_v55  ;;  %8728 = vsinq.f32 %v2210_v8  ;;  %v2885_v51 = vsel %vm2875_vm9, %v2882_v6, %v2884_v50 }
 0x185   : > { %v2081_v37 = vsel %vm2079_vm1, %v10653_v53, %v1977_v5  ;;  %v2084_v48 = vsel %vm2082_vm2, %v1980_v44, %v10662_v27  ;;  %v2215_v15 = vadd.s32 3, %v2211_v32  ;;  %v2889_v47 = vsel %vm2875_vm9, %v2886_v63, %v2888_v11 }
 0x186   : > { %v1982_v24 = vsel %vm1975_vm3, %v1978_v31, %v1981_v10  ;;  %vm8154_vm10 = vcmp.lt.s32.totalorder %v8153_v28, 0  ;;  %v10774_v53 = vsub.s32 %v10647_v58, %v2665_v1  ;;  %vm3093_vm11 = vcmp.gt.s32.totalorder %v3092_v56, 0 }
 0x187   : > { %v10777_v27 = vmul.u32.u64.low %v10751_v49, %v2885_v51  ;;  %v10778_v5 = vmul.u32.u64.high %v10751_v49, %v2885_v51, %v10777_v27  ;;  %v2085_v44 = vsel %vm2078_vm5, %v2081_v37, %v2084_v48  ;;  %v2858_v30 = vshrl.u32 %v15152_v22, %v10624_v13 }
 0x188   : > { %v10786_v8 = vmul.u32.u64.low %v10751_v49, %v2889_v47  ;;  %v10787_v10 = vmul.u32.u64.high %v10751_v49, %v2889_v47, %v10786_v8  ;;  %v10789_v6 = vand.u32 3, %v2215_v15  ;;  %v10791_v58 = vand.u32 3, %v2211_v32 }
 0x189   : > { %v2879_v31 = vsel %vm2877_vm4, %v2867_v36, 2102212464  ;;  %v2433_v63 = vsel %vm8154_vm10, 0, %v8153_v28  ;;  %v3094_v13 = vsel %vm3093_vm11, %v3092_v56, 0  ;;  %v1983_v1 = vsel %vm1972_vm8, nan, %v1982_v24 }
 0x18a   : > { %v2086_v32 = vsel %vm1972_vm8, nan, %v2085_v44  ;;  %v2668_v51 = vsub.s32 0, %v10774_v53  ;;  %v2418_v36 = vadd.s32 %v10408_v20, %v10420_v0  ;;  %v2434_v28 = vsub.s32 32, %v2433_v63 }
 0x18b   : > { %v2878_v56 = vsel %vm2874_vm6, %v2858_v30, %v10700_v21  ;;  %v2880_v35 = vsel %vm2876_vm7, %v10702_v25, %v2879_v31  ;;  %v2438_v48 = vsub.s32 4294967266, %v2433_v63  ;;  %v3096_v24 = vand.u32 31, %v3094_v13 }
 0x18c   : > { %v15278_v44 = vstv %s10191_s25  ;;  %v15279_v11 = vstv %s10203_s28  ;;  %v15280_v0 = vstv %s10195_s27  ;;  %v15281_v12 = vstv %s10216_s0  ;;  %s10942_s25 = sld [smem:[#allocation2 + $0x18a]] }
 0x18d   : > { %v2089_v8 = vmul.f32 %v15278_v44, %v1983_v1  ;;  %v2093_v20 = vmul.f32 %v15279_v11, %v2086_v32  ;;  %v2097_v37 = vmul.f32 %v15280_v0, %v1983_v1  ;;  %v2105_v50 = vmul.f32 %v15281_v12, %v1983_v1  ;;  %s11010_s27 = sld [smem:[#allocation2 + $0x1aa]] }
 0x18e   : > { %v15282_v55 = vstv %s10232_s3  ;;  %v8168_v30 = vmin.u32 %v2668_v51, %v10774_v53  ;;  %v2881_v25 = vsel %vm2875_vm9, %v2878_v56, %v2880_v35  ;;  %v2900_v31 = vadd.s32 1, %v10778_v5  ;;  %s11030_s28 = sld [smem:[#allocation2 + $0xb]] }
 0x18f   : > { %v2113_v21 = vmul.f32 %v15282_v55, %v1983_v1  ;;  %v15283_v44 = vstv %s10211_s23  ;;  %vm2218_vm12 = vcmp.eq.s32.totalorder %v10789_v6, 0  ;;  %vm2221_vm13 = vcmp.eq.s32.totalorder %v10789_v6, 2  ;;  %s11039_s23 = sld [smem:[#allocation2 + $0x8b]] }
 0x190   : > { %v10830_v47 = vpop.eup %8726  ;;  %v10834_v15 = vmul.f32 %v15283_v44, %v2086_v32  ;;  %v2435_v12 = vshll.u32 %v10617_v62, %v2433_v63  ;;  %v2436_v11 = vshrl.u32 %v2418_v36, %v2434_v28  ;;  %vm2899_vm14 = vc.u32 %v10787_v10, %v10777_v27  ;;  %s11045_s0 = sld [smem:[#allocation2 + $0x2b]] }
 0x191   : > { %v10841_v55 = vpop.eup %8728  ;;  %v15284_v38 = vstv %s10225_s24  ;;  %v15285_v51 = vstv %s10242_s4  ;;  %v2439_v35 = vadd.s32 127, %v2438_v48  ;;  %v10851_v0 = vsub.s32 32, %v3096_v24  ;;  %s11047_s24 = sld [smem:[#allocation2 + $0xab]] }
 0x192   : > { %v10845_v1 = vmul.f32 %v15284_v38, %v2086_v32  ;;  %v10849_v56 = vmul.f32 %v15285_v51, %v2086_v32  ;;  %v2090_v44 = vadd.f32 %v2089_v8, %v10674_v18  ;;  %v10855_v62 = vadd.f32 %v2097_v37, %v10686_v46  ;;  %s11056_s3 = sld [smem:[#allocation2 + $0x10b]] }
 0x193   : > { %v10858_v63 = vadd.f32 %v2105_v50, %v10714_v14  ;;  %v2897_v36 = vmul.u32 %v10751_v49, %v2881_v25  ;;  %v10862_v28 = vadd.f32 %v2113_v21, %v10716_v16  ;;  %v2670_v38 = vclz %v8168_v30  ;;  %s11085_s4 = sld [smem:[#allocation2 + $0x12b]] }
 0x194   : > { %v2901_v32 = vsel %vm2899_vm14, %v2900_v31, %v10778_v5  ;;  %v10866_v48 = vmul.f32 0.013335214, %v9802_v57  ;;  %v2219_v51 = vxor.u32 2147483648, %v10841_v55  ;;  %v2222_v18 = vxor.u32 2147483648, %v10830_v47 }
 0x195   : > { %vm2321_vm15 = vcmp.eq.s32.totalorder %v10791_v58, 0  ;;  %vm2324_vm0 = vcmp.eq.s32.totalorder %v10791_v58, 2  ;;  %v2437_v46 = vor.u32 %v2436_v11, %v2435_v12  ;;  %vm2217_vm1 = vcmp.lt.s32.totalorder %v10789_v6, 2 }
 0x196   : > { %15286 = vst [vmem:[#allocation13_spill] sm:$0xff] %v10866_v48  ;;  %v2440_v16 = vshll.u32 %v2439_v35, 23  ;;  %v15149_v49 = vand.u32 2147483647, %v10632_v45  ;;  %v3108_v5 = vshll.u32 %v15256_v52, %v3096_v24  ;;  %v3109_v50 = vshrl.u32 %v15216_v29, %v10851_v0 }
 0x197   : > { %vm2364_vm2 = vcmp.lt.s32.totalorder %v10101_v26, 0  ;;  %v10879_v37 = vadd.s32 %v2901_v32, %v2897_v36  ;;  %v10881_v8 = vshrl.u32 %v3094_v13, 5  ;;  %v3111_v21 = vshll.u32 %v15216_v29, %v3096_v24 }
 0x198   : > { %v3112_v30 = vshrl.u32 %v15217_v59, %v10851_v0  ;;  %v8169_v25 = vadd.s32 4294967294, %v2670_v38  ;;  %v3099_v31 = vshll.u32 %v15152_v22, %v3096_v24  ;;  %v3102_v12 = vshll.u32 %v15218_v54, %v3096_v24 }
 0x199   : > { %v3325_v11 = vand.u32 2139095040, %v10866_v48  ;;  %vm2320_vm3 = vcmp.lt.s32.totalorder %v10791_v58, 2  ;;  %v3100_v35 = vshrl.u32 %v15218_v54, %v10851_v0  ;;  %v3103_v13 = vshrl.u32 %v15219_v33, %v10851_v0 }
 0x19a   : > { %v3105_v36 = vshll.u32 %v15219_v33, %v3096_v24  ;;  %v3106_v32 = vshrl.u32 %v15256_v52, %v10851_v0  ;;  %v10897_v38 = vadd.f32 %v2093_v20, %v2090_v44  ;;  %vm2214_vm4 = vweird.f32 %v9802_v57 }
 0x19b   : > { %v2441_v14 = vor.u32 4788187, %v2440_v16  ;;  %v2448_v19 = vsub.s32 4, %v10572_v4  ;;  %v3110_v41 = vor.u32 %v3109_v50, %v3108_v5  ;;  %v2903_v9 = vadd.s32 536870912, %v10879_v37 }
 0x19c   : > { %v3089_v39 = vand.u32 8388607, %v15149_v49  ;;  %v3113_v2 = vor.u32 %v3112_v30, %v3111_v21  ;;  %vm3117_vm5 = vcmp.lt.s32.totalorder %v10881_v8, 4  ;;  %v2220_v24 = vsel %vm2218_vm12, %v10830_v47, %v2219_v51 }
 0x19d   : > { %v2223_v20 = vsel %vm2221_vm13, %v2222_v18, %v10841_v55  ;;  %v15287_v44 = vand.u32 2147483647, %v10101_v26  ;;  %vm8170_vm7 = vcmp.lt.s32.totalorder %v8169_v25, 0  ;;  %v3326_v5 = vshrl.u32 %v3325_v11, 23 }
 0x19e   : > { %v2444_v50 = vcvt.s32.f32 %v2437_v46  ;;  %v10917_v21 = vor.u32 %v3100_v35, %v3099_v31  ;;  %v10919_v30 = vor.u32 %v3103_v13, %v3102_v12  ;;  %v3107_v49 = vor.u32 %v3106_v32, %v3105_v36 }
 0x19f   : > { %vm10913_vm6 = vcmp.le.f32.partialorder %v15287_v44, 0.7853982  ;;  %v2442_v34 = vand.u32 2147483647, %v2441_v14  ;;  %vm3114_vm8 = vcmp.lt.s32.totalorder %v10881_v8, 1  ;;  %vm3116_vm9 = vcmp.lt.s32.totalorder %v10881_v8, 3 }
 0x1a0   : > { %v3123_v3 = vsel %vm3117_vm5, %v3110_v41, 920167782  ;;  %v10925_v44 = vsel %vm8170_vm7, 0, %v8169_v25  ;;  %v10927_v43 = vshrl.u32 %v2903_v9, 30  ;;  %v3090_v23 = vor.u32 8388608, %v3089_v39 }
 0x1a1   : > { %v3127_v46 = vsel %vm3117_vm5, %v3113_v2, 1326507024  ;;  %v2323_v31 = vsel %vm2321_vm15, %v10830_v47, %v2219_v51  ;;  %v2326_v14 = vsel %vm2324_vm0, %v2222_v18, %v10841_v55  ;;  %v2449_v12 = vsel %vm2364_vm2, %v2448_v19, %v10572_v4 }
 0x1a2   : > { %v8215_v25 = vadd.s32 4294967169, %v3326_v5  ;;  %v2224_v9 = vsel %vm2217_vm1, %v2220_v24, %v2223_v20  ;;  %vm3115_vm10 = vcmp.lt.s32.totalorder %v10881_v8, 2  ;;  %v3122_v2 = vsel %vm3114_vm8, %v10917_v21, %v10919_v30 }
 0x1a3   : > { %v3124_v39 = vsel %vm3116_vm9, %v3107_v49, %v3123_v3  ;;  %v2445_v47 = vmul.f32 %v2444_v50, %v2442_v34  ;;  %v2678_v55 = vsub.s32 4294967266, %v10925_v44  ;;  %v3126_v4 = vsel %vm3114_vm8, %v10919_v30, %v3107_v49 }
 0x1a4   : > { %v3128_v19 = vsel %vm3116_vm9, %v3110_v41, %v3127_v46  ;;  %v2102_v6 = vadd.f32 %v10834_v15, %v10855_v62  ;;  %v2110_v51 = vadd.f32 %v10845_v1, %v10858_v63  ;;  %v2905_v18 = vshll.u32 %v10927_v43, 30 }
 0x1a5   : > { %v10962_v11 = vshll.u32 %v3090_v23, 8  ;;  %v2118_v3 = vadd.f32 %v10849_v56, %v10862_v28  ;;  %v2327_v34 = vsel %vm2320_vm3, %v2323_v31, %v2326_v14  ;;  %v3125_v35 = vsel %vm3115_vm10, %v3122_v2, %v3124_v39 }
 0x1a6   : > { %v3332_v41 = vadd.s32 1, %v8215_v25  ;;  %v2225_v15 = vsel %vm2214_vm4, nan, %v2224_v9  ;;  %v2451_v1 = vsel %vm10913_vm6, 0, %v2449_v12  ;;  %v3129_v23 = vsel %vm3115_vm10, %v3126_v4, %v3128_v19 }
 0x1a7   : > { %v10977_v62 = vmul.f32 0.0056234132, %v9802_v57  ;;  %v2446_v56 = vxor.u32 2147483648, %v2445_v47  ;;  %v2658_v58 = vadd.s32 %v10560_v60, %v10568_v61  ;;  %v2674_v63 = vsub.s32 32, %v10925_v44 }
 0x1a8   : > { %v2679_v28 = vadd.s32 127, %v2678_v55  ;;  %v2328_v13 = vsel %vm2214_vm4, nan, %v2327_v34  ;;  %v10985_v36 = vsub.s32 %v10879_v37, %v2905_v18  ;;  %v3098_v20 = vshrl.u32 %v15152_v22, %v10851_v0 }
 0x1a9   : > { %v10988_v32 = vmul.u32.u64.low %v10962_v11, %v3125_v35  ;;  %v10989_v24 = vmul.u32.u64.high %v10962_v11, %v3125_v35, %v10988_v32  ;;  %v10995_v60 = vmul.u32.u64.low %v10962_v11, %v3129_v23  ;;  %v10996_v61 = vmul.u32.u64.high %v10962_v11, %v3129_v23, %v10995_v60 }
 0x1aa   : > { %vm3333_vm11 = vcmp.gt.s32.totalorder %v3332_v41, 0  ;;  %v2455_v5 = vadd.s32 3, %v2451_v1  ;;  %v3119_v37 = vsel %vm3117_vm5, %v3107_v49, 2102212464  ;;  %v3565_v46 = vand.u32 2139095040, %v10977_v62 }
 0x1ab   : > { %v2447_v31 = vsel %vm2364_vm2, %v2446_v56, %v2445_v47  ;;  %v2675_v0 = vshll.u32 %v10774_v53, %v10925_v44  ;;  %v2676_v14 = vshrl.u32 %v2658_v58, %v2674_v63  ;;  %v2680_v12 = vshll.u32 %v2679_v28, 23 }
 0x1ac   : > { %v15290_v25 = vstv %s10247_s6  ;;  %v15291_v2 = vstv %s10257_s5  ;;  %v2908_v49 = vsub.s32 0, %v10985_v36  ;;  %v3334_v55 = vsel %vm3333_vm11, %v3332_v41, 0  ;;  %s11091_s6 = sld [smem:[#allocation2 + $0x18b]] }
 0x1ad   : > { %v2331_v9 = vmul.f32 %v15290_v25, %v2225_v15  ;;  %v2335_v39 = vmul.f32 %v15291_v2, %v2328_v13  ;;  %v15292_v4 = vstv %s10249_s30  ;;  %v15293_v18 = vstv %s10346_s8  ;;  %s11109_s30 = sld [smem:[#allocation2 + $0x1ab]] }
 0x1ae   : > { %v2339_v19 = vmul.f32 %v15292_v4, %v2225_v15  ;;  %v2347_v34 = vmul.f32 %v15293_v18, %v2225_v15  ;;  %v3118_v53 = vsel %vm3114_vm8, %v3098_v20, %v10917_v21  ;;  %v3120_v44 = vsel %vm3116_vm9, %v10919_v30, %v3119_v37  ;;  %s11236_s5 = sld [smem:[#allocation2 + $0xc]] }
 0x1af   : > { %v15294_v47 = vstv %s10263_s7  ;;  %v2355_v23 = vmul.f32 %v2354_v42, %v2225_v15  ;;  %v2450_v41 = vsel %vm10913_vm6, %v10101_v26, %v2447_v31  ;;  %v3566_v56 = vshrl.u32 %v3565_v46, 23  ;;  %s11243_s7 = sld [smem:[#allocation2 + $0x2c]] }
 0x1b0   : > { %v2343_v35 = vmul.f32 %v15294_v47, %v2328_v13  ;;  %v15295_v58 = vstv %s10514_s9  ;;  %v2677_v28 = vor.u32 %v2676_v14, %v2675_v0  ;;  %v2681_v21 = vor.u32 4788187, %v2680_v12  ;;  %s11270_s8 = sld [smem:[#allocation2 + $0x8c]] }
 0x1b1   : > { %v2351_v63 = vmul.f32 %v15295_v58, %v2328_v13  ;;  %v3336_v20 = vand.u32 31, %v3334_v55  ;;  %v2332_v60 = vadd.f32 %v2331_v9, %v10897_v38  ;;  %v8184_v30 = vmin.u32 %v2908_v49, %v10985_v36  ;;  %s11379_s9 = sld [smem:[#allocation2 + $0xac]] }
 0x1b2   : > { %v3121_v42 = vsel %vm3115_vm10, %v3118_v53, %v3120_v44  ;;  %v3140_v15 = vadd.s32 1, %v10989_v24  ;;  %v2340_v16 = vadd.f32 %v2339_v19, %v2102_v6  ;;  %v2348_v37 = vadd.f32 %v2347_v34, %v2110_v51 }
 0x1b3   : > { %8730 = vcosq.f32 %v2450_v41  ;;  %vm3139_vm12 = vc.u32 %v10996_v61, %v10988_v32  ;;  %v2356_v46 = vadd.f32 %v2355_v23, %v2118_v3  ;;  %v15296_v31 = vstv %s10535_s11  ;;  %s11392_s11 = sld [smem:[#allocation2 + $0x12c]] }
 0x1b4   : > { %v2359_v0 = vmul.f32 %v15296_v31, %v2328_v13  ;;  %8732 = vsinq.f32 %v2450_v41  ;;  %v8231_v38 = vadd.s32 4294967169, %v3566_v56  ;;  %v2682_v8 = vand.u32 2147483647, %v2681_v21 }
 0x1b5   : > { %v2684_v14 = vcvt.s32.f32 %v2677_v28  ;;  %v3137_v6 = vmul.u32 %v10962_v11, %v3121_v42  ;;  %v11050_v51 = vsub.s32 32, %v3336_v20  ;;  %v11052_v12 = vand.u32 3, %v2451_v1 }
 0x1b6   : > { %vm2604_vm13 = vcmp.lt.s32.totalorder %v10252_v40, 0  ;;  %v2910_v25 = vclz %v8184_v30  ;;  %v3141_v13 = vsel %vm3139_vm12, %v3140_v15, %v10989_v24  ;;  %v11062_v9 = vadd.f32 %v2335_v39, %v2332_v60 }
 0x1b7   : > { %v11064_v2 = vadd.f32 %v2343_v35, %v2340_v16  ;;  %v11066_v11 = vadd.f32 %v2351_v63, %v2348_v37  ;;  %v11068_v49 = vand.u32 3, %v2455_v5  ;;  %v11070_v1 = vadd.f32 %v2359_v0, %v2356_v46 }
 0x1b8   : > { %v2688_v4 = vsub.s32 4, %v10710_v17  ;;  %v3572_v18 = vadd.s32 1, %v8231_v38  ;;  %v2685_v34 = vmul.f32 %v2684_v14, %v2682_v8  ;;  %v11074_v53 = vadd.s32 %v3141_v13, %v3137_v6 }
 0x1b9   : > { %v3348_v44 = vshll.u32 %v15256_v52, %v3336_v20  ;;  %v3349_v24 = vshrl.u32 %v15216_v29, %v11050_v51  ;;  %v15297_v39 = vand.u32 2147483647, %v10252_v40  ;;  %v8185_v5 = vadd.s32 4294967294, %v2910_v25 }
 0x1ba   : > { %v15151_v35 = vand.u32 2147483647, %v10866_v48  ;;  %v11088_v23 = vshrl.u32 %v3334_v55, 5  ;;  %v3339_v41 = vshll.u32 %v15152_v22, %v3336_v20  ;;  %v3342_v56 = vshll.u32 %v15218_v54, %v3336_v20 }
 0x1bb   : > { %vm11081_vm14 = vcmp.le.f32.partialorder %v15297_v39, 0.7853982  ;;  %v3345_v58 = vshll.u32 %v15219_v33, %v3336_v20  ;;  %v3351_v63 = vshll.u32 %v15216_v29, %v3336_v20  ;;  %v3352_v28 = vshrl.u32 %v15217_v59, %v11050_v51 }
 0x1bc   : > { %vm2461_vm15 = vcmp.eq.s32.totalorder %v11068_v49, 2  ;;  %vm2564_vm0 = vcmp.eq.s32.totalorder %v11052_v12, 2  ;;  %v3340_v55 = vshrl.u32 %v15218_v54, %v11050_v51  ;;  %v3343_v21 = vshrl.u32 %v15219_v33, %v11050_v51 }
 0x1bd   : > { %v3346_v60 = vshrl.u32 %v15256_v52, %v11050_v51  ;;  %vm3573_vm1 = vcmp.gt.s32.totalorder %v3572_v18, 0  ;;  %vm2458_vm2 = vcmp.eq.s32.totalorder %v11068_v49, 0  ;;  %v3143_v42 = vadd.s32 536870912, %v11074_v53 }
 0x1be   : > { %v3350_v15 = vor.u32 %v3349_v24, %v3348_v44  ;;  %v3329_v46 = vand.u32 8388607, %v15151_v35  ;;  %vm3357_vm3 = vcmp.lt.s32.totalorder %v11088_v23, 4  ;;  %v2689_v31 = vsel %vm2604_vm13, %v2688_v4, %v10710_v17 }
 0x1bf   : > { %vm8186_vm4 = vcmp.lt.s32.totalorder %v8185_v5, 0  ;;  %v3353_v0 = vor.u32 %v3352_v28, %v3351_v63  ;;  %v3574_v38 = vsel %vm3573_vm1, %v3572_v18, 0  ;;  %v2686_v14 = vxor.u32 2147483648, %v2685_v34 }
 0x1c0   : > { %v11120_v8 = vpop.eup %8730  ;;  %v11122_v6 = vor.u32 %v3340_v55, %v3339_v41  ;;  %v11124_v25 = vor.u32 %v3343_v21, %v3342_v56  ;;  %v3347_v13 = vor.u32 %v3346_v60, %v3345_v58  ;;  %v11128_v24 = vshrl.u32 %v3143_v42, 30 }
 0x1c1   : > { %v11126_v44 = vpop.eup %8732  ;;  %vm3354_vm5 = vcmp.lt.s32.totalorder %v11088_v23, 1  ;;  %vm3356_vm6 = vcmp.lt.s32.totalorder %v11088_v23, 3  ;;  %v3363_v17 = vsel %vm3357_vm3, %v3350_v15, 920167782  ;;  %v11134_v4 = vsel %vm8186_vm4, 0, %v8185_v5 }
 0x1c2   : > { %v3330_v39 = vor.u32 8388608, %v3329_v46  ;;  %v3576_v41 = vand.u32 31, %v3574_v38  ;;  %v2462_v56 = vxor.u32 2147483648, %v11120_v8  ;;  %v11140_v58 = vsel %vm11081_vm14, 0, %v2689_v31 }
 0x1c3   : > { %v3367_v28 = vsel %vm3357_vm3, %v3353_v0, 1326507024  ;;  %v15154_v55 = vxor.u32 2147483648, %v11126_v44  ;;  %vm3355_vm7 = vcmp.lt.s32.totalorder %v11088_v23, 2  ;;  %v3362_v5 = vsel %vm3354_vm5, %v11122_v6, %v11124_v25 }
 0x1c4   : > { %v3364_v21 = vsel %vm3356_vm6, %v3347_v13, %v3363_v17  ;;  %v2687_v60 = vsel %vm2604_vm13, %v2686_v14, %v2685_v34  ;;  %v2918_v42 = vsub.s32 4294967266, %v11134_v4  ;;  %v3145_v31 = vshll.u32 %v11128_v24, 30 }
 0x1c5   : > { %v3366_v0 = vsel %vm3354_vm5, %v11124_v25, %v3347_v13  ;;  %v3368_v35 = vsel %vm3356_vm6, %v3350_v15, %v3367_v28  ;;  %v11163_v63 = vshll.u32 %v3330_v39, 8  ;;  %v11165_v18 = vsub.s32 32, %v3576_v41 }
 0x1c6   : > { %v11170_v34 = vsel %vm2461_vm15, %v2462_v56, %v11126_v44  ;;  %v11175_v14 = vsel %vm2564_vm0, %v2462_v56, %v11126_v44  ;;  %v11178_v17 = vadd.s32 3, %v11140_v58  ;;  %v3365_v15 = vsel %vm3355_vm7, %v3362_v5, %v3364_v21 }
 0x1c7   : > { %v11187_v39 = vsel %vm2458_vm2, %v11120_v8, %v15154_v55  ;;  %vm2561_vm8 = vcmp.eq.s32.totalorder %v11052_v12, 0  ;;  %v2690_v56 = vsel %vm11081_vm14, %v10252_v40, %v2687_v60  ;;  %v2898_v28 = vadd.s32 %v10777_v27, %v10787_v10 }
 0x1c8   : > { %v2914_v46 = vsub.s32 32, %v11134_v4  ;;  %v2919_v37 = vadd.s32 127, %v2918_v42  ;;  %v11197_v5 = vsub.s32 %v11074_v53, %v3145_v31  ;;  %v3338_v21 = vshrl.u32 %v15152_v22, %v11050_v51 }
 0x1c9   : > { %v3369_v16 = vsel %vm3355_vm7, %v3366_v0, %v3368_v35  ;;  %v11204_v30 = vmul.u32.u64.low %v11163_v63, %v3365_v15  ;;  %v11205_v20 = vmul.u32.u64.high %v11163_v63, %v3365_v15, %v11204_v30  ;;  %v3588_v47 = vshll.u32 %v15256_v52, %v3576_v41 }
 0x1ca   : > { %v3589_v27 = vshrl.u32 %v15216_v29, %v11165_v18  ;;  %vm2457_vm9 = vcmp.lt.s32.totalorder %v11068_v49, 2  ;;  %v15158_v10 = vand.u32 2147483647, %v10977_v62  ;;  %v11213_v53 = vshrl.u32 %v3574_v38, 5 }
 0x1cb   : > { %v3591_v51 = vshll.u32 %v15216_v29, %v3576_v41  ;;  %v3592_v35 = vshrl.u32 %v15217_v59, %v11165_v18  ;;  %vm2560_vm10 = vcmp.lt.s32.totalorder %v11052_v12, 2  ;;  %v3579_v31 = vshll.u32 %v15152_v22, %v3576_v41 }
 0x1cc   : > { %v11220_v60 = vmul.u32.u64.low %v11163_v63, %v3369_v16  ;;  %v11221_v42 = vmul.u32.u64.high %v11163_v63, %v3369_v16, %v11220_v60  ;;  %v3580_v0 = vshrl.u32 %v15218_v54, %v11165_v18  ;;  %v3582_v15 = vshll.u32 %v15218_v54, %v3576_v41 }
 0x1cd   : > { %v3583_v38 = vshrl.u32 %v15219_v33, %v11165_v18  ;;  %v3585_v19 = vshll.u32 %v15219_v33, %v3576_v41  ;;  %v3586_v3 = vshrl.u32 %v15256_v52, %v11165_v18  ;;  %8734 = vcosq.f32 %v2690_v56 }
 0x1ce   : > { %v3148_v50 = vsub.s32 0, %v11197_v5  ;;  %v3359_v16 = vsel %vm3357_vm3, %v3347_v13, 2102212464  ;;  %v3590_v60 = vor.u32 %v3589_v27, %v3588_v47  ;;  %vm2454_vm11 = vweird.f32 %v10101_v26 }
 0x1cf   : > { %8736 = vsinq.f32 %v2690_v56  ;;  %v3569_v22 = vand.u32 8388607, %v15158_v10  ;;  %v3593_v55 = vor.u32 %v3592_v35, %v3591_v51  ;;  %vm3597_vm12 = vcmp.lt.s32.totalorder %v11213_v53, 4 }
 0x1d0   : > { %v2915_v41 = vshll.u32 %v10985_v36, %v11134_v4  ;;  %v2916_v48 = vshrl.u32 %v2898_v28, %v2914_v46  ;;  %v2920_v33 = vshll.u32 %v2919_v37, 23  ;;  %v3358_v13 = vsel %vm3354_vm5, %v3338_v21, %v11122_v6 }
 0x1d1   : > { %v3360_v56 = vsel %vm3356_vm6, %v11124_v25, %v3359_v16  ;;  %v11251_v47 = vor.u32 %v3580_v0, %v3579_v31  ;;  %v11253_v27 = vor.u32 %v3583_v38, %v3582_v15  ;;  %v3587_v51 = vor.u32 %v3586_v3, %v3585_v19 }
 0x1d2   : > { %v8200_v35 = vmin.u32 %v3148_v50, %v11197_v5  ;;  %vm3594_vm13 = vcmp.lt.s32.totalorder %v11213_v53, 1  ;;  %vm3596_vm14 = vcmp.lt.s32.totalorder %v11213_v53, 3  ;;  %v3603_v36 = vsel %vm3597_vm12, %v3590_v60, 920167782 }
 0x1d3   : > { %v15300_v37 = vxor.u32 2147483648, %v11126_v44  ;;  %v3570_v25 = vor.u32 8388608, %v3569_v22  ;;  %v3607_v4 = vsel %vm3597_vm12, %v3593_v55, 1326507024  ;;  %v11268_v3 = vmul.f32 0.0023713738, %v9802_v57 }
 0x1d4   : > { %v2917_v50 = vor.u32 %v2916_v48, %v2915_v41  ;;  %v2921_v19 = vor.u32 4788187, %v2920_v33  ;;  %v3361_v44 = vsel %vm3355_vm7, %v3358_v13, %v3360_v56  ;;  %v3380_v46 = vadd.s32 1, %v11205_v20 }
 0x1d5   : > { %v2563_v6 = vsel %vm2561_vm8, %v11120_v8, %v15300_v37  ;;  %vm3379_vm15 = vc.u32 %v11221_v42, %v11204_v30  ;;  %vm3595_vm0 = vcmp.lt.s32.totalorder %v11213_v53, 2  ;;  %v3602_v22 = vsel %vm3594_vm13, %v11251_v47, %v11253_v27 }
 0x1d6   : > { %v3604_v33 = vsel %vm3596_vm14, %v3587_v51, %v3603_v36  ;;  %v2464_v57 = vsel %vm2457_vm9, %v11187_v39, %v11170_v34  ;;  %v3150_v48 = vclz %v8200_v35  ;;  %v3606_v23 = vsel %vm3594_vm13, %v11253_v27, %v3587_v51 }
 0x1d7   : > { %v3608_v8 = vsel %vm3596_vm14, %v3590_v60, %v3607_v4  ;;  %v2567_v55 = vsel %vm2560_vm10, %v2563_v6, %v11175_v14  ;;  %v3377_v28 = vmul.u32 %v11163_v63, %v3361_v44  ;;  %v11297_v21 = vshll.u32 %v3570_v25, 8 }
 0x1d8   : > { %v3805_v31 = vand.u32 2139095040, %v11268_v3  ;;  %v3290_v49 = vstv %s11236_s5  ;;  %v3381_v39 = vsel %vm3379_vm15, %v3380_v46, %v11205_v20  ;;  %v3605_v0 = vsel %vm3595_vm0, %v3602_v22, %v3604_v33  ;;  %s11966_s5 = sld [smem:[#allocation2 + $0x18f]] }
 0x1d9   : > { %v11306_v15 = vand.u32 3, %v11140_v58  ;;  %vm2844_vm1 = vcmp.lt.s32.totalorder %v10429_v7, 0  ;;  %v2922_v12 = vand.u32 2147483647, %v2921_v19  ;;  %v2924_v63 = vcvt.s32.f32 %v2917_v50 }
 0x1da   : > { %v3609_v14 = vsel %vm3595_vm0, %v3606_v23, %v3608_v8  ;;  %v2465_v38 = vsel %vm2454_vm11, nan, %v2464_v57  ;;  %v2568_v20 = vsel %vm2454_vm11, nan, %v2567_v55  ;;  %v11316_v16 = vand.u32 3, %v11178_v17  ;;  %v11318_v60 = vpop.eup %8734 }
 0x1db   : > { %v8201_v58 = vadd.s32 4294967294, %v3150_v48  ;;  %v11320_v41 = vadd.s32 %v3381_v39, %v3377_v28  ;;  %v11323_v13 = vmul.u32.u64.low %v11297_v21, %v3605_v0  ;;  %v11324_v56 = vmul.u32.u64.high %v11297_v21, %v3605_v0, %v11323_v13 }
 0x1dc   : > { %v3806_v35 = vshrl.u32 %v3805_v31, 23  ;;  %v8737_v36 = vpop.eup %8736  ;;  %v15301_v26 = vmov 683565275   ;;  %v11331_v17 = vmul.u32.u64.low %v11297_v21, %v3609_v14  ;;  %v11332_v25 = vmul.u32.u64.high %v11297_v21, %v3609_v14, %v11331_v17 }
 0x1dd   : > { %v3578_v6 = vshrl.u32 %v15301_v26, %v11165_v18  ;;  %v15302_v4 = vstv %s10544_s14  ;;  %vm2801_vm2 = vcmp.eq.s32.totalorder %v11306_v15, 0  ;;  %vm2804_vm3 = vcmp.eq.s32.totalorder %v11306_v15, 2  ;;  %s11402_s14 = sld [smem:[#allocation2 + $0x18c]] }
 0x1de   : > { %v2571_v50 = vmul.f32 %v15302_v4, %v2465_v38  ;;  %v15303_v19 = vand.u32 2147483647, %v10429_v7  ;;  %v2925_v46 = vmul.f32 %v2924_v63, %v2922_v12  ;;  %v3599_v18 = vsel %vm3597_vm12, %v3587_v51, 2102212464 }
 0x1df   : > { %v15306_v22 = vstv %s10557_s26  ;;  %vm2698_vm5 = vcmp.eq.s32.totalorder %v11316_v16, 0  ;;  %vm2701_vm6 = vcmp.eq.s32.totalorder %v11316_v16, 2  ;;  %v2928_v57 = vsub.s32 4, %v10927_v43  ;;  %s11410_s26 = sld [smem:[#allocation2 + $0x1ac]] }
 0x1e0   : > { %vm11340_vm4 = vcmp.le.f32.partialorder %v15303_v19, 0.7853982  ;;  %v2575_v33 = vmul.f32 %v15306_v22, %v2568_v20  ;;  %v15307_v48 = vstv %s10580_s15  ;;  %vm2697_vm7 = vcmp.lt.s32.totalorder %v11316_v16, 2  ;;  %s11427_s15 = sld [smem:[#allocation2 + $0xd]] }
 0x1e1   : > { %v2579_v23 = vmul.f32 %v15307_v48, %v2465_v38  ;;  %vm8202_vm8 = vcmp.lt.s32.totalorder %v8201_v58, 0  ;;  %v3383_v8 = vadd.s32 536870912, %v11320_v41  ;;  %v8247_v55 = vadd.s32 4294967169, %v3806_v35 }
 0x1e2   : > { %v15308_v28 = vstv %s10682_s16  ;;  %v15309_v31 = vstv %s10693_s17  ;;  %vm2800_vm9 = vcmp.lt.s32.totalorder %v11306_v15, 2  ;;  %v3598_v0 = vsel %vm3594_vm13, %v3578_v6, %v11251_v47  ;;  %s11433_s16 = sld [smem:[#allocation2 + $0x2d]] }
 0x1e3   : > { %v2583_v51 = vmul.f32 %v15308_v28, %v2568_v20  ;;  %v2587_v39 = vmul.f32 %v15309_v31, %v2465_v38  ;;  %v3600_v12 = vsel %vm3596_vm14, %v11253_v27, %v3599_v18  ;;  %v2572_v63 = vadd.f32 %v2571_v50, %v11062_v9  ;;  %s11541_s17 = sld [smem:[#allocation2 + $0x8d]] }
 0x1e4   : > { %v15310_v14 = vstv %s10698_s18  ;;  %v15311_v4 = vstv %s10704_s19  ;;  %v2926_v19 = vxor.u32 2147483648, %v2925_v46  ;;  %vm2694_vm10 = vweird.f32 %v10252_v40  ;;  %s11543_s18 = sld [smem:[#allocation2 + $0xad]] }
 0x1e5   : > { %v2591_v17 = vmul.f32 %v15310_v14, %v2568_v20  ;;  %v2595_v35 = vmul.f32 %v15311_v4, %v2465_v38  ;;  %v2699_v22 = vxor.u32 2147483648, %v8737_v36  ;;  %v2702_v48 = vxor.u32 2147483648, %v11318_v60  ;;  %s11565_s19 = sld [smem:[#allocation2 + $0x10d]] }
 0x1e6   : > { %v2929_v47 = vsel %vm2844_vm1, %v2928_v57, %v10927_v43  ;;  %v11377_v6 = vsel %vm8202_vm8, 0, %v8201_v58  ;;  %v11383_v9 = vshrl.u32 %v3383_v8, 30  ;;  %v3601_v27 = vsel %vm3595_vm0, %v3598_v0, %v3600_v12 }
 0x1e7   : > { %v3620_v38 = vadd.s32 1, %v11324_v56  ;;  %v3812_v50 = vadd.s32 1, %v8247_v55  ;;  %v2580_v18 = vadd.f32 %v2579_v23, %v11064_v2  ;;  %v2588_v28 = vadd.f32 %v2587_v39, %v11066_v11 }
 0x1e8   : > { %v15312_v43 = vstv %s10724_s20  ;;  %vm3619_vm11 = vc.u32 %v11332_v25, %v11323_v13  ;;  %v11396_v58 = vadd.f32 %v2575_v33, %v2572_v63  ;;  %v2596_v8 = vadd.f32 %v2595_v35, %v11070_v1  ;;  %s11578_s20 = sld [smem:[#allocation2 + $0x12d]] }
 0x1e9   : > { %v2599_v57 = vmul.f32 %v15312_v43, %v2568_v20  ;;  %v2927_v53 = vsel %vm2844_vm1, %v2926_v19, %v2925_v46  ;;  %v3158_v55 = vsub.s32 4294967266, %v11377_v6  ;;  %v2703_v2 = vsel %vm2701_vm6, %v2702_v48, %v8737_v36 }
 0x1ea   : > { %v2806_v11 = vsel %vm2804_vm3, %v2702_v48, %v8737_v36  ;;  %v2931_v20 = vsel %vm11340_vm4, 0, %v2929_v47  ;;  %v3617_v1 = vmul.u32 %v11297_v21, %v3601_v27  ;;  %v2700_v46 = vsel %vm2698_vm5, %v11318_v60, %v2699_v22 }
 0x1eb   : > { %v3385_v33 = vshll.u32 %v11383_v9, 30  ;;  %v3621_v23 = vsel %vm3619_vm11, %v3620_v38, %v11324_v56  ;;  %vm3813_vm12 = vcmp.gt.s32.totalorder %v3812_v50, 0  ;;  %v2803_v36 = vsel %vm2801_vm2, %v11318_v60, %v2699_v22  ;;  %v8263_v22 = vld [vmem:[%s8959_s29 + $0x10] sm:$0xff] }
 0x1ec   : > { %v2930_v31 = vsel %vm11340_vm4, %v10429_v7, %v2927_v53  ;;  %v3138_v21 = vadd.s32 %v10988_v32, %v10996_v61  ;;  %v3154_v39 = vsub.s32 32, %v11377_v6  ;;  %v2584_v0 = vadd.f32 %v2583_v51, %v2580_v18 }
 0x1ed   : > { %v11429_v56 = vadd.f32 %v2591_v17, %v2588_v28  ;;  %v11431_v12 = vadd.f32 %v2599_v57, %v2596_v8  ;;  %v3159_v60 = vadd.s32 127, %v3158_v55  ;;  %v2704_v44 = vsel %vm2697_vm7, %v2700_v46, %v2703_v2 }
 0x1ee   : > { %v11438_v32 = vadd.s32 %v3621_v23, %v3617_v1  ;;  %v3814_v61 = vsel %vm3813_vm12, %v3812_v50, 0  ;;  %v2807_v51 = vsel %vm2800_vm9, %v2803_v36, %v2806_v11  ;;  %8738 = vcosq.f32 %v2930_v31 }
 0x1ef   : > { %v2935_v14 = vadd.s32 3, %v2931_v20  ;;  %v11443_v17 = vsub.s32 %v11320_v41, %v3385_v33  ;;  %v3155_v4 = vshll.u32 %v11197_v5, %v11377_v6  ;;  %v3156_v35 = vshrl.u32 %v3138_v21, %v3154_v39 }
 0x1f0   : > { %v2705_v15 = vsel %vm2694_vm10, nan, %v2704_v44  ;;  %8740 = vsinq.f32 %v2930_v31  ;;  %v3160_v48 = vshll.u32 %v3159_v60, 23  ;;  %v3816_v47 = vand.u32 31, %v3814_v61 }
 0x1f1   : > { %v2808_v41 = vsel %vm2694_vm10, nan, %v2807_v51  ;;  %v3623_v27 = vadd.s32 536870912, %v11438_v32  ;;  %v11457_v38 = vand.u32 3, %v2935_v14  ;;  %v11459_v50 = vand.u32 3, %v2931_v20 }
 0x1f2   : > { %v3388_v18 = vsub.s32 0, %v11443_v17  ;;  %v11462_v28 = vmul.f32 100.0, %v8263_v22  ;;  %v15313_v43 = vstv %s10729_s21  ;;  %v15314_v57 = vstv %s10749_s1  ;;  %s11589_s21 = sld [smem:[#allocation2 + $0x18d]] }
 0x1f3   : > { %v2811_v40 = vmul.f32 %v15313_v43, %v2705_v15  ;;  %v2819_v8 = vmul.f32 %v15314_v57, %v2705_v15  ;;  %v3157_v53 = vor.u32 %v3156_v35, %v3155_v4  ;;  %v15315_v2 = vstv %s10741_s22  ;;  %s11601_s22 = sld [smem:[#allocation2 + $0x1ad]] }
 0x1f4   : > { %v2815_v11 = vmul.f32 %v15315_v2, %v2808_v41  ;;  %v3161_v1 = vor.u32 4788187, %v3160_v48  ;;  %v11472_v33 = vsub.s32 32, %v3816_v47  ;;  %v15316_v20 = vstv %s10755_s2  ;;  %s11606_s1 = sld [smem:[#allocation2 + $0xe]] }
 0x1f5   : > { %v11476_v23 = vmul.f32 %v15316_v20, %v2808_v41  ;;  %v15317_v36 = vstv %s10765_s12  ;;  %v15318_v21 = vstv %s10806_s13  ;;  %vm3084_vm13 = vcmp.lt.s32.totalorder %v10632_v45, 0  ;;  %s11796_s2 = sld [smem:[#allocation2 + $0x8e]] }
 0x1f6   : > { %v2827_v31 = vmul.f32 %v15317_v36, %v2705_v15  ;;  %v11482_v39 = vmul.f32 %v15318_v21, %v2808_v41  ;;  %v11485_v60 = vshrl.u32 %v3623_v27, 30  ;;  %v15319_v44 = vstv %s10942_s25  ;;  %s11803_s12 = sld [smem:[#allocation2 + $0x2e]] }
 0x1f7   : > { %v2835_v51 = vmul.f32 %v15319_v44, %v2705_v15  ;;  %v15320_v14 = vstv %s11010_s27  ;;  %v8216_v35 = vmin.u32 %v3388_v18, %v11443_v17  ;;  %v4047_v22 = vand.u32 2139095040, %v11462_v28  ;;  %s11812_s13 = sld [smem:[#allocation2 + $0xae]] }
 0x1f8   : > { %v11491_v4 = vmul.f32 %v15320_v14, %v2808_v41  ;;  %v2812_v48 = vadd.f32 %v2811_v40, %v11396_v58  ;;  %v2820_v43 = vadd.f32 %v2819_v8, %v2584_v0  ;;  %v3164_v57 = vcvt.s32.f32 %v3157_v53  ;;  %s11828_s25 = sld [smem:[#allocation2 + $0x10e]] }
 0x1f9   : > { %v3168_v2 = vsub.s32 4, %v11128_v24  ;;  %v3162_v20 = vand.u32 2147483647, %v3161_v1  ;;  %v15159_v36 = vand.u32 2147483647, %v11268_v3  ;;  %v3828_v27 = vshll.u32 %v15256_v52, %v3816_v47  ;;  %s11839_s27 = sld [smem:[#allocation2 + $0x12e]] }
 0x1fa   : > { %v3829_v15 = vshrl.u32 %v15216_v29, %v11472_v33  ;;  %vm2938_vm14 = vcmp.eq.s32.totalorder %v11457_v38, 0  ;;  %vm2941_vm15 = vcmp.eq.s32.totalorder %v11457_v38, 2  ;;  %v15321_v41 = vand.u32 2147483647, %v10632_v45 }
 0x1fb   : > { %v3625_v0 = vshll.u32 %v11485_v60, 30  ;;  %v11510_v18 = vshrl.u32 %v3814_v61, 5  ;;  %v3831_v40 = vshll.u32 %v15216_v29, %v3816_v47  ;;  %v3832_v8 = vshrl.u32 %v15217_v59, %v11472_v33  ;;  %v8739_v14 = vpop.eup %8738 }
 0x1fc   : > { %vm11505_vm0 = vcmp.le.f32.partialorder %v15321_v41, 0.7853982  ;;  %v3390_v53 = vclz %v8216_v35  ;;  %v3819_v1 = vshll.u32 %v15301_v26, %v3816_v47  ;;  %v3822_v21 = vshll.u32 %v15218_v54, %v3816_v47 }
 0x1fd   : > { %v4048_v44 = vshrl.u32 %v4047_v22, 23  ;;  %vm3041_vm1 = vcmp.eq.s32.totalorder %v11459_v50, 0  ;;  %vm3044_vm2 = vcmp.eq.s32.totalorder %v11459_v50, 2  ;;  %v3820_v61 = vshrl.u32 %v15218_v54, %v11472_v33  ;;  %v8741_v34 = vpop.eup %8740 }
 0x1fe   : > { %v15324_v41 = vmov 2131351028   ;;  %v3826_v35 = vshrl.u32 %v15256_v52, %v11472_v33  ;;  %v2828_v6 = vadd.f32 %v2827_v31, %v11429_v56  ;;  %v2836_v22 = vadd.f32 %v2835_v51, %v11431_v12 }
 0x1ff   : > { %v3823_v46 = vshrl.u32 %v15324_v41, %v11472_v33  ;;  %v3825_v55 = vshll.u32 %v15324_v41, %v3816_v47  ;;  %v3165_v19 = vmul.f32 %v3164_v57, %v3162_v20  ;;  %v3830_v63 = vor.u32 %v3829_v15, %v3828_v27 }
 0x200   : > { %vm2937_vm3 = vcmp.lt.s32.totalorder %v11457_v38, 2  ;;  %v11530_v5 = vsub.s32 %v11438_v32, %v3625_v0  ;;  %v3809_v16 = vand.u32 8388607, %v15159_v36  ;;  %v3833_v10 = vor.u32 %v3832_v8, %v3831_v40 }
 0x201   : > { %vm3837_vm4 = vcmp.lt.s32.totalorder %v11510_v18, 4  ;;  %v11535_v47 = vadd.f32 %v2815_v11, %v2812_v48  ;;  %v2942_v37 = vxor.u32 2147483648, %v8739_v14  ;;  %vm3040_vm5 = vcmp.lt.s32.totalorder %v11459_v50, 2 }
 0x202   : > { %v3169_v56 = vsel %vm3084_vm13, %v3168_v2, %v11128_v24  ;;  %v8217_v12 = vadd.s32 4294967294, %v3390_v53  ;;  %v11545_v32 = vor.u32 %v3820_v61, %v3819_v1  ;;  %v11547_v31 = vor.u32 %v3823_v46, %v3822_v21 }
 0x203   : > { %v3827_v51 = vor.u32 %v3826_v35, %v3825_v55  ;;  %v8264_v57 = vadd.s32 4294967169, %v4048_v44  ;;  %v2939_v11 = vxor.u32 2147483648, %v8741_v34  ;;  %vm3834_vm6 = vcmp.lt.s32.totalorder %v11510_v18, 1 }
 0x204   : > { %vm3836_vm7 = vcmp.lt.s32.totalorder %v11510_v18, 3  ;;  %v3843_v48 = vsel %vm3837_vm4, %v3830_v63, 920167782  ;;  %vm2934_vm8 = vweird.f32 %v10429_v7  ;;  %v3166_v24 = vxor.u32 2147483648, %v3165_v19 }
 0x205   : > { %v3628_v2 = vsub.s32 0, %v11530_v5  ;;  %v3810_v20 = vor.u32 8388608, %v3809_v16  ;;  %v3847_v46 = vsel %vm3837_vm4, %v3833_v10, 1326507024  ;;  %v11558_v55 = vadd.f32 %v11476_v23, %v2820_v43 }
 0x206   : > { %v11561_v27 = vadd.f32 %v11482_v39, %v2828_v6  ;;  %v3171_v15 = vsel %vm11505_vm0, 0, %v3169_v56  ;;  %vm8218_vm9 = vcmp.lt.s32.totalorder %v8217_v12, 0  ;;  %vm3835_vm10 = vcmp.lt.s32.totalorder %v11510_v18, 2 }
 0x207   : > { %v3842_v16 = vsel %vm3834_vm6, %v11545_v32, %v11547_v31  ;;  %v3844_v10 = vsel %vm3836_vm7, %v3827_v51, %v3843_v48  ;;  %v4054_v23 = vadd.s32 1, %v8264_v57  ;;  %v2940_v6 = vsel %vm2938_vm14, %v8739_v14, %v2939_v11 }
 0x208   : > { %v2943_v39 = vsel %vm2941_vm15, %v2942_v37, %v8741_v34  ;;  %v3846_v43 = vsel %vm3834_vm6, %v11547_v31, %v3827_v51  ;;  %v3848_v0 = vsel %vm3836_vm7, %v3830_v63, %v3847_v46  ;;  %v3167_v40 = vsel %vm3084_vm13, %v3166_v24, %v3165_v19 }
 0x209   : > { %v11587_v8 = vsel %vm8218_vm9, 0, %v8217_v12  ;;  %v8232_v53 = vmin.u32 %v3628_v2, %v11530_v5  ;;  %v11592_v1 = vshll.u32 %v3810_v20, 8  ;;  %v11595_v21 = vadd.f32 %v11491_v4, %v2836_v22 }
 0x20a   : > { %v3043_v44 = vsel %vm3041_vm1, %v8739_v14, %v2939_v11  ;;  %v3046_v63 = vsel %vm3044_vm2, %v2942_v37, %v8741_v34  ;;  %v3845_v19 = vsel %vm3835_vm10, %v3842_v16, %v3844_v10  ;;  %v3175_v61 = vadd.s32 3, %v3171_v15 }
 0x20b   : > { %v3538_v35 = vstv %s11541_s17  ;;  %v3849_v56 = vsel %vm3835_vm10, %v3846_v43, %v3848_v0  ;;  %vm4055_vm11 = vcmp.gt.s32.totalorder %v4054_v23, 0  ;;  %v2944_v4 = vsel %vm2937_vm3, %v2940_v6, %v2943_v39  ;;  %s12239_s17 = sld [smem:[#allocation2 + $0x11]] }
 0x20c   : > { %v3170_v34 = vsel %vm11505_vm0, %v10632_v45, %v3167_v40  ;;  %v3398_v37 = vsub.s32 4294967266, %v11587_v8  ;;  %v3542_v14 = vstv %s11543_s18  ;;  %v3047_v22 = vsel %vm3040_vm5, %v3043_v44, %v3046_v63  ;;  %s12245_s18 = sld [smem:[#allocation2 + $0x91]] }
 0x20d   : > { %v3630_v12 = vclz %v8232_v53  ;;  %v11620_v57 = vmul.u32.u64.low %v11592_v1, %v3845_v19  ;;  %v11621_v11 = vmul.u32.u64.high %v11592_v1, %v3845_v19, %v11620_v57  ;;  %v3818_v38 = vshrl.u32 %v15301_v26, %v11472_v33 }
 0x20e   : > { %v11627_v58 = vmul.u32.u64.low %v11592_v1, %v3849_v56  ;;  %v11628_v48 = vmul.u32.u64.high %v11592_v1, %v3849_v56, %v11627_v58  ;;  %v4056_v24 = vsel %vm4055_vm11, %v4054_v23, 0  ;;  %8742 = vcosq.f32 %v3170_v34 }
 0x20f   : > { %v11630_v50 = vand.u32 3, %v3175_v61  ;;  %v11632_v2 = vand.u32 3, %v3171_v15  ;;  %v3839_v20 = vsel %vm3837_vm4, %v3827_v51, 2102212464  ;;  %v2945_v33 = vsel %vm2934_vm8, nan, %v2944_v4 }
 0x210   : > { %v3378_v46 = vadd.s32 %v11204_v30, %v11221_v42  ;;  %v3394_v16 = vsub.s32 32, %v11587_v8  ;;  %v3399_v10 = vadd.s32 127, %v3398_v37  ;;  %v3048_v23 = vsel %vm2934_vm8, nan, %v3047_v22 }
 0x211   : > { %v8233_v6 = vadd.s32 4294967294, %v3630_v12  ;;  %v4058_v39 = vand.u32 31, %v4056_v24  ;;  %8744 = vsinq.f32 %v3170_v34  ;;  %v3838_v43 = vsel %vm3834_vm6, %v3818_v38, %v11545_v32 }
 0x212   : > { %v3840_v30 = vsel %vm3836_vm7, %v11547_v31, %v3839_v20  ;;  %v15325_v42 = vstv %s11030_s28  ;;  %v15326_v44 = vstv %s11045_s0  ;;  %v3395_v19 = vshll.u32 %v11443_v17, %v11587_v8  ;;  %s11845_s28 = sld [smem:[#allocation2 + $0x18e]] }
 0x213   : > { %v3051_v0 = vmul.f32 %v15325_v42, %v2945_v33  ;;  %v11658_v63 = vmul.f32 %v15326_v44, %v3048_v23  ;;  %v3396_v32 = vshrl.u32 %v3378_v46, %v3394_v16  ;;  %v3400_v61 = vshll.u32 %v3399_v10, 23  ;;  %s11869_s0 = sld [smem:[#allocation2 + $0xf]] }
 0x214   : > { %vm8234_vm12 = vcmp.lt.s32.totalorder %v8233_v6, 0  ;;  %v3841_v31 = vsel %vm3835_vm10, %v3838_v43, %v3840_v30  ;;  %v3860_v56 = vadd.s32 1, %v11621_v11  ;;  %v11665_v4 = vsub.s32 32, %v4058_v39 }
 0x215   : > { %v15327_v34 = vstv %s11039_s23  ;;  %v15328_v22 = vstv %s11047_s24  ;;  %v15329_v38 = vstv %s11056_s3  ;;  %vm3859_vm13 = vc.u32 %v11628_v48, %v11620_v57  ;;  %s11861_s23 = sld [smem:[#allocation2 + $0x1ae]] }
 0x216   : > { %v3059_v37 = vmul.f32 %v15327_v34, %v2945_v33  ;;  %v11671_v12 = vmul.f32 %v15328_v22, %v3048_v23  ;;  %v3067_v58 = vmul.f32 %v15329_v38, %v2945_v33  ;;  %v11678_v17 = vadd.f32 %v3051_v0, %v11535_v47  ;;  %s11874_s24 = sld [smem:[#allocation2 + $0x2f]] }
 0x217   : > { %v15330_v8 = vstv %s11085_s4  ;;  %v15331_v20 = vstv %s11091_s6  ;;  %v15332_v16 = vstv %s11109_s30  ;;  %v3397_v43 = vor.u32 %v3396_v32, %v3395_v19  ;;  %s11893_s3 = sld [smem:[#allocation2 + $0x8f]] }
 0x218   : > { %v11682_v18 = vmul.f32 %v15330_v8, %v3048_v23  ;;  %v11686_v46 = vmul.f32 %v15331_v20, %v2945_v33  ;;  %v11690_v10 = vmul.f32 %v15332_v16, %v3048_v23  ;;  %v3401_v30 = vor.u32 4788187, %v3400_v61  ;;  %s11899_s4 = sld [smem:[#allocation2 + $0xaf]] }
 0x219   : > { %v11692_v42 = vsel %vm8234_vm12, 0, %v8233_v6  ;;  %v3857_v44 = vmul.u32 %v11592_v1, %v3841_v31  ;;  %v3861_v34 = vsel %vm3859_vm13, %v3860_v56, %v11621_v11  ;;  %v4070_v47 = vshll.u32 %v15256_v52, %v4058_v39  ;;  %s11955_s6 = sld [smem:[#allocation2 + $0x10f]] }
 0x21a   : > { %v4071_v0 = vshrl.u32 %v15216_v29, %v11665_v4  ;;  %v11700_v22 = vmul.f32 0.4216965, %v11462_v28  ;;  %v15160_v33 = vand.u32 2147483647, %v11462_v28  ;;  %v11703_v23 = vshrl.u32 %v4056_v24, 5  ;;  %s11961_s30 = sld [smem:[#allocation2 + $0x12f]] }
 0x21b   : > { %v4073_v19 = vshll.u32 %v15216_v29, %v4058_v39  ;;  %v4074_v6 = vshrl.u32 %v15217_v59, %v11665_v4  ;;  %vm3178_vm14 = vcmp.eq.s32.totalorder %v11630_v50, 0  ;;  %vm3181_vm15 = vcmp.eq.s32.totalorder %v11630_v50, 2  ;;  %v8743_v31 = vpop.eup %8742 }
 0x21c   : > { %v3638_v1 = vsub.s32 4294967266, %v11692_v42  ;;  %v4061_v11 = vshll.u32 %v15301_v26, %v4058_v39  ;;  %v4064_v32 = vshll.u32 %v15218_v54, %v4058_v39  ;;  %v4067_v61 = vshll.u32 %v15324_v41, %v4058_v39 }
 0x21d   : > { %vm3284_vm0 = vcmp.eq.s32.totalorder %v11632_v2, 2  ;;  %v11715_v24 = vadd.s32 %v3861_v34, %v3857_v44  ;;  %v4062_v56 = vshrl.u32 %v15218_v54, %v11665_v4  ;;  %v4065_v38 = vshrl.u32 %v15324_v41, %v11665_v4  ;;  %v15333_v44 = vld [vmem:[#allocation13_spill] sm:$0xff] }
 0x21e   : > { %v4068_v8 = vshrl.u32 %v15256_v52, %v11665_v4  ;;  %v11724_v20 = vadd.f32 %v3059_v37, %v11558_v55  ;;  %vm3281_vm1 = vcmp.eq.s32.totalorder %v11632_v2, 0  ;;  %v3404_v39 = vcvt.s32.f32 %v3397_v43  ;;  %v8745_v7 = vpop.eup %8744 }
 0x21f   : > { %v4072_v16 = vor.u32 %v4071_v0, %v4070_v47  ;;  %v4287_v53 = vand.u32 2139095040, %v11700_v22  ;;  %vm3177_vm2 = vcmp.lt.s32.totalorder %v11630_v50, 2  ;;  %vm3324_vm3 = vcmp.lt.s32.totalorder %v15333_v44, 0 }
 0x220   : > { %v3402_v34 = vand.u32 2147483647, %v3401_v30  ;;  %v4051_v36 = vand.u32 8388607, %v15160_v33  ;;  %v4075_v40 = vor.u32 %v4074_v6, %v4073_v19  ;;  %vm4079_vm4 = vcmp.lt.s32.totalorder %v11703_v23, 4 }
 0x221   : > { %v3182_v55 = vxor.u32 2147483648, %v8743_v31  ;;  %v3618_v37 = vadd.s32 %v11323_v13, %v11332_v25  ;;  %v3634_v43 = vsub.s32 32, %v11692_v42  ;;  %v3639_v47 = vadd.s32 127, %v3638_v1 }
 0x222   : > { %vm3280_vm5 = vcmp.lt.s32.totalorder %v11632_v2, 2  ;;  %v3863_v0 = vadd.s32 536870912, %v11715_v24  ;;  %v11738_v51 = vor.u32 %v4062_v56, %v4061_v11  ;;  %v11740_v30 = vor.u32 %v4065_v38, %v4064_v32 }
 0x223   : > { %v4069_v33 = vor.u32 %v4068_v8, %v4067_v61  ;;  %vm3174_vm6 = vweird.f32 %v10632_v45  ;;  %v15334_v19 = vand.u32 2147483647, %v15333_v44  ;;  %vm4076_vm8 = vcmp.lt.s32.totalorder %v11703_v23, 1 }
 0x224   : > { %vm4078_vm9 = vcmp.lt.s32.totalorder %v11703_v23, 3  ;;  %v4085_v13 = vsel %vm4079_vm4, %v4072_v16, 920167782  ;;  %v4288_v25 = vshrl.u32 %v4287_v53, 23  ;;  %v3179_v1 = vxor.u32 2147483648, %v8745_v7 }
 0x225   : > { %vm11745_vm7 = vcmp.le.f32.partialorder %v15334_v19, 0.7853982  ;;  %v3405_v11 = vmul.f32 %v3404_v39, %v3402_v34  ;;  %v4052_v32 = vor.u32 8388608, %v4051_v36  ;;  %v4089_v61 = vsel %vm4079_vm4, %v4075_v40, 1326507024 }
 0x226   : > { %v3068_v56 = vadd.f32 %v3067_v58, %v11561_v27  ;;  %v3408_v38 = vsub.s32 4, %v11383_v9  ;;  %v3635_v8 = vshll.u32 %v11530_v5, %v11692_v42  ;;  %v3636_v19 = vshrl.u32 %v3618_v37, %v3634_v43 }
 0x227   : > { %v3640_v15 = vshll.u32 %v3639_v47, 23  ;;  %vm4077_vm10 = vcmp.lt.s32.totalorder %v11703_v23, 2  ;;  %v4084_v53 = vsel %vm4076_vm8, %v11738_v51, %v11740_v30  ;;  %v4086_v36 = vsel %vm4078_vm9, %v4069_v33, %v4085_v13 }
 0x228   : > { %v11766_v40 = vshrl.u32 %v3863_v0, 30  ;;  %v4088_v27 = vsel %vm4076_vm8, %v11740_v30, %v4069_v33  ;;  %v4090_v5 = vsel %vm4078_vm9, %v4072_v16, %v4089_v61  ;;  %v8280_v58 = vadd.s32 4294967169, %v4288_v25 }
 0x229   : > { %v3180_v42 = vsel %vm3178_vm14, %v8743_v31, %v3179_v1  ;;  %v3183_v39 = vsel %vm3181_vm15, %v3182_v55, %v8745_v7  ;;  %v3406_v34 = vxor.u32 2147483648, %v3405_v11  ;;  %v11777_v37 = vshll.u32 %v4052_v32, 8 }
 0x22a   : > { %v3076_v43 = vadd.f32 %v11686_v46, %v11595_v21  ;;  %v3286_v47 = vsel %vm3284_vm0, %v3182_v55, %v8745_v7  ;;  %v3409_v16 = vsel %vm3324_vm3, %v3408_v38, %v11383_v9  ;;  %v4087_v0 = vsel %vm4077_vm10, %v4084_v53, %v4086_v36 }
 0x22b   : > { %v3283_v13 = vsel %vm3281_vm1, %v8743_v31, %v3179_v1  ;;  %v3637_v25 = vor.u32 %v3636_v19, %v3635_v8  ;;  %v3641_v61 = vor.u32 4788187, %v3640_v15  ;;  %v4091_v32 = vsel %vm4077_vm10, %v4088_v27, %v4090_v5 }
 0x22c   : > { %v3056_v21 = vadd.f32 %v11658_v63, %v11678_v17  ;;  %v3184_v7 = vsel %vm3177_vm2, %v3180_v42, %v3183_v39  ;;  %v3865_v9 = vshll.u32 %v11766_v40, 30  ;;  %v4294_v46 = vadd.s32 1, %v8280_v58 }
 0x22d   : > { %v3407_v55 = vsel %vm3324_vm3, %v3406_v34, %v3405_v11  ;;  %v3411_v15 = vsel %vm11745_vm7, 0, %v3409_v16  ;;  %v11806_v31 = vmul.u32.u64.low %v11777_v37, %v4087_v0  ;;  %v11807_v1 = vmul.u32.u64.high %v11777_v37, %v4087_v0, %v11806_v31 }
 0x22e   : > { %v3287_v50 = vsel %vm3280_vm5, %v3283_v13, %v3286_v47  ;;  %v4060_v63 = vshrl.u32 %v15301_v26, %v11665_v4  ;;  %v11817_v17 = vmul.u32.u64.low %v11777_v37, %v4091_v32  ;;  %v11818_v11 = vmul.u32.u64.high %v11777_v37, %v4091_v32, %v11817_v17 }
 0x22f   : > { %v3185_v38 = vsel %vm3174_vm6, nan, %v3184_v7  ;;  %v3642_v8 = vand.u32 2147483647, %v3641_v61  ;;  %v3644_v19 = vcvt.s32.f32 %v3637_v25  ;;  %v4081_v53 = vsel %vm4079_vm4, %v4069_v33, 2102212464 }
 0x230   : > { %v3410_v2 = vsel %vm11745_vm7, %v15333_v44, %v3407_v55  ;;  %v3415_v36 = vadd.s32 3, %v3411_v15  ;;  %vm3564_vm11 = vcmp.lt.s32.totalorder %v10977_v62, 0  ;;  %v11831_v4 = vsub.s32 %v11715_v24, %v3865_v9 }
 0x231   : > { %vm4295_vm12 = vcmp.gt.s32.totalorder %v4294_v46, 0  ;;  %v3064_v27 = vadd.f32 %v11671_v12, %v11724_v20  ;;  %v3072_v33 = vadd.f32 %v11682_v18, %v3068_v56  ;;  %v3080_v5 = vadd.f32 %v11690_v10, %v3076_v43 }
 0x232   : > { %v11837_v6 = vand.u32 3, %v3411_v15  ;;  %v3288_v58 = vsel %vm3174_vm6, nan, %v3287_v50  ;;  %v3291_v24 = vmul.f32 %v3290_v49, %v3185_v38  ;;  %v4080_v12 = vsel %vm4076_vm8, %v4060_v63, %v11738_v51 }
 0x233   : > { %v4082_v18 = vsel %vm4078_vm9, %v11740_v30, %v4081_v53  ;;  %v15337_v10 = vstv %s11270_s8  ;;  %8746 = vcosq.f32 %v3410_v2  ;;  %v15338_v45 = vand.u32 2147483647, %v10977_v62  ;;  %s11993_s8 = sld [smem:[#allocation2 + $0x10]] }
 0x234   : > { %v3299_v20 = vmul.f32 %v15337_v10, %v3185_v38  ;;  %v3645_v56 = vmul.f32 %v3644_v19, %v3642_v8  ;;  %v4296_v51 = vsel %vm4295_vm12, %v4294_v46, 0  ;;  %v15341_v42 = vstv %s11381_s10  ;;  %s12079_s10 = sld [smem:[#allocation2 + $0x90]] }
 0x235   : > { %vm11857_vm13 = vcmp.le.f32.partialorder %v15338_v45, 0.7853982  ;;  %v3307_v39 = vmul.f32 %v15341_v42, %v3185_v38  ;;  %8748 = vsinq.f32 %v3410_v2  ;;  %v11866_v30 = vand.u32 3, %v3415_v36 }
 0x236   : > { %v3868_v34 = vsub.s32 0, %v11831_v4  ;;  %v15342_v43 = vstv %s11402_s14  ;;  %v3774_v16 = vstv %s11803_s12  ;;  %v4083_v0 = vsel %vm4077_vm10, %v4080_v12, %v4082_v18  ;;  %s12119_s14 = sld [smem:[#allocation2 + $0x110]] }
 0x237   : > { %v3315_v47 = vmul.f32 %v15342_v43, %v3185_v38  ;;  %v4102_v13 = vadd.s32 1, %v11807_v1  ;;  %v15343_v25 = vstv %s11243_s7  ;;  %v3778_v32 = vstv %s11796_s2  ;;  %s11968_s7 = sld [smem:[#allocation2 + $0x1af]] }
 0x238   : > { %v3295_v61 = vmul.f32 %v15343_v25, %v3288_v58  ;;  %vm4101_vm14 = vc.u32 %v11818_v11, %v11806_v31  ;;  %v4298_v7 = vand.u32 31, %v4296_v51  ;;  %v3292_v9 = vadd.f32 %v3291_v24, %v3056_v21  ;;  %s12320_s2 = sld [smem:[#allocation2 + $0x1b1]] }
 0x239   : > { %v3300_v46 = vadd.f32 %v3299_v20, %v3064_v27  ;;  %v15344_v55 = vstv %s11379_s9  ;;  %v3646_v50 = vxor.u32 2147483648, %v3645_v56  ;;  %v3308_v23 = vadd.f32 %v3307_v39, %v3072_v33  ;;  %s12013_s9 = sld [smem:[#allocation2 + $0x30]] }
 0x23a   : > { %v3303_v15 = vmul.f32 %v15344_v55, %v3288_v58  ;;  %v15345_v63 = vstv %s11392_s11  ;;  %v8248_v38 = vmin.u32 %v3868_v34, %v11831_v4  ;;  %v4099_v8 = vmul.u32 %v11777_v37, %v4083_v0  ;;  %s12090_s11 = sld [smem:[#allocation2 + $0xb0]] }
 0x23b   : > { %v3311_v17 = vmul.f32 %v15345_v63, %v3288_v58  ;;  %v3316_v19 = vadd.f32 %v3315_v47, %v3080_v5  ;;  %v15346_v53 = vstv %s11410_s26  ;;  %v3648_v36 = vsub.s32 4, %v11485_v60  ;;  %s12127_s26 = sld [smem:[#allocation2 + $0x130]] }
 0x23c   : > { %v3319_v2 = vmul.f32 %v15346_v53, %v3288_v58  ;;  %v4103_v21 = vsel %vm4101_vm14, %v4102_v13, %v11807_v1  ;;  %v3782_v27 = vstv %s11812_s13  ;;  %v3786_v24 = vstv %s11828_s25  ;;  %s12350_s12 = sld [smem:[#allocation2 + $0x12]] }
 0x23d   : > { %v3790_v33 = vstv %s11839_s27  ;;  %v11901_v12 = vsub.s32 32, %v4298_v7  ;;  %v11903_v37 = vadd.f32 %v3295_v61, %v3292_v9  ;;  %v11905_v5 = vadd.f32 %v3303_v15, %v3300_v46  ;;  %s12358_s13 = sld [smem:[#allocation2 + $0x32]] }
 0x23e   : > { %v3647_v58 = vsel %vm3564_vm11, %v3646_v50, %v3645_v56  ;;  %v3794_v18 = vstv %s11845_s28  ;;  %v11910_v10 = vadd.f32 %v3311_v17, %v3308_v23  ;;  %v3870_v20 = vclz %v8248_v38  ;;  %s12360_s25 = sld [smem:[#allocation2 + $0x92]] }
 0x23f   : > { %v11913_v45 = vadd.s32 %v4103_v21, %v4099_v8  ;;  %v11915_v42 = vadd.f32 %v3319_v2, %v3316_v19  ;;  %vm3418_vm15 = vcmp.eq.s32.totalorder %v11866_v30, 0  ;;  %vm3421_vm0 = vcmp.eq.s32.totalorder %v11866_v30, 2  ;;  %s12399_s27 = sld [smem:[#allocation2 + $0xb2]] }
 0x240   : > { %vm3521_vm1 = vcmp.eq.s32.totalorder %v11837_v6, 0  ;;  %vm3524_vm2 = vcmp.eq.s32.totalorder %v11837_v6, 2  ;;  %v3649_v56 = vsel %vm3564_vm11, %v3648_v36, %v11485_v60  ;;  %v3650_v43 = vsel %vm11857_vm13, %v10977_v62, %v3647_v58  ;;  %v8747_v46 = vpop.eup %8746  ;;  %s12551_s28 = sld [smem:[#allocation2 + $0x112]] }
 0x241   : > { %v4310_v47 = vshll.u32 %v15256_v52, %v4298_v7  ;;  %v4311_v0 = vshrl.u32 %v15216_v29, %v11901_v12  ;;  %v11933_v13 = vmul.f32 0.17782794, %v11462_v28  ;;  %v15161_v25 = vand.u32 2147483647, %v11700_v22 }
 0x242   : > { %v11936_v61 = vshrl.u32 %v4296_v51, 5  ;;  %v4313_v60 = vshll.u32 %v15216_v29, %v4298_v7  ;;  %v4314_v9 = vshrl.u32 %v15217_v59, %v11901_v12  ;;  %vm3417_vm3 = vcmp.lt.s32.totalorder %v11866_v30, 2  ;;  %v8749_v23 = vpop.eup %8748 }
 0x243   : > { %vm3520_vm4 = vcmp.lt.s32.totalorder %v11837_v6, 2  ;;  %v8249_v55 = vadd.s32 4294967294, %v3870_v20  ;;  %v4105_v15 = vadd.s32 536870912, %v11913_v45  ;;  %v4301_v50 = vshll.u32 %v15301_v26, %v4298_v7 }
 0x244   : > { %v4302_v51 = vshrl.u32 %v15218_v54, %v11901_v12  ;;  %v4304_v63 = vshll.u32 %v15218_v54, %v4298_v7  ;;  %v4305_v17 = vshrl.u32 %v15324_v41, %v11901_v12  ;;  %v4307_v38 = vshll.u32 %v15324_v41, %v4298_v7 }
 0x245   : > { %v4308_v8 = vshrl.u32 %v15256_v52, %v11901_v12  ;;  %v4312_v2 = vor.u32 %v4311_v0, %v4310_v47  ;;  %v4527_v36 = vand.u32 2139095040, %v11933_v13  ;;  %vm3414_vm5 = vweird.f32 %v15333_v44 }
 0x246   : > { %v3651_v21 = vsel %vm11857_vm13, 0, %v3649_v56  ;;  %v4291_v7 = vand.u32 8388607, %v15161_v25  ;;  %v4315_v58 = vor.u32 %v4314_v9, %v4313_v60  ;;  %vm4319_vm6 = vcmp.lt.s32.totalorder %v11936_v61, 4 }
 0x247   : > { %v3419_v20 = vxor.u32 2147483648, %v8749_v23  ;;  %v3422_v53 = vxor.u32 2147483648, %v8747_v46  ;;  %8750 = vcosq.f32 %v3650_v43  ;;  %vm8250_vm7 = vcmp.lt.s32.totalorder %v8249_v55, 0 }
 0x248   : > { %v11970_v47 = vshrl.u32 %v4105_v15, 30  ;;  %v11972_v49 = vor.u32 %v4302_v51, %v4301_v50  ;;  %v11974_v56 = vor.u32 %v4305_v17, %v4304_v63  ;;  %v4309_v0 = vor.u32 %v4308_v8, %v4307_v38 }
 0x249   : > { %vm4316_vm8 = vcmp.lt.s32.totalorder %v11936_v61, 1  ;;  %vm4318_vm9 = vcmp.lt.s32.totalorder %v11936_v61, 3  ;;  %v4325_v60 = vsel %vm4319_vm6, %v4312_v2, 920167782  ;;  %v4528_v9 = vshrl.u32 %v4527_v36, 23 }
 0x24a   : > { %8752 = vsinq.f32 %v3650_v43  ;;  %v3655_v25 = vadd.s32 3, %v3651_v21  ;;  %v4292_v19 = vor.u32 8388608, %v4291_v7  ;;  %v4329_v15 = vsel %vm4319_vm6, %v4315_v58, 1326507024 }
 0x24b   : > { %v3420_v50 = vsel %vm3418_vm15, %v8747_v46, %v3419_v20  ;;  %v3423_v51 = vsel %vm3421_vm0, %v3422_v53, %v8749_v23  ;;  %v3523_v63 = vsel %vm3521_vm1, %v8747_v46, %v3419_v20  ;;  %v3526_v17 = vsel %vm3524_vm2, %v3422_v53, %v8749_v23 }
 0x24c   : > { %v11991_v43 = vsel %vm8250_vm7, 0, %v8249_v55  ;;  %vm4317_vm10 = vcmp.lt.s32.totalorder %v11936_v61, 2  ;;  %v4324_v38 = vsel %vm4316_vm8, %v11972_v49, %v11974_v56  ;;  %v4326_v46 = vsel %vm4318_vm9, %v4309_v0, %v4325_v60 }
 0x24d   : > { %v4107_v23 = vshll.u32 %v11970_v47, 30  ;;  %v4328_v55 = vsel %vm4316_vm8, %v11974_v56, %v4309_v0  ;;  %v4330_v8 = vsel %vm4318_vm9, %v4312_v2, %v4329_v15  ;;  %v8296_v53 = vadd.s32 4294967169, %v4528_v9 }
 0x24e   : > { %v3424_v36 = vsel %vm3417_vm3, %v3420_v50, %v3423_v51  ;;  %v3527_v7 = vsel %vm3520_vm4, %v3523_v63, %v3526_v17  ;;  %v4026_v58 = vstv %s11955_s6  ;;  %v12015_v20 = vshll.u32 %v4292_v19, 8  ;;  %s12715_s6 = sld [smem:[#allocation2 + $0x33]] }
 0x24f   : > { %v3878_v60 = vsub.s32 4294967266, %v11991_v43  ;;  %v4030_v34 = vstv %s11961_s30  ;;  %v4327_v1 = vsel %vm4317_vm10, %v4324_v38, %v4326_v46  ;;  %v12022_v2 = vand.u32 3, %v3655_v25  ;;  %s12726_s30 = sld [smem:[#allocation2 + $0xb3]] }
 0x250   : > { %v12024_v9 = vand.u32 3, %v3651_v21  ;;  %v4331_v6 = vsel %vm4317_vm10, %v4328_v55, %v4330_v8  ;;  %v3425_v19 = vsel %vm3414_vm5, nan, %v3424_v36  ;;  %v3528_v15 = vsel %vm3414_vm5, nan, %v3527_v7 }
 0x251   : > { %v12034_v50 = vsub.s32 %v11913_v45, %v4107_v23  ;;  %v4534_v51 = vadd.s32 1, %v8296_v53  ;;  %v3858_v25 = vadd.s32 %v11620_v57, %v11628_v48  ;;  %v3874_v21 = vsub.s32 32, %v11991_v43 }
 0x252   : > { %v12040_v63 = vmul.u32.u64.low %v12015_v20, %v4327_v1  ;;  %v12041_v17 = vmul.u32.u64.high %v12015_v20, %v4327_v1, %v12040_v63  ;;  %v3879_v38 = vadd.s32 127, %v3878_v60  ;;  %v4300_v44 = vshrl.u32 %v15301_v26, %v11901_v12 }
 0x253   : > { %v12047_v45 = vmul.u32.u64.low %v12015_v20, %v4331_v6  ;;  %v12048_v46 = vmul.u32.u64.high %v12015_v20, %v4331_v6, %v12047_v45  ;;  %vm3761_vm11 = vcmp.eq.s32.totalorder %v12024_v9, 0  ;;  %vm3764_vm12 = vcmp.eq.s32.totalorder %v12024_v9, 2 }
 0x254   : > { %v8751_v23 = vpop.eup %8750  ;;  %v4321_v48 = vsel %vm4319_vm6, %v4309_v0, 2102212464  ;;  %vm3658_vm13 = vcmp.eq.s32.totalorder %v12022_v2, 0  ;;  %vm3661_vm14 = vcmp.eq.s32.totalorder %v12022_v2, 2  ;;  %v4110_v12 = vsub.s32 0, %v12034_v50 }
 0x255   : > { %vm4535_vm15 = vcmp.gt.s32.totalorder %v4534_v51, 0  ;;  %v15347_v1 = vstv %s11427_s15  ;;  %v15348_v8 = vstv %s11433_s16  ;;  %v3875_v36 = vshll.u32 %v11831_v4, %v11991_v43  ;;  %s12151_s15 = sld [smem:[#allocation2 + $0x190]] }
 0x256   : > { %v3531_v55 = vmul.f32 %v15347_v1, %v3425_v19  ;;  %v3535_v53 = vmul.f32 %v15348_v8, %v3528_v15  ;;  %vm3657_vm0 = vcmp.lt.s32.totalorder %v12022_v2, 2  ;;  %vm3760_vm1 = vcmp.lt.s32.totalorder %v12024_v9, 2  ;;  %s12223_s16 = sld [smem:[#allocation2 + $0x1b0]] }
 0x257   : > { %v8753_v7 = vpop.eup %8752  ;;  %v3876_v60 = vshrl.u32 %v3858_v25, %v3874_v21  ;;  %v3880_v6 = vshll.u32 %v3879_v38, 23  ;;  %v4320_v45 = vsel %vm4316_vm8, %v4300_v44, %v11972_v49  ;;  %v4322_v1 = vsel %vm4318_vm9, %v11974_v56, %v4321_v48 }
 0x258   : > { %v3539_v8 = vmul.f32 %v3538_v35, %v3425_v19  ;;  %v3543_v4 = vmul.f32 %v3542_v14, %v3528_v15  ;;  %v15349_v43 = vstv %s11565_s19  ;;  %v4536_v57 = vsel %vm4535_vm15, %v4534_v51, 0  ;;  %s12247_s19 = sld [smem:[#allocation2 + $0x31]] }
 0x259   : > { %v3547_v0 = vmul.f32 %v15349_v43, %v3425_v19  ;;  %v15350_v25 = vstv %s11578_s20  ;;  %v15351_v38 = vstv %s11589_s21  ;;  %v15352_v39 = vstv %s11601_s22  ;;  %s12259_s20 = sld [smem:[#allocation2 + $0xb1]] }
 0x25a   : > { %v3551_v21 = vmul.f32 %v15350_v25, %v3528_v15  ;;  %v3555_v30 = vmul.f32 %v15351_v38, %v3425_v19  ;;  %v3559_v49 = vmul.f32 %v15352_v39, %v3528_v15  ;;  %vm3804_vm2 = vcmp.lt.s32.totalorder %v11268_v3, 0  ;;  %s12276_s21 = sld [smem:[#allocation2 + $0x111]] }
 0x25b   : > { %v8265_v56 = vmin.u32 %v4110_v12, %v12034_v50  ;;  %v3659_v44 = vxor.u32 2147483648, %v8753_v7  ;;  %v3662_v35 = vxor.u32 2147483648, %v8751_v23  ;;  %v4323_v14 = vsel %vm4317_vm10, %v4320_v45, %v4322_v1  ;;  %s12288_s22 = sld [smem:[#allocation2 + $0x131]] }
 0x25c   : > { %v4342_v48 = vadd.s32 1, %v12041_v17  ;;  %v3877_v51 = vor.u32 %v3876_v60, %v3875_v36  ;;  %v3881_v43 = vor.u32 4788187, %v3880_v6  ;;  %vm4341_vm3 = vc.u32 %v12048_v46, %v12040_v63 }
 0x25d   : > { %v4538_v19 = vand.u32 31, %v4536_v57  ;;  %v3532_v39 = vadd.f32 %v3531_v55, %v11903_v37  ;;  %v3540_v15 = vadd.f32 %v3539_v8, %v11905_v5  ;;  %v3548_v12 = vadd.f32 %v3547_v0, %v11910_v10 }
 0x25e   : > { %v12101_v25 = vmul.f32 0.07498942, %v11462_v28  ;;  %v3556_v61 = vadd.f32 %v3555_v30, %v11915_v42  ;;  %v3888_v45 = vsub.s32 4, %v11766_v40  ;;  %v4112_v1 = vclz %v8265_v56 }
 0x25f   : > { %v4339_v36 = vmul.u32 %v12015_v20, %v4323_v14  ;;  %vm3654_vm4 = vweird.f32 %v10977_v62  ;;  %v3660_v37 = vsel %vm3658_vm13, %v8751_v23, %v3659_v44  ;;  %v3663_v5 = vsel %vm3661_vm14, %v3662_v35, %v8753_v7 }
 0x260   : > { %v3766_v10 = vsel %vm3764_vm12, %v3662_v35, %v8753_v7  ;;  %v15353_v55 = vand.u32 2147483647, %v11268_v3  ;;  %v4343_v20 = vsel %vm4341_vm3, %v4342_v48, %v12041_v17  ;;  %v3763_v30 = vsel %vm3761_vm11, %v8751_v23, %v3659_v44 }
 0x261   : > { %v3882_v0 = vand.u32 2147483647, %v3881_v43  ;;  %v3884_v60 = vcvt.s32.f32 %v3877_v51  ;;  %v12129_v7 = vsub.s32 32, %v4538_v19  ;;  %v12131_v6 = vadd.f32 %v3535_v53, %v3532_v39 }
 0x262   : > { %vm12115_vm5 = vcmp.le.f32.partialorder %v15353_v55, 0.7853982  ;;  %v12133_v8 = vadd.f32 %v3543_v4, %v3540_v15  ;;  %v4260_v38 = vstv %s12079_s10  ;;  %v4767_v56 = vand.u32 2139095040, %v12101_v25  ;;  %s12779_s10 = sld [smem:[#allocation2 + $0x14]] }
 0x263   : > { %v12137_v35 = vadd.f32 %v3551_v21, %v3548_v12  ;;  %v12139_v17 = vadd.f32 %v3559_v49, %v3556_v61  ;;  %v8266_v14 = vadd.s32 4294967294, %v4112_v1  ;;  %v12141_v23 = vadd.s32 %v4343_v20, %v4339_v36 }
 0x264   : > { %v3664_v44 = vsel %vm3657_vm0, %v3660_v37, %v3663_v5  ;;  %v3767_v48 = vsel %vm3760_vm1, %v3763_v30, %v3766_v10  ;;  %v3889_v53 = vsel %vm3804_vm2, %v3888_v45, %v11766_v40  ;;  %v3885_v51 = vmul.f32 %v3884_v60, %v3882_v0 }
 0x265   : > { %v15162_v21 = vand.u32 2147483647, %v11933_v13  ;;  %v4550_v49 = vshll.u32 %v15256_v52, %v4538_v19  ;;  %v4551_v2 = vshrl.u32 %v15216_v29, %v12129_v7  ;;  %v12157_v43 = vshrl.u32 %v4536_v57, 5 }
 0x266   : > { %v4553_v9 = vshll.u32 %v15216_v29, %v4538_v19  ;;  %v4554_v40 = vshrl.u32 %v15217_v59, %v12129_v7  ;;  %v4768_v39 = vshrl.u32 %v4767_v56, 23  ;;  %vm8267_vm6 = vcmp.lt.s32.totalorder %v8266_v14, 0 }
 0x267   : > { %v4345_v15 = vadd.s32 536870912, %v12141_v23  ;;  %v4541_v12 = vshll.u32 %v15301_v26, %v4538_v19  ;;  %v4544_v61 = vshll.u32 %v15218_v54, %v4538_v19  ;;  %v4542_v45 = vshrl.u32 %v15218_v54, %v12129_v7 }
 0x268   : > { %v4545_v57 = vshrl.u32 %v15324_v41, %v12129_v7  ;;  %v4547_v1 = vshll.u32 %v15324_v41, %v4538_v19  ;;  %v4548_v36 = vshrl.u32 %v15256_v52, %v12129_v7  ;;  %v12174_v37 = vsel %vm12115_vm5, 0, %v3889_v53 }
 0x269   : > { %v4552_v55 = vor.u32 %v4551_v2, %v4550_v49  ;;  %v4531_v20 = vand.u32 8388607, %v15162_v21  ;;  %v4555_v30 = vor.u32 %v4554_v40, %v4553_v9  ;;  %vm4559_vm7 = vcmp.lt.s32.totalorder %v12157_v43, 4 }
 0x26a   : > { %v8312_v0 = vadd.s32 4294967169, %v4768_v39  ;;  %v3665_v19 = vsel %vm3654_vm4, nan, %v3664_v44  ;;  %v3768_v60 = vsel %vm3654_vm4, nan, %v3767_v48  ;;  %v3886_v56 = vxor.u32 2147483648, %v3885_v51 }
 0x26b   : > { %v12186_v53 = vsel %vm8267_vm6, 0, %v8266_v14  ;;  %v12188_v49 = vshrl.u32 %v4345_v15, 30  ;;  %v4543_v2 = vor.u32 %v4542_v45, %v4541_v12  ;;  %v4546_v21 = vor.u32 %v4545_v57, %v4544_v61 }
 0x26c   : > { %v4549_v9 = vor.u32 %v4548_v36, %v4547_v1  ;;  %vm4556_vm8 = vcmp.lt.s32.totalorder %v12157_v43, 1  ;;  %vm4558_vm9 = vcmp.lt.s32.totalorder %v12157_v43, 3  ;;  %v4565_v62 = vsel %vm4559_vm7, %v4552_v55, 920167782 }
 0x26d   : > { %v3895_v44 = vadd.s32 3, %v12174_v37  ;;  %v4532_v48 = vor.u32 8388608, %v4531_v20  ;;  %v4569_v14 = vsel %vm4559_vm7, %v4555_v30, 1326507024  ;;  %v4774_v39 = vadd.s32 1, %v8312_v0 }
 0x26e   : > { %v15356_v15 = vstv %s11606_s1  ;;  %v3775_v61 = vmul.f32 %v3774_v16, %v3768_v60  ;;  %v3887_v45 = vsel %vm3804_vm2, %v3886_v56, %v3885_v51  ;;  %v4120_v57 = vsub.s32 4294967266, %v12186_v53  ;;  %s12295_s1 = sld [smem:[#allocation2 + $0x191]] }
 0x26f   : > { %v3771_v12 = vmul.f32 %v15356_v15, %v3665_v19  ;;  %v4347_v1 = vshll.u32 %v12188_v49, 30  ;;  %vm4557_vm10 = vcmp.lt.s32.totalorder %v12157_v43, 2  ;;  %v4564_v36 = vsel %vm4556_vm8, %v4543_v2, %v4546_v21 }
 0x270   : > { %v4566_v20 = vsel %vm4558_vm9, %v4549_v9, %v4565_v62  ;;  %v4100_v16 = vadd.s32 %v11806_v31, %v11818_v11  ;;  %v4116_v30 = vsub.s32 32, %v12186_v53  ;;  %v4568_v51 = vsel %vm4556_vm8, %v4546_v21, %v4549_v9 }
 0x271   : > { %v4570_v0 = vsel %vm4558_vm9, %v4552_v55, %v4569_v14  ;;  %v3779_v56 = vmul.f32 %v3778_v32, %v3665_v19  ;;  %v3890_v15 = vsel %vm12115_vm5, %v11268_v3, %v3887_v45  ;;  %v12225_v62 = vshll.u32 %v4532_v48, 8 }
 0x272   : > { %vm4775_vm11 = vcmp.gt.s32.totalorder %v4774_v39, 0  ;;  %v3783_v31 = vmul.f32 %v3782_v27, %v3768_v60  ;;  %v3787_v11 = vmul.f32 %v3786_v24, %v3665_v19  ;;  %v4121_v40 = vadd.s32 127, %v4120_v57 }
 0x273   : > { %v4567_v10 = vsel %vm4557_vm10, %v4564_v36, %v4566_v20  ;;  %v3772_v55 = vadd.f32 %v3771_v12, %v12131_v6  ;;  %v3795_v32 = vmul.f32 %v3794_v18, %v3665_v19  ;;  %v12237_v42 = vsub.s32 %v12141_v23, %v4347_v1 }
 0x274   : > { %v4571_v48 = vsel %vm4557_vm10, %v4568_v51, %v4570_v0  ;;  %8754 = vcosq.f32 %v3890_v15  ;;  %v4117_v27 = vshll.u32 %v12034_v50, %v12186_v53  ;;  %v4118_v24 = vshrl.u32 %v4100_v16, %v4116_v30 }
 0x275   : > { %v4776_v14 = vsel %vm4775_vm11, %v4774_v39, 0  ;;  %v4540_v18 = vshrl.u32 %v15301_v26, %v12129_v7  ;;  %v12252_v6 = vmul.u32.u64.low %v12225_v62, %v4567_v10  ;;  %v12253_v23 = vmul.u32.u64.high %v12225_v62, %v4567_v10, %v12252_v6 }
 0x276   : > { %v12257_v19 = vmul.f32 0.031622775, %v11462_v28  ;;  %v4122_v50 = vshll.u32 %v4121_v40, 23  ;;  %v4561_v53 = vsel %vm4559_vm7, %v4549_v9, 2102212464  ;;  %v3780_v7 = vadd.f32 %v3779_v56, %v12133_v8 }
 0x277   : > { %v12264_v39 = vmul.u32.u64.low %v12225_v62, %v4571_v48  ;;  %v12265_v12 = vmul.u32.u64.high %v12225_v62, %v4571_v48, %v12264_v39  ;;  %8756 = vsinq.f32 %v3890_v15  ;;  %v4350_v10 = vsub.s32 0, %v12237_v42 }
 0x278   : > { %15357 = vst [vmem:[#allocation13_spill] sm:$0xff] %v12257_v19  ;;  %v4778_v45 = vand.u32 31, %v4776_v14  ;;  %v3788_v57 = vadd.f32 %v3787_v11, %v12137_v35  ;;  %v3791_v1 = vmul.f32 %v3790_v33, %v3768_v60  ;;  %v3796_v40 = vadd.f32 %v3795_v32, %v12139_v17 }
 0x279   : > { %v15358_v36 = vstv %s11861_s23  ;;  %v4560_v9 = vsel %vm4556_vm8, %v4540_v18, %v4543_v2  ;;  %v4562_v8 = vsel %vm4558_vm9, %v4546_v21, %v4561_v53  ;;  %v5007_v30 = vand.u32 2139095040, %v12257_v19  ;;  %s12572_s23 = sld [smem:[#allocation2 + $0x132]] }
 0x27a   : > { %v3799_v20 = vmul.f32 %v15358_v36, %v3768_v60  ;;  %v12283_v35 = vand.u32 3, %v3895_v44  ;;  %v12286_v33 = vand.u32 3, %v12174_v37  ;;  %v4119_v17 = vor.u32 %v4118_v24, %v4117_v27 }
 0x27b   : > { %v4123_v60 = vor.u32 4788187, %v4122_v50  ;;  %v12290_v51 = vadd.f32 %v3775_v61, %v3772_v55  ;;  %v12292_v2 = vadd.f32 %v3783_v31, %v3780_v7  ;;  %v8281_v21 = vmin.u32 %v4350_v10, %v12237_v42 }
 0x27c   : > { %v12297_v0 = vsub.s32 32, %v4778_v45  ;;  %v12299_v44 = vadd.f32 %v3791_v1, %v3788_v57  ;;  %v12301_v56 = vadd.f32 %v3799_v20, %v3796_v40  ;;  %v4563_v15 = vsel %vm4557_vm10, %v4560_v9, %v4562_v8 }
 0x27d   : > { %v4582_v55 = vadd.s32 1, %v12253_v23  ;;  %v5008_v31 = vshrl.u32 %v5007_v30, 23  ;;  %vm3901_vm12 = vcmp.eq.s32.totalorder %v12283_v35, 2  ;;  %v4124_v32 = vand.u32 2147483647, %v4123_v60 }
 0x27e   : > { %v4126_v48 = vcvt.s32.f32 %v4119_v17  ;;  %vm4581_vm13 = vc.u32 %v12265_v12, %v12252_v6  ;;  %v4352_v24 = vclz %v8281_v21  ;;  %v4579_v18 = vmul.u32 %v12225_v62, %v4563_v15 }
 0x27f   : > { %v4790_v50 = vshll.u32 %v15256_v52, %v4778_v45  ;;  %v4791_v43 = vshrl.u32 %v15216_v29, %v12297_v0  ;;  %vm3898_vm14 = vcmp.eq.s32.totalorder %v12283_v35, 0  ;;  %vm4004_vm15 = vcmp.eq.s32.totalorder %v12286_v33, 2 }
 0x280   : > { %vm4046_vm0 = vcmp.lt.s32.totalorder %v11462_v28, 0  ;;  %v15163_v53 = vand.u32 2147483647, %v12101_v25  ;;  %v12323_v39 = vshrl.u32 %v4776_v14, 5  ;;  %v4793_v62 = vshll.u32 %v15216_v29, %v4778_v45 }
 0x281   : > { %v4794_v7 = vshrl.u32 %v15217_v59, %v12297_v0  ;;  %v8755_v10 = vpop.eup %8754  ;;  %vm4001_vm1 = vcmp.eq.s32.totalorder %v12286_v33, 0  ;;  %v4583_v57 = vsel %vm4581_vm13, %v4582_v55, %v12253_v23  ;;  %v4781_v1 = vshll.u32 %v15301_v26, %v4778_v45 }
 0x282   : > { %v4784_v40 = vshll.u32 %v15218_v54, %v4778_v45  ;;  %v8328_v36 = vadd.s32 4294967169, %v5008_v31  ;;  %v4782_v20 = vshrl.u32 %v15218_v54, %v12297_v0  ;;  %v4785_v14 = vshrl.u32 %v15324_v41, %v12297_v0 }
 0x283   : > { %v4787_v9 = vshll.u32 %v15324_v41, %v4778_v45  ;;  %v4788_v8 = vshrl.u32 %v15256_v52, %v12297_v0  ;;  %v4792_v23 = vor.u32 %v4791_v43, %v4790_v50  ;;  %vm3897_vm2 = vcmp.lt.s32.totalorder %v12283_v35, 2 }
 0x284   : > { %v8757_v21 = vpop.eup %8756  ;;  %vm4000_vm3 = vcmp.lt.s32.totalorder %v12286_v33, 2  ;;  %v15359_v15 = vand.u32 2147483647, %v11462_v28  ;;  %v4127_v31 = vmul.f32 %v4126_v48, %v4124_v32  ;;  %v4771_v45 = vand.u32 8388607, %v15163_v53 }
 0x285   : > { %v4795_v17 = vor.u32 %v4794_v7, %v4793_v62  ;;  %vm4799_vm5 = vcmp.lt.s32.totalorder %v12323_v39, 4  ;;  %v3902_v50 = vxor.u32 2147483648, %v8755_v10  ;;  %v4130_v43 = vsub.s32 4, %v11970_v47 }
 0x286   : > { %vm12346_vm4 = vcmp.le.f32.partialorder %v15359_v15, 0.7853982  ;;  %v8282_v60 = vadd.s32 4294967294, %v4352_v24  ;;  %v12356_v27 = vadd.s32 %v4583_v57, %v4579_v18  ;;  %v4783_v32 = vor.u32 %v4782_v20, %v4781_v1 }
 0x287   : > { %v4786_v48 = vor.u32 %v4785_v14, %v4784_v40  ;;  %v4789_v15 = vor.u32 %v4788_v8, %v4787_v9  ;;  %v5014_v11 = vadd.s32 1, %v8328_v36  ;;  %vm3894_vm6 = vweird.f32 %v11268_v3 }
 0x288   : > { %v3899_v62 = vxor.u32 2147483648, %v8757_v21  ;;  %vm4796_vm7 = vcmp.lt.s32.totalorder %v12323_v39, 1  ;;  %vm4798_vm8 = vcmp.lt.s32.totalorder %v12323_v39, 3  ;;  %v4805_v24 = vsel %vm4799_vm5, %v4792_v23, 920167782 }
 0x289   : > { %v4128_v18 = vxor.u32 2147483648, %v4127_v31  ;;  %v4772_v57 = vor.u32 8388608, %v4771_v45  ;;  %v4809_v53 = vsel %vm4799_vm5, %v4795_v17, 1326507024  ;;  %v3903_v1 = vsel %vm3901_vm12, %v3902_v50, %v8757_v21 }
 0x28a   : > { %v4131_v40 = vsel %vm4046_vm0, %v4130_v43, %v11970_v47  ;;  %vm8283_vm9 = vcmp.lt.s32.totalorder %v8282_v60, 0  ;;  %v4585_v36 = vadd.s32 536870912, %v12356_v27  ;;  %vm4797_vm10 = vcmp.lt.s32.totalorder %v12323_v39, 2 }
 0x28b   : > { %v4804_v20 = vsel %vm4796_vm7, %v4783_v32, %v4786_v48  ;;  %v4806_v14 = vsel %vm4798_vm8, %v4789_v15, %v4805_v24  ;;  %vm5015_vm11 = vcmp.gt.s32.totalorder %v5014_v11, 0  ;;  %v3900_v9 = vsel %vm3898_vm14, %v8755_v10, %v3899_v62 }
 0x28c   : > { %v4006_v47 = vsel %vm4004_vm15, %v3902_v50, %v8757_v21  ;;  %v4808_v8 = vsel %vm4796_vm7, %v4786_v48, %v4789_v15  ;;  %v4810_v17 = vsel %vm4798_vm8, %v4792_v23, %v4809_v53  ;;  %v4003_v45 = vsel %vm4001_vm1, %v8755_v10, %v3899_v62 }
 0x28d   : > { %v4129_v43 = vsel %vm4046_vm0, %v4128_v18, %v4127_v31  ;;  %v12393_v24 = vsel %vm8283_vm9, 0, %v8282_v60  ;;  %v12395_v7 = vshll.u32 %v4772_v57, 8  ;;  %v4807_v21 = vsel %vm4797_vm10, %v4804_v20, %v4806_v14 }
 0x28e   : > { %v5016_v50 = vsel %vm5015_vm11, %v5014_v11, 0  ;;  %v4133_v53 = vsel %vm12346_vm4, 0, %v4131_v40  ;;  %v12405_v23 = vshrl.u32 %v4585_v36, 30  ;;  %v4811_v60 = vsel %vm4797_vm10, %v4808_v8, %v4810_v17 }
 0x28f   : > { %v3904_v31 = vsel %vm3897_vm2, %v3900_v9, %v3903_v1  ;;  %v4007_v62 = vsel %vm4000_vm3, %v4003_v45, %v4006_v47  ;;  %v4132_v18 = vsel %vm12346_vm4, %v11462_v28, %v4129_v43  ;;  %v4360_v11 = vsub.s32 4294967266, %v12393_v24 }
 0x290   : > { %v4780_v57 = vshrl.u32 %v15301_v26, %v12297_v0  ;;  %v12421_v40 = vmul.u32.u64.low %v12395_v7, %v4807_v21  ;;  %v12422_v36 = vmul.u32.u64.high %v12395_v7, %v4807_v21, %v12421_v40  ;;  %v5018_v20 = vand.u32 31, %v5016_v50 }
 0x291   : > { %v4137_v35 = vadd.s32 3, %v4133_v53  ;;  %v4801_v33 = vsel %vm4799_vm5, %v4789_v15, 2102212464  ;;  %v12428_v1 = vmul.u32.u64.low %v12395_v7, %v4811_v60  ;;  %v12429_v55 = vmul.u32.u64.high %v12395_v7, %v4811_v60, %v12428_v1 }
 0x292   : > { %v12433_v14 = vsel %vm3894_vm6, nan, %v3904_v31  ;;  %8758 = vcosq.f32 %v4132_v18  ;;  %v12435_v0 = vand.u32 3, %v4133_v53  ;;  %v4587_v9 = vshll.u32 %v12405_v23, 30 }
 0x293   : > { %v12440_v47 = vsel %vm3894_vm6, nan, %v4007_v62  ;;  %v4340_v15 = vadd.s32 %v12040_v63, %v12048_v46  ;;  %v4356_v8 = vsub.s32 32, %v12393_v24  ;;  %v4361_v17 = vadd.s32 127, %v4360_v11 }
 0x294   : > { %v4800_v45 = vsel %vm4796_vm7, %v4780_v57, %v4783_v32  ;;  %v4802_v43 = vsel %vm4798_vm8, %v4786_v48, %v4801_v33  ;;  %v12449_v21 = vsub.s32 32, %v5018_v20  ;;  %v12452_v53 = vmul.f32 0.013335214, %v11462_v28 }
 0x295   : > { %v15362_v3 = vstv %s11869_s0  ;;  %8760 = vsinq.f32 %v4132_v18  ;;  %v12459_v63 = vand.u32 3, %v4137_v35  ;;  %v15363_v31 = vstv %s11874_s24  ;;  %s12579_s0 = sld [smem:[#allocation2 + $0x192]] }
 0x296   : > { %v12457_v60 = vmul.f32 %v15362_v3, %v12433_v14  ;;  %v12465_v62 = vmul.f32 %v15363_v31, %v12440_v47  ;;  %v15364_v32 = vstv %s11893_s3  ;;  %v4357_v11 = vshll.u32 %v12237_v42, %v12393_v24  ;;  %s12588_s24 = sld [smem:[#allocation2 + $0x1b2]] }
 0x297   : > { %v12470_v48 = vmul.f32 %v15364_v32, %v12433_v14  ;;  %v12475_v57 = vsub.s32 %v12356_v27, %v4587_v9  ;;  %v4358_v33 = vshrl.u32 %v4340_v15, %v4356_v8  ;;  %v4362_v1 = vshll.u32 %v4361_v17, 23  ;;  %s12702_s3 = sld [smem:[#allocation2 + $0x13]] }
 0x298   : > { %v4803_v18 = vsel %vm4797_vm10, %v4800_v45, %v4802_v43  ;;  %v15164_v35 = vand.u32 2147483647, %v12257_v19  ;;  %v4822_v3 = vadd.s32 1, %v12422_v36  ;;  %v5030_v31 = vshll.u32 %v15256_v52, %v5018_v20 }
 0x299   : > { %v5031_v32 = vshrl.u32 %v15216_v29, %v12449_v21  ;;  %v5247_v42 = vand.u32 2139095040, %v12452_v53  ;;  %vm4286_vm12 = vcmp.lt.s32.totalorder %v11700_v22, 0  ;;  %vm4821_vm13 = vc.u32 %v12429_v55, %v12421_v40 }
 0x29a   : > { %v12488_v27 = vshrl.u32 %v5016_v50, 5  ;;  %v5033_v39 = vshll.u32 %v15216_v29, %v5018_v20  ;;  %v5034_v24 = vshrl.u32 %v15217_v59, %v12449_v21  ;;  %v4590_v9 = vsub.s32 0, %v12475_v57 }
 0x29b   : > { %v4819_v15 = vmul.u32 %v12395_v7, %v4803_v18  ;;  %v5021_v8 = vshll.u32 %v15301_v26, %v5018_v20  ;;  %v5024_v17 = vshll.u32 %v15218_v54, %v5018_v20  ;;  %v5022_v45 = vshrl.u32 %v15218_v54, %v12449_v21 }
 0x29c   : > { %v5025_v50 = vshrl.u32 %v15324_v41, %v12449_v21  ;;  %v5027_v43 = vshll.u32 %v15324_v41, %v5018_v20  ;;  %v5028_v46 = vshrl.u32 %v15256_v52, %v12449_v21  ;;  %v15365_v10 = vstv %s11899_s4  ;;  %s12713_s4 = sld [smem:[#allocation2 + $0x93]] }
 0x29d   : > { %v12507_v61 = vmul.f32 %v15365_v10, %v12440_v47  ;;  %vm4143_vm14 = vcmp.eq.s32.totalorder %v12459_v63, 2  ;;  %v4823_v7 = vsel %vm4821_vm13, %v4822_v3, %v12422_v36  ;;  %v5032_v18 = vor.u32 %v5031_v32, %v5030_v31 }
 0x29e   : > { %v5248_v30 = vshrl.u32 %v5247_v42, 23  ;;  %v4027_v37 = vmul.f32 %v4026_v58, %v12433_v14  ;;  %vm4246_vm15 = vcmp.eq.s32.totalorder %v12435_v0, 2  ;;  %v5011_v20 = vand.u32 8388607, %v15164_v35 }
 0x29f   : > { %v5035_v16 = vor.u32 %v5034_v24, %v5033_v39  ;;  %vm5039_vm0 = vcmp.lt.s32.totalorder %v12488_v27, 4  ;;  %vm4140_vm1 = vcmp.eq.s32.totalorder %v12459_v63, 0  ;;  %vm4243_vm2 = vcmp.eq.s32.totalorder %v12435_v0, 0  ;;  %v8759_v42 = vpop.eup %8758 }
 0x2a0   : > { %v15366_v10 = vand.u32 2147483647, %v11700_v22  ;;  %v4359_v58 = vor.u32 %v4358_v33, %v4357_v11  ;;  %v4363_v3 = vor.u32 4788187, %v4362_v1  ;;  %v4370_v31 = vsub.s32 4, %v12188_v49 }
 0x2a1   : > { %v8297_v32 = vmin.u32 %v4590_v9, %v12475_v57  ;;  %v12528_v39 = vadd.s32 %v4823_v7, %v4819_v15  ;;  %v12530_v24 = vor.u32 %v5022_v45, %v5021_v8  ;;  %v12532_v35 = vor.u32 %v5025_v50, %v5024_v17 }
 0x2a2   : > { %vm12522_vm3 = vcmp.le.f32.partialorder %v15366_v10, 0.7853982  ;;  %v5029_v5 = vor.u32 %v5028_v46, %v5027_v43  ;;  %vm5036_vm4 = vcmp.lt.s32.totalorder %v12488_v27, 1  ;;  %vm5038_vm5 = vcmp.lt.s32.totalorder %v12488_v27, 3  ;;  %v8761_v17 = vpop.eup %8760 }
 0x2a3   : > { %v5045_v11 = vsel %vm5039_vm0, %v5032_v18, 920167782  ;;  %v8344_v33 = vadd.s32 4294967169, %v5248_v30  ;;  %v4031_v1 = vmul.f32 %v4030_v34, %v12440_v47  ;;  %v15369_v9 = vstv %s11966_s5  ;;  %s12728_s5 = sld [smem:[#allocation2 + $0x113]] }
 0x2a4   : > { %v4035_v15 = vmul.f32 %v15369_v9, %v12433_v14  ;;  %v5012_v7 = vor.u32 8388608, %v5011_v20  ;;  %v5049_v8 = vsel %vm5039_vm0, %v5035_v16, 1326507024  ;;  %vm4139_vm6 = vcmp.lt.s32.totalorder %v12459_v63, 2 }
 0x2a5   : > { %v4144_v46 = vxor.u32 2147483648, %v8759_v42  ;;  %vm4242_vm7 = vcmp.lt.s32.totalorder %v12435_v0, 2  ;;  %v4364_v45 = vand.u32 2147483647, %v4363_v3  ;;  %v4366_v50 = vcvt.s32.f32 %v4359_v58 }
 0x2a6   : > { %v4371_v34 = vsel %vm4286_vm12, %v4370_v31, %v12188_v49  ;;  %v4592_v30 = vclz %v8297_v32  ;;  %vm5037_vm8 = vcmp.lt.s32.totalorder %v12488_v27, 2  ;;  %v5044_v16 = vsel %vm5036_vm4, %v12530_v24, %v12532_v35 }
 0x2a7   : > { %v5046_v14 = vsel %vm5038_vm5, %v5029_v5, %v5045_v11  ;;  %v4825_v43 = vadd.s32 536870912, %v12528_v39  ;;  %v5048_v20 = vsel %vm5036_vm4, %v12532_v35, %v5029_v5  ;;  %v5050_v49 = vsel %vm5038_vm5, %v5032_v18, %v5049_v8 }
 0x2a8   : > { %v5254_v10 = vadd.s32 1, %v8344_v33  ;;  %v4012_v58 = vadd.f32 %v12457_v60, %v12290_v51  ;;  %v15370_v3 = vstv %s11968_s7  ;;  %vm4136_vm9 = vweird.f32 %v11462_v28  ;;  %s12746_s7 = sld [smem:[#allocation2 + $0x133]] }
 0x2a9   : > { %v4039_v31 = vmul.f32 %v15370_v3, %v12440_v47  ;;  %v4141_v32 = vxor.u32 2147483648, %v8761_v17  ;;  %v12574_v11 = vshll.u32 %v5012_v7, 8  ;;  %v4020_v9 = vadd.f32 %v12470_v48, %v12292_v2 }
 0x2aa   : > { %v4028_v4 = vadd.f32 %v4027_v37, %v12299_v44  ;;  %v4367_v18 = vmul.f32 %v4366_v50, %v4364_v45  ;;  %v5047_v51 = vsel %vm5037_vm8, %v5044_v16, %v5046_v14  ;;  %v4036_v47 = vadd.f32 %v4035_v15, %v12301_v56 }
 0x2ab   : > { %v4145_v60 = vsel %vm4143_vm14, %v4144_v46, %v8761_v17  ;;  %v4373_v33 = vsel %vm12522_vm3, 0, %v4371_v34  ;;  %v5051_v2 = vsel %vm5037_vm8, %v5048_v20, %v5050_v49  ;;  %v4248_v44 = vsel %vm4246_vm15, %v4144_v46, %v8761_v17 }
 0x2ac   : > { %v8298_v37 = vadd.s32 4294967294, %v4592_v30  ;;  %v12594_v48 = vshrl.u32 %v4825_v43, 30  ;;  %vm5255_vm10 = vcmp.gt.s32.totalorder %v5254_v10, 0  ;;  %v4142_v56 = vsel %vm4140_vm1, %v8759_v42, %v4141_v32 }
 0x2ad   : > { %v4245_v15 = vsel %vm4243_vm2, %v8759_v42, %v4141_v32  ;;  %v12601_v7 = vmul.u32.u64.low %v12574_v11, %v5047_v51  ;;  %v12602_v8 = vmul.u32.u64.high %v12574_v11, %v5047_v51, %v12601_v7  ;;  %v4368_v45 = vxor.u32 2147483648, %v4367_v18 }
 0x2ae   : > { %v5020_v50 = vshrl.u32 %v15301_v26, %v12449_v21  ;;  %v12608_v17 = vmul.u32.u64.low %v12574_v11, %v5051_v2  ;;  %v12609_v46 = vmul.u32.u64.high %v12574_v11, %v5051_v2, %v12608_v17  ;;  %v12612_v34 = vadd.f32 %v12465_v62, %v4012_v58 }
 0x2af   : > { %15371 = vst [vmem:[#allocation14_spill] sm:$0xff] %v12601_v7  ;;  %v5041_v42 = vsel %vm5039_vm0, %v5029_v5, 2102212464  ;;  %v5256_v16 = vsel %vm5255_vm10, %v5254_v10, 0  ;;  %v12618_v14 = vadd.f32 %v12507_v61, %v4020_v9  ;;  %v12620_v43 = vadd.f32 %v4031_v1, %v4028_v4 }
 0x2b0   : > { %vm8299_vm11 = vcmp.lt.s32.totalorder %v8298_v37, 0  ;;  %v4827_v21 = vshll.u32 %v12594_v48, 30  ;;  %v12623_v20 = vadd.f32 %v4039_v31, %v4036_v47  ;;  %v4146_v62 = vsel %vm4139_vm6, %v4142_v56, %v4145_v60 }
 0x2b1   : > { %v4249_v49 = vsel %vm4242_vm7, %v4245_v15, %v4248_v44  ;;  %v4377_v5 = vadd.s32 3, %v4373_v33  ;;  %v4369_v10 = vsel %vm4286_vm12, %v4368_v45, %v4367_v18  ;;  %v5040_v4 = vsel %vm5036_vm4, %v5020_v50, %v12530_v24 }
 0x2b2   : > { %v5042_v61 = vsel %vm5038_vm5, %v12532_v35, %v5041_v42  ;;  %v5258_v1 = vand.u32 31, %v5256_v16  ;;  %v12637_v58 = vsel %vm8299_vm11, 0, %v8298_v37  ;;  %v4147_v31 = vsel %vm4136_vm9, nan, %v4146_v62 }
 0x2b3   : > { %v4250_v24 = vsel %vm4136_vm9, nan, %v4249_v49  ;;  %v12646_v32 = vand.u32 3, %v4373_v33  ;;  %v12649_v35 = vsub.s32 %v12528_v39, %v4827_v21  ;;  %v4372_v9 = vsel %vm12522_vm3, %v11700_v22, %v4369_v10 }
 0x2b4   : > { %v12654_v18 = vand.u32 3, %v4377_v5  ;;  %v5043_v51 = vsel %vm5037_vm8, %v5040_v4, %v5042_v61  ;;  %v5062_v47 = vadd.s32 1, %v12602_v8  ;;  %v4600_v60 = vsub.s32 4294967266, %v12637_v58 }
 0x2b5   : > { %vm5061_vm12 = vc.u32 %v12609_v46, %v12601_v7  ;;  %v12662_v33 = vsub.s32 32, %v5258_v1  ;;  %v12665_v39 = vmul.f32 0.0056234132, %v11462_v28  ;;  %v15372_v2 = vstv %s11993_s8  ;;  %s12756_s8 = sld [smem:[#allocation2 + $0x193]] }
 0x2b6   : > { %v4253_v36 = vmul.f32 %v15372_v2, %v4147_v31  ;;  %v15373_v44 = vstv %s12013_s9  ;;  %v4261_v27 = vmul.f32 %v4260_v38, %v4147_v31  ;;  %v15374_v56 = vstv %s12090_s11  ;;  %s12767_s9 = sld [smem:[#allocation2 + $0x1b3]] }
 0x2b7   : > { %v12671_v37 = vmul.f32 %v15373_v44, %v4250_v24  ;;  %v12677_v15 = vmul.f32 %v15374_v56, %v4250_v24  ;;  %v15375_v45 = vstv %s12119_s14  ;;  %8762 = vcosq.f32 %v4372_v9  ;;  %s12791_s11 = sld [smem:[#allocation2 + $0x94]] }
 0x2b8   : > { %v4269_v50 = vmul.f32 %v15375_v45, %v4147_v31  ;;  %v4830_v17 = vsub.s32 0, %v12649_v35  ;;  %v5059_v42 = vmul.u32 %v12574_v11, %v5043_v51  ;;  %8764 = vsinq.f32 %v4372_v9  ;;  %s12799_s14 = sld [smem:[#allocation2 + $0x34]] }
 0x2b9   : > { %v4580_v21 = vadd.s32 %v12252_v6, %v12265_v12  ;;  %v4596_v62 = vsub.s32 32, %v12637_v58  ;;  %v5063_v49 = vsel %vm5061_vm12, %v5062_v47, %v12602_v8  ;;  %v4601_v5 = vadd.s32 127, %v4600_v60 }
 0x2ba   : > { %v5270_v38 = vshll.u32 %v15256_v52, %v5258_v1  ;;  %v5271_v10 = vshrl.u32 %v15216_v29, %v12662_v33  ;;  %v5487_v4 = vand.u32 2139095040, %v12665_v39  ;;  %v15170_v61 = vand.u32 2147483647, %v12452_v53 }
 0x2bb   : > { %v12692_v2 = vshrl.u32 %v5256_v16, 5  ;;  %v5273_v11 = vshll.u32 %v15216_v29, %v5258_v1  ;;  %v5274_v6 = vshrl.u32 %v15217_v59, %v12662_v33  ;;  %v8313_v12 = vmin.u32 %v4830_v17, %v12649_v35 }
 0x2bc   : > { %v12698_v8 = vadd.s32 %v5063_v49, %v5059_v42  ;;  %v5261_v9 = vshll.u32 %v15301_v26, %v5258_v1  ;;  %v5264_v51 = vshll.u32 %v15218_v54, %v5258_v1  ;;  %v5262_v16 = vshrl.u32 %v15218_v54, %v12662_v33 }
 0x2bd   : > { %v5265_v47 = vshrl.u32 %v15324_v41, %v12662_v33  ;;  %v5267_v60 = vshll.u32 %v15324_v41, %v5258_v1  ;;  %v5268_v44 = vshrl.u32 %v15256_v52, %v12662_v33  ;;  %v4597_v56 = vshll.u32 %v12475_v57, %v12637_v58 }
 0x2be   : > { %v4598_v45 = vshrl.u32 %v4580_v21, %v4596_v62  ;;  %v5272_v17 = vor.u32 %v5271_v10, %v5270_v38  ;;  %v5488_v42 = vshrl.u32 %v5487_v4, 23  ;;  %v4602_v49 = vshll.u32 %v4601_v5, 23 }
 0x2bf   : > { %v5251_v3 = vand.u32 8388607, %v15170_v61  ;;  %v5275_v0 = vor.u32 %v5274_v6, %v5273_v11  ;;  %vm5279_vm13 = vcmp.lt.s32.totalorder %v12692_v2, 4  ;;  %v15376_v1 = vstv %s12127_s26  ;;  %s12817_s26 = sld [smem:[#allocation2 + $0xb4]] }
 0x2c0   : > { %v4273_v63 = vmul.f32 %v15376_v1, %v4250_v24  ;;  %v15377_v30 = vstv %s12151_s15  ;;  %v15378_v7 = vstv %s12223_s16  ;;  %v4832_v58 = vclz %v8313_v12  ;;  %s12909_s15 = sld [smem:[#allocation2 + $0x114]] }
 0x2c1   : > { %v4277_v19 = vmul.f32 %v15377_v30, %v4147_v31  ;;  %v4281_v57 = vmul.f32 %v15378_v7, %v4250_v24  ;;  %v5065_v21 = vadd.s32 536870912, %v12698_v8  ;;  %v12731_v62 = vor.u32 %v5262_v16, %v5261_v9  ;;  %s12918_s16 = sld [smem:[#allocation2 + $0x134]] }
 0x2c2   : > { %v12733_v5 = vor.u32 %v5265_v47, %v5264_v51  ;;  %v5269_v38 = vor.u32 %v5268_v44, %v5267_v60  ;;  %vm4526_vm14 = vcmp.lt.s32.totalorder %v11933_v13, 0  ;;  %vm5276_vm15 = vcmp.lt.s32.totalorder %v12692_v2, 1 }
 0x2c3   : > { %vm5278_vm0 = vcmp.lt.s32.totalorder %v12692_v2, 3  ;;  %v5285_v7 = vsel %vm5279_vm13, %v5272_v17, 920167782  ;;  %v8360_v30 = vadd.s32 4294967169, %v5488_v42  ;;  %v4599_v31 = vor.u32 %v4598_v45, %v4597_v56 }
 0x2c4   : > { %v4603_v24 = vor.u32 4788187, %v4602_v49  ;;  %v5252_v10 = vor.u32 8388608, %v5251_v3  ;;  %v5289_v4 = vsel %vm5279_vm13, %v5275_v0, 1326507024  ;;  %v4254_v11 = vadd.f32 %v4253_v36, %v12612_v34  ;;  %v12748_v51 = vpop.eup %8762 }
 0x2c5   : > { %v4262_v6 = vadd.f32 %v4261_v27, %v12618_v14  ;;  %v4270_v12 = vadd.f32 %v4269_v50, %v12620_v43  ;;  %v4278_v9 = vadd.f32 %v4277_v19, %v12623_v20  ;;  %v15379_v16 = vand.u32 2147483647, %v11933_v13  ;;  %v12765_v14 = vpop.eup %8764 }
 0x2c6   : > { %v8314_v3 = vadd.s32 4294967294, %v4832_v58  ;;  %vm5277_vm2 = vcmp.lt.s32.totalorder %v12692_v2, 2  ;;  %v5284_v19 = vsel %vm5276_vm15, %v12731_v62, %v12733_v5  ;;  %v5286_v34 = vsel %vm5278_vm0, %v5269_v38, %v5285_v7 }
 0x2c7   : > { %vm12752_vm1 = vcmp.le.f32.partialorder %v15379_v16, 0.7853982  ;;  %v12769_v43 = vshrl.u32 %v5065_v21, 30  ;;  %v5288_v20 = vsel %vm5276_vm15, %v12733_v5, %v5269_v38  ;;  %v5290_v0 = vsel %vm5278_vm0, %v5272_v17, %v5289_v4 }
 0x2c8   : > { %v5494_v36 = vadd.s32 1, %v8360_v30  ;;  %vm4380_vm3 = vcmp.eq.s32.totalorder %v12654_v18, 0  ;;  %vm4383_vm4 = vcmp.eq.s32.totalorder %v12654_v18, 2  ;;  %v4604_v27 = vand.u32 2147483647, %v4603_v24 }
 0x2c9   : > { %v4606_v50 = vcvt.s32.f32 %v4599_v31  ;;  %v4610_v60 = vsub.s32 4, %v12405_v23  ;;  %v12781_v44 = vshll.u32 %v5252_v10, 8  ;;  %v12784_v56 = vadd.f32 %v12671_v37, %v4254_v11 }
 0x2ca   : > { %v12787_v45 = vadd.f32 %v12677_v15, %v4262_v6  ;;  %v12789_v17 = vadd.f32 %v4273_v63, %v4270_v12  ;;  %v5287_v42 = vsel %vm5277_vm2, %v5284_v19, %v5286_v34  ;;  %v12795_v49 = vadd.f32 %v4281_v57, %v4278_v9 }
 0x2cb   : > { %v5291_v37 = vsel %vm5277_vm2, %v5288_v20, %v5290_v0  ;;  %vm4483_vm5 = vcmp.eq.s32.totalorder %v12646_v32, 0  ;;  %vm4486_vm6 = vcmp.eq.s32.totalorder %v12646_v32, 2  ;;  %vm8315_vm7 = vcmp.lt.s32.totalorder %v8314_v3, 0 }
 0x2cc   : > { %v5067_v15 = vshll.u32 %v12769_v43, 30  ;;  %vm5495_vm8 = vcmp.gt.s32.totalorder %v5494_v36, 0  ;;  %vm4379_vm9 = vcmp.lt.s32.totalorder %v12654_v18, 2  ;;  %v4607_v57 = vmul.f32 %v4606_v50, %v4604_v27 }
 0x2cd   : > { %v4611_v21 = vsel %vm4526_vm14, %v4610_v60, %v12405_v23  ;;  %v12812_v7 = vmul.u32.u64.low %v12781_v44, %v5287_v42  ;;  %v12813_v30 = vmul.u32.u64.high %v12781_v44, %v5287_v42, %v12812_v7  ;;  %v5260_v24 = vshrl.u32 %v15301_v26, %v12662_v33 }
 0x2ce   : > { %v12822_v10 = vmul.u32.u64.low %v12781_v44, %v5291_v37  ;;  %v12823_v4 = vmul.u32.u64.high %v12781_v44, %v5291_v37, %v12822_v10  ;;  %v12825_v11 = vsel %vm8315_vm7, 0, %v8314_v3  ;;  %v5281_v6 = vsel %vm5279_vm13, %v5269_v38, 2102212464 }
 0x2cf   : > { %v5496_v12 = vsel %vm5495_vm8, %v5494_v36, 0  ;;  %v4381_v9 = vxor.u32 2147483648, %v12765_v14  ;;  %v4384_v16 = vxor.u32 2147483648, %v12748_v51  ;;  %v4613_v33 = vsel %vm12752_vm1, 0, %v4611_v21 }
 0x2d0   : > { %v12835_v19 = vsub.s32 %v12698_v8, %v5067_v15  ;;  %v4608_v3 = vxor.u32 2147483648, %v4607_v57  ;;  %v4840_v27 = vsub.s32 4294967266, %v12825_v11  ;;  %v5280_v38 = vsel %vm5276_vm15, %v5260_v24, %v12731_v62 }
 0x2d1   : > { %v5282_v36 = vsel %vm5278_vm0, %v12733_v5, %v5281_v6  ;;  %v5498_v50 = vand.u32 31, %v5496_v12  ;;  %v4617_v60 = vadd.s32 3, %v4613_v33  ;;  %v4382_v15 = vsel %vm4380_vm3, %v12748_v51, %v4381_v9 }
 0x2d2   : > { %v4385_v21 = vsel %vm4383_vm4, %v4384_v16, %v12765_v14  ;;  %v4820_v62 = vadd.s32 %v12421_v40, %v12429_v55  ;;  %v5070_v24 = vsub.s32 0, %v12835_v19  ;;  %vm4376_vm10 = vweird.f32 %v11700_v22 }
 0x2d3   : > { %vm4482_vm11 = vcmp.lt.s32.totalorder %v12646_v32, 2  ;;  %v4609_v5 = vsel %vm4526_vm14, %v4608_v3, %v4607_v57  ;;  %v4836_v10 = vsub.s32 32, %v12825_v11  ;;  %v5283_v6 = vsel %vm5277_vm2, %v5280_v38, %v5282_v36 }
 0x2d4   : > { %v5302_v8 = vadd.s32 1, %v12813_v30  ;;  %v4841_v37 = vadd.s32 127, %v4840_v27  ;;  %vm5301_vm12 = vc.u32 %v12823_v4, %v12812_v7  ;;  %v12870_v40 = vsub.s32 32, %v5498_v50 }
 0x2d5   : > { %v4485_v55 = vsel %vm4483_vm5, %v12748_v51, %v4381_v9  ;;  %v4488_v57 = vsel %vm4486_vm6, %v4384_v16, %v12765_v14  ;;  %v12878_v3 = vand.u32 3, %v4617_v60  ;;  %v12880_v2 = vand.u32 3, %v4613_v33 }
 0x2d6   : > { %v4386_v27 = vsel %vm4379_vm9, %v4382_v15, %v4385_v21  ;;  %v4612_v38 = vsel %vm12752_vm1, %v11933_v13, %v4609_v5  ;;  %v8329_v36 = vmin.u32 %v5070_v24, %v12835_v19  ;;  %v5299_v42 = vmul.u32 %v12781_v44, %v5283_v6 }
 0x2d7   : > { %v4837_v51 = vshll.u32 %v12649_v35, %v12825_v11  ;;  %v4838_v9 = vshrl.u32 %v4820_v62, %v4836_v10  ;;  %v5303_v14 = vsel %vm5301_vm12, %v5302_v8, %v12813_v30  ;;  %v12893_v16 = vmul.f32 0.0023713738, %v11462_v28 }
 0x2d8   : > { %v4842_v33 = vshll.u32 %v4841_v37, 23  ;;  %v15168_v18 = vand.u32 2147483647, %v12665_v39  ;;  %v5510_v60 = vshll.u32 %v15256_v52, %v5498_v50  ;;  %v5511_v47 = vshrl.u32 %v15216_v29, %v12870_v40 }
 0x2d9   : > { %15382 = vst [vmem:[#allocation15_spill] sm:$0xff] %v12893_v16  ;;  %v12899_v15 = vshrl.u32 %v5496_v12, 5  ;;  %v5513_v44 = vshll.u32 %v15216_v29, %v5498_v50  ;;  %v5514_v35 = vshrl.u32 %v15217_v59, %v12870_v40  ;;  %v5727_v30 = vand.u32 2139095040, %v12893_v16 }
 0x2da   : > { %v5072_v11 = vclz %v8329_v36  ;;  %v12905_v28 = vadd.s32 %v5303_v14, %v5299_v42  ;;  %v5501_v8 = vshll.u32 %v15301_v26, %v5498_v50  ;;  %v5504_v37 = vshll.u32 %v15218_v54, %v5498_v50 }
 0x2db   : > { %v5502_v12 = vshrl.u32 %v15218_v54, %v12870_v40  ;;  %v5505_v21 = vshrl.u32 %v15324_v41, %v12870_v40  ;;  %v5507_v62 = vshll.u32 %v15324_v41, %v5498_v50  ;;  %v5508_v24 = vshrl.u32 %v15256_v52, %v12870_v40 }
 0x2dc   : > { %8766 = vcosq.f32 %v4612_v38  ;;  %v4839_v42 = vor.u32 %v4838_v9, %v4837_v51  ;;  %v5512_v5 = vor.u32 %v5511_v47, %v5510_v60  ;;  %v5728_v10 = vshrl.u32 %v5727_v30, 23 }
 0x2dd   : > { %v4843_v6 = vor.u32 4788187, %v4842_v33  ;;  %v5491_v36 = vand.u32 8388607, %v15168_v18  ;;  %v5515_v14 = vor.u32 %v5514_v35, %v5513_v44  ;;  %vm5519_vm13 = vcmp.lt.s32.totalorder %v12899_v15, 4 }
 0x2de   : > { %v4387_v0 = vsel %vm4376_vm10, nan, %v4386_v27  ;;  %v4489_v50 = vsel %vm4482_vm11, %v4485_v55, %v4488_v57  ;;  %8768 = vsinq.f32 %v4612_v38  ;;  %v8330_v51 = vadd.s32 4294967294, %v5072_v11 }
 0x2df   : > { %v5305_v9 = vadd.s32 536870912, %v12905_v28  ;;  %v12928_v33 = vor.u32 %v5502_v12, %v5501_v8  ;;  %v12930_v60 = vor.u32 %v5505_v21, %v5504_v37  ;;  %v5509_v47 = vor.u32 %v5508_v24, %v5507_v62 }
 0x2e0   : > { %vm5516_vm14 = vcmp.lt.s32.totalorder %v12899_v15, 1  ;;  %vm5518_vm15 = vcmp.lt.s32.totalorder %v12899_v15, 3  ;;  %v5525_v32 = vsel %vm5519_vm13, %v5512_v5, 920167782  ;;  %v8376_v55 = vadd.s32 4294967169, %v5728_v10 }
 0x2e1   : > { %v4844_v57 = vand.u32 2147483647, %v4843_v6  ;;  %v4846_v27 = vcvt.s32.f32 %v4839_v42  ;;  %v5492_v38 = vor.u32 8388608, %v5491_v36  ;;  %v5529_v44 = vsel %vm5519_vm13, %v5515_v14, 1326507024 }
 0x2e2   : > { %v4490_v35 = vsel %vm4376_vm10, nan, %v4489_v50  ;;  %v15383_v30 = vstv %s12239_s17  ;;  %v15384_v8 = vstv %s12245_s18  ;;  %v15385_v12 = vstv %s12276_s21  ;;  %s12977_s17 = sld [smem:[#allocation2 + $0x194]] }
 0x2e3   : > { %v4493_v11 = vmul.f32 %v15383_v30, %v4387_v0  ;;  %v4501_v37 = vmul.f32 %v15384_v8, %v4387_v0  ;;  %v4509_v21 = vmul.f32 %v15385_v12, %v4387_v0  ;;  %vm4766_vm0 = vcmp.lt.s32.totalorder %v12101_v25, 0  ;;  %s12987_s18 = sld [smem:[#allocation2 + $0x1b4]] }
 0x2e4   : > { %vm8331_vm1 = vcmp.lt.s32.totalorder %v8330_v51, 0  ;;  %vm5517_vm2 = vcmp.lt.s32.totalorder %v12899_v15, 2  ;;  %v5524_v22 = vsel %vm5516_vm14, %v12928_v33, %v12930_v60  ;;  %v5526_v62 = vsel %vm5518_vm15, %v5509_v47, %v5525_v32  ;;  %s13064_s21 = sld [smem:[#allocation2 + $0x95]] }
 0x2e5   : > { %v12954_v24 = vshrl.u32 %v5305_v9, 30  ;;  %v5528_v42 = vsel %vm5516_vm14, %v12930_v60, %v5509_v47  ;;  %v5530_v10 = vsel %vm5518_vm15, %v5512_v5, %v5529_v44  ;;  %v5734_v6 = vadd.s32 1, %v8376_v55 }
 0x2e6   : > { %v15386_v36 = vand.u32 2147483647, %v12101_v25  ;;  %v4847_v50 = vmul.f32 %v4846_v27, %v4844_v57  ;;  %v12969_v8 = vshll.u32 %v5492_v38, 8  ;;  %v15389_v9 = vstv %s12247_s19  ;;  %s13005_s19 = sld [smem:[#allocation2 + $0x15]] }
 0x2e7   : > { %v4497_v12 = vmul.f32 %v15389_v9, %v4490_v35  ;;  %v15390_v18 = vstv %s12259_s20  ;;  %v15391_v34 = vstv %s12288_s22  ;;  %v5527_v5 = vsel %vm5517_vm2, %v5524_v22, %v5526_v62  ;;  %s13016_s20 = sld [smem:[#allocation2 + $0x35]] }
 0x2e8   : > { %vm12963_vm3 = vcmp.le.f32.partialorder %v15386_v36, 0.7853982  ;;  %v4505_v20 = vmul.f32 %v15390_v18, %v4490_v35  ;;  %v4513_v23 = vmul.f32 %v15391_v34, %v4490_v35  ;;  %v4494_v55 = vadd.f32 %v4493_v11, %v12784_v56  ;;  %s13212_s22 = sld [smem:[#allocation2 + $0x115]] }
 0x2e9   : > { %v15392_v44 = vstv %s12295_s1  ;;  %v12985_v57 = vsel %vm8331_vm1, 0, %v8330_v51  ;;  %v5531_v27 = vsel %vm5517_vm2, %v5528_v42, %v5530_v10  ;;  %v4502_v18 = vadd.f32 %v4501_v37, %v12787_v45  ;;  %s13220_s1 = sld [smem:[#allocation2 + $0x135]] }
 0x2ea   : > { %v4517_v36 = vmul.f32 %v15392_v44, %v4387_v0  ;;  %v4510_v34 = vadd.f32 %v4509_v21, %v12789_v17  ;;  %vm4623_vm4 = vcmp.eq.s32.totalorder %v12878_v3, 2  ;;  %vm4726_vm5 = vcmp.eq.s32.totalorder %v12880_v2, 2  ;;  %v8767_v0 = vpop.eup %8766 }
 0x2eb   : > { %v5307_v56 = vshll.u32 %v12954_v24, 30  ;;  %vm5735_vm6 = vcmp.gt.s32.totalorder %v5734_v6, 0  ;;  %vm4620_vm7 = vcmp.eq.s32.totalorder %v12878_v3, 0  ;;  %v4848_v51 = vxor.u32 2147483648, %v4847_v50  ;;  %v8769_v62 = vpop.eup %8768 }
 0x2ec   : > { %v4850_v38 = vsub.s32 4, %v12594_v48  ;;  %v12999_v11 = vmul.u32.u64.low %v12969_v8, %v5527_v5  ;;  %v13000_v22 = vmul.u32.u64.high %v12969_v8, %v5527_v5, %v12999_v11  ;;  %vm4723_vm8 = vcmp.eq.s32.totalorder %v12880_v2, 0 }
 0x2ed   : > { %v5080_v45 = vsub.s32 4294967266, %v12985_v57  ;;  %v5500_v17 = vshrl.u32 %v15301_v26, %v12870_v40  ;;  %v13010_v37 = vmul.u32.u64.low %v12969_v8, %v5531_v27  ;;  %v13011_v21 = vmul.u32.u64.high %v12969_v8, %v5531_v27, %v13010_v37 }
 0x2ee   : > { %v4518_v42 = vadd.f32 %v4517_v36, %v12795_v49  ;;  %v15393_v10 = vstv %s12320_s2  ;;  %v5521_v5 = vsel %vm5519_vm13, %v5509_v47, 2102212464  ;;  %v5736_v44 = vsel %vm5735_vm6, %v5734_v6, 0  ;;  %s13235_s2 = sld [smem:[#allocation2 + $0x195]] }
 0x2ef   : > { %v4521_v9 = vmul.f32 %v15393_v10, %v4490_v35  ;;  %v13021_v32 = vadd.f32 %v4497_v12, %v4494_v55  ;;  %v13023_v40 = vadd.f32 %v4505_v20, %v4502_v18  ;;  %v13025_v27 = vadd.f32 %v4513_v23, %v4510_v34  ;;  %v15394_v35 = vld [vmem:[#allocation14_spill] sm:$0xff] }
 0x2f0   : > { %v13028_v37 = vsub.s32 %v12905_v28, %v5307_v56  ;;  %v4849_v49 = vsel %vm4766_vm0, %v4848_v51, %v4847_v50  ;;  %v4851_v47 = vsel %vm4766_vm0, %v4850_v38, %v12594_v48  ;;  %v5060_v6 = vadd.s32 %v15394_v35, %v12609_v46 }
 0x2f1   : > { %v5076_v12 = vsub.s32 32, %v12985_v57  ;;  %v5081_v55 = vadd.s32 127, %v5080_v45  ;;  %v5520_v23 = vsel %vm5516_vm14, %v5500_v17, %v12928_v33  ;;  %v5522_v20 = vsel %vm5518_vm15, %v12930_v60, %v5521_v5 }
 0x2f2   : > { %v5738_v28 = vand.u32 31, %v5736_v44  ;;  %v13044_v50 = vadd.f32 %v4521_v9, %v4518_v42  ;;  %v4624_v36 = vxor.u32 2147483648, %v8767_v0  ;;  %v4621_v34 = vxor.u32 2147483648, %v8769_v62  ;;  %v8392_v9 = vld [vmem:[%s8959_s29 + $0x18] sm:$0xff]  ;;  %s13200_s29 = sld [smem:[#allocation2 + $0xb5]] }
 0x2f3   : > { %v4852_v46 = vsel %vm12963_vm3, %v12101_v25, %v4849_v49  ;;  %v13053_v56 = vsel %vm12963_vm3, 0, %v4851_v47  ;;  %v5310_v33 = vsub.s32 0, %v13028_v37  ;;  %vm4619_vm9 = vcmp.lt.s32.totalorder %v12878_v3, 2 }
 0x2f4   : > { %vm4722_vm10 = vcmp.lt.s32.totalorder %v12880_v2, 2  ;;  %v5077_v60 = vshll.u32 %v12835_v19, %v12985_v57  ;;  %v5078_v51 = vshrl.u32 %v5060_v6, %v5076_v12  ;;  %v5523_v38 = vsel %vm5517_vm2, %v5520_v23, %v5522_v20 }
 0x2f5   : > { %v5542_v45 = vadd.s32 1, %v13000_v22  ;;  %v5082_v14 = vshll.u32 %v5081_v55, 23  ;;  %vm5541_vm11 = vc.u32 %v13011_v21, %v12999_v11  ;;  %v13068_v42 = vsub.s32 32, %v5738_v28 }
 0x2f6   : > { %v4625_v10 = vsel %vm4623_vm4, %v4624_v36, %v8769_v62  ;;  %v4728_v19 = vsel %vm4726_vm5, %v4624_v36, %v8769_v62  ;;  %v4857_v15 = vadd.s32 3, %v13053_v56  ;;  %v4622_v5 = vsel %vm4620_vm7, %v8767_v0, %v4621_v34 }
 0x2f7   : > { %8770 = vcosq.f32 %v4852_v46  ;;  %v8345_v49 = vmin.u32 %v5310_v33, %v13028_v37  ;;  %v5539_v47 = vmul.u32 %v12969_v8, %v5523_v38  ;;  %vm4616_vm12 = vweird.f32 %v11933_v13 }
 0x2f8   : > { %v4725_v35 = vsel %vm4723_vm8, %v8767_v0, %v4621_v34  ;;  %8772 = vsinq.f32 %v4852_v46  ;;  %v5079_v6 = vor.u32 %v5078_v51, %v5077_v60  ;;  %v5543_v62 = vsel %vm5541_vm11, %v5542_v45, %v13000_v22 }
 0x2f9   : > { %v5083_v12 = vor.u32 4788187, %v5082_v14  ;;  %v5750_v55 = vshll.u32 %v15256_v52, %v5738_v28  ;;  %v5751_v23 = vshrl.u32 %v15216_v29, %v13068_v42  ;;  %v13088_v20 = vmul.f32 100.0, %v8392_v9 }
 0x2fa   : > { %v15169_v8 = vand.u32 2147483647, %v12893_v16  ;;  %v13091_v36 = vshrl.u32 %v5736_v44, 5  ;;  %v5753_v33 = vshll.u32 %v15216_v29, %v5738_v28  ;;  %v5754_v0 = vshrl.u32 %v15217_v59, %v13068_v42 }
 0x2fb   : > { %v5312_v34 = vclz %v8345_v49  ;;  %v13096_v22 = vadd.s32 %v5543_v62, %v5539_v47  ;;  %v5741_v46 = vshll.u32 %v15301_v26, %v5738_v28  ;;  %v5744_v60 = vshll.u32 %v15218_v54, %v5738_v28 }
 0x2fc   : > { %v5742_v51 = vshrl.u32 %v15218_v54, %v13068_v42  ;;  %v5745_v38 = vshrl.u32 %v15324_v41, %v13068_v42  ;;  %v5747_v44 = vshll.u32 %v15324_v41, %v5738_v28  ;;  %v5748_v45 = vshrl.u32 %v15256_v52, %v13068_v42 }
 0x2fd   : > { %v5086_v14 = vcvt.s32.f32 %v5079_v6  ;;  %v5752_v49 = vor.u32 %v5751_v23, %v5750_v55  ;;  %v5969_v47 = vand.u32 2139095040, %v13088_v20  ;;  %v5084_v62 = vand.u32 2147483647, %v5083_v12  ;;  %v15395_v6 = vld [vmem:[#allocation13_spill] sm:$0xff] }
 0x2fe   : > { %v5731_v57 = vand.u32 8388607, %v15169_v8  ;;  %v5755_v17 = vor.u32 %v5754_v0, %v5753_v33  ;;  %vm5759_vm13 = vcmp.lt.s32.totalorder %v13091_v36, 4  ;;  %v4626_v18 = vsel %vm4619_vm9, %v4622_v5, %v4625_v10 }
 0x2ff   : > { %v4729_v28 = vsel %vm4722_vm10, %v4725_v35, %v4728_v19  ;;  %v13116_v48 = vand.u32 3, %v4857_v15  ;;  %vm5006_vm14 = vcmp.lt.s32.totalorder %v15395_v6, 0  ;;  %v8346_v55 = vadd.s32 4294967294, %v5312_v34 }
 0x300   : > { %v5545_v23 = vadd.s32 536870912, %v13096_v22  ;;  %v13120_v12 = vor.u32 %v5742_v51, %v5741_v46  ;;  %v13122_v9 = vor.u32 %v5745_v38, %v5744_v60  ;;  %v5749_v33 = vor.u32 %v5748_v45, %v5747_v44 }
 0x301   : > { %vm5756_vm15 = vcmp.lt.s32.totalorder %v13091_v36, 1  ;;  %vm5758_vm0 = vcmp.lt.s32.totalorder %v13091_v36, 3  ;;  %v5765_v3 = vsel %vm5759_vm13, %v5752_v49, 920167782  ;;  %v5970_v2 = vshrl.u32 %v5969_v47, 23 }
 0x302   : > { %v13129_v10 = vand.u32 3, %v13053_v56  ;;  %v5087_v19 = vmul.f32 %v5086_v14, %v5084_v62  ;;  %v5732_v15 = vor.u32 8388608, %v5731_v57  ;;  %v5769_v5 = vsel %vm5759_vm13, %v5755_v17, 1326507024 }
 0x303   : > { %v4627_v35 = vsel %vm4616_vm12, nan, %v4626_v18  ;;  %v4730_v0 = vsel %vm4616_vm12, nan, %v4729_v28  ;;  %vm4860_vm1 = vcmp.eq.s32.totalorder %v13116_v48, 0  ;;  %vm4863_vm2 = vcmp.eq.s32.totalorder %v13116_v48, 2 }
 0x304   : > { %v15396_v56 = vand.u32 2147483647, %v15395_v6  ;;  %v13145_v57 = vpop.eup %8770  ;;  %vm8347_vm4 = vcmp.lt.s32.totalorder %v8346_v55, 0  ;;  %vm5757_vm5 = vcmp.lt.s32.totalorder %v13091_v36, 2  ;;  %v5764_v13 = vsel %vm5756_vm15, %v13120_v12, %v13122_v9 }
 0x305   : > { %v5766_v18 = vsel %vm5758_vm0, %v5749_v33, %v5765_v3  ;;  %v8773_v17 = vpop.eup %8772  ;;  %v13154_v46 = vshrl.u32 %v5545_v23, 30  ;;  %v5768_v60 = vsel %vm5756_vm15, %v13122_v9, %v5749_v33  ;;  %v5770_v51 = vsel %vm5758_vm0, %v5752_v49, %v5769_v5 }
 0x306   : > { %vm13141_vm3 = vcmp.le.f32.partialorder %v15396_v56, 0.7853982  ;;  %v8393_v38 = vadd.s32 4294967169, %v5970_v2  ;;  %v15399_v44 = vstv %s12350_s12  ;;  %v15400_v14 = vstv %s12358_s13  ;;  %s13238_s12 = sld [smem:[#allocation2 + $0x1b5]] }
 0x307   : > { %v4733_v45 = vmul.f32 %v15399_v44, %v4627_v35  ;;  %v4737_v47 = vmul.f32 %v15400_v14, %v4730_v0  ;;  %vm4963_vm6 = vcmp.eq.s32.totalorder %v13129_v10, 0  ;;  %vm4966_vm7 = vcmp.eq.s32.totalorder %v13129_v10, 2  ;;  %s13251_s13 = sld [smem:[#allocation2 + $0x16]] }
 0x308   : > { %v5088_v62 = vxor.u32 2147483648, %v5087_v19  ;;  %v13167_v28 = vshll.u32 %v5732_v15, 8  ;;  %v15401_v23 = vstv %s12360_s25  ;;  %v15402_v56 = vstv %s12399_s27  ;;  %s13260_s25 = sld [smem:[#allocation2 + $0x96]] }
 0x309   : > { %v4741_v3 = vmul.f32 %v15401_v23, %v4627_v35  ;;  %v4745_v8 = vmul.f32 %v15402_v56, %v4730_v0  ;;  %v15403_v30 = vstv %s12551_s28  ;;  %vm4859_vm8 = vcmp.lt.s32.totalorder %v13116_v48, 2  ;;  %s13266_s27 = sld [smem:[#allocation2 + $0x36]] }
 0x30a   : > { %v4749_v61 = vmul.f32 %v15403_v30, %v4627_v35  ;;  %v5767_v49 = vsel %vm5757_vm5, %v5764_v13, %v5766_v18  ;;  %v15404_v2 = vstv %s12572_s23  ;;  %v15405_v44 = vstv %s12579_s0  ;;  %s13443_s28 = sld [smem:[#allocation2 + $0xb6]] }
 0x30b   : > { %v4753_v5 = vmul.f32 %v15404_v2, %v4730_v0  ;;  %v4757_v14 = vmul.f32 %v15405_v44, %v4627_v35  ;;  %v13183_v31 = vsel %vm8347_vm4, 0, %v8346_v55  ;;  %v5771_v15 = vsel %vm5757_vm5, %v5768_v60, %v5770_v51  ;;  %s13450_s23 = sld [smem:[#allocation2 + $0x116]] }
 0x30c   : > { %v4864_v23 = vxor.u32 2147483648, %v13145_v57  ;;  %vm4962_vm9 = vcmp.lt.s32.totalorder %v13129_v10, 2  ;;  %v5090_v30 = vsub.s32 4, %v12769_v43  ;;  %v5547_v56 = vshll.u32 %v13154_v46, 30  ;;  %s13462_s0 = sld [smem:[#allocation2 + $0x136]] }
 0x30d   : > { %v5976_v13 = vadd.s32 1, %v8393_v38  ;;  %v4861_v18 = vxor.u32 2147483648, %v8773_v17  ;;  %v5089_v35 = vsel %vm5006_vm14, %v5088_v62, %v5087_v19  ;;  %vm4856_vm10 = vweird.f32 %v12101_v25 }
 0x30e   : > { %v13194_v55 = vmul.u32.u64.low %v13167_v28, %v5767_v49  ;;  %v13195_v2 = vmul.u32.u64.high %v13167_v28, %v5767_v49, %v13194_v55  ;;  %v5320_v60 = vsub.s32 4294967266, %v13183_v31  ;;  %v5740_v51 = vshrl.u32 %v15301_v26, %v13068_v42 }
 0x30f   : > { %v13205_v38 = vmul.u32.u64.low %v13167_v28, %v5771_v15  ;;  %v13206_v44 = vmul.u32.u64.high %v13167_v28, %v5771_v15, %v13205_v38  ;;  %v4734_v19 = vadd.f32 %v4733_v45, %v13021_v32  ;;  %v4742_v62 = vadd.f32 %v4741_v3, %v13023_v40 }
 0x310   : > { %15406 = vst [vmem:[#allocation14_spill] sm:$0xff] %v13194_v55  ;;  %v15407_v49 = vstv %s12588_s24  ;;  %v5761_v58 = vsel %vm5759_vm13, %v5749_v33, 2102212464  ;;  %v4750_v1 = vadd.f32 %v4749_v61, %v13025_v27  ;;  %v5091_v42 = vsel %vm5006_vm14, %v5090_v30, %v12769_v43  ;;  %s13470_s24 = sld [smem:[#allocation2 + $0x196]] }
 0x311   : > { %v4761_v63 = vmul.f32 %v15407_v49, %v4730_v0  ;;  %v13223_v15 = vsub.s32 %v13096_v22, %v5547_v56  ;;  %vm5977_vm11 = vcmp.gt.s32.totalorder %v5976_v13, 0  ;;  %v4862_v32 = vsel %vm4860_vm1, %v13145_v57, %v4861_v18 }
 0x312   : > { %v4865_v40 = vsel %vm4863_vm2, %v4864_v23, %v8773_v17  ;;  %v5092_v61 = vsel %vm13141_vm3, %v15395_v6, %v5089_v35  ;;  %v5300_v43 = vadd.s32 %v12812_v7, %v12823_v4  ;;  %v5316_v27 = vsub.s32 32, %v13183_v31 }
 0x313   : > { %v5321_v22 = vadd.s32 127, %v5320_v60  ;;  %v5760_v33 = vsel %vm5756_vm15, %v5740_v51, %v13120_v12  ;;  %v5762_v0 = vsel %vm5758_vm0, %v13122_v9, %v5761_v58  ;;  %v13246_v45 = vadd.f32 %v4737_v47, %v4734_v19 }
 0x314   : > { %v4758_v3 = vadd.f32 %v4757_v14, %v13044_v50  ;;  %v5093_v7 = vsel %vm13141_vm3, 0, %v5091_v42  ;;  %v5978_v4 = vsel %vm5977_vm11, %v5976_v13, 0  ;;  %v4965_v30 = vsel %vm4963_vm6, %v13145_v57, %v4861_v18 }
 0x315   : > { %v4968_v12 = vsel %vm4966_vm7, %v4864_v23, %v8773_v17  ;;  %8774 = vcosq.f32 %v5092_v61  ;;  %v5550_v58 = vsub.s32 0, %v13223_v15  ;;  %v4866_v50 = vsel %vm4859_vm8, %v4862_v32, %v4865_v40 }
 0x316   : > { %v5317_v9 = vshll.u32 %v13028_v37, %v13183_v31  ;;  %v5763_v34 = vsel %vm5757_vm5, %v5760_v33, %v5762_v0  ;;  %v5782_v57 = vadd.s32 1, %v13195_v2  ;;  %v5318_v17 = vshrl.u32 %v5300_v43, %v5316_v27 }
 0x317   : > { %v5322_v47 = vshll.u32 %v5321_v22, 23  ;;  %vm5781_vm12 = vc.u32 %v13206_v44, %v13194_v55  ;;  %v5980_v14 = vand.u32 31, %v5978_v4  ;;  %v13273_v48 = vadd.f32 %v4745_v8, %v4742_v62 }
 0x318   : > { %v4969_v31 = vsel %vm4962_vm9, %v4965_v30, %v4968_v12  ;;  %8776 = vsinq.f32 %v5092_v61  ;;  %v5097_v37 = vadd.s32 3, %v5093_v7  ;;  %v13277_v36 = vadd.f32 %v4753_v5, %v4750_v1 }
 0x319   : > { %v13279_v23 = vadd.f32 %v4761_v63, %v4758_v3  ;;  %v8361_v56 = vmin.u32 %v5550_v58, %v13223_v15  ;;  %v5779_v13 = vmul.u32 %v13167_v28, %v5763_v34  ;;  %v13285_v8 = vsel %vm4856_vm10, nan, %v4866_v50 }
 0x31a   : > { %v5783_v35 = vsel %vm5781_vm12, %v5782_v57, %v13195_v2  ;;  %v13292_v1 = vsel %vm4856_vm10, nan, %v4969_v31  ;;  %v5319_v63 = vor.u32 %v5318_v17, %v5317_v9  ;;  %v5323_v5 = vor.u32 4788187, %v5322_v47 }
 0x31b   : > { %v13294_v60 = vsub.s32 32, %v5980_v14  ;;  %v13296_v28 = vand.u32 3, %v5097_v37  ;;  %v13301_v62 = vand.u32 3, %v5093_v7  ;;  %v5552_v49 = vclz %v8361_v56 }
 0x31c   : > { %v13304_v32 = vadd.s32 %v5783_v35, %v5779_v13  ;;  %v15408_v25 = vstv %s12702_s3  ;;  %v15409_v40 = vstv %s12715_s6  ;;  %v5324_v22 = vand.u32 2147483647, %v5323_v5  ;;  %s13476_s3 = sld [smem:[#allocation2 + $0x1b6]] }
 0x31d   : > { %v13309_v2 = vmul.f32 %v15408_v25, %v13285_v8  ;;  %v13314_v61 = vmul.f32 %v15409_v40, %v13292_v1  ;;  %v5326_v33 = vcvt.s32.f32 %v5319_v63  ;;  %v5992_v0 = vshll.u32 %v15256_v52, %v5980_v14  ;;  %s13489_s6 = sld [smem:[#allocation2 + $0x97]] }
 0x31e   : > { %v5993_v3 = vshrl.u32 %v15216_v29, %v13294_v60  ;;  %vm5103_vm13 = vcmp.eq.s32.totalorder %v13296_v28, 2  ;;  %v15171_v7 = vand.u32 2147483647, %v13088_v20  ;;  %v13323_v30 = vshrl.u32 %v5978_v4, 5 }
 0x31f   : > { %v5995_v12 = vshll.u32 %v15216_v29, %v5980_v14  ;;  %v5996_v58 = vshrl.u32 %v15217_v59, %v13294_v60  ;;  %vm5100_vm14 = vcmp.eq.s32.totalorder %v13296_v28, 0  ;;  %vm5246_vm15 = vcmp.lt.s32.totalorder %v12452_v53, 0 }
 0x320   : > { %v8362_v50 = vadd.s32 4294967294, %v5552_v49  ;;  %v5785_v9 = vadd.s32 536870912, %v13304_v32  ;;  %v5983_v34 = vshll.u32 %v15301_v26, %v5980_v14  ;;  %v5986_v57 = vshll.u32 %v15218_v54, %v5980_v14 }
 0x321   : > { %v5984_v4 = vshrl.u32 %v15218_v54, %v13294_v60  ;;  %v5987_v47 = vshrl.u32 %v15324_v41, %v13294_v60  ;;  %v5989_v31 = vshll.u32 %v15324_v41, %v5980_v14  ;;  %v5990_v37 = vshrl.u32 %v15256_v52, %v13294_v60 }
 0x322   : > { %v8775_v17 = vpop.eup %8774  ;;  %v15410_v56 = vstv %s12713_s4  ;;  %v15411_v35 = vstv %s12726_s30  ;;  %vm5203_vm0 = vcmp.eq.s32.totalorder %v13301_v62, 0  ;;  %vm5206_vm1 = vcmp.eq.s32.totalorder %v13301_v62, 2  ;;  %s13479_s4 = sld [smem:[#allocation2 + $0x17]] }
 0x323   : > { %v4981_v13 = vmul.f32 %v15410_v56, %v13285_v8  ;;  %v13346_v63 = vmul.f32 %v15411_v35, %v13292_v1  ;;  %v5994_v5 = vor.u32 %v5993_v3, %v5992_v0  ;;  %v13351_v49 = vmul.f32 0.4216965, %v13088_v20  ;;  %s13497_s30 = sld [smem:[#allocation2 + $0x37]] }
 0x324   : > { %vm5099_vm2 = vcmp.lt.s32.totalorder %v13296_v28, 2  ;;  %v15412_v14 = vand.u32 2147483647, %v12452_v53  ;;  %v5327_v40 = vmul.f32 %v5326_v33, %v5324_v22  ;;  %v5973_v56 = vand.u32 8388607, %v15171_v7 }
 0x325   : > { %v5997_v35 = vor.u32 %v5996_v58, %v5995_v12  ;;  %vm6001_vm4 = vcmp.lt.s32.totalorder %v13323_v30, 4  ;;  %v8777_v27 = vpop.eup %8776  ;;  %v15415_v0 = vstv %s12728_s5  ;;  %v15416_v43 = vstv %s12746_s7  ;;  %s13503_s5 = sld [smem:[#allocation2 + $0xb7]] }
 0x326   : > { %vm13356_vm3 = vcmp.le.f32.partialorder %v15412_v14, 0.7853982  ;;  %v4989_v3 = vmul.f32 %v15415_v0, %v13285_v8  ;;  %v13369_v42 = vmul.f32 %v15416_v43, %v13292_v1  ;;  %v5104_v14 = vxor.u32 2147483648, %v8775_v17  ;;  %s13508_s7 = sld [smem:[#allocation2 + $0x117]] }
 0x327   : > { %v13371_v19 = vshrl.u32 %v5785_v9, 30  ;;  %vm8363_vm5 = vcmp.lt.s32.totalorder %v8362_v50, 0  ;;  %v13373_v22 = vor.u32 %v5984_v4, %v5983_v34  ;;  %v13375_v33 = vor.u32 %v5987_v47, %v5986_v57 }
 0x328   : > { %v5991_v12 = vor.u32 %v5990_v37, %v5989_v31  ;;  %vm5998_vm6 = vcmp.lt.s32.totalorder %v13323_v30, 1  ;;  %vm6000_vm7 = vcmp.lt.s32.totalorder %v13323_v30, 3  ;;  %v6007_v58 = vsel %vm6001_vm4, %v5994_v5, 920167782 }
 0x329   : > { %15417 = vst [vmem:[#allocation13_spill] sm:$0xff] %v13371_v19  ;;  %v6209_v43 = vand.u32 2139095040, %v13351_v49  ;;  %v5101_v0 = vxor.u32 2147483648, %v8777_v27  ;;  %vm5202_vm8 = vcmp.lt.s32.totalorder %v13301_v62, 2  ;;  %v5328_v9 = vxor.u32 2147483648, %v5327_v40 }
 0x32a   : > { %v5974_v7 = vor.u32 8388608, %v5973_v56  ;;  %v6011_v34 = vsel %vm6001_vm4, %v5997_v35, 1326507024  ;;  %v15418_v57 = vstv %s12756_s8  ;;  %v15419_v47 = vstv %s12767_s9  ;;  %s13518_s8 = sld [smem:[#allocation2 + $0x137]] }
 0x32b   : > { %v4997_v4 = vmul.f32 %v15418_v57, %v13285_v8  ;;  %v5001_v31 = vmul.f32 %v15419_v47, %v13292_v1  ;;  %vm5096_vm9 = vweird.f32 %v15395_v6  ;;  %v13393_v37 = vsel %vm8363_vm5, 0, %v8362_v50  ;;  %s13524_s9 = sld [smem:[#allocation2 + $0x197]] }
 0x32c   : > { %v5787_v51 = vshll.u32 %v13371_v19, 30  ;;  %v5330_v10 = vsub.s32 4, %v12954_v24  ;;  %vm5999_vm10 = vcmp.lt.s32.totalorder %v13323_v30, 2  ;;  %v6006_v56 = vsel %vm5998_vm6, %v13373_v22, %v13375_v33 }
 0x32d   : > { %v6008_v8 = vsel %vm6000_vm7, %v5991_v12, %v6007_v58  ;;  %v5105_v1 = vsel %vm5103_vm13, %v5104_v14, %v8777_v27  ;;  %v6010_v50 = vsel %vm5998_vm6, %v13375_v33, %v5991_v12  ;;  %v6012_v35 = vsel %vm6000_vm7, %v5994_v5, %v6011_v34 }
 0x32e   : > { %v6210_v57 = vshrl.u32 %v6209_v43, 23  ;;  %v5102_v47 = vsel %vm5100_vm14, %v8775_v17, %v5101_v0  ;;  %v5329_v38 = vsel %vm5246_vm15, %v5328_v9, %v5327_v40  ;;  %v5560_v18 = vsub.s32 4294967266, %v13393_v37 }
 0x32f   : > { %v13416_v58 = vshll.u32 %v5974_v7, 8  ;;  %v4974_v19 = vadd.f32 %v13309_v2, %v13246_v45  ;;  %v4982_v16 = vadd.f32 %v4981_v13, %v13273_v48  ;;  %v13422_v55 = vsub.s32 %v13304_v32, %v5787_v51 }
 0x330   : > { %v6009_v5 = vsel %vm5999_vm10, %v6006_v56, %v6008_v8  ;;  %v5205_v43 = vsel %vm5203_vm0, %v8775_v17, %v5101_v0  ;;  %v5208_v40 = vsel %vm5206_vm1, %v5104_v14, %v8777_v27  ;;  %v5331_v7 = vsel %vm5246_vm15, %v5330_v10, %v12954_v24 }
 0x331   : > { %v6013_v45 = vsel %vm5999_vm10, %v6010_v50, %v6012_v35  ;;  %v5106_v48 = vsel %vm5099_vm2, %v5102_v47, %v5105_v1  ;;  %v5332_v51 = vsel %vm13356_vm3, %v12452_v53, %v5329_v38  ;;  %v5540_v32 = vadd.s32 %v12999_v11, %v13011_v21 }
 0x332   : > { %v8409_v2 = vadd.s32 4294967169, %v6210_v57  ;;  %v5556_v27 = vsub.s32 32, %v13393_v37  ;;  %v5561_v17 = vadd.s32 127, %v5560_v18  ;;  %v5790_v28 = vsub.s32 0, %v13422_v55 }
 0x333   : > { %v13446_v24 = vmul.u32.u64.low %v13416_v58, %v6009_v5  ;;  %v13447_v10 = vmul.u32.u64.high %v13416_v58, %v6009_v5, %v13446_v24  ;;  %v5982_v38 = vshrl.u32 %v15301_v26, %v13294_v60  ;;  %v4978_v18 = vadd.f32 %v13314_v61, %v4974_v19 }
 0x334   : > { %v13456_v11 = vmul.u32.u64.low %v13416_v58, %v6013_v45  ;;  %v13457_v21 = vmul.u32.u64.high %v13416_v58, %v6013_v45, %v13456_v11  ;;  %v4990_v13 = vadd.f32 %v4989_v3, %v13277_v36  ;;  %v4998_v14 = vadd.f32 %v4997_v4, %v13279_v23 }
 0x335   : > { %v6003_v0 = vsel %vm6001_vm4, %v5991_v12, 2102212464  ;;  %v5209_v9 = vsel %vm5202_vm8, %v5205_v43, %v5208_v40  ;;  %v5333_v60 = vsel %vm13356_vm3, 0, %v5331_v7  ;;  %8778 = vcosq.f32 %v5332_v51 }
 0x336   : > { %v6216_v34 = vadd.s32 1, %v8409_v2  ;;  %v5107_v36 = vsel %vm5096_vm9, nan, %v5106_v48  ;;  %8780 = vsinq.f32 %v5332_v51  ;;  %v5557_v23 = vshll.u32 %v13223_v15, %v13393_v37 }
 0x337   : > { %v5558_v19 = vshrl.u32 %v5540_v32, %v5556_v27  ;;  %v5562_v62 = vshll.u32 %v5561_v17, 23  ;;  %v8377_v61 = vmin.u32 %v5790_v28, %v13422_v55  ;;  %v6002_v25 = vsel %vm5998_vm6, %v5982_v38, %v13373_v22 }
 0x338   : > { %v6004_v3 = vsel %vm6000_vm7, %v13375_v33, %v6003_v0  ;;  %v4986_v15 = vadd.f32 %v13346_v63, %v4982_v16  ;;  %v4994_v12 = vadd.f32 %v13369_v42, %v4990_v13  ;;  %v5002_v4 = vadd.f32 %v5001_v31, %v4998_v14 }
 0x339   : > { %v5337_v37 = vadd.s32 3, %v5333_v60  ;;  %v5210_v56 = vsel %vm5096_vm9, nan, %v5209_v9  ;;  %v15420_v8 = vstv %s12779_s10  ;;  %v15421_v22 = vstv %s12791_s11  ;;  %s13612_s10 = sld [smem:[#allocation2 + $0x1b7]] }
 0x33a   : > { %v5213_v1 = vmul.f32 %v15420_v8, %v5107_v36  ;;  %v5221_v50 = vmul.f32 %v15421_v22, %v5107_v36  ;;  %vm6217_vm11 = vcmp.gt.s32.totalorder %v6216_v34, 0  ;;  %v15422_v33 = vstv %s12909_s15  ;;  %s13625_s11 = sld [smem:[#allocation2 + $0x18]] }
 0x33b   : > { %v5229_v16 = vmul.f32 %v15422_v33, %v5107_v36  ;;  %v15423_v63 = vstv %s12977_s17  ;;  %v6005_v6 = vsel %vm5999_vm10, %v6002_v25, %v6004_v3  ;;  %v6024_v31 = vadd.s32 1, %v13447_v10  ;;  %s13650_s15 = sld [smem:[#allocation2 + $0xb8]] }
 0x33c   : > { %v5237_v42 = vmul.f32 %v15423_v63, %v5107_v36  ;;  %v5559_v35 = vor.u32 %v5558_v19, %v5557_v23  ;;  %v5563_v57 = vor.u32 4788187, %v5562_v62  ;;  %v5792_v47 = vclz %v8377_v61  ;;  %s13680_s17 = sld [smem:[#allocation2 + $0x138]] }
 0x33d   : > { %vm6023_vm12 = vc.u32 %v13457_v21, %v13446_v24  ;;  %v15424_v5 = vstv %s12799_s14  ;;  %v15425_v40 = vstv %s12817_s26  ;;  %v13516_v45 = vand.u32 3, %v5337_v37  ;;  %s13634_s14 = sld [smem:[#allocation2 + $0x98]] }
 0x33e   : > { %v5217_v43 = vmul.f32 %v15424_v5, %v5210_v56  ;;  %v5225_v7 = vmul.f32 %v15425_v40, %v5210_v56  ;;  %v6218_v30 = vsel %vm6217_vm11, %v6216_v34, 0  ;;  %v5214_v48 = vadd.f32 %v5213_v1, %v4978_v18  ;;  %s13645_s26 = sld [smem:[#allocation2 + $0x38]] }
 0x33f   : > { %v15426_v51 = vstv %s12918_s16  ;;  %v15427_v2 = vstv %s12987_s18  ;;  %v6021_v17 = vmul.u32 %v13416_v58, %v6005_v6  ;;  %v5222_v28 = vadd.f32 %v5221_v50, %v4986_v15  ;;  %s13665_s16 = sld [smem:[#allocation2 + $0x118]] }
 0x340   : > { %v5233_v32 = vmul.f32 %v15426_v51, %v5210_v56  ;;  %v5241_v27 = vmul.f32 %v15427_v2, %v5210_v56  ;;  %v5230_v38 = vadd.f32 %v5229_v16, %v4994_v12  ;;  %v5238_v11 = vadd.f32 %v5237_v42, %v5002_v4  ;;  %s13801_s18 = sld [smem:[#allocation2 + $0x198]] }
 0x341   : > { %v6025_v13 = vsel %vm6023_vm12, %v6024_v31, %v13447_v10  ;;  %v5564_v14 = vand.u32 2147483647, %v5563_v57  ;;  %v5566_v0 = vcvt.s32.f32 %v5559_v35  ;;  %v8378_v9 = vadd.s32 4294967294, %v5792_v47 }
 0x342   : > { %v6220_v34 = vand.u32 31, %v6218_v30  ;;  %v5704_v18 = vstv %s13443_s28  ;;  %v5708_v36 = vstv %s13450_s23  ;;  %v5712_v23 = vstv %s13462_s0  ;;  %v13540_v10 = vpop.eup %8778  ;;  %s14319_s28 = sld [smem:[#allocation2 + $0x9a]] }
 0x343   : > { %v13532_v19 = vmul.f32 0.17782794, %v13088_v20  ;;  %v13534_v62 = vand.u32 3, %v5333_v60  ;;  %v5716_v61 = vstv %s13470_s24  ;;  %v5720_v58 = vstv %s13476_s3  ;;  %v13553_v4 = vpop.eup %8780  ;;  %s14324_s23 = sld [smem:[#allocation2 + $0xba]] }
 0x344   : > { %v13538_v25 = vadd.s32 %v6025_v13, %v6021_v17  ;;  %v13542_v3 = vadd.f32 %v5217_v43, %v5214_v48  ;;  %v13544_v15 = vadd.f32 %v5225_v7, %v5222_v28  ;;  %v13546_v12 = vadd.f32 %v5233_v32, %v5230_v38  ;;  %s14358_s0 = sld [smem:[#allocation2 + $0x11a]] }
 0x345   : > { %v13548_v60 = vadd.f32 %v5241_v27, %v5238_v11  ;;  %vm5340_vm13 = vcmp.eq.s32.totalorder %v13516_v45, 0  ;;  %vm5343_vm14 = vcmp.eq.s32.totalorder %v13516_v45, 2  ;;  %vm5486_vm15 = vcmp.lt.s32.totalorder %v12665_v39, 0  ;;  %s14390_s24 = sld [smem:[#allocation2 + $0x13a]] }
 0x346   : > { %v5567_v37 = vmul.f32 %v5566_v0, %v5564_v14  ;;  %vm8379_vm0 = vcmp.lt.s32.totalorder %v8378_v9, 0  ;;  %v5932_v56 = vstv %s13479_s4  ;;  %v13556_v8 = vsub.s32 32, %v6220_v34  ;;  %s14392_s3 = sld [smem:[#allocation2 + $0x19a]] }
 0x347   : > { %v6449_v33 = vand.u32 2139095040, %v13532_v19  ;;  %v6027_v6 = vadd.s32 536870912, %v13538_v25  ;;  %vm5339_vm1 = vcmp.lt.s32.totalorder %v13516_v45, 2  ;;  %v5341_v31 = vxor.u32 2147483648, %v13553_v4  ;;  %s14406_s4 = sld [smem:[#allocation2 + $0x1ba]] }
 0x348   : > { %v5344_v35 = vxor.u32 2147483648, %v13540_v10  ;;  %vm5446_vm2 = vcmp.eq.s32.totalorder %v13534_v62, 2  ;;  %v5570_v57 = vsub.s32 4, %v13154_v46  ;;  %v13572_v47 = vsel %vm8379_vm0, 0, %v8378_v9 }
 0x349   : > { %v5568_v5 = vxor.u32 2147483648, %v5567_v37  ;;  %v15177_v43 = vand.u32 2147483647, %v13351_v49  ;;  %v6232_v40 = vshll.u32 %v15256_v52, %v6220_v34  ;;  %v6233_v7 = vshrl.u32 %v15216_v29, %v13556_v8 }
 0x34a   : > { %vm5443_vm3 = vcmp.eq.s32.totalorder %v13534_v62, 0  ;;  %v15428_v48 = vand.u32 2147483647, %v12665_v39  ;;  %v13585_v32 = vshrl.u32 %v6218_v30, 5  ;;  %v6235_v2 = vshll.u32 %v15216_v29, %v6220_v34 }
 0x34b   : > { %v6236_v27 = vshrl.u32 %v15217_v59, %v13556_v8  ;;  %v6450_v17 = vshrl.u32 %v6449_v33, 23  ;;  %vm5336_vm5 = vweird.f32 %v12452_v53  ;;  %v5800_v28 = vsub.s32 4294967266, %v13572_v47 }
 0x34c   : > { %vm13581_vm4 = vcmp.le.f32.partialorder %v15428_v48, 0.7853982  ;;  %v13592_v38 = vshrl.u32 %v6027_v6, 30  ;;  %v6223_v11 = vshll.u32 %v15301_v26, %v6220_v34  ;;  %v6226_v13 = vshll.u32 %v15218_v54, %v6220_v34  ;;  %v15431_v6 = vld [vmem:[#allocation14_spill] sm:$0xff] }
 0x34d   : > { %v6224_v30 = vshrl.u32 %v15218_v54, %v13556_v8  ;;  %v6227_v14 = vshrl.u32 %v15324_v41, %v13556_v8  ;;  %v6229_v0 = vshll.u32 %v15324_v41, %v6220_v34  ;;  %v6230_v9 = vshrl.u32 %v15256_v52, %v13556_v8 }
 0x34e   : > { %v5571_v33 = vsel %vm5486_vm15, %v5570_v57, %v13154_v46  ;;  %v5780_v48 = vadd.s32 %v15431_v6, %v13206_v44  ;;  %v6213_v42 = vand.u32 8388607, %v15177_v43  ;;  %v6234_v63 = vor.u32 %v6233_v7, %v6232_v40 }
 0x34f   : > { %vm5442_vm6 = vcmp.lt.s32.totalorder %v13534_v62, 2  ;;  %v5796_v16 = vsub.s32 32, %v13572_v47  ;;  %v6237_v34 = vor.u32 %v6236_v27, %v6235_v2  ;;  %vm6241_vm7 = vcmp.lt.s32.totalorder %v13585_v32, 4 }
 0x350   : > { %v8425_v50 = vadd.s32 4294967169, %v6450_v17  ;;  %v5342_v46 = vsel %vm5340_vm13, %v13540_v10, %v5341_v31  ;;  %v5345_v44 = vsel %vm5343_vm14, %v5344_v35, %v13553_v4  ;;  %v5569_v57 = vsel %vm5486_vm15, %v5568_v5, %v5567_v37 }
 0x351   : > { %v5801_v40 = vadd.s32 127, %v5800_v28  ;;  %v6029_v7 = vshll.u32 %v13592_v38, 30  ;;  %v6225_v2 = vor.u32 %v6224_v30, %v6223_v11  ;;  %v6228_v27 = vor.u32 %v6227_v14, %v6226_v13 }
 0x352   : > { %v6231_v17 = vor.u32 %v6230_v9, %v6229_v0  ;;  %v6214_v6 = vor.u32 8388608, %v6213_v42  ;;  %vm6238_vm8 = vcmp.lt.s32.totalorder %v13585_v32, 1  ;;  %vm6240_vm9 = vcmp.lt.s32.totalorder %v13585_v32, 3 }
 0x353   : > { %v6247_v43 = vsel %vm6241_vm7, %v6234_v63, 920167782  ;;  %v5797_v22 = vshll.u32 %v13422_v55, %v13572_v47  ;;  %v5798_v37 = vshrl.u32 %v5780_v48, %v5796_v16  ;;  %v6251_v5 = vsel %vm6241_vm7, %v6237_v34, 1326507024 }
 0x354   : > { %v6456_v28 = vadd.s32 1, %v8425_v50  ;;  %v5346_v42 = vsel %vm5339_vm1, %v5342_v46, %v5345_v44  ;;  %v5448_v11 = vsel %vm5446_vm2, %v5344_v35, %v13553_v4  ;;  %v5573_v13 = vsel %vm13581_vm4, 0, %v5571_v33 }
 0x355   : > { %v5802_v30 = vshll.u32 %v5801_v40, 23  ;;  %v13648_v55 = vsub.s32 %v13538_v25, %v6029_v7  ;;  %vm6239_vm10 = vcmp.lt.s32.totalorder %v13585_v32, 2  ;;  %v6246_v45 = vsel %vm6238_vm8, %v6225_v2, %v6228_v27 }
 0x356   : > { %v6248_v50 = vsel %vm6240_vm9, %v6231_v17, %v6247_v43  ;;  %v5445_v16 = vsel %vm5443_vm3, %v13540_v10, %v5341_v31  ;;  %v5572_v25 = vsel %vm13581_vm4, %v12665_v39, %v5569_v57  ;;  %v6250_v35 = vsel %vm6238_vm8, %v6228_v27, %v6231_v17 }
 0x357   : > { %v6252_v47 = vsel %vm6240_vm9, %v6234_v63, %v6251_v5  ;;  %v5347_v4 = vsel %vm5336_vm5, nan, %v5346_v42  ;;  %v5799_v43 = vor.u32 %v5798_v37, %v5797_v22  ;;  %v13673_v14 = vshll.u32 %v6214_v6, 8 }
 0x358   : > { %vm6457_vm11 = vcmp.gt.s32.totalorder %v6456_v28, 0  ;;  %v5803_v10 = vor.u32 4788187, %v5802_v30  ;;  %v6249_v0 = vsel %vm6239_vm10, %v6246_v45, %v6248_v50  ;;  %8782 = vcosq.f32 %v5572_v25 }
 0x359   : > { %v5577_v9 = vadd.s32 3, %v5573_v13  ;;  %v6032_v33 = vsub.s32 0, %v13648_v55  ;;  %v6253_v22 = vsel %vm6239_vm10, %v6250_v35, %v6252_v47  ;;  %v5449_v63 = vsel %vm5442_vm6, %v5445_v16, %v5448_v11 }
 0x35a   : > { %v15432_v48 = vstv %s13005_s19  ;;  %8784 = vsinq.f32 %v5572_v25  ;;  %v6458_v46 = vsel %vm6457_vm11, %v6456_v28, 0  ;;  %v5806_v44 = vcvt.s32.f32 %v5799_v43  ;;  %s13826_s19 = sld [smem:[#allocation2 + $0x1b8]] }
 0x35b   : > { %v5453_v34 = vmul.f32 %v15432_v48, %v5347_v4  ;;  %v6222_v57 = vshrl.u32 %v15301_v26, %v13556_v8  ;;  %v13691_v40 = vmul.u32.u64.low %v13673_v14, %v6249_v0  ;;  %v13692_v7 = vmul.u32.u64.high %v13673_v14, %v6249_v0, %v13691_v40 }
 0x35c   : > { %v5804_v62 = vand.u32 2147483647, %v5803_v10  ;;  %v6243_v6 = vsel %vm6241_vm7, %v6231_v17, 2102212464  ;;  %v13698_v37 = vmul.u32.u64.low %v13673_v14, %v6253_v22  ;;  %v13699_v5 = vmul.u32.u64.high %v13673_v14, %v6253_v22, %v13698_v37 }
 0x35d   : > { %v5450_v28 = vsel %vm5336_vm5, nan, %v5449_v63  ;;  %v8394_v42 = vmin.u32 %v6032_v33, %v13648_v55  ;;  %v6460_v11 = vand.u32 31, %v6458_v46  ;;  %v15433_v30 = vstv %s13064_s21  ;;  %s13840_s21 = sld [smem:[#allocation2 + $0x99]] }
 0x35e   : > { %v5461_v45 = vmul.f32 %v15433_v30, %v5347_v4  ;;  %v15434_v17 = vstv %s13212_s22  ;;  %v15435_v47 = vstv %s13235_s2  ;;  %v6242_v53 = vsel %vm6238_vm8, %v6222_v57, %v6225_v2  ;;  %v15437_v30 = vld [vmem:[#allocation15_spill] sm:$0xff]  ;;  %s13907_s22 = sld [smem:[#allocation2 + $0xb9]] }
 0x35f   : > { %v5469_v35 = vmul.f32 %v15434_v17, %v5347_v4  ;;  %v5477_v43 = vmul.f32 %v15435_v47, %v5347_v4  ;;  %v6244_v10 = vsel %vm6240_vm9, %v6228_v27, %v6243_v6  ;;  %v5454_v0 = vadd.f32 %v5453_v34, %v13542_v3  ;;  %s13935_s2 = sld [smem:[#allocation2 + $0x139]] }
 0x360   : > { %v15436_v33 = vstv %s13016_s20  ;;  %v13721_v63 = vand.u32 3, %v5577_v9  ;;  %v5807_v48 = vmul.f32 %v5806_v44, %v5804_v62  ;;  %v13723_v37 = vand.u32 3, %v5573_v13  ;;  %s13829_s20 = sld [smem:[#allocation2 + $0x19]] }
 0x361   : > { %v5457_v22 = vmul.f32 %v15436_v33, %v5450_v28  ;;  %vm5726_vm12 = vcmp.lt.s32.totalorder %v15437_v30, 0  ;;  %v6034_v17 = vclz %v8394_v42  ;;  %v13727_v4 = vsub.s32 32, %v6460_v11  ;;  %v15444_v42 = vld [vmem:[#allocation13_spill] sm:$0xff] }
 0x362   : > { %v15438_v47 = vstv %s13200_s29  ;;  %v15439_v57 = vstv %s13220_s1  ;;  %v15440_v27 = vstv %s13238_s12  ;;  %v6245_v3 = vsel %vm6239_vm10, %v6242_v53, %v6244_v10  ;;  %s13853_s29 = sld [smem:[#allocation2 + $0x39]] }
 0x363   : > { %v5465_v2 = vmul.f32 %v15438_v47, %v5450_v28  ;;  %v5473_v8 = vmul.f32 %v15439_v57, %v5450_v28  ;;  %v13735_v6 = vmul.f32 %v15440_v27, %v5450_v28  ;;  %v5462_v9 = vadd.f32 %v5461_v45, %v13544_v15  ;;  %s13912_s1 = sld [smem:[#allocation2 + $0x119]] }
 0x364   : > { %v5470_v13 = vadd.f32 %v5469_v35, %v13546_v12  ;;  %v13742_v34 = vadd.f32 %v5477_v43, %v13548_v60  ;;  %v6264_v44 = vadd.s32 1, %v13692_v7  ;;  %v13745_v62 = vadd.f32 %v5457_v22, %v5454_v0  ;;  %s13939_s12 = sld [smem:[#allocation2 + $0x199]] }
 0x365   : > { %vm5580_vm13 = vcmp.eq.s32.totalorder %v13721_v63, 0  ;;  %vm5583_vm14 = vcmp.eq.s32.totalorder %v13721_v63, 2  ;;  %v15441_v28 = vand.u32 2147483647, %v15437_v30  ;;  %v5808_v15 = vxor.u32 2147483648, %v5807_v48  ;;  %v8783_v53 = vpop.eup %8782 }
 0x366   : > { %v5810_v12 = vsub.s32 4, %v15444_v42  ;;  %vm6263_vm0 = vc.u32 %v13699_v5, %v13691_v40  ;;  %v8395_v60 = vadd.s32 4294967294, %v6034_v17  ;;  %v6261_v45 = vmul.u32 %v13673_v14, %v6245_v3 }
 0x367   : > { %vm13751_vm15 = vcmp.le.f32.partialorder %v15441_v28, 0.7853982  ;;  %v6472_v35 = vshll.u32 %v15256_v52, %v6460_v11  ;;  %v6473_v43 = vshrl.u32 %v15216_v29, %v13727_v4  ;;  %vm5686_vm1 = vcmp.eq.s32.totalorder %v13723_v37, 2  ;;  %v8785_v17 = vpop.eup %8784 }
 0x368   : > { %v15179_v10 = vand.u32 2147483647, %v13532_v19  ;;  %v13764_v0 = vshrl.u32 %v6458_v46, 5  ;;  %v6475_v33 = vshll.u32 %v15216_v29, %v6460_v11  ;;  %v6476_v22 = vshrl.u32 %v15217_v59, %v13727_v4 }
 0x369   : > { %vm5683_vm2 = vcmp.eq.s32.totalorder %v13723_v37, 0  ;;  %v6265_v14 = vsel %vm6263_vm0, %v6264_v44, %v13692_v7  ;;  %v6463_v47 = vshll.u32 %v15301_v26, %v6460_v11  ;;  %v6466_v57 = vshll.u32 %v15218_v54, %v6460_v11 }
 0x36a   : > { %v13774_v27 = vmul.f32 0.07498942, %v13088_v20  ;;  %vm5579_vm3 = vcmp.lt.s32.totalorder %v13721_v63, 2  ;;  %v6464_v46 = vshrl.u32 %v15218_v54, %v13727_v4  ;;  %v6467_v3 = vshrl.u32 %v15324_v41, %v13727_v4 }
 0x36b   : > { %v6469_v28 = vshll.u32 %v15324_v41, %v6460_v11  ;;  %v6470_v7 = vshrl.u32 %v15256_v52, %v13727_v4  ;;  %v13784_v44 = vadd.f32 %v5465_v2, %v5462_v9  ;;  %v13786_v16 = vadd.f32 %v5473_v8, %v5470_v13 }
 0x36c   : > { %15445 = vst [vmem:[#allocation14_spill] sm:$0xff] %v13774_v27  ;;  %vm8396_vm4 = vcmp.lt.s32.totalorder %v8395_v60, 0  ;;  %v6474_v25 = vor.u32 %v6473_v43, %v6472_v35  ;;  %vm5682_vm5 = vcmp.lt.s32.totalorder %v13723_v37, 2  ;;  %v13789_v50 = vadd.s32 %v6265_v14, %v6261_v45 }
 0x36d   : > { %v6453_v51 = vand.u32 8388607, %v15179_v10  ;;  %v6477_v31 = vor.u32 %v6476_v22, %v6475_v33  ;;  %vm6481_vm6 = vcmp.lt.s32.totalorder %v13764_v0, 4  ;;  %vm5576_vm7 = vweird.f32 %v12665_v39 }
 0x36e   : > { %v5581_v11 = vxor.u32 2147483648, %v8785_v17  ;;  %v5584_v1 = vxor.u32 2147483648, %v8783_v53  ;;  %v5811_v8 = vsel %vm5726_vm12, %v5810_v12, %v15444_v42  ;;  %v6689_v2 = vand.u32 2139095040, %v13774_v27 }
 0x36f   : > { %v5809_v9 = vsel %vm5726_vm12, %v5808_v15, %v5807_v48  ;;  %v13803_v13 = vor.u32 %v6464_v46, %v6463_v47  ;;  %v13805_v45 = vor.u32 %v6467_v3, %v6466_v57  ;;  %v6471_v35 = vor.u32 %v6470_v7, %v6469_v28 }
 0x370   : > { %v13808_v43 = vsel %vm8396_vm4, 0, %v8395_v60  ;;  %vm6478_vm8 = vcmp.lt.s32.totalorder %v13764_v0, 1  ;;  %vm6480_vm9 = vcmp.lt.s32.totalorder %v13764_v0, 3  ;;  %v6487_v42 = vsel %vm6481_vm6, %v6474_v25, 920167782 }
 0x371   : > { %v5813_v48 = vsel %vm13751_vm15, 0, %v5811_v8  ;;  %v6267_v15 = vadd.s32 536870912, %v13789_v50  ;;  %v6454_v12 = vor.u32 8388608, %v6453_v51  ;;  %v6491_v33 = vsel %vm6481_vm6, %v6477_v31, 1326507024 }
 0x372   : > { %v5582_v60 = vsel %vm5580_vm13, %v8783_v53, %v5581_v11  ;;  %v5585_v22 = vsel %vm5583_vm14, %v5584_v1, %v8785_v17  ;;  %v5812_v14 = vsel %vm13751_vm15, %v15437_v30, %v5809_v9  ;;  %v6690_v47 = vshrl.u32 %v6689_v2, 23 }
 0x373   : > { %v6042_v57 = vsub.s32 4294967266, %v13808_v43  ;;  %vm6479_vm10 = vcmp.lt.s32.totalorder %v13764_v0, 2  ;;  %v6486_v31 = vsel %vm6478_vm8, %v13803_v13, %v13805_v45  ;;  %v6488_v51 = vsel %vm6480_vm9, %v6471_v35, %v6487_v42 }
 0x374   : > { %v5688_v32 = vsel %vm5686_vm1, %v5584_v1, %v8785_v17  ;;  %v5817_v46 = vadd.s32 3, %v5813_v48  ;;  %v6490_v3 = vsel %vm6478_vm8, %v13805_v45, %v6471_v35  ;;  %v6492_v28 = vsel %vm6480_vm9, %v6474_v25, %v6491_v33 }
 0x375   : > { %v5685_v7 = vsel %vm5683_vm2, %v8783_v53, %v5581_v11  ;;  %v6022_v8 = vadd.s32 %v13446_v24, %v13457_v21  ;;  %v13851_v2 = vshrl.u32 %v6267_v15, 30  ;;  %v13855_v1 = vshll.u32 %v6454_v12, 8 }
 0x376   : > { %v5586_v17 = vsel %vm5579_vm3, %v5582_v60, %v5585_v22  ;;  %8786 = vcosq.f32 %v5812_v14  ;;  %v6489_v9 = vsel %vm6479_vm10, %v6486_v31, %v6488_v51  ;;  %v8441_v25 = vadd.s32 4294967169, %v6690_v47 }
 0x377   : > { %8788 = vsinq.f32 %v5812_v14  ;;  %vm5968_vm11 = vcmp.lt.s32.totalorder %v13088_v20, 0  ;;  %v6038_v53 = vsub.s32 32, %v13808_v43  ;;  %v6043_v24 = vadd.s32 127, %v6042_v57 }
 0x378   : > { %v6493_v21 = vsel %vm6479_vm10, %v6490_v3, %v6492_v28  ;;  %v5482_v11 = vadd.f32 %v13735_v6, %v13742_v34  ;;  %v5689_v63 = vsel %vm5682_vm5, %v5685_v7, %v5688_v32  ;;  %v13869_v42 = vand.u32 3, %v5817_v46 }
 0x379   : > { %v13871_v15 = vand.u32 3, %v5813_v48  ;;  %v5587_v12 = vsel %vm5576_vm7, nan, %v5586_v17  ;;  %v6269_v33 = vshll.u32 %v13851_v2, 30  ;;  %v15446_v37 = vand.u32 2147483647, %v13088_v20 }
 0x37a   : > { %v13877_v60 = vmul.u32.u64.low %v13855_v1, %v6489_v9  ;;  %v13878_v6 = vmul.u32.u64.high %v13855_v1, %v6489_v9, %v13877_v60  ;;  %v6462_v48 = vshrl.u32 %v15301_v26, %v13727_v4  ;;  %v6696_v47 = vadd.s32 1, %v8441_v25 }
 0x37b   : > { %vm13883_vm12 = vcmp.le.f32.partialorder %v15446_v37, 0.7853982  ;;  %v13890_v22 = vmul.u32.u64.low %v13855_v1, %v6493_v21  ;;  %v13891_v14 = vmul.u32.u64.high %v13855_v1, %v6493_v21, %v13890_v22  ;;  %v6039_v57 = vshll.u32 %v13648_v55, %v13808_v43 }
 0x37c   : > { %v6040_v31 = vshrl.u32 %v6022_v8, %v6038_v53  ;;  %v6044_v51 = vshll.u32 %v6043_v24, 23  ;;  %v6483_v32 = vsel %vm6481_vm6, %v6471_v35, 2102212464  ;;  %v5690_v46 = vsel %vm5576_vm7, nan, %v5689_v63 }
 0x37d   : > { %v6052_v3 = vsub.s32 4, %v13592_v38  ;;  %v15449_v7 = vstv %s13251_s13  ;;  %v13910_v8 = vsub.s32 %v13789_v50, %v6269_v33  ;;  %v6482_v39 = vsel %vm6478_vm8, %v6462_v48, %v13803_v13  ;;  %s13969_s13 = sld [smem:[#allocation2 + $0x1b9]] }
 0x37e   : > { %v5693_v17 = vmul.f32 %v15449_v7, %v5587_v12  ;;  %v6484_v35 = vsel %vm6480_vm9, %v13805_v45, %v6483_v32  ;;  %vm6697_vm13 = vcmp.gt.s32.totalorder %v6696_v47, 0  ;;  %v15450_v25 = vstv %s13266_s27  ;;  %s14307_s27 = sld [smem:[#allocation2 + $0x3a]] }
 0x37f   : > { %v5697_v53 = vmul.f32 %v15450_v25, %v5690_v46  ;;  %vm5823_vm14 = vcmp.eq.s32.totalorder %v13869_v42, 2  ;;  %vm5926_vm15 = vcmp.eq.s32.totalorder %v13871_v15, 2  ;;  %v6041_v50 = vor.u32 %v6040_v31, %v6039_v57 }
 0x380   : > { %v6045_v24 = vor.u32 4788187, %v6044_v51  ;;  %v15451_v21 = vstv %s13260_s25  ;;  %v5705_v33 = vmul.f32 %v5704_v18, %v5690_v46  ;;  %v5709_v13 = vmul.f32 %v5708_v36, %v5587_v12  ;;  %s13978_s25 = sld [smem:[#allocation2 + $0x1a]] }
 0x381   : > { %v5701_v63 = vmul.f32 %v15451_v21, %v5587_v12  ;;  %vm5820_vm0 = vcmp.eq.s32.totalorder %v13869_v42, 0  ;;  %vm5923_vm1 = vcmp.eq.s32.totalorder %v13871_v15, 0  ;;  %v6053_v45 = vsel %vm5968_vm11, %v6052_v3, %v13592_v38 }
 0x382   : > { %v5717_v37 = vmul.f32 %v5716_v61, %v5587_v12  ;;  %v6485_v48 = vsel %vm6479_vm10, %v6482_v39, %v6484_v35  ;;  %v6504_v18 = vadd.s32 1, %v13878_v6  ;;  %v6698_v36 = vsel %vm6697_vm13, %v6696_v47, 0 }
 0x383   : > { %v5694_v22 = vadd.f32 %v5693_v17, %v13745_v62  ;;  %v5713_v57 = vmul.f32 %v5712_v23, %v5690_v46  ;;  %v6272_v38 = vsub.s32 0, %v13910_v8  ;;  %vm6503_vm2 = vc.u32 %v13891_v14, %v13877_v60  ;;  %v8787_v61 = vpop.eup %8786 }
 0x384   : > { %v6046_v12 = vand.u32 2147483647, %v6045_v24  ;;  %v6048_v0 = vcvt.s32.f32 %v6041_v50  ;;  %v6055_v31 = vsel %vm13883_vm12, 0, %v6053_v45  ;;  %v13954_v47 = vmul.f32 0.031622775, %v13088_v20  ;;  %v8789_v51 = vpop.eup %8788 }
 0x385   : > { %v5702_v62 = vadd.f32 %v5701_v63, %v13784_v44  ;;  %v5710_v23 = vadd.f32 %v5709_v13, %v13786_v16  ;;  %v6501_v32 = vmul.u32 %v13855_v1, %v6485_v48  ;;  %v6700_v3 = vand.u32 31, %v6698_v36 }
 0x386   : > { %v5718_v7 = vadd.f32 %v5717_v37, %v5482_v11  ;;  %v5721_v17 = vmul.f32 %v5720_v58, %v5690_v46  ;;  %v6505_v35 = vsel %vm6503_vm2, %v6504_v18, %v13878_v6  ;;  %v5824_v25 = vxor.u32 2147483648, %v8787_v61 }
 0x387   : > { %v6059_v50 = vadd.s32 3, %v6055_v31  ;;  %v8410_v24 = vmin.u32 %v6272_v38, %v13910_v8  ;;  %v13965_v45 = vadd.f32 %v5697_v53, %v5694_v22  ;;  %vm5819_vm3 = vcmp.lt.s32.totalorder %v13869_v42, 2 }
 0x388   : > { %v5821_v16 = vxor.u32 2147483648, %v8789_v51  ;;  %vm5922_vm4 = vcmp.lt.s32.totalorder %v13871_v15, 2  ;;  %v6049_v44 = vmul.f32 %v6048_v0, %v6046_v12  ;;  %v6929_v58 = vand.u32 2139095040, %v13954_v47 }
 0x389   : > { %v13972_v1 = vadd.f32 %v5705_v33, %v5702_v62  ;;  %v13974_v11 = vadd.f32 %v5713_v57, %v5710_v23  ;;  %v13976_v6 = vadd.s32 %v6505_v35, %v6501_v32  ;;  %v13980_v46 = vsub.s32 32, %v6700_v3 }
 0x38a   : > { %v13982_v53 = vadd.f32 %v5721_v17, %v5718_v7  ;;  %v13984_v63 = vand.u32 3, %v6055_v31  ;;  %v5825_v48 = vsel %vm5823_vm14, %v5824_v25, %v8789_v51  ;;  %v5928_v33 = vsel %vm5926_vm15, %v5824_v25, %v8789_v51 }
 0x38b   : > { %v13992_v18 = vand.u32 3, %v6059_v50  ;;  %v6274_v22 = vclz %v8410_v24  ;;  %vm5816_vm5 = vweird.f32 %v15437_v30  ;;  %v5822_v57 = vsel %vm5820_vm0, %v8787_v61, %v5821_v16 }
 0x38c   : > { %v5925_v38 = vsel %vm5923_vm1, %v8787_v61, %v5821_v16  ;;  %v6050_v12 = vxor.u32 2147483648, %v6049_v44  ;;  %v6930_v0 = vshrl.u32 %v6929_v58, 23  ;;  %v6507_v31 = vadd.s32 536870912, %v13976_v6 }
 0x38d   : > { %v15178_v62 = vand.u32 2147483647, %v13774_v27  ;;  %v6712_v51 = vshll.u32 %v15256_v52, %v6700_v3  ;;  %v6713_v23 = vshrl.u32 %v15216_v29, %v13980_v46  ;;  %v14004_v32 = vshrl.u32 %v6698_v36, 5 }
 0x38e   : > { %v6715_v7 = vshll.u32 %v15216_v29, %v6700_v3  ;;  %v6716_v61 = vshrl.u32 %v15217_v59, %v13980_v46  ;;  %v8457_v17 = vadd.s32 4294967169, %v6930_v0  ;;  %v8411_v35 = vadd.s32 4294967294, %v6274_v22 }
 0x38f   : > { %v6703_v25 = vshll.u32 %v15301_v26, %v6700_v3  ;;  %v6706_v50 = vshll.u32 %v15218_v54, %v6700_v3  ;;  %v6709_v24 = vshll.u32 %v15324_v41, %v6700_v3  ;;  %v6704_v16 = vshrl.u32 %v15218_v54, %v13980_v46 }
 0x390   : > { %v6707_v36 = vshrl.u32 %v15324_v41, %v13980_v46  ;;  %v6710_v58 = vshrl.u32 %v15256_v52, %v13980_v46  ;;  %v6936_v37 = vadd.s32 1, %v8457_v17  ;;  %v14019_v21 = vshrl.u32 %v6507_v31, 30 }
 0x391   : > { %v6714_v0 = vor.u32 %v6713_v23, %v6712_v51  ;;  %v6693_v39 = vand.u32 8388607, %v15178_v62  ;;  %v6717_v43 = vor.u32 %v6716_v61, %v6715_v7  ;;  %vm6721_vm6 = vcmp.lt.s32.totalorder %v14004_v32, 4 }
 0x392   : > { %15452 = vst [vmem:[#allocation15_spill] sm:$0xff] %v14019_v21  ;;  %vm6937_vm7 = vcmp.gt.s32.totalorder %v6936_v37, 0  ;;  %v5826_v3 = vsel %vm5819_vm3, %v5822_v57, %v5825_v48  ;;  %v5929_v55 = vsel %vm5922_vm4, %v5925_v38, %v5928_v33  ;;  %vm8412_vm8 = vcmp.lt.s32.totalorder %v8411_v35, 0 }
 0x393   : > { %v6938_v17 = vsel %vm6937_vm7, %v6936_v37, 0  ;;  %v6051_v31 = vsel %vm5968_vm11, %v6050_v12, %v6049_v44  ;;  %v14031_v22 = vor.u32 %v6704_v16, %v6703_v25  ;;  %v14033_v51 = vor.u32 %v6707_v36, %v6706_v50 }
 0x394   : > { %v6711_v23 = vor.u32 %v6710_v58, %v6709_v24  ;;  %v6509_v7 = vshll.u32 %v14019_v21, 30  ;;  %vm6718_vm9 = vcmp.lt.s32.totalorder %v14004_v32, 1  ;;  %vm6720_vm10 = vcmp.lt.s32.totalorder %v14004_v32, 3 }
 0x395   : > { %v6727_v42 = vsel %vm6721_vm6, %v6714_v0, 920167782  ;;  %v6277_v15 = vsel %vm8412_vm8, 0, %v8411_v35  ;;  %v6694_v37 = vor.u32 8388608, %v6693_v39  ;;  %v6731_v44 = vsel %vm6721_vm6, %v6717_v43, 1326507024 }
 0x396   : > { %v6940_v48 = vand.u32 31, %v6938_v17  ;;  %v5827_v33 = vsel %vm5816_vm5, nan, %v5826_v3  ;;  %v14046_v57 = vsel %vm5816_vm5, nan, %v5929_v55  ;;  %v6054_v38 = vsel %vm13883_vm12, %v13088_v20, %v6051_v31 }
 0x397   : > { %v6262_v39 = vadd.s32 %v13691_v40, %v13699_v5  ;;  %v6278_v12 = vsub.s32 32, %v6277_v15  ;;  %vm6719_vm11 = vcmp.lt.s32.totalorder %v14004_v32, 2  ;;  %v6726_v30 = vsel %vm6718_vm9, %v14031_v22, %v14033_v51 }
 0x398   : > { %v6728_v55 = vsel %vm6720_vm10, %v6711_v23, %v6727_v42  ;;  %v6282_v43 = vsub.s32 4294967266, %v6277_v15  ;;  %v14061_v34 = vsub.s32 %v13976_v6, %v6509_v7  ;;  %v6730_v40 = vsel %vm6718_vm9, %v14033_v51, %v6711_v23 }
 0x399   : > { %v6732_v5 = vsel %vm6720_vm10, %v6714_v0, %v6731_v44  ;;  %v5933_v61 = vmul.f32 %v5932_v56, %v5827_v33  ;;  %v15453_v35 = vstv %s13497_s30  ;;  %v14075_v50 = vshll.u32 %v6694_v37, 8  ;;  %s14490_s30 = sld [smem:[#allocation2 + $0x9b]] }
 0x39a   : > { %v14073_v25 = vmul.f32 %v15453_v35, %v14046_v57  ;;  %v14077_v24 = vsub.s32 32, %v6940_v48  ;;  %v15454_v16 = vstv %s13489_s6  ;;  %v15455_v36 = vstv %s13503_s5  ;;  %s14420_s6 = sld [smem:[#allocation2 + $0x1b]] }
 0x39b   : > { %v14081_v6 = vmul.f32 %v15454_v16, %v5827_v33  ;;  %v14086_v58 = vmul.f32 %v15455_v36, %v14046_v57  ;;  %v15456_v3 = vstv %s13508_s7  ;;  %v6729_v56 = vsel %vm6719_vm11, %v6726_v30, %v6728_v55  ;;  %s14499_s5 = sld [smem:[#allocation2 + $0x3b]] }
 0x39c   : > { %v14090_v31 = vmul.f32 %v15456_v3, %v5827_v33  ;;  %v15457_v0 = vstv %s13518_s8  ;;  %8790 = vcosq.f32 %v6054_v38  ;;  %v6279_v42 = vshll.u32 %v13910_v8, %v6277_v15  ;;  %s14503_s7 = sld [smem:[#allocation2 + $0xbb]] }
 0x39d   : > { %v14097_v7 = vmul.f32 %v15457_v0, %v14046_v57  ;;  %v6733_v37 = vsel %vm6719_vm11, %v6730_v40, %v6732_v5  ;;  %v6280_v44 = vshrl.u32 %v6262_v39, %v6278_v12  ;;  %v6283_v35 = vadd.s32 127, %v6282_v43  ;;  %s14513_s8 = sld [smem:[#allocation2 + $0x11b]] }
 0x39e   : > { %v6512_v16 = vsub.s32 0, %v14061_v34  ;;  %v6926_v36 = vand.u32 2147483647, %v13954_v47  ;;  %v14105_v3 = vmul.u32.u64.low %v14075_v50, %v6729_v56  ;;  %v14106_v13 = vmul.u32.u64.high %v14075_v50, %v6729_v56, %v14105_v3 }
 0x39f   : > { %v6952_v30 = vshll.u32 %v15256_v52, %v6940_v48  ;;  %v6953_v55 = vshrl.u32 %v15216_v29, %v14077_v24  ;;  %v6702_v8 = vshrl.u32 %v15301_v26, %v13980_v46  ;;  %v14118_v12 = vshrl.u32 %v6938_v17, 5 }
 0x3a0   : > { %v14115_v15 = vmul.u32.u64.low %v14075_v50, %v6733_v37  ;;  %v14116_v39 = vmul.u32.u64.high %v14075_v50, %v6733_v37, %v14115_v15  ;;  %v6943_v43 = vshll.u32 %v15301_v26, %v6940_v48  ;;  %v6946_v40 = vshll.u32 %v15218_v54, %v6940_v48 }
 0x3a1   : > { %v6955_v5 = vshll.u32 %v15216_v29, %v6940_v48  ;;  %v6956_v56 = vshrl.u32 %v15217_v59, %v14077_v24  ;;  %v6944_v0 = vshrl.u32 %v15218_v54, %v14077_v24  ;;  %v6947_v46 = vshrl.u32 %v15324_v41, %v14077_v24 }
 0x3a2   : > { %v6949_v37 = vshll.u32 %v15324_v41, %v6940_v48  ;;  %v6950_v17 = vshrl.u32 %v15256_v52, %v14077_v24  ;;  %8792 = vsinq.f32 %v6054_v38  ;;  %vm6208_vm12 = vcmp.lt.s32.totalorder %v13351_v49, 0 }
 0x3a3   : > { %v6284_v15 = vshll.u32 %v6283_v35, 23  ;;  %v6723_v62 = vsel %vm6721_vm6, %v6711_v23, 2102212464  ;;  %v6954_v9 = vor.u32 %v6953_v55, %v6952_v30  ;;  %v15458_v28 = vstv %s13524_s9  ;;  %s14516_s9 = sld [smem:[#allocation2 + $0x13b]] }
 0x3a4   : > { %v5957_v4 = vmul.f32 %v15458_v28, %v5827_v33  ;;  %v8426_v10 = vmin.u32 %v6512_v16, %v14061_v34  ;;  %v6933_v27 = vand.u32 8388607, %v6926_v36  ;;  %vm6961_vm13 = vcmp.lt.s32.totalorder %v14118_v12, 4 }
 0x3a5   : > { %v6281_v48 = vor.u32 %v6280_v44, %v6279_v42  ;;  %v6722_v38 = vsel %vm6718_vm9, %v6702_v8, %v14031_v22  ;;  %v6957_v21 = vor.u32 %v6956_v56, %v6955_v5  ;;  %v14145_v35 = vmul.f32 0.013335214, %v13088_v20 }
 0x3a6   : > { %v15459_v23 = vand.u32 2147483647, %v13351_v49  ;;  %v6724_v33 = vsel %vm6720_vm10, %v14033_v51, %v6723_v62  ;;  %v14156_v16 = vor.u32 %v6944_v0, %v6943_v43  ;;  %v14158_v42 = vor.u32 %v6947_v46, %v6946_v40 }
 0x3a7   : > { %v6951_v44 = vor.u32 %v6950_v17, %v6949_v37  ;;  %v6285_v22 = vor.u32 4788187, %v6284_v15  ;;  %vm6958_vm15 = vcmp.lt.s32.totalorder %v14118_v12, 1  ;;  %vm6960_vm0 = vcmp.lt.s32.totalorder %v14118_v12, 3 }
 0x3a8   : > { %vm14149_vm14 = vcmp.le.f32.partialorder %v15459_v23, 0.7853982  ;;  %v6967_v30 = vsel %vm6961_vm13, %v6954_v9, 920167782  ;;  %v5934_v55 = vadd.f32 %v5933_v61, %v13965_v45  ;;  %v6292_v8 = vsub.s32 4, %v13851_v2 }
 0x3a9   : > { %v6514_v5 = vclz %v8426_v10  ;;  %v6934_v56 = vor.u32 8388608, %v6933_v27  ;;  %v6725_v62 = vsel %vm6719_vm11, %v6722_v38, %v6724_v33  ;;  %v6744_v51 = vadd.s32 1, %v14106_v13  ;;  %v8791_v0 = vpop.eup %8790 }
 0x3aa   : > { %v6971_v43 = vsel %vm6961_vm13, %v6957_v21, 1326507024  ;;  %v7169_v40 = vand.u32 2139095040, %v14145_v35  ;;  %vm6743_vm1 = vc.u32 %v14116_v39, %v14105_v3  ;;  %vm6959_vm2 = vcmp.lt.s32.totalorder %v14118_v12, 2 }
 0x3ab   : > { %v6966_v10 = vsel %vm6958_vm15, %v14156_v16, %v14158_v42  ;;  %v6968_v27 = vsel %vm6960_vm0, %v6951_v44, %v6967_v30  ;;  %vm6065_vm3 = vcmp.eq.s32.totalorder %v13992_v18, 2  ;;  %vm6168_vm4 = vcmp.eq.s32.totalorder %v13984_v63, 2 }
 0x3ac   : > { %v6286_v21 = vand.u32 2147483647, %v6285_v22  ;;  %v6288_v45 = vcvt.s32.f32 %v6281_v48  ;;  %v6970_v32 = vsel %vm6958_vm15, %v14158_v42, %v6951_v44  ;;  %v6972_v61 = vsel %vm6960_vm0, %v6954_v9, %v6971_v43 }
 0x3ad   : > { %vm6062_vm5 = vcmp.eq.s32.totalorder %v13992_v18, 0  ;;  %vm6165_vm6 = vcmp.eq.s32.totalorder %v13984_v63, 0  ;;  %v6293_v46 = vsel %vm6208_vm12, %v6292_v8, %v13851_v2  ;;  %v8427_v37 = vadd.s32 4294967294, %v6514_v5 }
 0x3ae   : > { %v6741_v17 = vmul.u32 %v14075_v50, %v6725_v62  ;;  %v14194_v15 = vshll.u32 %v6934_v56, 8  ;;  %v15462_v48 = vstv %s13612_s10  ;;  %v6745_v9 = vsel %vm6743_vm1, %v6744_v51, %v14106_v13  ;;  %s14524_s10 = sld [smem:[#allocation2 + $0x19b]] }
 0x3af   : > { %v5961_v38 = vmul.f32 %v15462_v48, %v14046_v57  ;;  %v6969_v23 = vsel %vm6959_vm2, %v6966_v10, %v6968_v27  ;;  %v7170_v33 = vshrl.u32 %v7169_v40, 23  ;;  %v5942_v2 = vadd.f32 %v14081_v6, %v13972_v1  ;;  %v8793_v56 = vpop.eup %8792 }
 0x3b0   : > { %v5950_v50 = vadd.f32 %v14090_v31, %v13974_v11  ;;  %v5958_v22 = vadd.f32 %v5957_v4, %v13982_v53  ;;  %v6973_v57 = vsel %vm6959_vm2, %v6970_v32, %v6972_v61  ;;  %v14213_v30 = vadd.f32 %v14073_v25, %v5934_v55 }
 0x3b1   : > { %v6289_v8 = vmul.f32 %v6288_v45, %v6286_v21  ;;  %v6295_v13 = vsel %vm14149_vm14, 0, %v6293_v46  ;;  %v8473_v5 = vadd.s32 4294967169, %v7170_v33  ;;  %vm8428_vm7 = vcmp.lt.s32.totalorder %v8427_v37, 0 }
 0x3b2   : > { %v14217_v62 = vadd.s32 %v6745_v9, %v6741_v17  ;;  %v14220_v1 = vmul.u32.u64.low %v14194_v15, %v6969_v23  ;;  %v14221_v11 = vmul.u32.u64.high %v14194_v15, %v6969_v23, %v14220_v1  ;;  %v6942_v4 = vshrl.u32 %v15301_v26, %v14077_v24 }
 0x3b3   : > { %v14227_v53 = vmul.u32.u64.low %v14194_v15, %v6973_v57  ;;  %v14228_v25 = vmul.u32.u64.high %v14194_v15, %v6973_v57, %v14227_v53  ;;  %v7176_v6 = vadd.s32 1, %v8473_v5  ;;  %v14231_v31 = vadd.f32 %v14086_v58, %v5942_v2 }
 0x3b4   : > { %v6066_v55 = vxor.u32 2147483648, %v8791_v0  ;;  %v6299_v51 = vadd.s32 3, %v6295_v13  ;;  %v6963_v43 = vsel %vm6961_vm13, %v6951_v44, 2102212464  ;;  %v14236_v40 = vadd.f32 %v14097_v7, %v5950_v50 }
 0x3b5   : > { %v6063_v10 = vxor.u32 2147483648, %v8793_v56  ;;  %v6290_v27 = vxor.u32 2147483648, %v6289_v8  ;;  %vm7177_vm8 = vcmp.gt.s32.totalorder %v7176_v6, 0  ;;  %v14238_v24 = vadd.f32 %v5961_v38, %v5958_v22 }
 0x3b6   : > { %v14240_v21 = vsel %vm8428_vm7, 0, %v8427_v37  ;;  %v6747_v45 = vadd.s32 536870912, %v14217_v62  ;;  %v7178_v32 = vsel %vm7177_vm8, %v7176_v6, 0  ;;  %v6962_v58 = vsel %vm6958_vm15, %v6942_v4, %v14156_v16 }
 0x3b7   : > { %v6964_v44 = vsel %vm6960_vm0, %v14158_v42, %v6963_v43  ;;  %v15184_v7 = vand.u32 2147483647, %v14145_v35  ;;  %v7180_v61 = vand.u32 31, %v7178_v32  ;;  %v14252_v46 = vsel %vm6065_vm3, %v6066_v55, %v8793_v56 }
 0x3b8   : > { %v14256_v37 = vsel %vm6168_vm4, %v6066_v55, %v8793_v56  ;;  %v14258_v17 = vand.u32 3, %v6299_v51  ;;  %v14260_v48 = vand.u32 3, %v6295_v13  ;;  %v14264_v16 = vsel %vm6062_vm5, %v8791_v0, %v6063_v10 }
 0x3b9   : > { %v14268_v42 = vsel %vm6165_vm6, %v8791_v0, %v6063_v10  ;;  %v6291_v38 = vsel %vm6208_vm12, %v6290_v27, %v6289_v8  ;;  %v7181_v9 = vsub.s32 32, %v7180_v61  ;;  %v6522_v23 = vsub.s32 4294967266, %v14240_v21 }
 0x3ba   : > { %v14273_v33 = vshrl.u32 %v6747_v45, 30  ;;  %v6965_v2 = vsel %vm6959_vm2, %v6962_v58, %v6964_v44  ;;  %v6984_v50 = vadd.s32 1, %v14221_v11  ;;  %vm6983_vm9 = vc.u32 %v14228_v25, %v14220_v1 }
 0x3bb   : > { %v7173_v0 = vand.u32 8388607, %v15184_v7  ;;  %v7183_v22 = vshll.u32 %v15301_v26, %v7180_v61  ;;  %v7186_v57 = vshll.u32 %v15218_v54, %v7180_v61  ;;  %v7184_v8 = vshrl.u32 %v15218_v54, %v7181_v9 }
 0x3bc   : > { %v7187_v13 = vshrl.u32 %v15324_v41, %v7181_v9  ;;  %v7192_v5 = vshll.u32 %v15256_v52, %v7180_v61  ;;  %v7193_v12 = vshrl.u32 %v15216_v29, %v7181_v9  ;;  %vm6061_vm10 = vcmp.lt.s32.totalorder %v13992_v18, 2 }
 0x3bd   : > { %v6981_v56 = vmul.u32 %v14194_v15, %v6965_v2  ;;  %v14290_v4 = vshrl.u32 %v7178_v32, 5  ;;  %v7189_v53 = vshll.u32 %v15324_v41, %v7180_v61  ;;  %v7190_v6 = vshrl.u32 %v15256_v52, %v7181_v9 }
 0x3be   : > { %vm6164_vm11 = vcmp.lt.s32.totalorder %v13984_v63, 2  ;;  %v6502_v55 = vadd.s32 %v13877_v60, %v13891_v14  ;;  %v6985_v51 = vsel %vm6983_vm9, %v6984_v50, %v14221_v11  ;;  %v7195_v43 = vshll.u32 %v15216_v29, %v7180_v61 }
 0x3bf   : > { %v14300_v10 = vmul.f32 0.0056234132, %v13088_v20  ;;  %v6294_v15 = vsel %vm14149_vm14, %v13351_v49, %v6291_v38  ;;  %v6518_v27 = vsub.s32 32, %v14240_v21  ;;  %v6523_v45 = vadd.s32 127, %v6522_v23 }
 0x3c0   : > { %v7174_v32 = vor.u32 8388608, %v7173_v0  ;;  %vm6058_vm12 = vweird.f32 %v13088_v20  ;;  %v7185_v60 = vor.u32 %v7184_v8, %v7183_v22  ;;  %v7188_v14 = vor.u32 %v7187_v13, %v7186_v57 }
 0x3c1   : > { %v7194_v11 = vor.u32 %v7193_v12, %v7192_v5  ;;  %v7196_v58 = vshrl.u32 %v15217_v59, %v7181_v9  ;;  %v6749_v44 = vshll.u32 %v14273_v33, 30  ;;  %v14311_v61 = vadd.s32 %v6985_v51, %v6981_v56 }
 0x3c2   : > { %v7191_v2 = vor.u32 %v7190_v6, %v7189_v53  ;;  %vm7198_vm13 = vcmp.lt.s32.totalorder %v14290_v4, 1  ;;  %vm7200_vm14 = vcmp.lt.s32.totalorder %v14290_v4, 3  ;;  %vm7201_vm15 = vcmp.lt.s32.totalorder %v14290_v4, 4 }
 0x3c3   : > { %v7197_v28 = vor.u32 %v7196_v58, %v7195_v43  ;;  %v7409_v38 = vand.u32 2139095040, %v14300_v10  ;;  %8794 = vcosq.f32 %v6294_v15  ;;  %v6519_v23 = vshll.u32 %v14061_v34, %v14240_v21 }
 0x3c4   : > { %vm7199_vm0 = vcmp.lt.s32.totalorder %v14290_v4, 2  ;;  %v14322_v50 = vshll.u32 %v7174_v32, 8  ;;  %v6520_v0 = vshrl.u32 %v6502_v55, %v6518_v27  ;;  %v6524_v22 = vshll.u32 %v6523_v45, 23 }
 0x3c5   : > { %v7206_v57 = vsel %vm7198_vm13, %v7185_v60, %v7188_v14  ;;  %v7207_v8 = vsel %vm7201_vm15, %v7194_v11, 920167782  ;;  %v14331_v13 = vsub.s32 %v14217_v62, %v6749_v44  ;;  %v6987_v34 = vadd.s32 536870912, %v14311_v61 }
 0x3c6   : > { %v7208_v21 = vsel %vm7200_vm14, %v7191_v2, %v7207_v8  ;;  %v7210_v5 = vsel %vm7198_vm13, %v7188_v14, %v7191_v2  ;;  %v7182_v12 = vshrl.u32 %v15301_v26, %v7181_v9  ;;  %v7211_v53 = vsel %vm7201_vm15, %v7197_v28, 1326507024 }
 0x3c7   : > { %v7209_v56 = vsel %vm7199_vm0, %v7206_v57, %v7208_v21  ;;  %v7410_v6 = vshrl.u32 %v7409_v38, 23  ;;  %v7203_v62 = vsel %vm7201_vm15, %v7191_v2, 2102212464  ;;  %v7212_v55 = vsel %vm7200_vm14, %v7194_v11, %v7211_v53  ;;  %v15466_v38 = vld [vmem:[#allocation15_spill] sm:$0xff] }
 0x3c8   : > { %v14348_v51 = vmul.u32.u64.low %v14322_v50, %v7209_v56  ;;  %v14349_v43 = vmul.u32.u64.high %v14322_v50, %v7209_v56, %v14348_v51  ;;  %v6068_v9 = vsel %vm6061_vm10, %v14264_v16, %v14252_v46  ;;  %vm6448_vm1 = vcmp.lt.s32.totalorder %v13532_v19, 0 }
 0x3c9   : > { %v6658_v27 = vstv %s14307_s27  ;;  %v7213_v45 = vsel %vm7199_vm0, %v7210_v5, %v7212_v55  ;;  %v8489_v32 = vadd.s32 4294967169, %v7410_v6  ;;  %v6171_v11 = vsel %vm6164_vm11, %v14268_v42, %v14256_v37  ;;  %s14852_s27 = sld [smem:[#allocation2 + $0x1e]] }
 0x3ca   : > { %8796 = vsinq.f32 %v6294_v15  ;;  %v6752_v18 = vsub.s32 0, %v14331_v13  ;;  %v14367_v46 = vshrl.u32 %v6987_v34, 30  ;;  %v7202_v16 = vsel %vm7198_vm13, %v7182_v12, %v7185_v60 }
 0x3cb   : > { %v7204_v58 = vsel %vm7200_vm14, %v7188_v14, %v7203_v62  ;;  %v14374_v44 = vmul.u32.u64.low %v14322_v50, %v7213_v45  ;;  %v14375_v2 = vmul.u32.u64.high %v14322_v50, %v7213_v45, %v14374_v44  ;;  %v6069_v63 = vsel %vm6058_vm12, nan, %v6068_v9 }
 0x3cc   : > { %v15463_v37 = vand.u32 2147483647, %v13532_v19  ;;  %v6521_v15 = vor.u32 %v6520_v0, %v6519_v23  ;;  %v6525_v60 = vor.u32 4788187, %v6524_v22  ;;  %v7416_v28 = vadd.s32 1, %v8489_v32 }
 0x3cd   : > { %v6172_v14 = vsel %vm6058_vm12, nan, %v6171_v11  ;;  %v6532_v57 = vsub.s32 4, %v15466_v38  ;;  %v6662_v8 = vstv %s14319_s28  ;;  %v8442_v21 = vmin.u32 %v6752_v18, %v14331_v13  ;;  %s14858_s28 = sld [smem:[#allocation2 + $0x3e]] }
 0x3ce   : > { %vm14381_vm2 = vcmp.le.f32.partialorder %v15463_v37, 0.7853982  ;;  %v6989_v23 = vshll.u32 %v14367_v46, 30  ;;  %v7205_v0 = vsel %vm7199_vm0, %v7202_v16, %v7204_v58  ;;  %v7224_v22 = vadd.s32 1, %v14349_v43 }
 0x3cf   : > { %v15467_v5 = vstv %s13625_s11  ;;  %v15468_v56 = vstv %s13634_s14  ;;  %v15469_v6 = vstv %s13665_s16  ;;  %vm6305_vm3 = vcmp.eq.s32.totalorder %v14258_v17, 2  ;;  %s14529_s11 = sld [smem:[#allocation2 + $0x1bb]] }
 0x3d0   : > { %v6175_v12 = vmul.f32 %v15467_v5, %v6069_v63  ;;  %v6183_v53 = vmul.f32 %v15468_v56, %v6069_v63  ;;  %v6191_v62 = vmul.f32 %v15469_v6, %v6069_v63  ;;  %vm7223_vm4 = vc.u32 %v14375_v2, %v14348_v51  ;;  %v14412_v32 = vpop.eup %8794  ;;  %s14535_s14 = sld [smem:[#allocation2 + $0x1c]] }
 0x3d1   : > { %v15470_v55 = vstv %s13801_s18  ;;  %v6526_v4 = vand.u32 2147483647, %v6525_v60  ;;  %v6528_v45 = vcvt.s32.f32 %v6521_v15  ;;  %vm7417_vm5 = vcmp.gt.s32.totalorder %v7416_v28, 0  ;;  %s14562_s16 = sld [smem:[#allocation2 + $0xbc]] }
 0x3d2   : > { %v6199_v9 = vmul.f32 %v15470_v55, %v6069_v63  ;;  %v15471_v11 = vstv %s13645_s26  ;;  %v15472_v16 = vstv %s13650_s15  ;;  %vm6408_vm6 = vcmp.eq.s32.totalorder %v14260_v48, 2  ;;  %s14544_s26 = sld [smem:[#allocation2 + $0x9c]] }
 0x3d3   : > { %v6179_v18 = vmul.f32 %v15471_v11, %v6172_v14  ;;  %v6187_v58 = vmul.f32 %v15472_v16, %v6172_v14  ;;  %v7221_v37 = vmul.u32 %v14322_v50, %v7205_v0  ;;  %v6533_v63 = vsel %vm6448_vm1, %v6532_v57, %v15466_v38  ;;  %s14556_s15 = sld [smem:[#allocation2 + $0x3c]] }
 0x3d4   : > { %v6754_v15 = vclz %v8442_v21  ;;  %v14427_v60 = vsub.s32 %v14311_v61, %v6989_v23  ;;  %v7225_v5 = vsel %vm7223_vm4, %v7224_v22, %v14349_v43  ;;  %v6176_v56 = vadd.f32 %v6175_v12, %v14213_v30  ;;  %s14658_s18 = sld [smem:[#allocation2 + $0x13c]] }
 0x3d5   : > { %v6184_v6 = vadd.f32 %v6183_v53, %v14231_v31  ;;  %v15473_v55 = vstv %s13680_s17  ;;  %v7418_v16 = vsel %vm7417_vm5, %v7416_v28, 0  ;;  %v6192_v7 = vadd.f32 %v6191_v62, %v14236_v40  ;;  %s14652_s17 = sld [smem:[#allocation2 + $0x11c]] }
 0x3d6   : > { %v6195_v11 = vmul.f32 %v15473_v55, %v6172_v14  ;;  %v6200_v50 = vadd.f32 %v6199_v9, %v14238_v24  ;;  %v15474_v0 = vstv %s13826_s19  ;;  %vm6302_vm7 = vcmp.eq.s32.totalorder %v14258_v17, 0  ;;  %s14663_s19 = sld [smem:[#allocation2 + $0x19c]] }
 0x3d7   : > { %v6203_v38 = vmul.f32 %v15474_v0, %v6172_v14  ;;  %v6529_v61 = vmul.f32 %v6528_v45, %v6526_v4  ;;  %v14441_v43 = vsel %vm14381_vm2, 0, %v6533_v63  ;;  %v14444_v31 = vadd.s32 %v7225_v5, %v7221_v37  ;;  %v8797_v21 = vpop.eup %8796 }
 0x3d8   : > { %v15185_v28 = vand.u32 2147483647, %v14300_v10  ;;  %v6306_v40 = vxor.u32 2147483648, %v14412_v32  ;;  %vm6405_vm8 = vcmp.eq.s32.totalorder %v14260_v48, 0  ;;  %v8443_v24 = vadd.s32 4294967294, %v6754_v15 }
 0x3d9   : > { %v6992_v14 = vsub.s32 0, %v14427_v60  ;;  %v7420_v57 = vand.u32 31, %v7418_v16  ;;  %v14450_v23 = vadd.f32 %v6179_v18, %v6176_v56  ;;  %v14452_v22 = vadd.f32 %v6187_v58, %v6184_v6 }
 0x3da   : > { %v14456_v62 = vadd.f32 %v6195_v11, %v6192_v7  ;;  %v14458_v9 = vadd.f32 %v6203_v38, %v6200_v50  ;;  %v6530_v4 = vxor.u32 2147483648, %v6529_v61  ;;  %v14461_v37 = vadd.s32 3, %v14441_v43 }
 0x3db   : > { %v7421_v45 = vsub.s32 32, %v7420_v57  ;;  %v7227_v15 = vadd.s32 536870912, %v14444_v31  ;;  %v7413_v18 = vand.u32 8388607, %v15185_v28  ;;  %v6303_v5 = vxor.u32 2147483648, %v8797_v21 }
 0x3dc   : > { %v14469_v58 = vsel %vm6305_vm3, %v6306_v40, %v8797_v21  ;;  %vm8444_vm9 = vcmp.lt.s32.totalorder %v8443_v24, 0  ;;  %v8458_v7 = vmin.u32 %v6992_v14, %v14427_v60  ;;  %v7423_v56 = vshll.u32 %v15301_v26, %v7420_v57 }
 0x3dd   : > { %v7424_v6 = vshrl.u32 %v15218_v54, %v7421_v45  ;;  %v7426_v55 = vshll.u32 %v15218_v54, %v7420_v57  ;;  %v7427_v11 = vshrl.u32 %v15324_v41, %v7421_v45  ;;  %v14478_v50 = vsel %vm6408_vm6, %v6306_v40, %v8797_v21 }
 0x3de   : > { %v6531_v0 = vsel %vm6448_vm1, %v6530_v4, %v6529_v61  ;;  %v14482_v38 = vshrl.u32 %v7418_v16, 5  ;;  %v7429_v63 = vshll.u32 %v15324_v41, %v7420_v57  ;;  %v14485_v14 = vsel %vm8444_vm9, 0, %v8443_v24 }
 0x3df   : > { %v14487_v28 = vshrl.u32 %v7227_v15, 30  ;;  %v7414_v53 = vor.u32 8388608, %v7413_v18  ;;  %v7430_v30 = vshrl.u32 %v15256_v52, %v7421_v45  ;;  %v7432_v34 = vshll.u32 %v15256_v52, %v7420_v57 }
 0x3e0   : > { %v7433_v40 = vshrl.u32 %v15216_v29, %v7421_v45  ;;  %v7435_v21 = vshll.u32 %v15216_v29, %v7420_v57  ;;  %v7436_v16 = vshrl.u32 %v15217_v59, %v7421_v45  ;;  %v6304_v61 = vsel %vm6302_vm7, %v14412_v32, %v6303_v5 }
 0x3e1   : > { %v6994_v24 = vclz %v8458_v7  ;;  %v7425_v4 = vor.u32 %v7424_v6, %v7423_v56  ;;  %v7428_v15 = vor.u32 %v7427_v11, %v7426_v55  ;;  %vm6301_vm10 = vcmp.lt.s32.totalorder %v14258_v17, 2 }
 0x3e2   : > { %vm6404_vm11 = vcmp.lt.s32.totalorder %v14260_v48, 2  ;;  %v7431_v18 = vor.u32 %v7430_v30, %v7429_v63  ;;  %v7434_v12 = vor.u32 %v7433_v40, %v7432_v34  ;;  %v7437_v57 = vor.u32 %v7436_v16, %v7435_v21 }
 0x3e3   : > { %vm7438_vm12 = vcmp.lt.s32.totalorder %v14482_v38, 1  ;;  %v6407_v44 = vsel %vm6405_vm8, %v14412_v32, %v6303_v5  ;;  %v6534_v7 = vsel %vm14381_vm2, %v13532_v19, %v6531_v0  ;;  %v6762_v56 = vsub.s32 4294967266, %v14485_v14 }
 0x3e4   : > { %v7229_v6 = vshll.u32 %v14487_v28, 30  ;;  %vm7439_vm13 = vcmp.lt.s32.totalorder %v14482_v38, 2  ;;  %vm7440_vm14 = vcmp.lt.s32.totalorder %v14482_v38, 3  ;;  %vm7441_vm15 = vcmp.lt.s32.totalorder %v14482_v38, 4 }
 0x3e5   : > { %v14521_v34 = vshll.u32 %v7414_v53, 8  ;;  %vm6298_vm0 = vweird.f32 %v13351_v49  ;;  %v8459_v42 = vadd.s32 4294967294, %v6994_v24  ;;  %v7422_v32 = vshrl.u32 %v15301_v26, %v7421_v45 }
 0x3e6   : > { %v7446_v30 = vsel %vm7438_vm12, %v7425_v4, %v7428_v15  ;;  %v7447_v63 = vsel %vm7441_vm15, %v7434_v12, 920167782  ;;  %v7443_v5 = vsel %vm7441_vm15, %v7431_v18, 2102212464  ;;  %v7450_v53 = vsel %vm7438_vm12, %v7428_v15, %v7431_v18 }
 0x3e7   : > { %v7448_v55 = vsel %vm7440_vm14, %v7431_v18, %v7447_v63  ;;  %v7451_v11 = vsel %vm7441_vm15, %v7437_v57, 1326507024  ;;  %8798 = vcosq.f32 %v6534_v7  ;;  %v14538_v0 = vsub.s32 %v14444_v31, %v7229_v6 }
 0x3e8   : > { %v7449_v45 = vsel %vm7439_vm13, %v7446_v30, %v7448_v55  ;;  %v7452_v40 = vsel %vm7440_vm14, %v7434_v12, %v7451_v11  ;;  %8800 = vsinq.f32 %v6534_v7  ;;  %v6742_v24 = vadd.s32 %v14105_v3, %v14116_v39 }
 0x3e9   : > { %v7453_v21 = vsel %vm7439_vm13, %v7450_v53, %v7452_v40  ;;  %v14549_v31 = vmul.u32.u64.low %v14521_v34, %v7449_v45  ;;  %v14550_v16 = vmul.u32.u64.high %v14521_v34, %v7449_v45, %v14549_v31  ;;  %v6758_v18 = vsub.s32 32, %v14485_v14 }
 0x3ea   : > { %v7442_v12 = vsel %vm7438_vm12, %v7422_v32, %v7425_v4  ;;  %v7444_v57 = vsel %vm7440_vm14, %v7428_v15, %v7443_v5  ;;  %v6763_v7 = vadd.s32 127, %v6762_v56  ;;  %vm8460_vm1 = vcmp.lt.s32.totalorder %v8459_v42, 0 }
 0x3eb   : > { %v14565_v6 = vmul.u32.u64.low %v14521_v34, %v7453_v21  ;;  %v14566_v30 = vmul.u32.u64.high %v14521_v34, %v7453_v21, %v14565_v6  ;;  %v6902_v3 = vstv %s14490_s30  ;;  %v7232_v55 = vsub.s32 0, %v14538_v0  ;;  %s15022_s30 = sld [smem:[#allocation2 + $0x1f]] }
 0x3ec   : > { %v6910_v53 = vstv %s14513_s8  ;;  %v7445_v4 = vsel %vm7439_vm13, %v7442_v12, %v7444_v57  ;;  %v7464_v15 = vadd.s32 1, %v14550_v16  ;;  %v6308_v56 = vsel %vm6301_vm10, %v6304_v61, %v14469_v58  ;;  %s15037_s8 = sld [smem:[#allocation2 + $0xbf]] }
 0x3ed   : > { %v6411_v32 = vsel %vm6404_vm11, %v6407_v44, %v14478_v50  ;;  %v14584_v5 = vand.u32 3, %v14461_v37  ;;  %v14587_v45 = vsel %vm8460_vm1, 0, %v8459_v42  ;;  %v6759_v38 = vshll.u32 %v14331_v13, %v14485_v14 }
 0x3ee   : > { %v6760_v40 = vshrl.u32 %v6742_v24, %v6758_v18  ;;  %v6764_v17 = vshll.u32 %v6763_v7, 23  ;;  %vm7463_vm2 = vc.u32 %v14566_v30, %v14549_v31  ;;  %v14594_v48 = vand.u32 3, %v14441_v43 }
 0x3ef   : > { %v6918_v44 = vstv %s14524_s10  ;;  %v8474_v37 = vmin.u32 %v7232_v55, %v14538_v0  ;;  %v7461_v58 = vmul.u32 %v14521_v34, %v7445_v4  ;;  %v6309_v50 = vsel %vm6298_vm0, nan, %v6308_v56  ;;  %v15477_v55 = vld [vmem:[#allocation14_spill] sm:$0xff]  ;;  %s15067_s10 = sld [smem:[#allocation2 + $0x13f]] }
 0x3f0   : > { %v6412_v13 = vsel %vm6298_vm0, nan, %v6411_v32  ;;  %v7002_v14 = vsub.s32 4294967266, %v14587_v45  ;;  %v7465_v61 = vsel %vm7463_vm2, %v7464_v15, %v14550_v16  ;;  %vm6545_vm3 = vcmp.eq.s32.totalorder %v14584_v5, 2 }
 0x3f1   : > { %v6761_v18 = vor.u32 %v6760_v40, %v6759_v38  ;;  %v6765_v12 = vor.u32 4788187, %v6764_v17  ;;  %v14612_v57 = vmul.f32 0.0023713738, %v13088_v20  ;;  %v15475_v49 = vstv %s13829_s20  ;;  %s14668_s20 = sld [smem:[#allocation2 + $0x1bc]] }
 0x3f2   : > { %v6415_v7 = vmul.f32 %v15475_v49, %v6309_v50  ;;  %v15476_v6 = vstv %s13853_s29  ;;  %vm6542_vm4 = vcmp.eq.s32.totalorder %v14584_v5, 0  ;;  %vm6688_vm5 = vcmp.lt.s32.totalorder %v15477_v55, 0  ;;  %s14683_s29 = sld [smem:[#allocation2 + $0x9d]] }
 0x3f3   : > { %v6419_v16 = vmul.f32 %v15476_v6, %v6412_v13  ;;  %v7234_v4 = vclz %v8474_v37  ;;  %v7466_v15 = vadd.s32 %v7465_v61, %v7461_v58  ;;  %v15478_v32 = vstv %s13840_s21  ;;  %s14675_s21 = sld [smem:[#allocation2 + $0x1d]] }
 0x3f4   : > { %v14620_v56 = vpop.eup %8798  ;;  %v6423_v38 = vmul.f32 %v15478_v32, %v6309_v50  ;;  %vm6648_vm6 = vcmp.eq.s32.totalorder %v14594_v48, 2  ;;  %v6982_v20 = vadd.s32 %v14220_v1, %v14228_v25  ;;  %v6998_v40 = vsub.s32 32, %v14587_v45 }
 0x3f5   : > { %v7003_v17 = vadd.s32 127, %v7002_v14  ;;  %v8801_v49 = vpop.eup %8800  ;;  %v15479_v6 = vstv %s13907_s22  ;;  %v15480_v21 = vstv %s13912_s1  ;;  %v15481_v43 = vstv %s13935_s2  ;;  %s14691_s22 = sld [smem:[#allocation2 + $0x3d]] }
 0x3f6   : > { %v6427_v34 = vmul.f32 %v15479_v6, %v6412_v13  ;;  %v6431_v24 = vmul.f32 %v15480_v21, %v6309_v50  ;;  %v6435_v37 = vmul.f32 %v15481_v43, %v6412_v13  ;;  %vm6645_vm7 = vcmp.eq.s32.totalorder %v14594_v48, 0  ;;  %s14810_s1 = sld [smem:[#allocation2 + $0xbd]] }
 0x3f7   : > { %v7467_v58 = vadd.s32 536870912, %v7466_v15  ;;  %v15482_v61 = vstv %s13939_s12  ;;  %vm6541_vm8 = vcmp.lt.s32.totalorder %v14584_v5, 2  ;;  %v15483_v42 = vand.u32 2147483647, %v15477_v55  ;;  %s14817_s2 = sld [smem:[#allocation2 + $0x11d]] }
 0x3f8   : > { %v6439_v32 = vmul.f32 %v15482_v61, %v6309_v50  ;;  %v6766_v25 = vand.u32 2147483647, %v6765_v12  ;;  %v6768_v14 = vcvt.s32.f32 %v6761_v18  ;;  %v7649_v6 = vand.u32 2139095040, %v14612_v57  ;;  %s14826_s12 = sld [smem:[#allocation2 + $0x13d]] }
 0x3f9   : > { %vm14640_vm9 = vcmp.le.f32.partialorder %v15483_v42, 0.7853982  ;;  %v6416_v21 = vadd.f32 %v6415_v7, %v14450_v23  ;;  %v6772_v43 = vsub.s32 4, %v14273_v33  ;;  %v8475_v11 = vadd.s32 4294967294, %v7234_v4 }
 0x3fa   : > { %v14647_v39 = vshrl.u32 %v7467_v58, 30  ;;  %vm6644_vm10 = vcmp.lt.s32.totalorder %v14594_v48, 2  ;;  %v6999_v50 = vshll.u32 %v14427_v60, %v14587_v45  ;;  %v7000_v42 = vshrl.u32 %v6982_v20, %v6998_v40 }
 0x3fb   : > { %v7004_v61 = vshll.u32 %v7003_v17, 23  ;;  %v7650_v18 = vshrl.u32 %v7649_v6, 23  ;;  %v6424_v12 = vadd.f32 %v6423_v38, %v14452_v22  ;;  %v6432_v23 = vadd.f32 %v6431_v24, %v14456_v62 }
 0x3fc   : > { %vm6538_vm11 = vweird.f32 %v13532_v19  ;;  %v6546_v7 = vxor.u32 2147483648, %v14620_v56  ;;  %v7469_v4 = vshll.u32 %v14647_v39, 30  ;;  %v15486_v58 = vstv %s13969_s13  ;;  %s14834_s13 = sld [smem:[#allocation2 + $0x19d]] }
 0x3fd   : > { %v6443_v63 = vmul.f32 %v15486_v58, %v6412_v13  ;;  %v6543_v60 = vxor.u32 2147483648, %v8801_v49  ;;  %v6769_v45 = vmul.f32 %v6768_v14, %v6766_v25  ;;  %v8505_v20 = vadd.s32 4294967169, %v7650_v18 }
 0x3fe   : > { %v14665_v40 = vadd.f32 %v6419_v16, %v6416_v21  ;;  %v6440_v22 = vadd.f32 %v6439_v32, %v14458_v9  ;;  %vm8476_vm12 = vcmp.lt.s32.totalorder %v8475_v11, 0  ;;  %v14670_v62 = vsub.s32 %v7466_v15, %v7469_v4 }
 0x3ff   : > { %v6773_v24 = vsel %vm6688_vm5, %v6772_v43, %v14273_v33  ;;  %v7001_v38 = vor.u32 %v7000_v42, %v6999_v50  ;;  %v7005_v13 = vor.u32 4788187, %v7004_v61  ;;  %v7656_v17 = vadd.s32 1, %v8505_v20 }
 0x400   : > { %v14677_v25 = vadd.f32 %v6427_v34, %v6424_v12  ;;  %v14679_v16 = vadd.f32 %v6435_v37, %v6432_v23  ;;  %v6547_v9 = vsel %vm6545_vm3, %v6546_v7, %v8801_v49  ;;  %v7472_v15 = vsub.s32 0, %v14670_v62 }
 0x401   : > { %v6544_v33 = vsel %vm6542_vm4, %v14620_v56, %v6543_v60  ;;  %v6770_v32 = vxor.u32 2147483648, %v6769_v45  ;;  %v14689_v14 = vsel %vm8476_vm12, 0, %v8475_v11  ;;  %vm7657_vm13 = vcmp.gt.s32.totalorder %v7656_v17, 0 }
 0x402   : > { %v14693_v34 = vadd.f32 %v6443_v63, %v6440_v22  ;;  %v6650_v37 = vsel %vm6648_vm6, %v6546_v7, %v8801_v49  ;;  %v6775_v6 = vsel %vm14640_vm9, 0, %v6773_v24  ;;  %v8490_v21 = vmin.u32 %v7472_v15, %v14670_v62 }
 0x403   : > { %v6647_v11 = vsel %vm6645_vm7, %v14620_v56, %v6543_v60  ;;  %v7006_v43 = vand.u32 2147483647, %v7005_v13  ;;  %v7008_v50 = vcvt.s32.f32 %v7001_v38  ;;  %v7658_v42 = vsel %vm7657_vm13, %v7656_v17, 0 }
 0x404   : > { %v6548_v63 = vsel %vm6541_vm8, %v6544_v33, %v6547_v9  ;;  %v7150_v61 = vstv %s14652_s17  ;;  %v7242_v18 = vsub.s32 4294967266, %v14689_v14  ;;  %v7474_v49 = vclz %v8490_v21  ;;  %s15096_s17 = sld [smem:[#allocation4 + $0x3]] }
 0x405   : > { %v6771_v12 = vsel %vm6688_vm5, %v6770_v32, %v6769_v45  ;;  %vm6928_vm14 = vcmp.lt.s32.totalorder %v13954_v47, 0  ;;  %v7154_v23 = vstv %s14658_s18  ;;  %v7158_v7 = vstv %s14663_s19  ;;  %s15517_s18 = sld [smem:[#allocation9_spill]] }
 0x406   : > { %v7660_v56 = vand.u32 31, %v7658_v42  ;;  %v6651_v4 = vsel %vm6644_vm10, %v6647_v11, %v6650_v37  ;;  %v6779_v5 = vadd.s32 3, %v6775_v6  ;;  %v8491_v60 = vadd.s32 4294967294, %v7474_v49 }
 0x407   : > { %v14717_v20 = vsel %vm6538_vm11, nan, %v6548_v63  ;;  %v7009_v22 = vmul.f32 %v7008_v50, %v7006_v43  ;;  %v7222_v45 = vadd.s32 %v14348_v51, %v14375_v2  ;;  %v7238_v24 = vsub.s32 32, %v14689_v14 }
 0x408   : > { %v6774_v38 = vsel %vm14640_vm9, %v15477_v55, %v6771_v12  ;;  %v7243_v48 = vadd.s32 127, %v7242_v18  ;;  %v15186_v17 = vand.u32 2147483647, %v14612_v57  ;;  %v14727_v9 = vand.u32 3, %v6775_v6 }
 0x409   : > { %v7661_v32 = vsub.s32 32, %v7660_v56  ;;  %v14733_v37 = vsel %vm6538_vm11, nan, %v6651_v4  ;;  %v15487_v51 = vstv %s13978_s25  ;;  %v14740_v21 = vand.u32 3, %v6779_v5  ;;  %s14843_s25 = sld [smem:[#allocation2 + $0x1bd]] }
 0x40a   : > { %v14738_v2 = vmul.f32 %v15487_v51, %v14717_v20  ;;  %vm14744_vm15 = vcmp.le.f32.partialorder %v6926_v36, 0.7853982  ;;  %vm8492_vm0 = vcmp.lt.s32.totalorder %v8491_v60, 0  ;;  %8802 = vcosq.f32 %v6774_v38 }
 0x40b   : > { %v7010_v6 = vxor.u32 2147483648, %v7009_v22  ;;  %v7239_v19 = vshll.u32 %v14538_v0, %v14689_v14  ;;  %v7240_v11 = vshrl.u32 %v7222_v45, %v7238_v24  ;;  %v7244_v43 = vshll.u32 %v7243_v48, 23  ;;  %s15518_s19 = sshll.u32 %s15517_s18, 5 }
 0x40c   : > { %v7653_v50 = vand.u32 8388607, %v15186_v17  ;;  %v7659_v63 = vshrl.u32 %v7658_v42, 5  ;;  %v7663_v18 = vshll.u32 %v15301_v26, %v7660_v56  ;;  %v14753_v36 = vsel %vm8492_vm0, 0, %v8491_v60 }
 0x40d   : > { %v7664_v49 = vshrl.u32 %v15218_v54, %v7661_v32  ;;  %v7666_v12 = vshll.u32 %v15218_v54, %v7660_v56  ;;  %v7667_v4 = vshrl.u32 %v15324_v41, %v7661_v32  ;;  %v7669_v5 = vshll.u32 %v15324_v41, %v7660_v56 }
 0x40e   : > { %v7670_v0 = vshrl.u32 %v15256_v52, %v7661_v32  ;;  %v7672_v14 = vshll.u32 %v15256_v52, %v7660_v56  ;;  %v7673_v45 = vshrl.u32 %v15216_v29, %v7661_v32  ;;  %v14765_v42 = vmul.f32 %v6658_v27, %v14733_v37 }
 0x40f   : > { %v14770_v60 = vmul.f32 %v6662_v8, %v14717_v20  ;;  %8804 = vsinq.f32 %v6774_v38  ;;  %v7012_v54 = vsub.s32 4, %v14367_v46  ;;  %v7011_v41 = vsel %vm6928_vm14, %v7010_v6, %v7009_v22 }
 0x410   : > { %v7482_v24 = vsub.s32 4294967266, %v14753_v36  ;;  %v7675_v52 = vshll.u32 %v15216_v29, %v7660_v56  ;;  %v7676_v48 = vshrl.u32 %v15217_v59, %v7661_v32  ;;  %v7241_v51 = vor.u32 %v7240_v11, %v7239_v19 }
 0x411   : > { %v7654_v15 = vor.u32 8388608, %v7653_v50  ;;  %v7665_v27 = vor.u32 %v7664_v49, %v7663_v18  ;;  %v7668_v33 = vor.u32 %v7667_v4, %v7666_v12  ;;  %v7245_v13 = vor.u32 4788187, %v7244_v43 }
 0x412   : > { %v7671_v17 = vor.u32 %v7670_v0, %v7669_v5  ;;  %v7674_v8 = vor.u32 %v7673_v45, %v7672_v14  ;;  %vm7678_vm1 = vcmp.lt.s32.totalorder %v7659_v63, 1  ;;  %v7462_v38 = vadd.s32 %v14549_v31, %v14566_v30 }
 0x413   : > { %v7478_v58 = vsub.s32 32, %v14753_v36  ;;  %v7662_v22 = vshrl.u32 %v15301_v26, %v7661_v32  ;;  %vm7681_vm2 = vcmp.lt.s32.totalorder %v7659_v63, 4  ;;  %v7483_v6 = vadd.s32 127, %v7482_v24 }
 0x414   : > { %v7677_v29 = vor.u32 %v7676_v48, %v7675_v52  ;;  %vm7680_vm3 = vcmp.lt.s32.totalorder %v7659_v63, 3  ;;  %v7683_v59 = vsel %vm7681_vm2, %v7671_v17, 2102212464  ;;  %v7014_v56 = vsel %vm14744_vm15, %v13954_v47, %v7011_v41 }
 0x415   : > { %vm7679_vm4 = vcmp.lt.s32.totalorder %v7659_v63, 2  ;;  %v7686_v19 = vsel %vm7678_vm1, %v7665_v27, %v7668_v33  ;;  %v7694_v11 = vshll.u32 %v7654_v15, 8  ;;  %v7246_v31 = vand.u32 2147483647, %v7245_v13 }
 0x416   : > { %v7248_v30 = vcvt.s32.f32 %v7241_v51  ;;  %v7479_v26 = vshll.u32 %v14670_v62, %v14753_v36  ;;  %v7687_v32 = vsel %vm7681_vm2, %v7674_v8, 920167782  ;;  %v7682_v43 = vsel %vm7678_vm1, %v7662_v22, %v7665_v27 }
 0x417   : > { %v7684_v50 = vsel %vm7680_vm3, %v7668_v33, %v7683_v59  ;;  %v7688_v18 = vsel %vm7680_vm3, %v7671_v17, %v7687_v32  ;;  %v7690_v49 = vsel %vm7678_vm1, %v7668_v33, %v7671_v17  ;;  %v14794_v12 = vpop.eup %8802  ;;  %v7480_v15 = vshrl.u32 %v7462_v38, %v7478_v58 }
 0x418   : > { %v7484_v13 = vshll.u32 %v7483_v6, 23  ;;  %v7689_v4 = vsel %vm7679_vm4, %v7686_v19, %v7688_v18  ;;  %v7691_v5 = vsel %vm7681_vm2, %v7677_v29, 1326507024  ;;  %v15490_v62 = vstv %s14358_s0  ;;  %s14940_s0 = sld [smem:[#allocation2 + $0xbe]] }
 0x419   : > { %v6671_v36 = vmul.f32 %v15490_v62, %v14717_v20  ;;  %vm7168_vm5 = vcmp.lt.s32.totalorder %v14145_v35, 0  ;;  %v7692_v0 = vsel %vm7680_vm3, %v7674_v8, %v7691_v5  ;;  %v15491_v17 = vstv %s14392_s3  ;;  %s15002_s3 = sld [smem:[#allocation2 + $0x13e]] }
 0x41a   : > { %v14803_v14 = vmul.u32.u64.low %v7694_v11, %v7689_v4  ;;  %v14804_v45 = vmul.u32.u64.high %v7694_v11, %v7689_v4, %v14803_v14  ;;  %v6679_v33 = vmul.f32 %v15491_v17, %v14717_v20  ;;  %8806 = vcosq.f32 %v7014_v56 }
 0x41b   : > { %v7685_v58 = vsel %vm7679_vm4, %v7682_v43, %v7684_v50  ;;  %v7693_v41 = vsel %vm7679_vm4, %v7690_v49, %v7692_v0  ;;  %v15492_v24 = vstv %s14324_s23  ;;  %8808 = vsinq.f32 %v7014_v56  ;;  %s14899_s23 = sld [smem:[#allocation2 + $0x9e]] }
 0x41c   : > { %v6667_v52 = vmul.f32 %v15492_v24, %v14733_v37  ;;  %v14819_v48 = vmul.u32.u64.low %v7694_v11, %v7693_v41  ;;  %v14820_v51 = vmul.u32.u64.high %v7694_v11, %v7693_v41, %v14819_v48  ;;  %v8805_v27 = vpop.eup %8804  ;;  %vm6885_vm6 = vcmp.eq.s32.totalorder %v14727_v9, 0 }
 0x41d   : > { %v7013_v20 = vsel %vm6928_vm14, %v7012_v54, %v14367_v46  ;;  %v7249_v8 = vmul.f32 %v7248_v30, %v7246_v31  ;;  %v7481_v63 = vor.u32 %v7480_v15, %v7479_v26  ;;  %v7485_v38 = vor.u32 4788187, %v7484_v13 }
 0x41e   : > { %v15493_v22 = vstv %s14390_s24  ;;  %v15494_v29 = vstv %s14406_s4  ;;  %v7701_v56 = vmul.u32 %v7694_v11, %v7685_v58  ;;  %v7704_v19 = vadd.s32 1, %v14804_v45  ;;  %s14999_s24 = sld [smem:[#allocation2 + $0x11e]] }
 0x41f   : > { %v6675_v6 = vmul.f32 %v15493_v22, %v14733_v37  ;;  %v6683_v59 = vmul.f32 %v15494_v29, %v14733_v37  ;;  %v6656_v32 = vadd.f32 %v14738_v2, %v14665_v40  ;;  %v6664_v46 = vadd.f32 %v14770_v60, %v14677_v25  ;;  %s15017_s4 = sld [smem:[#allocation2 + $0x19e]] }
 0x420   : > { %v6672_v54 = vadd.f32 %v6671_v36, %v14679_v16  ;;  %v6680_v31 = vadd.f32 %v6679_v33, %v14693_v34  ;;  %vm6778_vm7 = vweird.f32 %v15477_v55  ;;  %v6783_v37 = vxor.u32 2147483648, %v8805_v27 }
 0x421   : > { %v6786_v30 = vxor.u32 2147483648, %v14794_v12  ;;  %vm6884_vm8 = vcmp.lt.s32.totalorder %v14727_v9, 2  ;;  %v7015_v11 = vsel %vm14744_vm15, 0, %v7013_v20  ;;  %vm7703_vm9 = vc.u32 %v14820_v51, %v14803_v14 }
 0x422   : > { %v7250_v40 = vxor.u32 2147483648, %v7249_v8  ;;  %v7486_v25 = vand.u32 2147483647, %v7485_v38  ;;  %v7488_v16 = vcvt.s32.f32 %v7481_v63  ;;  %v7705_v34 = vsel %vm7703_vm9, %v7704_v19, %v14804_v45 }
 0x423   : > { %vm6781_vm10 = vcmp.lt.s32.totalorder %v14740_v21, 2  ;;  %vm6782_vm11 = vcmp.eq.s32.totalorder %v14740_v21, 0  ;;  %vm6785_vm12 = vcmp.eq.s32.totalorder %v14740_v21, 2  ;;  %v7706_v2 = vadd.s32 %v7705_v34, %v7701_v56 }
 0x424   : > { %v14861_v1 = vadd.f32 %v14765_v42, %v6656_v32  ;;  %v14863_v60 = vadd.f32 %v6667_v52, %v6664_v46  ;;  %v14865_v26 = vadd.f32 %v6675_v6, %v6672_v54  ;;  %vm6888_vm13 = vcmp.eq.s32.totalorder %v14727_v9, 2 }
 0x425   : > { %v14868_v43 = vadd.f32 %v6683_v59, %v6680_v31  ;;  %v7019_v50 = vadd.s32 3, %v7015_v11  ;;  %v15495_v18 = vand.u32 2147483647, %v14145_v35  ;;  %v7707_v15 = vadd.s32 536870912, %v7706_v2 }
 0x426   : > { %v6784_v42 = vsel %vm6782_vm11, %v14794_v12, %v6783_v37  ;;  %v6787_v13 = vsel %vm6785_vm12, %v6786_v30, %v8805_v27  ;;  %v7251_v4 = vsel %vm7168_vm5, %v7250_v40, %v7249_v8  ;;  %v7489_v5 = vmul.f32 %v7488_v16, %v7486_v25 }
 0x427   : > { %vm14872_vm14 = vcmp.le.f32.partialorder %v15495_v18, 0.7853982  ;;  %v7386_v62 = vstv %s14810_s1  ;;  %v7390_v36 = vstv %s14817_s2  ;;  %v7394_v0 = vstv %s14826_s12  ;;  %v8807_v24 = vpop.eup %8806 }
 0x428   : > { %v14882_v45 = vshrl.u32 %v7707_v15, 30  ;;  %v6890_v17 = vsel %vm6888_vm13, %v6786_v30, %v8805_v27  ;;  %v7252_v33 = vsub.s32 4, %v14487_v28  ;;  %v7398_v58 = vstv %s14834_s13  ;;  %v8809_v27 = vpop.eup %8808 }
 0x429   : > { %v7402_v41 = vstv %s14843_s25  ;;  %v6788_v52 = vsel %vm6781_vm10, %v6784_v42, %v6787_v13  ;;  %v6887_v48 = vsel %vm6885_vm6, %v14794_v12, %v6783_v37  ;;  %v7254_v20 = vsel %vm14872_vm14, %v14145_v35, %v7251_v4 }
 0x42a   : > { %v7709_v8 = vshll.u32 %v14882_v45, 30  ;;  %v7020_v63 = vand.u32 3, %v7019_v50  ;;  %v14896_v38 = vand.u32 3, %v7015_v11  ;;  %v7490_v22 = vxor.u32 2147483648, %v7489_v5 }
 0x42b   : > { %v7614_v6 = vstv %s14852_s27  ;;  %v15498_v21 = vand.u32 2147483647, %v14300_v10  ;;  %vm7408_vm0 = vcmp.lt.s32.totalorder %v14300_v10, 0  ;;  %v7618_v12 = vstv %s14858_s28 }
 0x42c   : > { %v14909_v59 = vsub.s32 %v7706_v2, %v7709_v8  ;;  %v6789_v56 = vsel %vm6778_vm7, nan, %v6788_v52  ;;  %v6891_v19 = vsel %vm6884_vm8, %v6887_v48, %v6890_v17  ;;  %vm7018_vm1 = vweird.f32 %v13954_v47 }
 0x42d   : > { %vm14903_vm15 = vcmp.le.f32.partialorder %v15498_v21, 0.7853982  ;;  %v7253_v32 = vsel %vm7168_vm5, %v7252_v33, %v14487_v28  ;;  %8810 = vcosq.f32 %v7254_v20  ;;  %v7023_v46 = vxor.u32 2147483648, %v8809_v27 }
 0x42e   : > { %v7026_v54 = vxor.u32 2147483648, %v8807_v24  ;;  %8812 = vsinq.f32 %v7254_v20  ;;  %v7712_v31 = vsub.s32 0, %v14909_v59  ;;  %vm7022_vm2 = vcmp.eq.s32.totalorder %v7020_v63, 0 }
 0x42f   : > { %vm7025_vm3 = vcmp.eq.s32.totalorder %v7020_v63, 2  ;;  %vm7124_vm4 = vcmp.lt.s32.totalorder %v14896_v38, 2  ;;  %vm7125_vm6 = vcmp.eq.s32.totalorder %v14896_v38, 0  ;;  %v7491_v9 = vsel %vm7408_vm0, %v7490_v22, %v7489_v5 }
 0x430   : > { %v6892_v28 = vsel %vm6778_vm7, nan, %v6891_v19  ;;  %v15501_v37 = vstv %s14420_s6  ;;  %vm7021_vm5 = vcmp.lt.s32.totalorder %v7020_v63, 2  ;;  %v8506_v11 = vmin.u32 %v7712_v31, %v14909_v59  ;;  %s15019_s6 = sld [smem:[#allocation2 + $0x1be]] }
 0x431   : > { %v6895_v30 = vmul.f32 %v15501_v37, %v6789_v56  ;;  %v6903_v40 = vmul.f32 %v6902_v3, %v6789_v56  ;;  %v6911_v25 = vmul.f32 %v6910_v53, %v6789_v56  ;;  %v6919_v16 = vmul.f32 %v6918_v44, %v6789_v56 }
 0x432   : > { %v7255_v34 = vsel %vm14872_vm14, 0, %v7253_v32  ;;  %v7024_v2 = vsel %vm7022_vm2, %v8807_v24, %v7023_v46  ;;  %v7027_v55 = vsel %vm7025_vm3, %v7026_v54, %v8809_v27  ;;  %v7494_v50 = vsel %vm14903_vm15, %v14300_v10, %v7491_v9 }
 0x433   : > { %v7714_v18 = vclz %v8506_v11  ;;  %v15502_v15 = vstv %s14499_s5  ;;  %v15503_v13 = vstv %s14503_s7  ;;  %vm7128_vm7 = vcmp.eq.s32.totalorder %v14896_v38, 2  ;;  %s15031_s5 = sld [smem:[#allocation2 + $0x9f]] }
 0x434   : > { %v6899_v42 = vmul.f32 %v15502_v15, %v6892_v28  ;;  %v6907_v3 = vmul.f32 %v15503_v13, %v6892_v28  ;;  %v7622_v53 = vstv %s14899_s23  ;;  %v6896_v44 = vadd.f32 %v6895_v30, %v14861_v1  ;;  %s15033_s7 = sld [smem:[#allocation2 + $0x3f]] }
 0x435   : > { %v15504_v49 = vstv %s14516_s9  ;;  %v15505_v5 = vstv %s14529_s11  ;;  %v7259_v33 = vadd.s32 3, %v7255_v34  ;;  %v7028_v52 = vsel %vm7021_vm5, %v7024_v2, %v7027_v55  ;;  %s15061_s9 = sld [smem:[#allocation2 + $0x11f]] }
 0x436   : > { %v6915_v4 = vmul.f32 %v15504_v49, %v6892_v28  ;;  %v6923_v17 = vmul.f32 %v15505_v5, %v6892_v28  ;;  %v7492_v48 = vsub.s32 4, %v14647_v39  ;;  %8814 = vcosq.f32 %v7494_v50  ;;  %s15071_s11 = sld [smem:[#allocation2 + $0x19f]] }
 0x437   : > { %v8507_v20 = vadd.s32 4294967294, %v7714_v18  ;;  %v6904_v8 = vadd.f32 %v6903_v40, %v14863_v60  ;;  %v6912_v22 = vadd.f32 %v6911_v25, %v14865_v26  ;;  %v6920_v21 = vadd.f32 %v6919_v16, %v14868_v43 }
 0x438   : > { %8816 = vsinq.f32 %v7494_v50  ;;  %v7127_v1 = vsel %vm7125_vm6, %v8807_v24, %v7023_v46  ;;  %v7130_v56 = vsel %vm7128_vm7, %v7026_v54, %v8809_v27  ;;  %v7702_v63 = vadd.s32 %v14803_v14, %v14820_v51 }
 0x439   : > { %vm8508_vm8 = vcmp.lt.s32.totalorder %v8507_v20, 0  ;;  %v7029_v19 = vsel %vm7018_vm1, nan, %v7028_v52  ;;  %v7260_v32 = vand.u32 3, %v7259_v33  ;;  %v14964_v31 = vand.u32 3, %v7255_v34 }
 0x43a   : > { %v7717_v60 = vsel %vm8508_vm8, 0, %v8507_v20  ;;  %v7493_v26 = vsel %vm7408_vm0, %v7492_v48, %v14647_v39  ;;  %v8811_v46 = vpop.eup %8810  ;;  %v6900_v54 = vadd.f32 %v6899_v42, %v6896_v44  ;;  %v6908_v14 = vadd.f32 %v6907_v3, %v6904_v8 }
 0x43b   : > { %v7718_v43 = vsub.s32 32, %v7717_v60  ;;  %v7719_v24 = vshll.u32 %v14909_v59, %v7717_v60  ;;  %v7722_v27 = vsub.s32 4294967266, %v7717_v60  ;;  %v7131_v51 = vsel %vm7124_vm4, %v7127_v1, %v7130_v56  ;;  %v8813_v28 = vpop.eup %8812 }
 0x43c   : > { %v7626_v9 = vstv %s14940_s0  ;;  %v6916_v37 = vadd.f32 %v6915_v4, %v6912_v22  ;;  %v6924_v30 = vadd.f32 %v6923_v17, %v6920_v21  ;;  %v15506_v39 = vstv %s14535_s14  ;;  %s15078_s14 = sld [smem:[#allocation2 + $0x1bf]] }
 0x43d   : > { %v7720_v11 = vshrl.u32 %v7702_v63, %v7718_v43  ;;  %v7723_v40 = vadd.s32 127, %v7722_v27  ;;  %v7135_v25 = vmul.f32 %v15506_v39, %v7029_v19  ;;  %vm7262_vm9 = vcmp.eq.s32.totalorder %v7260_v32, 0 }
 0x43e   : > { %vm7365_vm10 = vcmp.eq.s32.totalorder %v14964_v31, 0  ;;  %v7495_v59 = vsel %vm14903_vm15, 0, %v7493_v26  ;;  %v7132_v38 = vsel %vm7018_vm1, nan, %v7131_v51  ;;  %vm7258_vm11 = vweird.f32 %v14145_v35 }
 0x43f   : > { %vm7265_vm12 = vcmp.eq.s32.totalorder %v7260_v32, 2  ;;  %vm7364_vm13 = vcmp.lt.s32.totalorder %v14964_v31, 2  ;;  %v7721_v16 = vor.u32 %v7720_v11, %v7719_v24  ;;  %v7724_v34 = vshll.u32 %v7723_v40, 23 }
 0x440   : > { %v15507_v2 = vstv %s14544_s26  ;;  %v7151_v50 = vmul.f32 %v7150_v61, %v7029_v19  ;;  %v7263_v29 = vxor.u32 2147483648, %v8813_v28  ;;  %v7266_v18 = vxor.u32 2147483648, %v8811_v46  ;;  %s15088_s26 = sld [smem:[#allocation4]] }
 0x441   : > { %v7143_v55 = vmul.f32 %v15507_v2, %v7029_v19  ;;  %v7159_v47 = vmul.f32 %v7158_v7, %v7029_v19  ;;  %v7499_v15 = vadd.s32 3, %v7495_v59  ;;  %v7725_v42 = vor.u32 4788187, %v7724_v34 }
 0x442   : > { %v7728_v13 = vcvt.s32.f32 %v7721_v16  ;;  %v7136_v3 = vadd.f32 %v7135_v25, %v6900_v54  ;;  %v15508_v44 = vstv %s14556_s15  ;;  %vm7261_vm14 = vcmp.lt.s32.totalorder %v7260_v32, 2  ;;  %s15090_s15 = sld [smem:[#allocation4 + $0x1]] }
 0x443   : > { %v7139_v49 = vmul.f32 %v15508_v44, %v7132_v38  ;;  %vm7368_vm15 = vcmp.eq.s32.totalorder %v14964_v31, 2  ;;  %v15509_v4 = vstv %s14562_s16  ;;  %v7155_v17 = vmul.f32 %v7154_v23, %v7132_v38  ;;  %v8815_v48 = vpop.eup %8814  ;;  %s15092_s16 = sld [smem:[#allocation4 + $0x2]] }
 0x444   : > { %v7147_v5 = vmul.f32 %v15509_v4, %v7132_v38  ;;  %v15510_v33 = vstv %s14668_s20  ;;  %v7726_v61 = vand.u32 2147483647, %v7725_v42  ;;  %v7144_v20 = vadd.f32 %v7143_v55, %v6908_v14 }
 0x445   : > { %v7163_v52 = vmul.f32 %v15510_v33, %v7132_v38  ;;  %v7152_v8 = vadd.f32 %v7151_v50, %v6916_v37  ;;  %v7264_v7 = vsel %vm7262_vm9, %v8811_v46, %v7263_v29  ;;  %v7267_v22 = vsel %vm7265_vm12, %v7266_v18, %v8813_v28  ;;  %v8817_v21 = vpop.eup %8816 }
 0x446   : > { %v7160_v1 = vadd.f32 %v7159_v47, %v6924_v30  ;;  %v7500_v56 = vand.u32 3, %v7499_v15  ;;  %v7729_v63 = vmul.f32 %v7728_v13, %v7726_v61  ;;  %v7732_v19 = vsub.s32 4, %v14882_v45 }
 0x447   : > { %v7140_v60 = vadd.f32 %v7139_v49, %v7136_v3  ;;  %v7603_v23 = vand.u32 3, %v7495_v59  ;;  %v15511_v26 = vand.u32 2147483647, %v14612_v57  ;;  %vm7648_vm1 = vcmp.lt.s32.totalorder %v14612_v57, 0 }
 0x448   : > { %v7268_v24 = vsel %vm7261_vm14, %v7264_v7, %v7267_v22  ;;  %v7367_v27 = vsel %vm7365_vm10, %v8811_v46, %v7263_v29  ;;  %v7370_v54 = vsel %vm7368_vm15, %v7266_v18, %v8813_v28  ;;  %vm7498_vm2 = vweird.f32 %v14300_v10 }
 0x449   : > { %vm15006_vm0 = vcmp.le.f32.partialorder %v15511_v26, 0.7853982  ;;  %v7730_v14 = vxor.u32 2147483648, %v7729_v63  ;;  %v7148_v51 = vadd.f32 %v7147_v5, %v7144_v20  ;;  %v7156_v37 = vadd.f32 %v7155_v17, %v7152_v8 }
 0x44a   : > { %v7503_v30 = vxor.u32 2147483648, %v8817_v21  ;;  %v7506_v11 = vxor.u32 2147483648, %v8815_v48  ;;  %vm7502_vm3 = vcmp.eq.s32.totalorder %v7500_v56, 0  ;;  %vm7505_vm4 = vcmp.eq.s32.totalorder %v7500_v56, 2 }
 0x44b   : > { %v7731_v32 = vsel %vm7648_vm1, %v7730_v14, %v7729_v63  ;;  %v7733_v40 = vsel %vm7648_vm1, %v7732_v19, %v14882_v45  ;;  %v7164_v46 = vadd.f32 %v7163_v52, %v7160_v1  ;;  %v7269_v28 = vsel %vm7258_vm11, nan, %v7268_v24 }
 0x44c   : > { %v7371_v39 = vsel %vm7364_vm13, %v7367_v27, %v7370_v54  ;;  %v7734_v25 = vsel %vm15006_vm0, %v14612_v57, %v7731_v32  ;;  %vm7501_vm6 = vcmp.lt.s32.totalorder %v7500_v56, 2  ;;  %vm7605_vm5 = vcmp.eq.s32.totalorder %v7603_v23, 0 }
 0x44d   : > { %vm7608_vm7 = vcmp.eq.s32.totalorder %v7603_v23, 2  ;;  %8818 = vcosq.f32 %v7734_v25  ;;  %v7504_v45 = vsel %vm7502_vm3, %v8815_v48, %v7503_v30  ;;  %v7507_v31 = vsel %vm7505_vm4, %v7506_v11, %v8817_v21 }
 0x44e   : > { %v7735_v59 = vsel %vm15006_vm0, 0, %v7733_v40  ;;  %8820 = vsinq.f32 %v7734_v25  ;;  %v7372_v38 = vsel %vm7258_vm11, nan, %v7371_v39  ;;  %v15514_v16 = vstv %s14675_s21 }
 0x44f   : > { %v7375_v34 = vmul.f32 %v15514_v16, %v7269_v28  ;;  %v15515_v2 = vstv %s14683_s29  ;;  %vm7604_vm8 = vcmp.lt.s32.totalorder %v7603_v23, 2  ;;  %v7391_v50 = vmul.f32 %v7390_v36, %v7269_v28  ;;  %s15519_s29 = sld [smem:[#allocation19_spill]] }
 0x450   : > { %v7383_v55 = vmul.f32 %v15515_v2, %v7269_v28  ;;  %v7399_v29 = vmul.f32 %v7398_v58, %v7269_v28  ;;  %v7607_v18 = vsel %vm7605_vm5, %v8815_v48, %v7503_v30  ;;  %v7610_v47 = vsel %vm7608_vm7, %v7506_v11, %v8817_v21 }
 0x451   : > { %v7508_v15 = vsel %vm7501_vm6, %v7504_v45, %v7507_v31  ;;  %v7630_v42 = vstv %s14999_s24  ;;  %v7634_v13 = vstv %s15002_s3  ;;  %v7739_v35 = vadd.s32 3, %v7735_v59 }
 0x452   : > { %v15516_v3 = vstv %s14691_s22  ;;  %v7387_v49 = vmul.f32 %v7386_v62, %v7372_v38  ;;  %v7638_v4 = vstv %s15017_s4  ;;  %v7642_v5 = vstv %s15019_s6 }
 0x453   : > { %v7379_v44 = vmul.f32 %v15516_v3, %v7372_v38  ;;  %v7376_v17 = vadd.f32 %v7375_v34, %v7140_v60  ;;  %v7384_v36 = vadd.f32 %v7383_v55, %v7148_v51  ;;  %v7395_v58 = vmul.f32 %v7394_v0, %v7372_v38 }
 0x454   : > { %v7611_v33 = vsel %vm7604_vm8, %v7607_v18, %v7610_v47  ;;  %v7392_v52 = vadd.f32 %v7391_v50, %v7156_v37  ;;  %v7400_v61 = vadd.f32 %v7399_v29, %v7164_v46  ;;  %v7403_v48 = vmul.f32 %v7402_v41, %v7372_v38 }
 0x455   : > { %v7509_v62 = vsel %vm7498_vm2, nan, %v7508_v15  ;;  %vm7738_vm9 = vweird.f32 %v14612_v57  ;;  %v7740_v20 = vand.u32 3, %v7739_v35  ;;  %v7843_v0 = vand.u32 3, %v7735_v59  ;;  %s197_s22 = scalar_lea.vmem %s15519_s29, %s15518_s19 }
 0x456   : > { %v7854_v8 = vstv %s15022_s30  ;;  %v7612_v7 = vsel %vm7498_vm2, nan, %v7611_v33  ;;  %v7858_v22 = vstv %s15033_s7  ;;  %v7862_v21 = vstv %s15031_s5 }
 0x457   : > { %v7866_v41 = vstv %s15037_s8  ;;  %v7380_v1 = vadd.f32 %v7379_v44, %v7376_v17  ;;  %v7388_v56 = vadd.f32 %v7387_v49, %v7384_v36  ;;  %v7615_v63 = vmul.f32 %v7614_v6, %v7509_v62 }
 0x458   : > { %v7623_v19 = vmul.f32 %v7622_v53, %v7509_v62  ;;  %v7396_v60 = vadd.f32 %v7395_v58, %v7392_v52  ;;  %v7404_v23 = vadd.f32 %v7403_v48, %v7400_v61  ;;  %v7631_v26 = vmul.f32 %v7630_v42, %v7509_v62 }
 0x459   : > { %v7639_v43 = vmul.f32 %v7638_v4, %v7509_v62  ;;  %v7619_v24 = vmul.f32 %v7618_v12, %v7612_v7  ;;  %vm7741_vm10 = vcmp.lt.s32.totalorder %v7740_v20, 2  ;;  %vm7844_vm11 = vcmp.lt.s32.totalorder %v7843_v0, 2 }
 0x45a   : > { %vm7845_vm12 = vcmp.eq.s32.totalorder %v7843_v0, 0  ;;  %v8819_v10 = vpop.eup %8818  ;;  %v7627_v27 = vmul.f32 %v7626_v9, %v7612_v7  ;;  %v7635_v54 = vmul.f32 %v7634_v13, %v7612_v7  ;;  %vm7745_vm13 = vcmp.eq.s32.totalorder %v7740_v20, 2 }
 0x45b   : > { %vm7848_vm14 = vcmp.eq.s32.totalorder %v7843_v0, 2  ;;  %v8821_v6 = vpop.eup %8820  ;;  %v7616_v53 = vadd.f32 %v7615_v63, %v7380_v1  ;;  %v7624_v14 = vadd.f32 %v7623_v19, %v7388_v56  ;;  %vm7742_vm15 = vcmp.eq.s32.totalorder %v7740_v20, 0 }
 0x45c   : > { %v7746_v12 = vxor.u32 2147483648, %v8819_v10  ;;  %v7632_v51 = vadd.f32 %v7631_v26, %v7396_v60  ;;  %v7640_v37 = vadd.f32 %v7639_v43, %v7404_v23  ;;  %v7643_v30 = vmul.f32 %v7642_v5, %v7612_v7 }
 0x45d   : > { %v7743_v9 = vxor.u32 2147483648, %v8821_v6  ;;  %v7870_v40 = vstv %s15061_s9  ;;  %v7874_v46 = vstv %s15067_s10  ;;  %v7878_v25 = vstv %s15071_s11 }
 0x45e   : > { %v7747_v11 = vsel %vm7745_vm13, %v7746_v12, %v8821_v6  ;;  %v7850_v32 = vsel %vm7848_vm14, %v7746_v12, %v8821_v6  ;;  %v7882_v45 = vstv %s15078_s14  ;;  %v7620_v31 = vadd.f32 %v7619_v24, %v7616_v53 }
 0x45f   : > { %v7744_v28 = vsel %vm7742_vm15, %v8819_v10, %v7743_v9  ;;  %v7847_v39 = vsel %vm7845_vm12, %v8819_v10, %v7743_v9  ;;  %v7628_v59 = vadd.f32 %v7627_v27, %v7624_v14  ;;  %v7636_v34 = vadd.f32 %v7635_v54, %v7632_v51 }
 0x460   : > { %v7748_v38 = vsel %vm7741_vm10, %v7744_v28, %v7747_v11  ;;  %v7851_v16 = vsel %vm7844_vm11, %v7847_v39, %v7850_v32  ;;  %v7644_v2 = vadd.f32 %v7643_v30, %v7640_v37  ;;  %v7886_v17 = vstv %s15088_s26 }
 0x461   : > { %v7749_v55 = vsel %vm7738_vm9, nan, %v7748_v38  ;;  %v7852_v50 = vsel %vm7738_vm9, nan, %v7851_v16  ;;  %v7894_v36 = vstv %s15090_s15  ;;  %v7902_v57 = vstv %s15092_s16 }
 0x462   : > { %v7855_v29 = vmul.f32 %v7854_v8, %v7749_v55  ;;  %v7859_v18 = vmul.f32 %v7858_v22, %v7852_v50  ;;  %v7863_v47 = vmul.f32 %v7862_v21, %v7749_v55  ;;  %v7867_v15 = vmul.f32 %v7866_v41, %v7852_v50 }
 0x463   : > { %v7871_v42 = vmul.f32 %v7870_v40, %v7749_v55  ;;  %v7875_v13 = vmul.f32 %v7874_v46, %v7852_v50  ;;  %v7879_v35 = vmul.f32 %v7878_v25, %v7749_v55  ;;  %v7883_v3 = vmul.f32 %v7882_v45, %v7852_v50 }
 0x464   : > { %v7856_v44 = vadd.f32 %v7855_v29, %v7620_v31  ;;  %v7864_v49 = vadd.f32 %v7863_v47, %v7628_v59  ;;  %v7910_v52 = vstv %s15096_s17  ;;  %vm7891_vm0 = vcmask 64512  }
 0x465   : > { %v7872_v4 = vadd.f32 %v7871_v42, %v7636_v34  ;;  %v7880_v5 = vadd.f32 %v7879_v35, %v7644_v2 }
 0x466   : > { %v7860_v58 = vadd.f32 %v7859_v18, %v7856_v44  ;;  %v7868_v33 = vadd.f32 %v7867_v15, %v7864_v49 }
 0x467   : > { %v7876_v61 = vadd.f32 %v7875_v13, %v7872_v4  ;;  %v7884_v48 = vadd.f32 %v7883_v3, %v7880_v5 }
 0x468   : > { %v7887_v62 = vadd.f32 %v7886_v17, %v7860_v58  ;;  %v7895_v20 = vadd.f32 %v7894_v36, %v7868_v33 }
 0x469   : > { %v7903_v0 = vadd.f32 %v7902_v57, %v7876_v61  ;;  %v7911_v8 = vadd.f32 %v7910_v52, %v7884_v48 }
 0x46a   : > { %v7888_v7 = vmax.f32 %v7887_v62, 1e-06  ;;  %v7896_v22 = vmax.f32 %v7895_v20, 1e-06 }
 0x46b   : > { %v7904_v21 = vmax.f32 %v7903_v0, 1e-06  ;;  %v7912_v41 = vmax.f32 %v7911_v8, 1e-06 }
 0x46c   : > { %8822 = vlog2.f32 %v7888_v7 }
 0x46d   : > { %8824 = vlog2.f32 %v7896_v22 }
 0x46e   : > { %8826 = vlog2.f32 %v7904_v21 }
 0x46f   : > { %8828 = vlog2.f32 %v7912_v41 }
 0x479   : > { %v8823_v1 = vpop.eup %8822 }
 0x47a   : > { %v8825_v56 = vpop.eup %8824  ;;  %v7890_v63 = vmul.f32 0.6931472, %v8823_v1 }
 0x47b   : > { %v8827_v19 = vpop.eup %8826  ;;  %v7898_v60 = vmul.f32 0.6931472, %v8825_v56 }
 0x47c   : > { %v8829_v23 = vpop.eup %8828  ;;  %7892 = vst.msk [vmem:[%s197_s22] sm:$0xff] %vm7891_vm0, %v7890_v63  ;;  %v7906_v26 = vmul.f32 0.6931472, %v8827_v19 }
 0x47d   : > { %8522 = vst.msk [vmem:[%s197_s22 + $0x8] sm:$0xff] %vm7891_vm0, %v7898_v60  ;;  %v7914_v43 = vmul.f32 0.6931472, %v8829_v23 }
 0x47e   : > { %8524 = vst.msk [vmem:[%s197_s22 + $0x10] sm:$0xff] %vm7891_vm0, %v7906_v26 }
 0x47f   : > { %8526 = vst.msk [vmem:[%s197_s22 + $0x18] sm:$0xff] %vm7891_vm0, %v7914_v43 }
 0x480 PF: > { %s15520_s1 = sld [smem:[#allocation8_spill]] }
 0x486   : > { %s15_s12 = sadd.s32 1, %s15520_s1  }
 0x487   : > { %p12_p5 = scmp.ge.s32.totalorder %s15_s12, 4  }
 0x489   :  { %14 = sbr.rel (!%p12_p5) target bundleno = 7 (0x7), region = 77 }
 0x48e   :  { %7938 = vsyncpa [#allocation3], 1 }
 0x48f   :  { %7940 = vsyncpa [#allocation3 + $0x1], 1 }
 0x490   :  { %7941 = vsyncpa [#allocation5], 1 }

</bundles_post_ra>
